<compile_context>
chip_gen: v5e
topology: v5e:2x2
jax: 0.10.0
libtpu: 0.0.40
codegen_flags: <defaults>
</compile_context>

<pallas_src>
import math

import jax
import jax.numpy as jnp
from jax.experimental import pallas as pl
from jax.experimental.pallas import tpu as pltpu

# ----------------------------- config (small synthetic shapes) -----------------------------
HIDDEN = 32
LAYER_NUM = 3
LAST_ITEM = True
ITEM_MAX_LENGTH = 8     # length of a user's item-neighbor mailbox
USER_MAX_LENGTH = 8     # length of an item's user-neighbor mailbox
USER_NUM = 50
ITEM_NUM = 40
BATCH = 2               # number of graphs in the batch
USERS_PER_GRAPH = 3
ITEMS_PER_GRAPH = 5
N_NEG = 4

_VMEM = pl.BlockSpec(memory_space=pltpu.MemorySpace.VMEM)
_SMEM = pl.BlockSpec(memory_space=pltpu.MemorySpace.SMEM)


# ----------------------------- in-kernel helpers -----------------------------
def _softmax_lastdim(e):
    # approx reciprocal runs on the EUP slot; small relative error vs exact softmax (inference).
    m = jnp.max(e, axis=-1, keepdims=True)
    p = jnp.exp(e - m)
    return p * pl.reciprocal(jnp.sum(p, axis=-1, keepdims=True), approx=True)


# ----------------------------- fused per-layer kernel -----------------------------
def dgsr_layer_kernel(
        # SMEM index inputs
        u_mail_idx_ref, i_mail_idx_ref, re_order_ref, last_node_u_ref, last_node_i_ref,
        # VMEM inputs (bf16 features/weights, f32 time tables)
        user_old_ref, item_old_ref, tq_tab_ref, tk_tab_ref,
        wu_ref, wi_ref, agg_ref, uu_ref, iu_ref,
        # outputs (bf16)
        user_new_ref, item_new_ref,
        # scratch (f32)
        user_hw_ref, item_hw_ref, nbr_item_ref, nbr_user_ref, tq_ref, tk_ref,
        last_u_ref, last_i_ref):
    f32 = jnp.float32
    bf16 = jnp.bfloat16
    n_u, h = user_hw_ref.shape
    n_i = item_hw_ref.shape[0]
    l_i = nbr_item_ref.shape[1]
    l_u = nbr_user_ref.shape[1]
    scale = 1.0 / math.sqrt(float(h))

    # ---- user_weight / item_weight applied ONCE to the node tables (commutes with the gather,
    #      no bias).  bf16 MXU matmuls, f32 accumulation into VMEM scratch. ----
    user_hw_ref[...] = jnp.dot(user_old_ref[...], wu_ref[...], preferred_element_type=f32)
    item_hw_ref[...] = jnp.dot(item_old_ref[...], wi_ref[...], preferred_element_type=f32)

    # ---- in-kernel mailbox / time-encoding / last-row gathers from the transformed tables ----
    # TODO(synk): at realistic node counts replace these per-row reads with a node-axis grid +
    #             PrefetchScalarGridSpec (pl.Element index_maps) or manual make_async_copy gathers.
    for n in range(n_u):
        for l in range(l_i):
            idx = u_mail_idx_ref[n, l]
            nbr_item_ref[n, l:l + 1, :] = item_hw_ref[pl.ds(idx, 1), :]
            ro = re_order_ref[n, l]
            tq_ref[n, l:l + 1, :] = tq_tab_ref[pl.ds(ro, 1), :]
            tk_ref[n, l:l + 1, :] = tk_tab_ref[pl.ds(ro, 1), :]
        lu = last_node_u_ref[n]
        last_u_ref[n:n + 1, :] = item_hw_ref[pl.ds(lu, 1), :]
    for n in range(n_i):
        for l in range(l_u):
            idx = i_mail_idx_ref[n, l]
            nbr_user_ref[n, l:l + 1, :] = user_hw_ref[pl.ds(idx, 1), :]
        li = last_node_i_ref[n]
        last_i_ref[n:n + 1, :] = user_hw_ref[pl.ds(li, 1), :]

    # ---- 'by' edges (item -> user): ORGAT long attention + short "att" attention ----
    user_h = user_hw_ref[...]                                                       # [N_U, H]
    nbr_item = nbr_item_ref[...]                                                    # [N_U, L_i, H]
    tq = tq_ref[...]
    tk = tk_ref[...]
    e = jnp.sum((tq + nbr_item) * user_h[:, None, :], axis=2) * scale               # [N_U, L_i]
    alpha = _softmax_lastdim(e)
    h_long = jnp.sum(alpha[:, :, None] * (nbr_item + tk), axis=1)                   # [N_U, H]

    last_u = last_u_ref[...]                                                        # [N_U, H]
    e1 = jnp.sum(last_u[:, None, :] * nbr_item, axis=2) * scale                     # [N_U, L_i]
    alpha1 = _softmax_lastdim(e1)
    h_short = jnp.sum(alpha1[:, :, None] * nbr_item, axis=1)                        # [N_U, H]

    # agg_gate_u(cat([h_long, h_short])): single [N_U, 2H] @ [2H, H] matmul (cheap lane concat).
    user_now = jnp.dot(jnp.concatenate([h_long, h_short], axis=-1).astype(bf16),
                       agg_ref[...], preferred_element_type=f32)                    # [N_U, H]

    # ---- 'pby' edges (user -> item): short "att" only (item_long='ogat' typo -> no long path) ----
    nbr_user = nbr_user_ref[...]                                                    # [N_I, L_u, H]
    last_i = last_i_ref[...]                                                        # [N_I, H]
    e2 = jnp.sum(last_i[:, None, :] * nbr_user, axis=2) * scale                     # [N_I, L_u]
    alpha2 = _softmax_lastdim(e2)
    item_now = jnp.sum(alpha2[:, :, None] * nbr_user, axis=1)                       # [N_I, H]

    # ---- 'rnn' updates: tanh(Linear_2H->H(cat([now, old]))) as single merged matmuls ----
    u_cat = jnp.concatenate([user_now.astype(bf16), user_old_ref[...]], axis=-1)    # [N_U, 2H]
    user_new_ref[...] = jnp.tanh(
        jnp.dot(u_cat, uu_ref[...], preferred_element_type=f32)).astype(user_new_ref.dtype)
    i_cat = jnp.concatenate([item_now.astype(bf16), item_old_ref[...]], axis=-1)    # [N_I, 2H]
    item_new_ref[...] = jnp.tanh(
        jnp.dot(i_cat, iu_ref[...], preferred_element_type=f32)).astype(item_new_ref.dtype)


def dgsr_layer(u_mail_idx, i_mail_idx, re_order_u, last_node_u, last_node_i,
               user_old, item_old, tq_tab, tk_tab, wu_t, wi_t, agg_t, uu_t, iu_t):
    n_u, h = user_old.shape
    n_i = item_old.shape[0]
    l_i = u_mail_idx.shape[1]
    l_u = i_mail_idx.shape[1]
    # TODO(synk): at realistic node counts add an 8-sublane-aligned node-axis grid
    #             (dimension_semantics=('parallel',) to use v7x's 2 TensorCores) and re-derive
    #             block_N for the per-chip scoped VMEM limit (64 MiB total on v7x); the toy
    #             shapes fit in a single full-array block.
    return pl.pallas_call(
        dgsr_layer_kernel,
        out_shape=(jax.ShapeDtypeStruct((n_u, h), jnp.bfloat16),
                   jax.ShapeDtypeStruct((n_i, h), jnp.bfloat16)),
        in_specs=[_SMEM] * 5 + [_VMEM] * 9,
        out_specs=(_VMEM, _VMEM),
        scratch_shapes=[
            pltpu.VMEM((n_u, h), jnp.float32),          # user_hw
            pltpu.VMEM((n_i, h), jnp.float32),          # item_hw
            pltpu.VMEM((n_u, l_i, h), jnp.float32),     # nbr_item (W-transformed mailbox)
            pltpu.VMEM((n_i, l_u, h), jnp.float32),     # nbr_user (W-transformed mailbox)
            pltpu.VMEM((n_u, l_i, h), jnp.float32),     # tq
            pltpu.VMEM((n_u, l_i, h), jnp.float32),     # tk
            pltpu.VMEM((n_u, h), jnp.float32),          # last_u
            pltpu.VMEM((n_i, h), jnp.float32),          # last_i
        ],
    )(u_mail_idx, i_mail_idx, re_order_u, last_node_u, last_node_i,
      user_old, item_old, tq_tab, tk_tab, wu_t, wi_t, agg_t, uu_t, iu_t)


# ----------------------------- fused epilogue kernel -----------------------------
def epilogue_kernel(cat_ref, umap_ref, item_emb_t_ref, score_ref):
    f32 = jnp.float32
    unified = jnp.dot(cat_ref[...], umap_ref[...], preferred_element_type=f32)      # [B, H]
    # full-catalog scores (item_embedding pre-transposed once at prepare time)
    # TODO(synk): for a realistic catalog tile this matmul over item_num with 128-multiple
    #             lane-dense 'parallel' output blocks and batch more sequences per call.
    score_ref[...] = jnp.dot(unified.astype(jnp.bfloat16), item_emb_t_ref[...],
                             preferred_element_type=f32)


def dgsr_epilogue(cat_feats, umap_t, item_emb_t):
    b = cat_feats.shape[0]
    item_num = item_emb_t.shape[1]
    return pl.pallas_call(
        epilogue_kernel,
        out_shape=jax.ShapeDtypeStruct((b, item_num), jnp.float32),
        in_specs=[_VMEM] * 3,
        out_specs=_VMEM,
    )(cat_feats, umap_t, item_emb_t)


# ----------------------------- model glue (plain JAX) -----------------------------
def graph_user(g, user_index, user_embedding):
    sizes = g["batch_num_user"]
    tmp = jnp.roll(jnp.cumsum(sizes), 1).at[0].set(0)
    return user_embedding[tmp + user_index]


def graph_item(g, last_index, item_embedding):
    sizes = g["batch_num_item"]
    tmp = jnp.roll(jnp.cumsum(sizes), 1).at[0].set(0)
    return item_embedding[tmp + last_index]


def dgsr_layer_forward(lp, user_old, item_old, static):
    return dgsr_layer(
        static["u_mail_idx"], static["i_mail_idx"], static["re_order_u"],
        static["last_node_u"], static["last_node_i"],
        user_old, item_old,
        lp["u_time_encoding"], lp["u_time_encoding_k"],
        lp["wu_t"], lp["wi_t"], lp["agg_t"], lp["uu_t"], lp["iu_t"])


def dgsr_forward(prepped, g, user_index, last_item_index, neg_tar):
    user_h = prepped["user_embedding"][g["user_id"]]           # [N_U, H] bf16
    item_h = prepped["item_embedding"][g["item_id"]]           # [N_I, H] bf16

    # graph-only index math (time ordering and "last interaction" node indices), shared by all
    # layers so computed once; only small int arrays cross the pallas_call boundary (SMEM).
    u_mail_idx = g["u_mail_idx"].astype(jnp.int32)
    i_mail_idx = g["i_mail_idx"].astype(jnp.int32)
    L_i = u_mail_idx.shape[1]
    order = jnp.argsort(jnp.argsort(g["u_mail_time"], axis=1), axis=1)
    re_order_u = (L_i - order - 1).astype(jnp.int32)
    last_slot_u = jnp.argmax(g["u_mail_time"], axis=1)
    last_node_u = jnp.take_along_axis(u_mail_idx, last_slot_u[:, None], axis=1)[:, 0]
    last_slot_i = jnp.argmax(g["i_mail_time"], axis=1)
    last_node_i = jnp.take_along_axis(i_mail_idx, last_slot_i[:, None], axis=1)[:, 0]
    static = {"u_mail_idx": u_mail_idx, "i_mail_idx": i_mail_idx, "re_order_u": re_order_u,
              "last_node_u": last_node_u.astype(jnp.int32),
              "last_node_i": last_node_i.astype(jnp.int32)}

    user_layer = []
    for lp in prepped["layers"]:
        user_h, item_h = dgsr_layer_forward(lp, user_h, item_h, static)
        user_layer.append(graph_user(g, user_index, user_h))
    if LAST_ITEM:
        user_layer.append(graph_item(g, last_item_index, item_h))

    cat_feats = jnp.concatenate(user_layer, axis=-1)           # [B, (LAYER_NUM+1)*H], lane-dense 128
    score = dgsr_epilogue(cat_feats, prepped["unified_map_t"], prepped["item_embedding_t"])
    # negative scores = gather from the full score matrix (exact; no extra kernel work)
    score_neg = jnp.take_along_axis(score, neg_tar, axis=1)
    return score, score_neg


# ----------------------------- parameters -----------------------------
def xavier_normal(key, shape, gain):
    fan_out, fan_in = shape[0], shape[1]
    std = gain * math.sqrt(2.0 / (fan_in + fan_out))
    return std * jax.random.normal(key, shape, dtype=jnp.float32)


def init_params(key):
    """PyTorch-layout parameters (nn.Linear weights are [out_features, in_features])."""
    gain = math.sqrt(2.0)  # nn.init.calculate_gain('relu')
    keys = iter(jax.random.split(key, 64))
    params = {
        "user_embedding": xavier_normal(next(keys), (USER_NUM, HIDDEN), gain),
        "item_embedding": xavier_normal(next(keys), (ITEM_NUM, HIDDEN), gain),
        "unified_map": xavier_normal(next(keys), (HIDDEN, (LAYER_NUM + 1) * HIDDEN), gain),
        "layers": [],
    }
    for _ in range(LAYER_NUM):
        params["layers"].append({
            "agg_gate_u":        xavier_normal(next(keys), (HIDDEN, 2 * HIDDEN), gain),
            "user_weight":       xavier_normal(next(keys), (HIDDEN, HIDDEN), gain),
            "item_weight":       xavier_normal(next(keys), (HIDDEN, HIDDEN), gain),
            "user_update":       xavier_normal(next(keys), (HIDDEN, 2 * HIDDEN), gain),
            "item_update":       xavier_normal(next(keys), (HIDDEN, 2 * HIDDEN), gain),
            "u_time_encoding":   xavier_normal(next(keys), (ITEM_MAX_LENGTH, HIDDEN), gain),
            "u_time_encoding_k": xavier_normal(next(keys), (ITEM_MAX_LENGTH, HIDDEN), gain),
            # last_weight_u / last_weight_i exist in the module but are unused in forward.
        })
    return params


def prepare_params(params):
    """One-time layout prep: transpose torch [out,in] weights to [in,out], keep 2H->H maps merged
    (single [2H,H] matmuls in-kernel) and store features/weights in bf16 (f32 accumulation)."""
    bf16 = jnp.bfloat16
    prepped = {
        "user_embedding": params["user_embedding"].astype(bf16),
        "item_embedding": params["item_embedding"].astype(bf16),
        "item_embedding_t": params["item_embedding"].T.astype(bf16),   # [H, item_num]
        "unified_map_t": params["unified_map"].T.astype(bf16),         # [(LAYER_NUM+1)*H, H]
        "layers": [],
    }
    for lp in params["layers"]:
        prepped["layers"].append({
            "wu_t": lp["user_weight"].T.astype(bf16),
            "wi_t": lp["item_weight"].T.astype(bf16),
            "agg_t": lp["agg_gate_u"].T.astype(bf16),     # [2H, H]
            "uu_t": lp["user_update"].T.astype(bf16),     # [2H, H]
            "iu_t": lp["item_update"].T.astype(bf16),     # [2H, H]
            # time-encoding tables stay f32: they are row-gathered inside the kernel.
            "u_time_encoding": lp["u_time_encoding"],
            "u_time_encoding_k": lp["u_time_encoding_k"],
        })
    return prepped


# ----------------------------- synthetic batched graph -----------------------------
def make_graph(key):
    n_user = BATCH * USERS_PER_GRAPH
    n_item = BATCH * ITEMS_PER_GRAPH
    k = iter(jax.random.split(key, 16))
    user_id = jax.random.randint(next(k), (n_user,), 0, USER_NUM)
    item_id = jax.random.randint(next(k), (n_item,), 0, ITEM_NUM)

    # each user node's item-neighbor mailbox: indices into the global item-node array, same graph
    u_local = jax.random.randint(next(k), (n_user, ITEM_MAX_LENGTH), 0, ITEMS_PER_GRAPH)
    u_graph = jnp.repeat(jnp.arange(BATCH), USERS_PER_GRAPH)[:, None]
    u_mail_idx = u_graph * ITEMS_PER_GRAPH + u_local
    u_mail_time = jax.random.uniform(next(k), (n_user, ITEM_MAX_LENGTH), dtype=jnp.float32)

    # each item node's user-neighbor mailbox
    i_local = jax.random.randint(next(k), (n_item, USER_MAX_LENGTH), 0, USERS_PER_GRAPH)
    i_graph = jnp.repeat(jnp.arange(BATCH), ITEMS_PER_GRAPH)[:, None]
    i_mail_idx = i_graph * USERS_PER_GRAPH + i_local
    i_mail_time = jax.random.uniform(next(k), (n_item, USER_MAX_LENGTH), dtype=jnp.float32)

    g = {
        "user_id": user_id,
        "item_id": item_id,
        "u_mail_idx": u_mail_idx,
        "u_mail_time": u_mail_time,
        "i_mail_idx": i_mail_idx,
        "i_mail_time": i_mail_time,
        "batch_num_user": jnp.full((BATCH,), USERS_PER_GRAPH, dtype=jnp.int32),
        "batch_num_item": jnp.full((BATCH,), ITEMS_PER_GRAPH, dtype=jnp.int32),
    }
    user_index = jnp.array([0, 1], dtype=jnp.int32)
    last_item_index = jnp.array([4, 2], dtype=jnp.int32)
    neg_tar = jax.random.randint(next(k), (BATCH, N_NEG), 0, ITEM_NUM)
    return g, user_index, last_item_index, neg_tar


# TODO(synk): DGL variable-degree mailboxes are modeled as fixed-length dense mailboxes with no
#             validity mask (softmax sees padded/duplicate slots); GRU long paths and the other
#             update modes are not exercised by this config.

if __name__ == "__main__":
    key = jax.random.PRNGKey(0)
    k_params, k_graph = jax.random.split(key)
    params = init_params(k_params)
    prepped = prepare_params(params)          # one-time transposes / bf16 casts, outside forward
    g, user_index, last_item_index, neg_tar = make_graph(k_graph)

    fwd = jax.jit(dgsr_forward)
    score, score_neg = fwd(prepped, g, user_index, last_item_index, neg_tar)
    jax.block_until_ready(score)
    jax.block_until_ready(score_neg)
    assert score.shape == (BATCH, ITEM_NUM)
    assert score_neg.shape == (BATCH, N_NEG)
    print("KERNEL_OK")
</pallas_src>

<mosaic_0001>
module attributes {stable_mosaic.version = 11 : i64} {
  func.func @epilogue_kernel(%arg0: memref<2x128xbf16, #tpu.memory_space<vmem>>, %arg1: memref<128x32xbf16, #tpu.memory_space<vmem>>, %arg2: memref<32x40xbf16, #tpu.memory_space<vmem>>, %arg3: memref<2x40xf32, #tpu.memory_space<vmem>>) attributes {dimension_semantics = [], scalar_prefetch = 0 : i64, scratch_operands = 0 : i64, tpu.core_type = #tpu.core_type<tc>} {
    %c0 = arith.constant 0 : index
    %c0_0 = arith.constant 0 : index
    %0 = vector.load %arg0[%c0, %c0_0] : memref<2x128xbf16, #tpu.memory_space<vmem>>, vector<2x128xbf16>
    %c0_1 = arith.constant 0 : index
    %c0_2 = arith.constant 0 : index
    %1 = vector.load %arg1[%c0_1, %c0_2] : memref<128x32xbf16, #tpu.memory_space<vmem>>, vector<128x32xbf16>
    %cst = arith.constant dense<0.000000e+00> : vector<2x32xf32>
    %2 = tpu.matmul %0, %1, %cst {dimension_numbers = #tpu.dot_dimension_numbers<[1], [0], [0], [1], [0, 0, 1, 1], [], []>} : vector<2x128xbf16>, vector<128x32xbf16>, vector<2x32xf32> -> vector<2x32xf32>
    %3 = arith.truncf %2 : vector<2x32xf32> to vector<2x32xbf16>
    %c0_3 = arith.constant 0 : index
    %c0_4 = arith.constant 0 : index
    %4 = vector.load %arg2[%c0_3, %c0_4] : memref<32x40xbf16, #tpu.memory_space<vmem>>, vector<32x40xbf16>
    %cst_5 = arith.constant dense<0.000000e+00> : vector<2x40xf32>
    %5 = tpu.matmul %3, %4, %cst_5 {dimension_numbers = #tpu.dot_dimension_numbers<[1], [0], [0], [1], [0, 0, 1, 1], [], []>} : vector<2x32xbf16>, vector<32x40xbf16>, vector<2x40xf32> -> vector<2x40xf32>
    %c0_6 = arith.constant 0 : index
    %c0_7 = arith.constant 0 : index
    %6 = vector.load %arg3[%c0_6, %c0_7] : memref<2x40xf32, #tpu.memory_space<vmem>>, vector<2x40xf32>
    tpu.vector_store %arg3[%c0_6, %c0_7], %5 {strides = array<i32>} : memref<2x40xf32, #tpu.memory_space<vmem>>, vector<2x40xf32>,
    return
  }
}

module attributes {stable_mosaic.version = 11 : i64} {
  func.func @dgsr_layer_kernel(%arg0: memref<6x8xi32, #tpu.memory_space<smem>>, %arg1: memref<10x8xi32, #tpu.memory_space<smem>>, %arg2: memref<6x8xi32, #tpu.memory_space<smem>>, %arg3: memref<6xi32, #tpu.memory_space<smem>>, %arg4: memref<10xi32, #tpu.memory_space<smem>>, %arg5: memref<6x32xbf16, #tpu.memory_space<vmem>>, %arg6: memref<10x32xbf16, #tpu.memory_space<vmem>>, %arg7: memref<8x32xf32, #tpu.memory_space<vmem>>, %arg8: memref<8x32xf32, #tpu.memory_space<vmem>>, %arg9: memref<32x32xbf16, #tpu.memory_space<vmem>>, %arg10: memref<32x32xbf16, #tpu.memory_space<vmem>>, %arg11: memref<64x32xbf16, #tpu.memory_space<vmem>>, %arg12: memref<64x32xbf16, #tpu.memory_space<vmem>>, %arg13: memref<64x32xbf16, #tpu.memory_space<vmem>>, %arg14: memref<6x32xbf16, #tpu.memory_space<vmem>>, %arg15: memref<10x32xbf16, #tpu.memory_space<vmem>>, %arg16: memref<6x32xf32, #tpu.memory_space<vmem>>, %arg17: memref<10x32xf32, #tpu.memory_space<vmem>>, %arg18: memref<6x8x32xf32, #tpu.memory_space<vmem>>, %arg19: memref<10x8x32xf32, #tpu.memory_space<vmem>>, %arg20: memref<6x8x32xf32, #tpu.memory_space<vmem>>, %arg21: memref<6x8x32xf32, #tpu.memory_space<vmem>>, %arg22: memref<6x32xf32, #tpu.memory_space<vmem>>, %arg23: memref<10x32xf32, #tpu.memory_space<vmem>>) attributes {dimension_semantics = [], scalar_prefetch = 0 : i64, scratch_operands = 8 : i64, tpu.core_type = #tpu.core_type<tc>} {
    %c0 = arith.constant 0 : index
    %c0_0 = arith.constant 0 : index
    %0 = vector.load %arg5[%c0, %c0_0] : memref<6x32xbf16, #tpu.memory_space<vmem>>, vector<6x32xbf16>
    %c0_1 = arith.constant 0 : index
    %c0_2 = arith.constant 0 : index
    %1 = vector.load %arg9[%c0_1, %c0_2] : memref<32x32xbf16, #tpu.memory_space<vmem>>, vector<32x32xbf16>
    %cst = arith.constant dense<0.000000e+00> : vector<6x32xf32>
    %2 = tpu.matmul %0, %1, %cst {dimension_numbers = #tpu.dot_dimension_numbers<[1], [0], [0], [1], [0, 0, 1, 1], [], []>} : vector<6x32xbf16>, vector<32x32xbf16>, vector<6x32xf32> -> vector<6x32xf32>
    %c0_3 = arith.constant 0 : index
    %c0_4 = arith.constant 0 : index
    %3 = vector.load %arg16[%c0_3, %c0_4] : memref<6x32xf32, #tpu.memory_space<vmem>>, vector<6x32xf32>
    tpu.vector_store %arg16[%c0_3, %c0_4], %2 {strides = array<i32>} : memref<6x32xf32, #tpu.memory_space<vmem>>, vector<6x32xf32>,
    %c0_5 = arith.constant 0 : index
    %c0_6 = arith.constant 0 : index
    %4 = vector.load %arg6[%c0_5, %c0_6] : memref<10x32xbf16, #tpu.memory_space<vmem>>, vector<10x32xbf16>
    %c0_7 = arith.constant 0 : index
    %c0_8 = arith.constant 0 : index
    %5 = vector.load %arg10[%c0_7, %c0_8] : memref<32x32xbf16, #tpu.memory_space<vmem>>, vector<32x32xbf16>
    %cst_9 = arith.constant dense<0.000000e+00> : vector<10x32xf32>
    %6 = tpu.matmul %4, %5, %cst_9 {dimension_numbers = #tpu.dot_dimension_numbers<[1], [0], [0], [1], [0, 0, 1, 1], [], []>} : vector<10x32xbf16>, vector<32x32xbf16>, vector<10x32xf32> -> vector<10x32xf32>
    %c0_10 = arith.constant 0 : index
    %c0_11 = arith.constant 0 : index
    %7 = vector.load %arg17[%c0_10, %c0_11] : memref<10x32xf32, #tpu.memory_space<vmem>>, vector<10x32xf32>
    tpu.vector_store %arg17[%c0_10, %c0_11], %6 {strides = array<i32>} : memref<10x32xf32, #tpu.memory_space<vmem>>, vector<10x32xf32>,
    %c0_12 = arith.constant 0 : index
    %c0_13 = arith.constant 0 : index
    %8 = memref.load %arg0[%c0_12, %c0_13] : memref<6x8xi32, #tpu.memory_space<smem>>
    %9 = arith.index_cast %8 : i32 to index
    %c0_14 = arith.constant 0 : index
    %10 = vector.load %arg17[%9, %c0_14] : memref<10x32xf32, #tpu.memory_space<vmem>>, vector<1x32xf32>
    %c0_15 = arith.constant 0 : index
    %c0_16 = arith.constant 0 : index
    %c0_17 = arith.constant 0 : index
    %11 = vector.load %arg18[%c0_15, %c0_16, %c0_17] : memref<6x8x32xf32, #tpu.memory_space<vmem>>, vector<1x1x32xf32>
    %12 = vector.shape_cast %11 : vector<1x1x32xf32> to vector<1x32xf32>
    %13 = vector.shape_cast %10 : vector<1x32xf32> to vector<1x1x32xf32>
    tpu.vector_store %arg18[%c0_15, %c0_16, %c0_17], %13 {strides = array<i32>} : memref<6x8x32xf32, #tpu.memory_space<vmem>>, vector<1x1x32xf32>,
    %c0_18 = arith.constant 0 : index
    %c0_19 = arith.constant 0 : index
    %14 = memref.load %arg2[%c0_18, %c0_19] : memref<6x8xi32, #tpu.memory_space<smem>>
    %15 = arith.index_cast %14 : i32 to index
    %c0_20 = arith.constant 0 : index
    %16 = vector.load %arg7[%15, %c0_20] : memref<8x32xf32, #tpu.memory_space<vmem>>, vector<1x32xf32>
    %c0_21 = arith.constant 0 : index
    %c0_22 = arith.constant 0 : index
    %c0_23 = arith.constant 0 : index
    %17 = vector.load %arg20[%c0_21, %c0_22, %c0_23] : memref<6x8x32xf32, #tpu.memory_space<vmem>>, vector<1x1x32xf32>
    %18 = vector.shape_cast %17 : vector<1x1x32xf32> to vector<1x32xf32>
    %19 = vector.shape_cast %16 : vector<1x32xf32> to vector<1x1x32xf32>
    tpu.vector_store %arg20[%c0_21, %c0_22, %c0_23], %19 {strides = array<i32>} : memref<6x8x32xf32, #tpu.memory_space<vmem>>, vector<1x1x32xf32>,
    %20 = arith.index_cast %14 : i32 to index
    %c0_24 = arith.constant 0 : index
    %21 = vector.load %arg8[%20, %c0_24] : memref<8x32xf32, #tpu.memory_space<vmem>>, vector<1x32xf32>
    %c0_25 = arith.constant 0 : index
    %c0_26 = arith.constant 0 : index
    %c0_27 = arith.constant 0 : index
    %22 = vector.load %arg21[%c0_25, %c0_26, %c0_27] : memref<6x8x32xf32, #tpu.memory_space<vmem>>, vector<1x1x32xf32>
    %23 = vector.shape_cast %22 : vector<1x1x32xf32> to vector<1x32xf32>
    %24 = vector.shape_cast %21 : vector<1x32xf32> to vector<1x1x32xf32>
    tpu.vector_store %arg21[%c0_25, %c0_26, %c0_27], %24 {strides = array<i32>} : memref<6x8x32xf32, #tpu.memory_space<vmem>>, vector<1x1x32xf32>,
    %c0_28 = arith.constant 0 : index
    %c1 = arith.constant 1 : index
    %25 = memref.load %arg0[%c0_28, %c1] : memref<6x8xi32, #tpu.memory_space<smem>>
    %26 = arith.index_cast %25 : i32 to index
    %c0_29 = arith.constant 0 : index
    %27 = vector.load %arg17[%26, %c0_29] : memref<10x32xf32, #tpu.memory_space<vmem>>, vector<1x32xf32>
    %c0_30 = arith.constant 0 : index
    %c1_31 = arith.constant 1 : index
    %c0_32 = arith.constant 0 : index
    %28 = vector.load %arg18[%c0_30, %c1_31, %c0_32] : memref<6x8x32xf32, #tpu.memory_space<vmem>>, vector<1x1x32xf32>
    %29 = vector.shape_cast %28 : vector<1x1x32xf32> to vector<1x32xf32>
    %30 = vector.shape_cast %27 : vector<1x32xf32> to vector<1x1x32xf32>
    tpu.vector_store %arg18[%c0_30, %c1_31, %c0_32], %30 {strides = array<i32>} : memref<6x8x32xf32, #tpu.memory_space<vmem>>, vector<1x1x32xf32>,
    %c0_33 = arith.constant 0 : index
    %c1_34 = arith.constant 1 : index
    %31 = memref.load %arg2[%c0_33, %c1_34] : memref<6x8xi32, #tpu.memory_space<smem>>
    %32 = arith.index_cast %31 : i32 to index
    %c0_35 = arith.constant 0 : index
    %33 = vector.load %arg7[%32, %c0_35] : memref<8x32xf32, #tpu.memory_space<vmem>>, vector<1x32xf32>
    %c0_36 = arith.constant 0 : index
    %c1_37 = arith.constant 1 : index
    %c0_38 = arith.constant 0 : index
    %34 = vector.load %arg20[%c0_36, %c1_37, %c0_38] : memref<6x8x32xf32, #tpu.memory_space<vmem>>, vector<1x1x32xf32>
    %35 = vector.shape_cast %34 : vector<1x1x32xf32> to vector<1x32xf32>
    %36 = vector.shape_cast %33 : vector<1x32xf32> to vector<1x1x32xf32>
    tpu.vector_store %arg20[%c0_36, %c1_37, %c0_38], %36 {strides = array<i32>} : memref<6x8x32xf32, #tpu.memory_space<vmem>>, vector<1x1x32xf32>,
    %37 = arith.index_cast %31 : i32 to index
    %c0_39 = arith.constant 0 : index
    %38 = vector.load %arg8[%37, %c0_39] : memref<8x32xf32, #tpu.memory_space<vmem>>, vector<1x32xf32>
    %c0_40 = arith.constant 0 : index
    %c1_41 = arith.constant 1 : index
    %c0_42 = arith.constant 0 : index
    %39 = vector.load %arg21[%c0_40, %c1_41, %c0_42] : memref<6x8x32xf32, #tpu.memory_space<vmem>>, vector<1x1x32xf32>
    %40 = vector.shape_cast %39 : vector<1x1x32xf32> to vector<1x32xf32>
    %41 = vector.shape_cast %38 : vector<1x32xf32> to vector<1x1x32xf32>
    tpu.vector_store %arg21[%c0_40, %c1_41, %c0_42], %41 {strides = array<i32>} : memref<6x8x32xf32, #tpu.memory_space<vmem>>, vector<1x1x32xf32>,
    %c0_43 = arith.constant 0 : index
    %c2 = arith.constant 2 : index
    %42 = memref.load %arg0[%c0_43, %c2] : memref<6x8xi32, #tpu.memory_space<smem>>
    %43 = arith.index_cast %42 : i32 to index
    %c0_44 = arith.constant 0 : index
    %44 = vector.load %arg17[%43, %c0_44] : memref<10x32xf32, #tpu.memory_space<vmem>>, vector<1x32xf32>
    %c0_45 = arith.constant 0 : index
    %c2_46 = arith.constant 2 : index
    %c0_47 = arith.constant 0 : index
    %45 = vector.load %arg18[%c0_45, %c2_46, %c0_47] : memref<6x8x32xf32, #tpu.memory_space<vmem>>, vector<1x1x32xf32>
    %46 = vector.shape_cast %45 : vector<1x1x32xf32> to vector<1x32xf32>
    %47 = vector.shape_cast %44 : vector<1x32xf32> to vector<1x1x32xf32>
    tpu.vector_store %arg18[%c0_45, %c2_46, %c0_47], %47 {strides = array<i32>} : memref<6x8x32xf32, #tpu.memory_space<vmem>>, vector<1x1x32xf32>,
    %c0_48 = arith.constant 0 : index
    %c2_49 = arith.constant 2 : index
    %48 = memref.load %arg2[%c0_48, %c2_49] : memref<6x8xi32, #tpu.memory_space<smem>>
    %49 = arith.index_cast %48 : i32 to index
    %c0_50 = arith.constant 0 : index
    %50 = vector.load %arg7[%49, %c0_50] : memref<8x32xf32, #tpu.memory_space<vmem>>, vector<1x32xf32>
    %c0_51 = arith.constant 0 : index
    %c2_52 = arith.constant 2 : index
    %c0_53 = arith.constant 0 : index
    %51 = vector.load %arg20[%c0_51, %c2_52, %c0_53] : memref<6x8x32xf32, #tpu.memory_space<vmem>>, vector<1x1x32xf32>
    %52 = vector.shape_cast %51 : vector<1x1x32xf32> to vector<1x32xf32>
    %53 = vector.shape_cast %50 : vector<1x32xf32> to vector<1x1x32xf32>
    tpu.vector_store %arg20[%c0_51, %c2_52, %c0_53], %53 {strides = array<i32>} : memref<6x8x32xf32, #tpu.memory_space<vmem>>, vector<1x1x32xf32>,
    %54 = arith.index_cast %48 : i32 to index
    %c0_54 = arith.constant 0 : index
    %55 = vector.load %arg8[%54, %c0_54] : memref<8x32xf32, #tpu.memory_space<vmem>>, vector<1x32xf32>
    %c0_55 = arith.constant 0 : index
    %c2_56 = arith.constant 2 : index
    %c0_57 = arith.constant 0 : index
    %56 = vector.load %arg21[%c0_55, %c2_56, %c0_57] : memref<6x8x32xf32, #tpu.memory_space<vmem>>, vector<1x1x32xf32>
    %57 = vector.shape_cast %56 : vector<1x1x32xf32> to vector<1x32xf32>
    %58 = vector.shape_cast %55 : vector<1x32xf32> to vector<1x1x32xf32>
    tpu.vector_store %arg21[%c0_55, %c2_56, %c0_57], %58 {strides = array<i32>} : memref<6x8x32xf32, #tpu.memory_space<vmem>>, vector<1x1x32xf32>,
    %c0_58 = arith.constant 0 : index
    %c3 = arith.constant 3 : index
    %59 = memref.load %arg0[%c0_58, %c3] : memref<6x8xi32, #tpu.memory_space<smem>>
    %60 = arith.index_cast %59 : i32 to index
    %c0_59 = arith.constant 0 : index
    %61 = vector.load %arg17[%60, %c0_59] : memref<10x32xf32, #tpu.memory_space<vmem>>, vector<1x32xf32>
    %c0_60 = arith.constant 0 : index
    %c3_61 = arith.constant 3 : index
    %c0_62 = arith.constant 0 : index
    %62 = vector.load %arg18[%c0_60, %c3_61, %c0_62] : memref<6x8x32xf32, #tpu.memory_space<vmem>>, vector<1x1x32xf32>
    %63 = vector.shape_cast %62 : vector<1x1x32xf32> to vector<1x32xf32>
    %64 = vector.shape_cast %61 : vector<1x32xf32> to vector<1x1x32xf32>
    tpu.vector_store %arg18[%c0_60, %c3_61, %c0_62], %64 {strides = array<i32>} : memref<6x8x32xf32, #tpu.memory_space<vmem>>, vector<1x1x32xf32>,
    %c0_63 = arith.constant 0 : index
    %c3_64 = arith.constant 3 : index
    %65 = memref.load %arg2[%c0_63, %c3_64] : memref<6x8xi32, #tpu.memory_space<smem>>
    %66 = arith.index_cast %65 : i32 to index
    %c0_65 = arith.constant 0 : index
    %67 = vector.load %arg7[%66, %c0_65] : memref<8x32xf32, #tpu.memory_space<vmem>>, vector<1x32xf32>
    %c0_66 = arith.constant 0 : index
    %c3_67 = arith.constant 3 : index
    %c0_68 = arith.constant 0 : index
    %68 = vector.load %arg20[%c0_66, %c3_67, %c0_68] : memref<6x8x32xf32, #tpu.memory_space<vmem>>, vector<1x1x32xf32>
    %69 = vector.shape_cast %68 : vector<1x1x32xf32> to vector<1x32xf32>
    %70 = vector.shape_cast %67 : vector<1x32xf32> to vector<1x1x32xf32>
    tpu.vector_store %arg20[%c0_66, %c3_67, %c0_68], %70 {strides = array<i32>} : memref<6x8x32xf32, #tpu.memory_space<vmem>>, vector<1x1x32xf32>,
    %71 = arith.index_cast %65 : i32 to index
    %c0_69 = arith.constant 0 : index
    %72 = vector.load %arg8[%71, %c0_69] : memref<8x32xf32, #tpu.memory_space<vmem>>, vector<1x32xf32>
    %c0_70 = arith.constant 0 : index
    %c3_71 = arith.constant 3 : index
    %c0_72 = arith.constant 0 : index
    %73 = vector.load %arg21[%c0_70, %c3_71, %c0_72] : memref<6x8x32xf32, #tpu.memory_space<vmem>>, vector<1x1x32xf32>
    %74 = vector.shape_cast %73 : vector<1x1x32xf32> to vector<1x32xf32>
    %75 = vector.shape_cast %72 : vector<1x32xf32> to vector<1x1x32xf32>
    tpu.vector_store %arg21[%c0_70, %c3_71, %c0_72], %75 {strides = array<i32>} : memref<6x8x32xf32, #tpu.memory_space<vmem>>, vector<1x1x32xf32>,
    %c0_73 = arith.constant 0 : index
    %c4 = arith.constant 4 : index
    %76 = memref.load %arg0[%c0_73, %c4] : memref<6x8xi32, #tpu.memory_space<smem>>
    %77 = arith.index_cast %76 : i32 to index
    %c0_74 = arith.constant 0 : index
    %78 = vector.load %arg17[%77, %c0_74] : memref<10x32xf32, #tpu.memory_space<vmem>>, vector<1x32xf32>
    %c0_75 = arith.constant 0 : index
    %c4_76 = arith.constant 4 : index
    %c0_77 = arith.constant 0 : index
    %79 = vector.load %arg18[%c0_75, %c4_76, %c0_77] : memref<6x8x32xf32, #tpu.memory_space<vmem>>, vector<1x1x32xf32>
    %80 = vector.shape_cast %79 : vector<1x1x32xf32> to vector<1x32xf32>
    %81 = vector.shape_cast %78 : vector<1x32xf32> to vector<1x1x32xf32>
    tpu.vector_store %arg18[%c0_75, %c4_76, %c0_77], %81 {strides = array<i32>} : memref<6x8x32xf32, #tpu.memory_space<vmem>>, vector<1x1x32xf32>,
    %c0_78 = arith.constant 0 : index
    %c4_79 = arith.constant 4 : index
    %82 = memref.load %arg2[%c0_78, %c4_79] : memref<6x8xi32, #tpu.memory_space<smem>>
    %83 = arith.index_cast %82 : i32 to index
    %c0_80 = arith.constant 0 : index
    %84 = vector.load %arg7[%83, %c0_80] : memref<8x32xf32, #tpu.memory_space<vmem>>, vector<1x32xf32>
    %c0_81 = arith.constant 0 : index
    %c4_82 = arith.constant 4 : index
    %c0_83 = arith.constant 0 : index
    %85 = vector.load %arg20[%c0_81, %c4_82, %c0_83] : memref<6x8x32xf32, #tpu.memory_space<vmem>>, vector<1x1x32xf32>
    %86 = vector.shape_cast %85 : vector<1x1x32xf32> to vector<1x32xf32>
    %87 = vector.shape_cast %84 : vector<1x32xf32> to vector<1x1x32xf32>
    tpu.vector_store %arg20[%c0_81, %c4_82, %c0_83], %87 {strides = array<i32>} : memref<6x8x32xf32, #tpu.memory_space<vmem>>, vector<1x1x32xf32>,
    %88 = arith.index_cast %82 : i32 to index
    %c0_84 = arith.constant 0 : index
    %89 = vector.load %arg8[%88, %c0_84] : memref<8x32xf32, #tpu.memory_space<vmem>>, vector<1x32xf32>
    %c0_85 = arith.constant 0 : index
    %c4_86 = arith.constant 4 : index
    %c0_87 = arith.constant 0 : index
    %90 = vector.load %arg21[%c0_85, %c4_86, %c0_87] : memref<6x8x32xf32, #tpu.memory_space<vmem>>, vector<1x1x32xf32>
    %91 = vector.shape_cast %90 : vector<1x1x32xf32> to vector<1x32xf32>
    %92 = vector.shape_cast %89 : vector<1x32xf32> to vector<1x1x32xf32>
    tpu.vector_store %arg21[%c0_85, %c4_86, %c0_87], %92 {strides = array<i32>} : memref<6x8x32xf32, #tpu.memory_space<vmem>>, vector<1x1x32xf32>,
    %c0_88 = arith.constant 0 : index
    %c5 = arith.constant 5 : index
    %93 = memref.load %arg0[%c0_88, %c5] : memref<6x8xi32, #tpu.memory_space<smem>>
    %94 = arith.index_cast %93 : i32 to index
    %c0_89 = arith.constant 0 : index
    %95 = vector.load %arg17[%94, %c0_89] : memref<10x32xf32, #tpu.memory_space<vmem>>, vector<1x32xf32>
    %c0_90 = arith.constant 0 : index
    %c5_91 = arith.constant 5 : index
    %c0_92 = arith.constant 0 : index
    %96 = vector.load %arg18[%c0_90, %c5_91, %c0_92] : memref<6x8x32xf32, #tpu.memory_space<vmem>>, vector<1x1x32xf32>
    %97 = vector.shape_cast %96 : vector<1x1x32xf32> to vector<1x32xf32>
    %98 = vector.shape_cast %95 : vector<1x32xf32> to vector<1x1x32xf32>
    tpu.vector_store %arg18[%c0_90, %c5_91, %c0_92], %98 {strides = array<i32>} : memref<6x8x32xf32, #tpu.memory_space<vmem>>, vector<1x1x32xf32>,
    %c0_93 = arith.constant 0 : index
    %c5_94 = arith.constant 5 : index
    %99 = memref.load %arg2[%c0_93, %c5_94] : memref<6x8xi32, #tpu.memory_space<smem>>
    %100 = arith.index_cast %99 : i32 to index
    %c0_95 = arith.constant 0 : index
    %101 = vector.load %arg7[%100, %c0_95] : memref<8x32xf32, #tpu.memory_space<vmem>>, vector<1x32xf32>
    %c0_96 = arith.constant 0 : index
    %c5_97 = arith.constant 5 : index
    %c0_98 = arith.constant 0 : index
    %102 = vector.load %arg20[%c0_96, %c5_97, %c0_98] : memref<6x8x32xf32, #tpu.memory_space<vmem>>, vector<1x1x32xf32>
    %103 = vector.shape_cast %102 : vector<1x1x32xf32> to vector<1x32xf32>
    %104 = vector.shape_cast %101 : vector<1x32xf32> to vector<1x1x32xf32>
    tpu.vector_store %arg20[%c0_96, %c5_97, %c0_98], %104 {strides = array<i32>} : memref<6x8x32xf32, #tpu.memory_space<vmem>>, vector<1x1x32xf32>,
    %105 = arith.index_cast %99 : i32 to index
    %c0_99 = arith.constant 0 : index
    %106 = vector.load %arg8[%105, %c0_99] : memref<8x32xf32, #tpu.memory_space<vmem>>, vector<1x32xf32>
    %c0_100 = arith.constant 0 : index
    %c5_101 = arith.constant 5 : index
    %c0_102 = arith.constant 0 : index
    %107 = vector.load %arg21[%c0_100, %c5_101, %c0_102] : memref<6x8x32xf32, #tpu.memory_space<vmem>>, vector<1x1x32xf32>
    %108 = vector.shape_cast %107 : vector<1x1x32xf32> to vector<1x32xf32>
    %109 = vector.shape_cast %106 : vector<1x32xf32> to vector<1x1x32xf32>
    tpu.vector_store %arg21[%c0_100, %c5_101, %c0_102], %109 {strides = array<i32>} : memref<6x8x32xf32, #tpu.memory_space<vmem>>, vector<1x1x32xf32>,
    %c0_103 = arith.constant 0 : index
    %c6 = arith.constant 6 : index
    %110 = memref.load %arg0[%c0_103, %c6] : memref<6x8xi32, #tpu.memory_space<smem>>
    %111 = arith.index_cast %110 : i32 to index
    %c0_104 = arith.constant 0 : index
    %112 = vector.load %arg17[%111, %c0_104] : memref<10x32xf32, #tpu.memory_space<vmem>>, vector<1x32xf32>
    %c0_105 = arith.constant 0 : index
    %c6_106 = arith.constant 6 : index
    %c0_107 = arith.constant 0 : index
    %113 = vector.load %arg18[%c0_105, %c6_106, %c0_107] : memref<6x8x32xf32, #tpu.memory_space<vmem>>, vector<1x1x32xf32>
    %114 = vector.shape_cast %113 : vector<1x1x32xf32> to vector<1x32xf32>
    %115 = vector.shape_cast %112 : vector<1x32xf32> to vector<1x1x32xf32>
    tpu.vector_store %arg18[%c0_105, %c6_106, %c0_107], %115 {strides = array<i32>} : memref<6x8x32xf32, #tpu.memory_space<vmem>>, vector<1x1x32xf32>,
    %c0_108 = arith.constant 0 : index
    %c6_109 = arith.constant 6 : index
    %116 = memref.load %arg2[%c0_108, %c6_109] : memref<6x8xi32, #tpu.memory_space<smem>>
    %117 = arith.index_cast %116 : i32 to index
    %c0_110 = arith.constant 0 : index
    %118 = vector.load %arg7[%117, %c0_110] : memref<8x32xf32, #tpu.memory_space<vmem>>, vector<1x32xf32>
    %c0_111 = arith.constant 0 : index
    %c6_112 = arith.constant 6 : index
    %c0_113 = arith.constant 0 : index
    %119 = vector.load %arg20[%c0_111, %c6_112, %c0_113] : memref<6x8x32xf32, #tpu.memory_space<vmem>>, vector<1x1x32xf32>
    %120 = vector.shape_cast %119 : vector<1x1x32xf32> to vector<1x32xf32>
    %121 = vector.shape_cast %118 : vector<1x32xf32> to vector<1x1x32xf32>
    tpu.vector_store %arg20[%c0_111, %c6_112, %c0_113], %121 {strides = array<i32>} : memref<6x8x32xf32, #tpu.memory_space<vmem>>, vector<1x1x32xf32>,
    %122 = arith.index_cast %116 : i32 to index
    %c0_114 = arith.constant 0 : index
    %123 = vector.load %arg8[%122, %c0_114] : memref<8x32xf32, #tpu.memory_space<vmem>>, vector<1x32xf32>
    %c0_115 = arith.constant 0 : index
    %c6_116 = arith.constant 6 : index
    %c0_117 = arith.constant 0 : index
    %124 = vector.load %arg21[%c0_115, %c6_116, %c0_117] : memref<6x8x32xf32, #tpu.memory_space<vmem>>, vector<1x1x32xf32>
    %125 = vector.shape_cast %124 : vector<1x1x32xf32> to vector<1x32xf32>
    %126 = vector.shape_cast %123 : vector<1x32xf32> to vector<1x1x32xf32>
    tpu.vector_store %arg21[%c0_115, %c6_116, %c0_117], %126 {strides = array<i32>} : memref<6x8x32xf32, #tpu.memory_space<vmem>>, vector<1x1x32xf32>,
    %c0_118 = arith.constant 0 : index
    %c7 = arith.constant 7 : index
    %127 = memref.load %arg0[%c0_118, %c7] : memref<6x8xi32, #tpu.memory_space<smem>>
    %128 = arith.index_cast %127 : i32 to index
    %c0_119 = arith.constant 0 : index
    %129 = vector.load %arg17[%128, %c0_119] : memref<10x32xf32, #tpu.memory_space<vmem>>, vector<1x32xf32>
    %c0_120 = arith.constant 0 : index
    %c7_121 = arith.constant 7 : index
    %c0_122 = arith.constant 0 : index
    %130 = vector.load %arg18[%c0_120, %c7_121, %c0_122] : memref<6x8x32xf32, #tpu.memory_space<vmem>>, vector<1x1x32xf32>
    %131 = vector.shape_cast %130 : vector<1x1x32xf32> to vector<1x32xf32>
    %132 = vector.shape_cast %129 : vector<1x32xf32> to vector<1x1x32xf32>
    tpu.vector_store %arg18[%c0_120, %c7_121, %c0_122], %132 {strides = array<i32>} : memref<6x8x32xf32, #tpu.memory_space<vmem>>, vector<1x1x32xf32>,
    %c0_123 = arith.constant 0 : index
    %c7_124 = arith.constant 7 : index
    %133 = memref.load %arg2[%c0_123, %c7_124] : memref<6x8xi32, #tpu.memory_space<smem>>
    %134 = arith.index_cast %133 : i32 to index
    %c0_125 = arith.constant 0 : index
    %135 = vector.load %arg7[%134, %c0_125] : memref<8x32xf32, #tpu.memory_space<vmem>>, vector<1x32xf32>
    %c0_126 = arith.constant 0 : index
    %c7_127 = arith.constant 7 : index
    %c0_128 = arith.constant 0 : index
    %136 = vector.load %arg20[%c0_126, %c7_127, %c0_128] : memref<6x8x32xf32, #tpu.memory_space<vmem>>, vector<1x1x32xf32>
    %137 = vector.shape_cast %136 : vector<1x1x32xf32> to vector<1x32xf32>
    %138 = vector.shape_cast %135 : vector<1x32xf32> to vector<1x1x32xf32>
    tpu.vector_store %arg20[%c0_126, %c7_127, %c0_128], %138 {strides = array<i32>} : memref<6x8x32xf32, #tpu.memory_space<vmem>>, vector<1x1x32xf32>,
    %139 = arith.index_cast %133 : i32 to index
    %c0_129 = arith.constant 0 : index
    %140 = vector.load %arg8[%139, %c0_129] : memref<8x32xf32, #tpu.memory_space<vmem>>, vector<1x32xf32>
    %c0_130 = arith.constant 0 : index
    %c7_131 = arith.constant 7 : index
    %c0_132 = arith.constant 0 : index
    %141 = vector.load %arg21[%c0_130, %c7_131, %c0_132] : memref<6x8x32xf32, #tpu.memory_space<vmem>>, vector<1x1x32xf32>
    %142 = vector.shape_cast %141 : vector<1x1x32xf32> to vector<1x32xf32>
    %143 = vector.shape_cast %140 : vector<1x32xf32> to vector<1x1x32xf32>
    tpu.vector_store %arg21[%c0_130, %c7_131, %c0_132], %143 {strides = array<i32>} : memref<6x8x32xf32, #tpu.memory_space<vmem>>, vector<1x1x32xf32>,
    %c0_133 = arith.constant 0 : index
    %144 = memref.load %arg3[%c0_133] : memref<6xi32, #tpu.memory_space<smem>>
    %145 = arith.index_cast %144 : i32 to index
    %c0_134 = arith.constant 0 : index
    %146 = vector.load %arg17[%145, %c0_134] : memref<10x32xf32, #tpu.memory_space<vmem>>, vector<1x32xf32>
    %c0_135 = arith.constant 0 : index
    %c0_136 = arith.constant 0 : index
    %147 = vector.load %arg22[%c0_135, %c0_136] : memref<6x32xf32, #tpu.memory_space<vmem>>, vector<1x32xf32>
    tpu.vector_store %arg22[%c0_135, %c0_136], %146 {strides = array<i32>} : memref<6x32xf32, #tpu.memory_space<vmem>>, vector<1x32xf32>,
    %c1_137 = arith.constant 1 : index
    %c0_138 = arith.constant 0 : index
    %148 = memref.load %arg0[%c1_137, %c0_138] : memref<6x8xi32, #tpu.memory_space<smem>>
    %149 = arith.index_cast %148 : i32 to index
    %c0_139 = arith.constant 0 : index
    %150 = vector.load %arg17[%149, %c0_139] : memref<10x32xf32, #tpu.memory_space<vmem>>, vector<1x32xf32>
    %c1_140 = arith.constant 1 : index
    %c0_141 = arith.constant 0 : index
    %c0_142 = arith.constant 0 : index
    %151 = vector.load %arg18[%c1_140, %c0_141, %c0_142] : memref<6x8x32xf32, #tpu.memory_space<vmem>>, vector<1x1x32xf32>
    %152 = vector.shape_cast %151 : vector<1x1x32xf32> to vector<1x32xf32>
    %153 = vector.shape_cast %150 : vector<1x32xf32> to vector<1x1x32xf32>
    tpu.vector_store %arg18[%c1_140, %c0_141, %c0_142], %153 {strides = array<i32>} : memref<6x8x32xf32, #tpu.memory_space<vmem>>, vector<1x1x32xf32>,
    %c1_143 = arith.constant 1 : index
    %c0_144 = arith.constant 0 : index
    %154 = memref.load %arg2[%c1_143, %c0_144] : memref<6x8xi32, #tpu.memory_space<smem>>
    %155 = arith.index_cast %154 : i32 to index
    %c0_145 = arith.constant 0 : index
    %156 = vector.load %arg7[%155, %c0_145] : memref<8x32xf32, #tpu.memory_space<vmem>>, vector<1x32xf32>
    %c1_146 = arith.constant 1 : index
    %c0_147 = arith.constant 0 : index
    %c0_148 = arith.constant 0 : index
    %157 = vector.load %arg20[%c1_146, %c0_147, %c0_148] : memref<6x8x32xf32, #tpu.memory_space<vmem>>, vector<1x1x32xf32>
    %158 = vector.shape_cast %157 : vector<1x1x32xf32> to vector<1x32xf32>
    %159 = vector.shape_cast %156 : vector<1x32xf32> to vector<1x1x32xf32>
    tpu.vector_store %arg20[%c1_146, %c0_147, %c0_148], %159 {strides = array<i32>} : memref<6x8x32xf32, #tpu.memory_space<vmem>>, vector<1x1x32xf32>,
    %160 = arith.index_cast %154 : i32 to index
    %c0_149 = arith.constant 0 : index
    %161 = vector.load %arg8[%160, %c0_149] : memref<8x32xf32, #tpu.memory_space<vmem>>, vector<1x32xf32>
    %c1_150 = arith.constant 1 : index
    %c0_151 = arith.constant 0 : index
    %c0_152 = arith.constant 0 : index
    %162 = vector.load %arg21[%c1_150, %c0_151, %c0_152] : memref<6x8x32xf32, #tpu.memory_space<vmem>>, vector<1x1x32xf32>
    %163 = vector.shape_cast %162 : vector<1x1x32xf32> to vector<1x32xf32>
    %164 = vector.shape_cast %161 : vector<1x32xf32> to vector<1x1x32xf32>
    tpu.vector_store %arg21[%c1_150, %c0_151, %c0_152], %164 {strides = array<i32>} : memref<6x8x32xf32, #tpu.memory_space<vmem>>, vector<1x1x32xf32>,
    %c1_153 = arith.constant 1 : index
    %c1_154 = arith.constant 1 : index
    %165 = memref.load %arg0[%c1_153, %c1_154] : memref<6x8xi32, #tpu.memory_space<smem>>
    %166 = arith.index_cast %165 : i32 to index
    %c0_155 = arith.constant 0 : index
    %167 = vector.load %arg17[%166, %c0_155] : memref<10x32xf32, #tpu.memory_space<vmem>>, vector<1x32xf32>
    %c1_156 = arith.constant 1 : index
    %c1_157 = arith.constant 1 : index
    %c0_158 = arith.constant 0 : index
    %168 = vector.load %arg18[%c1_156, %c1_157, %c0_158] : memref<6x8x32xf32, #tpu.memory_space<vmem>>, vector<1x1x32xf32>
    %169 = vector.shape_cast %168 : vector<1x1x32xf32> to vector<1x32xf32>
    %170 = vector.shape_cast %167 : vector<1x32xf32> to vector<1x1x32xf32>
    tpu.vector_store %arg18[%c1_156, %c1_157, %c0_158], %170 {strides = array<i32>} : memref<6x8x32xf32, #tpu.memory_space<vmem>>, vector<1x1x32xf32>,
    %c1_159 = arith.constant 1 : index
    %c1_160 = arith.constant 1 : index
    %171 = memref.load %arg2[%c1_159, %c1_160] : memref<6x8xi32, #tpu.memory_space<smem>>
    %172 = arith.index_cast %171 : i32 to index
    %c0_161 = arith.constant 0 : index
    %173 = vector.load %arg7[%172, %c0_161] : memref<8x32xf32, #tpu.memory_space<vmem>>, vector<1x32xf32>
    %c1_162 = arith.constant 1 : index
    %c1_163 = arith.constant 1 : index
    %c0_164 = arith.constant 0 : index
    %174 = vector.load %arg20[%c1_162, %c1_163, %c0_164] : memref<6x8x32xf32, #tpu.memory_space<vmem>>, vector<1x1x32xf32>
    %175 = vector.shape_cast %174 : vector<1x1x32xf32> to vector<1x32xf32>
    %176 = vector.shape_cast %173 : vector<1x32xf32> to vector<1x1x32xf32>
    tpu.vector_store %arg20[%c1_162, %c1_163, %c0_164], %176 {strides = array<i32>} : memref<6x8x32xf32, #tpu.memory_space<vmem>>, vector<1x1x32xf32>,
    %177 = arith.index_cast %171 : i32 to index
    %c0_165 = arith.constant 0 : index
    %178 = vector.load %arg8[%177, %c0_165] : memref<8x32xf32, #tpu.memory_space<vmem>>, vector<1x32xf32>
    %c1_166 = arith.constant 1 : index
    %c1_167 = arith.constant 1 : index
    %c0_168 = arith.constant 0 : index
    %179 = vector.load %arg21[%c1_166, %c1_167, %c0_168] : memref<6x8x32xf32, #tpu.memory_space<vmem>>, vector<1x1x32xf32>
    %180 = vector.shape_cast %179 : vector<1x1x32xf32> to vector<1x32xf32>
    %181 = vector.shape_cast %178 : vector<1x32xf32> to vector<1x1x32xf32>
    tpu.vector_store %arg21[%c1_166, %c1_167, %c0_168], %181 {strides = array<i32>} : memref<6x8x32xf32, #tpu.memory_space<vmem>>, vector<1x1x32xf32>,
    %c1_169 = arith.constant 1 : index
    %c2_170 = arith.constant 2 : index
    %182 = memref.load %arg0[%c1_169, %c2_170] : memref<6x8xi32, #tpu.memory_space<smem>>
    %183 = arith.index_cast %182 : i32 to index
    %c0_171 = arith.constant 0 : index
    %184 = vector.load %arg17[%183, %c0_171] : memref<10x32xf32, #tpu.memory_space<vmem>>, vector<1x32xf32>
    %c1_172 = arith.constant 1 : index
    %c2_173 = arith.constant 2 : index
    %c0_174 = arith.constant 0 : index
    %185 = vector.load %arg18[%c1_172, %c2_173, %c0_174] : memref<6x8x32xf32, #tpu.memory_space<vmem>>, vector<1x1x32xf32>
    %186 = vector.shape_cast %185 : vector<1x1x32xf32> to vector<1x32xf32>
    %187 = vector.shape_cast %184 : vector<1x32xf32> to vector<1x1x32xf32>
    tpu.vector_store %arg18[%c1_172, %c2_173, %c0_174], %187 {strides = array<i32>} : memref<6x8x32xf32, #tpu.memory_space<vmem>>, vector<1x1x32xf32>,
    %c1_175 = arith.constant 1 : index
    %c2_176 = arith.constant 2 : index
    %188 = memref.load %arg2[%c1_175, %c2_176] : memref<6x8xi32, #tpu.memory_space<smem>>
    %189 = arith.index_cast %188 : i32 to index
    %c0_177 = arith.constant 0 : index
    %190 = vector.load %arg7[%189, %c0_177] : memref<8x32xf32, #tpu.memory_space<vmem>>, vector<1x32xf32>
    %c1_178 = arith.constant 1 : index
    %c2_179 = arith.constant 2 : index
    %c0_180 = arith.constant 0 : index
    %191 = vector.load %arg20[%c1_178, %c2_179, %c0_180] : memref<6x8x32xf32, #tpu.memory_space<vmem>>, vector<1x1x32xf32>
    %192 = vector.shape_cast %191 : vector<1x1x32xf32> to vector<1x32xf32>
    %193 = vector.shape_cast %190 : vector<1x32xf32> to vector<1x1x32xf32>
    tpu.vector_store %arg20[%c1_178, %c2_179, %c0_180], %193 {strides = array<i32>} : memref<6x8x32xf32, #tpu.memory_space<vmem>>, vector<1x1x32xf32>,
    %194 = arith.index_cast %188 : i32 to index
    %c0_181 = arith.constant 0 : index
    %195 = vector.load %arg8[%194, %c0_181] : memref<8x32xf32, #tpu.memory_space<vmem>>, vector<1x32xf32>
    %c1_182 = arith.constant 1 : index
    %c2_183 = arith.constant 2 : index
    %c0_184 = arith.constant 0 : index
    %196 = vector.load %arg21[%c1_182, %c2_183, %c0_184] : memref<6x8x32xf32, #tpu.memory_space<vmem>>, vector<1x1x32xf32>
    %197 = vector.shape_cast %196 : vector<1x1x32xf32> to vector<1x32xf32>
    %198 = vector.shape_cast %195 : vector<1x32xf32> to vector<1x1x32xf32>
    tpu.vector_store %arg21[%c1_182, %c2_183, %c0_184], %198 {strides = array<i32>} : memref<6x8x32xf32, #tpu.memory_space<vmem>>, vector<1x1x32xf32>,
    %c1_185 = arith.constant 1 : index
    %c3_186 = arith.constant 3 : index
    %199 = memref.load %arg0[%c1_185, %c3_186] : memref<6x8xi32, #tpu.memory_space<smem>>
    %200 = arith.index_cast %199 : i32 to index
    %c0_187 = arith.constant 0 : index
    %201 = vector.load %arg17[%200, %c0_187] : memref<10x32xf32, #tpu.memory_space<vmem>>, vector<1x32xf32>
    %c1_188 = arith.constant 1 : index
    %c3_189 = arith.constant 3 : index
    %c0_190 = arith.constant 0 : index
    %202 = vector.load %arg18[%c1_188, %c3_189, %c0_190] : memref<6x8x32xf32, #tpu.memory_space<vmem>>, vector<1x1x32xf32>
    %203 = vector.shape_cast %202 : vector<1x1x32xf32> to vector<1x32xf32>
    %204 = vector.shape_cast %201 : vector<1x32xf32> to vector<1x1x32xf32>
    tpu.vector_store %arg18[%c1_188, %c3_189, %c0_190], %204 {strides = array<i32>} : memref<6x8x32xf32, #tpu.memory_space<vmem>>, vector<1x1x32xf32>,
    %c1_191 = arith.constant 1 : index
    %c3_192 = arith.constant 3 : index
    %205 = memref.load %arg2[%c1_191, %c3_192] : memref<6x8xi32, #tpu.memory_space<smem>>
    %206 = arith.index_cast %205 : i32 to index
    %c0_193 = arith.constant 0 : index
    %207 = vector.load %arg7[%206, %c0_193] : memref<8x32xf32, #tpu.memory_space<vmem>>, vector<1x32xf32>
    %c1_194 = arith.constant 1 : index
    %c3_195 = arith.constant 3 : index
    %c0_196 = arith.constant 0 : index
    %208 = vector.load %arg20[%c1_194, %c3_195, %c0_196] : memref<6x8x32xf32, #tpu.memory_space<vmem>>, vector<1x1x32xf32>
    %209 = vector.shape_cast %208 : vector<1x1x32xf32> to vector<1x32xf32>
    %210 = vector.shape_cast %207 : vector<1x32xf32> to vector<1x1x32xf32>
    tpu.vector_store %arg20[%c1_194, %c3_195, %c0_196], %210 {strides = array<i32>} : memref<6x8x32xf32, #tpu.memory_space<vmem>>, vector<1x1x32xf32>,
    %211 = arith.index_cast %205 : i32 to index
    %c0_197 = arith.constant 0 : index
    %212 = vector.load %arg8[%211, %c0_197] : memref<8x32xf32, #tpu.memory_space<vmem>>, vector<1x32xf32>
    %c1_198 = arith.constant 1 : index
    %c3_199 = arith.constant 3 : index
    %c0_200 = arith.constant 0 : index
    %213 = vector.load %arg21[%c1_198, %c3_199, %c0_200] : memref<6x8x32xf32, #tpu.memory_space<vmem>>, vector<1x1x32xf32>
    %214 = vector.shape_cast %213 : vector<1x1x32xf32> to vector<1x32xf32>
    %215 = vector.shape_cast %212 : vector<1x32xf32> to vector<1x1x32xf32>
    tpu.vector_store %arg21[%c1_198, %c3_199, %c0_200], %215 {strides = array<i32>} : memref<6x8x32xf32, #tpu.memory_space<vmem>>, vector<1x1x32xf32>,
    %c1_201 = arith.constant 1 : index
    %c4_202 = arith.constant 4 : index
    %216 = memref.load %arg0[%c1_201, %c4_202] : memref<6x8xi32, #tpu.memory_space<smem>>
    %217 = arith.index_cast %216 : i32 to index
    %c0_203 = arith.constant 0 : index
    %218 = vector.load %arg17[%217, %c0_203] : memref<10x32xf32, #tpu.memory_space<vmem>>, vector<1x32xf32>
    %c1_204 = arith.constant 1 : index
    %c4_205 = arith.constant 4 : index
    %c0_206 = arith.constant 0 : index
    %219 = vector.load %arg18[%c1_204, %c4_205, %c0_206] : memref<6x8x32xf32, #tpu.memory_space<vmem>>, vector<1x1x32xf32>
    %220 = vector.shape_cast %219 : vector<1x1x32xf32> to vector<1x32xf32>
    %221 = vector.shape_cast %218 : vector<1x32xf32> to vector<1x1x32xf32>
    tpu.vector_store %arg18[%c1_204, %c4_205, %c0_206], %221 {strides = array<i32>} : memref<6x8x32xf32, #tpu.memory_space<vmem>>, vector<1x1x32xf32>,
    %c1_207 = arith.constant 1 : index
    %c4_208 = arith.constant 4 : index
    %222 = memref.load %arg2[%c1_207, %c4_208] : memref<6x8xi32, #tpu.memory_space<smem>>
    %223 = arith.index_cast %222 : i32 to index
    %c0_209 = arith.constant 0 : index
    %224 = vector.load %arg7[%223, %c0_209] : memref<8x32xf32, #tpu.memory_space<vmem>>, vector<1x32xf32>
    %c1_210 = arith.constant 1 : index
    %c4_211 = arith.constant 4 : index
    %c0_212 = arith.constant 0 : index
    %225 = vector.load %arg20[%c1_210, %c4_211, %c0_212] : memref<6x8x32xf32, #tpu.memory_space<vmem>>, vector<1x1x32xf32>
    %226 = vector.shape_cast %225 : vector<1x1x32xf32> to vector<1x32xf32>
    %227 = vector.shape_cast %224 : vector<1x32xf32> to vector<1x1x32xf32>
    tpu.vector_store %arg20[%c1_210, %c4_211, %c0_212], %227 {strides = array<i32>} : memref<6x8x32xf32, #tpu.memory_space<vmem>>, vector<1x1x32xf32>,
    %228 = arith.index_cast %222 : i32 to index
    %c0_213 = arith.constant 0 : index
    %229 = vector.load %arg8[%228, %c0_213] : memref<8x32xf32, #tpu.memory_space<vmem>>, vector<1x32xf32>
    %c1_214 = arith.constant 1 : index
    %c4_215 = arith.constant 4 : index
    %c0_216 = arith.constant 0 : index
    %230 = vector.load %arg21[%c1_214, %c4_215, %c0_216] : memref<6x8x32xf32, #tpu.memory_space<vmem>>, vector<1x1x32xf32>
    %231 = vector.shape_cast %230 : vector<1x1x32xf32> to vector<1x32xf32>
    %232 = vector.shape_cast %229 : vector<1x32xf32> to vector<1x1x32xf32>
    tpu.vector_store %arg21[%c1_214, %c4_215, %c0_216], %232 {strides = array<i32>} : memref<6x8x32xf32, #tpu.memory_space<vmem>>, vector<1x1x32xf32>,
    %c1_217 = arith.constant 1 : index
    %c5_218 = arith.constant 5 : index
    %233 = memref.load %arg0[%c1_217, %c5_218] : memref<6x8xi32, #tpu.memory_space<smem>>
    %234 = arith.index_cast %233 : i32 to index
    %c0_219 = arith.constant 0 : index
    %235 = vector.load %arg17[%234, %c0_219] : memref<10x32xf32, #tpu.memory_space<vmem>>, vector<1x32xf32>
    %c1_220 = arith.constant 1 : index
    %c5_221 = arith.constant 5 : index
    %c0_222 = arith.constant 0 : index
    %236 = vector.load %arg18[%c1_220, %c5_221, %c0_222] : memref<6x8x32xf32, #tpu.memory_space<vmem>>, vector<1x1x32xf32>
    %237 = vector.shape_cast %236 : vector<1x1x32xf32> to vector<1x32xf32>
    %238 = vector.shape_cast %235 : vector<1x32xf32> to vector<1x1x32xf32>
    tpu.vector_store %arg18[%c1_220, %c5_221, %c0_222], %238 {strides = array<i32>} : memref<6x8x32xf32, #tpu.memory_space<vmem>>, vector<1x1x32xf32>,
    %c1_223 = arith.constant 1 : index
    %c5_224 = arith.constant 5 : index
    %239 = memref.load %arg2[%c1_223, %c5_224] : memref<6x8xi32, #tpu.memory_space<smem>>
    %240 = arith.index_cast %239 : i32 to index
    %c0_225 = arith.constant 0 : index
    %241 = vector.load %arg7[%240, %c0_225] : memref<8x32xf32, #tpu.memory_space<vmem>>, vector<1x32xf32>
    %c1_226 = arith.constant 1 : index
    %c5_227 = arith.constant 5 : index
    %c0_228 = arith.constant 0 : index
    %242 = vector.load %arg20[%c1_226, %c5_227, %c0_228] : memref<6x8x32xf32, #tpu.memory_space<vmem>>, vector<1x1x32xf32>
    %243 = vector.shape_cast %242 : vector<1x1x32xf32> to vector<1x32xf32>
    %244 = vector.shape_cast %241 : vector<1x32xf32> to vector<1x1x32xf32>
    tpu.vector_store %arg20[%c1_226, %c5_227, %c0_228], %244 {strides = array<i32>} : memref<6x8x32xf32, #tpu.memory_space<vmem>>, vector<1x1x32xf32>,
    %245 = arith.index_cast %239 : i32 to index
    %c0_229 = arith.constant 0 : index
    %246 = vector.load %arg8[%245, %c0_229] : memref<8x32xf32, #tpu.memory_space<vmem>>, vector<1x32xf32>
    %c1_230 = arith.constant 1 : index
    %c5_231 = arith.constant 5 : index
    %c0_232 = arith.constant 0 : index
    %247 = vector.load %arg21[%c1_230, %c5_231, %c0_232] : memref<6x8x32xf32, #tpu.memory_space<vmem>>, vector<1x1x32xf32>
    %248 = vector.shape_cast %247 : vector<1x1x32xf32> to vector<1x32xf32>
    %249 = vector.shape_cast %246 : vector<1x32xf32> to vector<1x1x32xf32>
    tpu.vector_store %arg21[%c1_230, %c5_231, %c0_232], %249 {strides = array<i32>} : memref<6x8x32xf32, #tpu.memory_space<vmem>>, vector<1x1x32xf32>,
    %c1_233 = arith.constant 1 : index
    %c6_234 = arith.constant 6 : index
    %250 = memref.load %arg0[%c1_233, %c6_234] : memref<6x8xi32, #tpu.memory_space<smem>>
    %251 = arith.index_cast %250 : i32 to index
    %c0_235 = arith.constant 0 : index
    %252 = vector.load %arg17[%251, %c0_235] : memref<10x32xf32, #tpu.memory_space<vmem>>, vector<1x32xf32>
    %c1_236 = arith.constant 1 : index
    %c6_237 = arith.constant 6 : index
    %c0_238 = arith.constant 0 : index
    %253 = vector.load %arg18[%c1_236, %c6_237, %c0_238] : memref<6x8x32xf32, #tpu.memory_space<vmem>>, vector<1x1x32xf32>
    %254 = vector.shape_cast %253 : vector<1x1x32xf32> to vector<1x32xf32>
    %255 = vector.shape_cast %252 : vector<1x32xf32> to vector<1x1x32xf32>
    tpu.vector_store %arg18[%c1_236, %c6_237, %c0_238], %255 {strides = array<i32>} : memref<6x8x32xf32, #tpu.memory_space<vmem>>, vector<1x1x32xf32>,
    %c1_239 = arith.constant 1 : index
    %c6_240 = arith.constant 6 : index
    %256 = memref.load %arg2[%c1_239, %c6_240] : memref<6x8xi32, #tpu.memory_space<smem>>
    %257 = arith.index_cast %256 : i32 to index
    %c0_241 = arith.constant 0 : index
    %258 = vector.load %arg7[%257, %c0_241] : memref<8x32xf32, #tpu.memory_space<vmem>>, vector<1x32xf32>
    %c1_242 = arith.constant 1 : index
    %c6_243 = arith.constant 6 : index
    %c0_244 = arith.constant 0 : index
    %259 = vector.load %arg20[%c1_242, %c6_243, %c0_244] : memref<6x8x32xf32, #tpu.memory_space<vmem>>, vector<1x1x32xf32>
    %260 = vector.shape_cast %259 : vector<1x1x32xf32> to vector<1x32xf32>
    %261 = vector.shape_cast %258 : vector<1x32xf32> to vector<1x1x32xf32>
    tpu.vector_store %arg20[%c1_242, %c6_243, %c0_244], %261 {strides = array<i32>} : memref<6x8x32xf32, #tpu.memory_space<vmem>>, vector<1x1x32xf32>,
    %262 = arith.index_cast %256 : i32 to index
    %c0_245 = arith.constant 0 : index
    %263 = vector.load %arg8[%262, %c0_245] : memref<8x32xf32, #tpu.memory_space<vmem>>, vector<1x32xf32>
    %c1_246 = arith.constant 1 : index
    %c6_247 = arith.constant 6 : index
    %c0_248 = arith.constant 0 : index
    %264 = vector.load %arg21[%c1_246, %c6_247, %c0_248] : memref<6x8x32xf32, #tpu.memory_space<vmem>>, vector<1x1x32xf32>
    %265 = vector.shape_cast %264 : vector<1x1x32xf32> to vector<1x32xf32>
    %266 = vector.shape_cast %263 : vector<1x32xf32> to vector<1x1x32xf32>
    tpu.vector_store %arg21[%c1_246, %c6_247, %c0_248], %266 {strides = array<i32>} : memref<6x8x32xf32, #tpu.memory_space<vmem>>, vector<1x1x32xf32>,
    %c1_249 = arith.constant 1 : index
    %c7_250 = arith.constant 7 : index
    %267 = memref.load %arg0[%c1_249, %c7_250] : memref<6x8xi32, #tpu.memory_space<smem>>
    %268 = arith.index_cast %267 : i32 to index
    %c0_251 = arith.constant 0 : index
    %269 = vector.load %arg17[%268, %c0_251] : memref<10x32xf32, #tpu.memory_space<vmem>>, vector<1x32xf32>
    %c1_252 = arith.constant 1 : index
    %c7_253 = arith.constant 7 : index
    %c0_254 = arith.constant 0 : index
    %270 = vector.load %arg18[%c1_252, %c7_253, %c0_254] : memref<6x8x32xf32, #tpu.memory_space<vmem>>, vector<1x1x32xf32>
    %271 = vector.shape_cast %270 : vector<1x1x32xf32> to vector<1x32xf32>
    %272 = vector.shape_cast %269 : vector<1x32xf32> to vector<1x1x32xf32>
    tpu.vector_store %arg18[%c1_252, %c7_253, %c0_254], %272 {strides = array<i32>} : memref<6x8x32xf32, #tpu.memory_space<vmem>>, vector<1x1x32xf32>,
    %c1_255 = arith.constant 1 : index
    %c7_256 = arith.constant 7 : index
    %273 = memref.load %arg2[%c1_255, %c7_256] : memref<6x8xi32, #tpu.memory_space<smem>>
    %274 = arith.index_cast %273 : i32 to index
    %c0_257 = arith.constant 0 : index
    %275 = vector.load %arg7[%274, %c0_257] : memref<8x32xf32, #tpu.memory_space<vmem>>, vector<1x32xf32>
    %c1_258 = arith.constant 1 : index
    %c7_259 = arith.constant 7 : index
    %c0_260 = arith.constant 0 : index
    %276 = vector.load %arg20[%c1_258, %c7_259, %c0_260] : memref<6x8x32xf32, #tpu.memory_space<vmem>>, vector<1x1x32xf32>
    %277 = vector.shape_cast %276 : vector<1x1x32xf32> to vector<1x32xf32>
    %278 = vector.shape_cast %275 : vector<1x32xf32> to vector<1x1x32xf32>
    tpu.vector_store %arg20[%c1_258, %c7_259, %c0_260], %278 {strides = array<i32>} : memref<6x8x32xf32, #tpu.memory_space<vmem>>, vector<1x1x32xf32>,
    %279 = arith.index_cast %273 : i32 to index
    %c0_261 = arith.constant 0 : index
    %280 = vector.load %arg8[%279, %c0_261] : memref<8x32xf32, #tpu.memory_space<vmem>>, vector<1x32xf32>
    %c1_262 = arith.constant 1 : index
    %c7_263 = arith.constant 7 : index
    %c0_264 = arith.constant 0 : index
    %281 = vector.load %arg21[%c1_262, %c7_263, %c0_264] : memref<6x8x32xf32, #tpu.memory_space<vmem>>, vector<1x1x32xf32>
    %282 = vector.shape_cast %281 : vector<1x1x32xf32> to vector<1x32xf32>
    %283 = vector.shape_cast %280 : vector<1x32xf32> to vector<1x1x32xf32>
    tpu.vector_store %arg21[%c1_262, %c7_263, %c0_264], %283 {strides = array<i32>} : memref<6x8x32xf32, #tpu.memory_space<vmem>>, vector<1x1x32xf32>,
    %c1_265 = arith.constant 1 : index
    %284 = memref.load %arg3[%c1_265] : memref<6xi32, #tpu.memory_space<smem>>
    %285 = arith.index_cast %284 : i32 to index
    %c0_266 = arith.constant 0 : index
    %286 = vector.load %arg17[%285, %c0_266] : memref<10x32xf32, #tpu.memory_space<vmem>>, vector<1x32xf32>
    %c1_267 = arith.constant 1 : index
    %c0_268 = arith.constant 0 : index
    %287 = vector.load %arg22[%c1_267, %c0_268] : memref<6x32xf32, #tpu.memory_space<vmem>>, vector<1x32xf32>
    tpu.vector_store %arg22[%c1_267, %c0_268], %286 {strides = array<i32>} : memref<6x32xf32, #tpu.memory_space<vmem>>, vector<1x32xf32>,
    %c2_269 = arith.constant 2 : index
    %c0_270 = arith.constant 0 : index
    %288 = memref.load %arg0[%c2_269, %c0_270] : memref<6x8xi32, #tpu.memory_space<smem>>
    %289 = arith.index_cast %288 : i32 to index
    %c0_271 = arith.constant 0 : index
    %290 = vector.load %arg17[%289, %c0_271] : memref<10x32xf32, #tpu.memory_space<vmem>>, vector<1x32xf32>
    %c2_272 = arith.constant 2 : index
    %c0_273 = arith.constant 0 : index
    %c0_274 = arith.constant 0 : index
    %291 = vector.load %arg18[%c2_272, %c0_273, %c0_274] : memref<6x8x32xf32, #tpu.memory_space<vmem>>, vector<1x1x32xf32>
    %292 = vector.shape_cast %291 : vector<1x1x32xf32> to vector<1x32xf32>
    %293 = vector.shape_cast %290 : vector<1x32xf32> to vector<1x1x32xf32>
    tpu.vector_store %arg18[%c2_272, %c0_273, %c0_274], %293 {strides = array<i32>} : memref<6x8x32xf32, #tpu.memory_space<vmem>>, vector<1x1x32xf32>,
    %c2_275 = arith.constant 2 : index
    %c0_276 = arith.constant 0 : index
    %294 = memref.load %arg2[%c2_275, %c0_276] : memref<6x8xi32, #tpu.memory_space<smem>>
    %295 = arith.index_cast %294 : i32 to index
    %c0_277 = arith.constant 0 : index
    %296 = vector.load %arg7[%295, %c0_277] : memref<8x32xf32, #tpu.memory_space<vmem>>, vector<1x32xf32>
    %c2_278 = arith.constant 2 : index
    %c0_279 = arith.constant 0 : index
    %c0_280 = arith.constant 0 : index
    %297 = vector.load %arg20[%c2_278, %c0_279, %c0_280] : memref<6x8x32xf32, #tpu.memory_space<vmem>>, vector<1x1x32xf32>
    %298 = vector.shape_cast %297 : vector<1x1x32xf32> to vector<1x32xf32>
    %299 = vector.shape_cast %296 : vector<1x32xf32> to vector<1x1x32xf32>
    tpu.vector_store %arg20[%c2_278, %c0_279, %c0_280], %299 {strides = array<i32>} : memref<6x8x32xf32, #tpu.memory_space<vmem>>, vector<1x1x32xf32>,
    %300 = arith.index_cast %294 : i32 to index
    %c0_281 = arith.constant 0 : index
    %301 = vector.load %arg8[%300, %c0_281] : memref<8x32xf32, #tpu.memory_space<vmem>>, vector<1x32xf32>
    %c2_282 = arith.constant 2 : index
    %c0_283 = arith.constant 0 : index
    %c0_284 = arith.constant 0 : index
    %302 = vector.load %arg21[%c2_282, %c0_283, %c0_284] : memref<6x8x32xf32, #tpu.memory_space<vmem>>, vector<1x1x32xf32>
    %303 = vector.shape_cast %302 : vector<1x1x32xf32> to vector<1x32xf32>
    %304 = vector.shape_cast %301 : vector<1x32xf32> to vector<1x1x32xf32>
    tpu.vector_store %arg21[%c2_282, %c0_283, %c0_284], %304 {strides = array<i32>} : memref<6x8x32xf32, #tpu.memory_space<vmem>>, vector<1x1x32xf32>,
    %c2_285 = arith.constant 2 : index
    %c1_286 = arith.constant 1 : index
    %305 = memref.load %arg0[%c2_285, %c1_286] : memref<6x8xi32, #tpu.memory_space<smem>>
    %306 = arith.index_cast %305 : i32 to index
    %c0_287 = arith.constant 0 : index
    %307 = vector.load %arg17[%306, %c0_287] : memref<10x32xf32, #tpu.memory_space<vmem>>, vector<1x32xf32>
    %c2_288 = arith.constant 2 : index
    %c1_289 = arith.constant 1 : index
    %c0_290 = arith.constant 0 : index
    %308 = vector.load %arg18[%c2_288, %c1_289, %c0_290] : memref<6x8x32xf32, #tpu.memory_space<vmem>>, vector<1x1x32xf32>
    %309 = vector.shape_cast %308 : vector<1x1x32xf32> to vector<1x32xf32>
    %310 = vector.shape_cast %307 : vector<1x32xf32> to vector<1x1x32xf32>
    tpu.vector_store %arg18[%c2_288, %c1_289, %c0_290], %310 {strides = array<i32>} : memref<6x8x32xf32, #tpu.memory_space<vmem>>, vector<1x1x32xf32>,
    %c2_291 = arith.constant 2 : index
    %c1_292 = arith.constant 1 : index
    %311 = memref.load %arg2[%c2_291, %c1_292] : memref<6x8xi32, #tpu.memory_space<smem>>
    %312 = arith.index_cast %311 : i32 to index
    %c0_293 = arith.constant 0 : index
    %313 = vector.load %arg7[%312, %c0_293] : memref<8x32xf32, #tpu.memory_space<vmem>>, vector<1x32xf32>
    %c2_294 = arith.constant 2 : index
    %c1_295 = arith.constant 1 : index
    %c0_296 = arith.constant 0 : index
    %314 = vector.load %arg20[%c2_294, %c1_295, %c0_296] : memref<6x8x32xf32, #tpu.memory_space<vmem>>, vector<1x1x32xf32>
    %315 = vector.shape_cast %314 : vector<1x1x32xf32> to vector<1x32xf32>
    %316 = vector.shape_cast %313 : vector<1x32xf32> to vector<1x1x32xf32>
    tpu.vector_store %arg20[%c2_294, %c1_295, %c0_296], %316 {strides = array<i32>} : memref<6x8x32xf32, #tpu.memory_space<vmem>>, vector<1x1x32xf32>,
    %317 = arith.index_cast %311 : i32 to index
    %c0_297 = arith.constant 0 : index
    %318 = vector.load %arg8[%317, %c0_297] : memref<8x32xf32, #tpu.memory_space<vmem>>, vector<1x32xf32>
    %c2_298 = arith.constant 2 : index
    %c1_299 = arith.constant 1 : index
    %c0_300 = arith.constant 0 : index
    %319 = vector.load %arg21[%c2_298, %c1_299, %c0_300] : memref<6x8x32xf32, #tpu.memory_space<vmem>>, vector<1x1x32xf32>
    %320 = vector.shape_cast %319 : vector<1x1x32xf32> to vector<1x32xf32>
    %321 = vector.shape_cast %318 : vector<1x32xf32> to vector<1x1x32xf32>
    tpu.vector_store %arg21[%c2_298, %c1_299, %c0_300], %321 {strides = array<i32>} : memref<6x8x32xf32, #tpu.memory_space<vmem>>, vector<1x1x32xf32>,
    %c2_301 = arith.constant 2 : index
    %c2_302 = arith.constant 2 : index
    %322 = memref.load %arg0[%c2_301, %c2_302] : memref<6x8xi32, #tpu.memory_space<smem>>
    %323 = arith.index_cast %322 : i32 to index
    %c0_303 = arith.constant 0 : index
    %324 = vector.load %arg17[%323, %c0_303] : memref<10x32xf32, #tpu.memory_space<vmem>>, vector<1x32xf32>
    %c2_304 = arith.constant 2 : index
    %c2_305 = arith.constant 2 : index
    %c0_306 = arith.constant 0 : index
    %325 = vector.load %arg18[%c2_304, %c2_305, %c0_306] : memref<6x8x32xf32, #tpu.memory_space<vmem>>, vector<1x1x32xf32>
    %326 = vector.shape_cast %325 : vector<1x1x32xf32> to vector<1x32xf32>
    %327 = vector.shape_cast %324 : vector<1x32xf32> to vector<1x1x32xf32>
    tpu.vector_store %arg18[%c2_304, %c2_305, %c0_306], %327 {strides = array<i32>} : memref<6x8x32xf32, #tpu.memory_space<vmem>>, vector<1x1x32xf32>,
    %c2_307 = arith.constant 2 : index
    %c2_308 = arith.constant 2 : index
    %328 = memref.load %arg2[%c2_307, %c2_308] : memref<6x8xi32, #tpu.memory_space<smem>>
    %329 = arith.index_cast %328 : i32 to index
    %c0_309 = arith.constant 0 : index
    %330 = vector.load %arg7[%329, %c0_309] : memref<8x32xf32, #tpu.memory_space<vmem>>, vector<1x32xf32>
    %c2_310 = arith.constant 2 : index
    %c2_311 = arith.constant 2 : index
    %c0_312 = arith.constant 0 : index
    %331 = vector.load %arg20[%c2_310, %c2_311, %c0_312] : memref<6x8x32xf32, #tpu.memory_space<vmem>>, vector<1x1x32xf32>
    %332 = vector.shape_cast %331 : vector<1x1x32xf32> to vector<1x32xf32>
    %333 = vector.shape_cast %330 : vector<1x32xf32> to vector<1x1x32xf32>
    tpu.vector_store %arg20[%c2_310, %c2_311, %c0_312], %333 {strides = array<i32>} : memref<6x8x32xf32, #tpu.memory_space<vmem>>, vector<1x1x32xf32>,
    %334 = arith.index_cast %328 : i32 to index
    %c0_313 = arith.constant 0 : index
    %335 = vector.load %arg8[%334, %c0_313] : memref<8x32xf32, #tpu.memory_space<vmem>>, vector<1x32xf32>
    %c2_314 = arith.constant 2 : index
    %c2_315 = arith.constant 2 : index
    %c0_316 = arith.constant 0 : index
    %336 = vector.load %arg21[%c2_314, %c2_315, %c0_316] : memref<6x8x32xf32, #tpu.memory_space<vmem>>, vector<1x1x32xf32>
    %337 = vector.shape_cast %336 : vector<1x1x32xf32> to vector<1x32xf32>
    %338 = vector.shape_cast %335 : vector<1x32xf32> to vector<1x1x32xf32>
    tpu.vector_store %arg21[%c2_314, %c2_315, %c0_316], %338 {strides = array<i32>} : memref<6x8x32xf32, #tpu.memory_space<vmem>>, vector<1x1x32xf32>,
    %c2_317 = arith.constant 2 : index
    %c3_318 = arith.constant 3 : index
    %339 = memref.load %arg0[%c2_317, %c3_318] : memref<6x8xi32, #tpu.memory_space<smem>>
    %340 = arith.index_cast %339 : i32 to index
    %c0_319 = arith.constant 0 : index
    %341 = vector.load %arg17[%340, %c0_319] : memref<10x32xf32, #tpu.memory_space<vmem>>, vector<1x32xf32>
    %c2_320 = arith.constant 2 : index
    %c3_321 = arith.constant 3 : index
    %c0_322 = arith.constant 0 : index
    %342 = vector.load %arg18[%c2_320, %c3_321, %c0_322] : memref<6x8x32xf32, #tpu.memory_space<vmem>>, vector<1x1x32xf32>
    %343 = vector.shape_cast %342 : vector<1x1x32xf32> to vector<1x32xf32>
    %344 = vector.shape_cast %341 : vector<1x32xf32> to vector<1x1x32xf32>
    tpu.vector_store %arg18[%c2_320, %c3_321, %c0_322], %344 {strides = array<i32>} : memref<6x8x32xf32, #tpu.memory_space<vmem>>, vector<1x1x32xf32>,
    %c2_323 = arith.constant 2 : index
    %c3_324 = arith.constant 3 : index
    %345 = memref.load %arg2[%c2_323, %c3_324] : memref<6x8xi32, #tpu.memory_space<smem>>
    %346 = arith.index_cast %345 : i32 to index
    %c0_325 = arith.constant 0 : index
    %347 = vector.load %arg7[%346, %c0_325] : memref<8x32xf32, #tpu.memory_space<vmem>>, vector<1x32xf32>
    %c2_326 = arith.constant 2 : index
    %c3_327 = arith.constant 3 : index
    %c0_328 = arith.constant 0 : index
    %348 = vector.load %arg20[%c2_326, %c3_327, %c0_328] : memref<6x8x32xf32, #tpu.memory_space<vmem>>, vector<1x1x32xf32>
    %349 = vector.shape_cast %348 : vector<1x1x32xf32> to vector<1x32xf32>
    %350 = vector.shape_cast %347 : vector<1x32xf32> to vector<1x1x32xf32>
    tpu.vector_store %arg20[%c2_326, %c3_327, %c0_328], %350 {strides = array<i32>} : memref<6x8x32xf32, #tpu.memory_space<vmem>>, vector<1x1x32xf32>,
    %351 = arith.index_cast %345 : i32 to index
    %c0_329 = arith.constant 0 : index
    %352 = vector.load %arg8[%351, %c0_329] : memref<8x32xf32, #tpu.memory_space<vmem>>, vector<1x32xf32>
    %c2_330 = arith.constant 2 : index
    %c3_331 = arith.constant 3 : index
    %c0_332 = arith.constant 0 : index
    %353 = vector.load %arg21[%c2_330, %c3_331, %c0_332] : memref<6x8x32xf32, #tpu.memory_space<vmem>>, vector<1x1x32xf32>
    %354 = vector.shape_cast %353 : vector<1x1x32xf32> to vector<1x32xf32>
    %355 = vector.shape_cast %352 : vector<1x32xf32> to vector<1x1x32xf32>
    tpu.vector_store %arg21[%c2_330, %c3_331, %c0_332], %355 {strides = array<i32>} : memref<6x8x32xf32, #tpu.memory_space<vmem>>, vector<1x1x32xf32>,
    %c2_333 = arith.constant 2 : index
    %c4_334 = arith.constant 4 : index
    %356 = memref.load %arg0[%c2_333, %c4_334] : memref<6x8xi32, #tpu.memory_space<smem>>
    %357 = arith.index_cast %356 : i32 to index
    %c0_335 = arith.constant 0 : index
    %358 = vector.load %arg17[%357, %c0_335] : memref<10x32xf32, #tpu.memory_space<vmem>>, vector<1x32xf32>
    %c2_336 = arith.constant 2 : index
    %c4_337 = arith.constant 4 : index
    %c0_338 = arith.constant 0 : index
    %359 = vector.load %arg18[%c2_336, %c4_337, %c0_338] : memref<6x8x32xf32, #tpu.memory_space<vmem>>, vector<1x1x32xf32>
    %360 = vector.shape_cast %359 : vector<1x1x32xf32> to vector<1x32xf32>
    %361 = vector.shape_cast %358 : vector<1x32xf32> to vector<1x1x32xf32>
    tpu.vector_store %arg18[%c2_336, %c4_337, %c0_338], %361 {strides = array<i32>} : memref<6x8x32xf32, #tpu.memory_space<vmem>>, vector<1x1x32xf32>,
    %c2_339 = arith.constant 2 : index
    %c4_340 = arith.constant 4 : index
    %362 = memref.load %arg2[%c2_339, %c4_340] : memref<6x8xi32, #tpu.memory_space<smem>>
    %363 = arith.index_cast %362 : i32 to index
    %c0_341 = arith.constant 0 : index
    %364 = vector.load %arg7[%363, %c0_341] : memref<8x32xf32, #tpu.memory_space<vmem>>, vector<1x32xf32>
    %c2_342 = arith.constant 2 : index
    %c4_343 = arith.constant 4 : index
    %c0_344 = arith.constant 0 : index
    %365 = vector.load %arg20[%c2_342, %c4_343, %c0_344] : memref<6x8x32xf32, #tpu.memory_space<vmem>>, vector<1x1x32xf32>
    %366 = vector.shape_cast %365 : vector<1x1x32xf32> to vector<1x32xf32>
    %367 = vector.shape_cast %364 : vector<1x32xf32> to vector<1x1x32xf32>
    tpu.vector_store %arg20[%c2_342, %c4_343, %c0_344], %367 {strides = array<i32>} : memref<6x8x32xf32, #tpu.memory_space<vmem>>, vector<1x1x32xf32>,
    %368 = arith.index_cast %362 : i32 to index
    %c0_345 = arith.constant 0 : index
    %369 = vector.load %arg8[%368, %c0_345] : memref<8x32xf32, #tpu.memory_space<vmem>>, vector<1x32xf32>
    %c2_346 = arith.constant 2 : index
    %c4_347 = arith.constant 4 : index
    %c0_348 = arith.constant 0 : index
    %370 = vector.load %arg21[%c2_346, %c4_347, %c0_348] : memref<6x8x32xf32, #tpu.memory_space<vmem>>, vector<1x1x32xf32>
    %371 = vector.shape_cast %370 : vector<1x1x32xf32> to vector<1x32xf32>
    %372 = vector.shape_cast %369 : vector<1x32xf32> to vector<1x1x32xf32>
    tpu.vector_store %arg21[%c2_346, %c4_347, %c0_348], %372 {strides = array<i32>} : memref<6x8x32xf32, #tpu.memory_space<vmem>>, vector<1x1x32xf32>,
    %c2_349 = arith.constant 2 : index
    %c5_350 = arith.constant 5 : index
    %373 = memref.load %arg0[%c2_349, %c5_350] : memref<6x8xi32, #tpu.memory_space<smem>>
    %374 = arith.index_cast %373 : i32 to index
    %c0_351 = arith.constant 0 : index
    %375 = vector.load %arg17[%374, %c0_351] : memref<10x32xf32, #tpu.memory_space<vmem>>, vector<1x32xf32>
    %c2_352 = arith.constant 2 : index
    %c5_353 = arith.constant 5 : index
    %c0_354 = arith.constant 0 : index
    %376 = vector.load %arg18[%c2_352, %c5_353, %c0_354] : memref<6x8x32xf32, #tpu.memory_space<vmem>>, vector<1x1x32xf32>
    %377 = vector.shape_cast %376 : vector<1x1x32xf32> to vector<1x32xf32>
    %378 = vector.shape_cast %375 : vector<1x32xf32> to vector<1x1x32xf32>
    tpu.vector_store %arg18[%c2_352, %c5_353, %c0_354], %378 {strides = array<i32>} : memref<6x8x32xf32, #tpu.memory_space<vmem>>, vector<1x1x32xf32>,
    %c2_355 = arith.constant 2 : index
    %c5_356 = arith.constant 5 : index
    %379 = memref.load %arg2[%c2_355, %c5_356] : memref<6x8xi32, #tpu.memory_space<smem>>
    %380 = arith.index_cast %379 : i32 to index
    %c0_357 = arith.constant 0 : index
    %381 = vector.load %arg7[%380, %c0_357] : memref<8x32xf32, #tpu.memory_space<vmem>>, vector<1x32xf32>
    %c2_358 = arith.constant 2 : index
    %c5_359 = arith.constant 5 : index
    %c0_360 = arith.constant 0 : index
    %382 = vector.load %arg20[%c2_358, %c5_359, %c0_360] : memref<6x8x32xf32, #tpu.memory_space<vmem>>, vector<1x1x32xf32>
    %383 = vector.shape_cast %382 : vector<1x1x32xf32> to vector<1x32xf32>
    %384 = vector.shape_cast %381 : vector<1x32xf32> to vector<1x1x32xf32>
    tpu.vector_store %arg20[%c2_358, %c5_359, %c0_360], %384 {strides = array<i32>} : memref<6x8x32xf32, #tpu.memory_space<vmem>>, vector<1x1x32xf32>,
    %385 = arith.index_cast %379 : i32 to index
    %c0_361 = arith.constant 0 : index
    %386 = vector.load %arg8[%385, %c0_361] : memref<8x32xf32, #tpu.memory_space<vmem>>, vector<1x32xf32>
    %c2_362 = arith.constant 2 : index
    %c5_363 = arith.constant 5 : index
    %c0_364 = arith.constant 0 : index
    %387 = vector.load %arg21[%c2_362, %c5_363, %c0_364] : memref<6x8x32xf32, #tpu.memory_space<vmem>>, vector<1x1x32xf32>
    %388 = vector.shape_cast %387 : vector<1x1x32xf32> to vector<1x32xf32>
    %389 = vector.shape_cast %386 : vector<1x32xf32> to vector<1x1x32xf32>
    tpu.vector_store %arg21[%c2_362, %c5_363, %c0_364], %389 {strides = array<i32>} : memref<6x8x32xf32, #tpu.memory_space<vmem>>, vector<1x1x32xf32>,
    %c2_365 = arith.constant 2 : index
    %c6_366 = arith.constant 6 : index
    %390 = memref.load %arg0[%c2_365, %c6_366] : memref<6x8xi32, #tpu.memory_space<smem>>
    %391 = arith.index_cast %390 : i32 to index
    %c0_367 = arith.constant 0 : index
    %392 = vector.load %arg17[%391, %c0_367] : memref<10x32xf32, #tpu.memory_space<vmem>>, vector<1x32xf32>
    %c2_368 = arith.constant 2 : index
    %c6_369 = arith.constant 6 : index
    %c0_370 = arith.constant 0 : index
    %393 = vector.load %arg18[%c2_368, %c6_369, %c0_370] : memref<6x8x32xf32, #tpu.memory_space<vmem>>, vector<1x1x32xf32>
    %394 = vector.shape_cast %393 : vector<1x1x32xf32> to vector<1x32xf32>
    %395 = vector.shape_cast %392 : vector<1x32xf32> to vector<1x1x32xf32>
    tpu.vector_store %arg18[%c2_368, %c6_369, %c0_370], %395 {strides = array<i32>} : memref<6x8x32xf32, #tpu.memory_space<vmem>>, vector<1x1x32xf32>,
    %c2_371 = arith.constant 2 : index
    %c6_372 = arith.constant 6 : index
    %396 = memref.load %arg2[%c2_371, %c6_372] : memref<6x8xi32, #tpu.memory_space<smem>>
    %397 = arith.index_cast %396 : i32 to index
    %c0_373 = arith.constant 0 : index
    %398 = vector.load %arg7[%397, %c0_373] : memref<8x32xf32, #tpu.memory_space<vmem>>, vector<1x32xf32>
    %c2_374 = arith.constant 2 : index
    %c6_375 = arith.constant 6 : index
    %c0_376 = arith.constant 0 : index
    %399 = vector.load %arg20[%c2_374, %c6_375, %c0_376] : memref<6x8x32xf32, #tpu.memory_space<vmem>>, vector<1x1x32xf32>
    %400 = vector.shape_cast %399 : vector<1x1x32xf32> to vector<1x32xf32>
    %401 = vector.shape_cast %398 : vector<1x32xf32> to vector<1x1x32xf32>
    tpu.vector_store %arg20[%c2_374, %c6_375, %c0_376], %401 {strides = array<i32>} : memref<6x8x32xf32, #tpu.memory_space<vmem>>, vector<1x1x32xf32>,
    %402 = arith.index_cast %396 : i32 to index
    %c0_377 = arith.constant 0 : index
    %403 = vector.load %arg8[%402, %c0_377] : memref<8x32xf32, #tpu.memory_space<vmem>>, vector<1x32xf32>
    %c2_378 = arith.constant 2 : index
    %c6_379 = arith.constant 6 : index
    %c0_380 = arith.constant 0 : index
    %404 = vector.load %arg21[%c2_378, %c6_379, %c0_380] : memref<6x8x32xf32, #tpu.memory_space<vmem>>, vector<1x1x32xf32>
    %405 = vector.shape_cast %404 : vector<1x1x32xf32> to vector<1x32xf32>
    %406 = vector.shape_cast %403 : vector<1x32xf32> to vector<1x1x32xf32>
    tpu.vector_store %arg21[%c2_378, %c6_379, %c0_380], %406 {strides = array<i32>} : memref<6x8x32xf32, #tpu.memory_space<vmem>>, vector<1x1x32xf32>,
    %c2_381 = arith.constant 2 : index
    %c7_382 = arith.constant 7 : index
    %407 = memref.load %arg0[%c2_381, %c7_382] : memref<6x8xi32, #tpu.memory_space<smem>>
    %408 = arith.index_cast %407 : i32 to index
    %c0_383 = arith.constant 0 : index
    %409 = vector.load %arg17[%408, %c0_383] : memref<10x32xf32, #tpu.memory_space<vmem>>, vector<1x32xf32>
    %c2_384 = arith.constant 2 : index
    %c7_385 = arith.constant 7 : index
    %c0_386 = arith.constant 0 : index
    %410 = vector.load %arg18[%c2_384, %c7_385, %c0_386] : memref<6x8x32xf32, #tpu.memory_space<vmem>>, vector<1x1x32xf32>
    %411 = vector.shape_cast %410 : vector<1x1x32xf32> to vector<1x32xf32>
    %412 = vector.shape_cast %409 : vector<1x32xf32> to vector<1x1x32xf32>
    tpu.vector_store %arg18[%c2_384, %c7_385, %c0_386], %412 {strides = array<i32>} : memref<6x8x32xf32, #tpu.memory_space<vmem>>, vector<1x1x32xf32>,
    %c2_387 = arith.constant 2 : index
    %c7_388 = arith.constant 7 : index
    %413 = memref.load %arg2[%c2_387, %c7_388] : memref<6x8xi32, #tpu.memory_space<smem>>
    %414 = arith.index_cast %413 : i32 to index
    %c0_389 = arith.constant 0 : index
    %415 = vector.load %arg7[%414, %c0_389] : memref<8x32xf32, #tpu.memory_space<vmem>>, vector<1x32xf32>
    %c2_390 = arith.constant 2 : index
    %c7_391 = arith.constant 7 : index
    %c0_392 = arith.constant 0 : index
    %416 = vector.load %arg20[%c2_390, %c7_391, %c0_392] : memref<6x8x32xf32, #tpu.memory_space<vmem>>, vector<1x1x32xf32>
    %417 = vector.shape_cast %416 : vector<1x1x32xf32> to vector<1x32xf32>
    %418 = vector.shape_cast %415 : vector<1x32xf32> to vector<1x1x32xf32>
    tpu.vector_store %arg20[%c2_390, %c7_391, %c0_392], %418 {strides = array<i32>} : memref<6x8x32xf32, #tpu.memory_space<vmem>>, vector<1x1x32xf32>,
    %419 = arith.index_cast %413 : i32 to index
    %c0_393 = arith.constant 0 : index
    %420 = vector.load %arg8[%419, %c0_393] : memref<8x32xf32, #tpu.memory_space<vmem>>, vector<1x32xf32>
    %c2_394 = arith.constant 2 : index
    %c7_395 = arith.constant 7 : index
    %c0_396 = arith.constant 0 : index
    %421 = vector.load %arg21[%c2_394, %c7_395, %c0_396] : memref<6x8x32xf32, #tpu.memory_space<vmem>>, vector<1x1x32xf32>
    %422 = vector.shape_cast %421 : vector<1x1x32xf32> to vector<1x32xf32>
    %423 = vector.shape_cast %420 : vector<1x32xf32> to vector<1x1x32xf32>
    tpu.vector_store %arg21[%c2_394, %c7_395, %c0_396], %423 {strides = array<i32>} : memref<6x8x32xf32, #tpu.memory_space<vmem>>, vector<1x1x32xf32>,
    %c2_397 = arith.constant 2 : index
    %424 = memref.load %arg3[%c2_397] : memref<6xi32, #tpu.memory_space<smem>>
    %425 = arith.index_cast %424 : i32 to index
    %c0_398 = arith.constant 0 : index
    %426 = vector.load %arg17[%425, %c0_398] : memref<10x32xf32, #tpu.memory_space<vmem>>, vector<1x32xf32>
    %c2_399 = arith.constant 2 : index
    %c0_400 = arith.constant 0 : index
    %427 = vector.load %arg22[%c2_399, %c0_400] : memref<6x32xf32, #tpu.memory_space<vmem>>, vector<1x32xf32>
    tpu.vector_store %arg22[%c2_399, %c0_400], %426 {strides = array<i32>} : memref<6x32xf32, #tpu.memory_space<vmem>>, vector<1x32xf32>,
    %c3_401 = arith.constant 3 : index
    %c0_402 = arith.constant 0 : index
    %428 = memref.load %arg0[%c3_401, %c0_402] : memref<6x8xi32, #tpu.memory_space<smem>>
    %429 = arith.index_cast %428 : i32 to index
    %c0_403 = arith.constant 0 : index
    %430 = vector.load %arg17[%429, %c0_403] : memref<10x32xf32, #tpu.memory_space<vmem>>, vector<1x32xf32>
    %c3_404 = arith.constant 3 : index
    %c0_405 = arith.constant 0 : index
    %c0_406 = arith.constant 0 : index
    %431 = vector.load %arg18[%c3_404, %c0_405, %c0_406] : memref<6x8x32xf32, #tpu.memory_space<vmem>>, vector<1x1x32xf32>
    %432 = vector.shape_cast %431 : vector<1x1x32xf32> to vector<1x32xf32>
    %433 = vector.shape_cast %430 : vector<1x32xf32> to vector<1x1x32xf32>
    tpu.vector_store %arg18[%c3_404, %c0_405, %c0_406], %433 {strides = array<i32>} : memref<6x8x32xf32, #tpu.memory_space<vmem>>, vector<1x1x32xf32>,
    %c3_407 = arith.constant 3 : index
    %c0_408 = arith.constant 0 : index
    %434 = memref.load %arg2[%c3_407, %c0_408] : memref<6x8xi32, #tpu.memory_space<smem>>
    %435 = arith.index_cast %434 : i32 to index
    %c0_409 = arith.constant 0 : index
    %436 = vector.load %arg7[%435, %c0_409] : memref<8x32xf32, #tpu.memory_space<vmem>>, vector<1x32xf32>
    %c3_410 = arith.constant 3 : index
    %c0_411 = arith.constant 0 : index
    %c0_412 = arith.constant 0 : index
    %437 = vector.load %arg20[%c3_410, %c0_411, %c0_412] : memref<6x8x32xf32, #tpu.memory_space<vmem>>, vector<1x1x32xf32>
    %438 = vector.shape_cast %437 : vector<1x1x32xf32> to vector<1x32xf32>
    %439 = vector.shape_cast %436 : vector<1x32xf32> to vector<1x1x32xf32>
    tpu.vector_store %arg20[%c3_410, %c0_411, %c0_412], %439 {strides = array<i32>} : memref<6x8x32xf32, #tpu.memory_space<vmem>>, vector<1x1x32xf32>,
    %440 = arith.index_cast %434 : i32 to index
    %c0_413 = arith.constant 0 : index
    %441 = vector.load %arg8[%440, %c0_413] : memref<8x32xf32, #tpu.memory_space<vmem>>, vector<1x32xf32>
    %c3_414 = arith.constant 3 : index
    %c0_415 = arith.constant 0 : index
    %c0_416 = arith.constant 0 : index
    %442 = vector.load %arg21[%c3_414, %c0_415, %c0_416] : memref<6x8x32xf32, #tpu.memory_space<vmem>>, vector<1x1x32xf32>
    %443 = vector.shape_cast %442 : vector<1x1x32xf32> to vector<1x32xf32>
    %444 = vector.shape_cast %441 : vector<1x32xf32> to vector<1x1x32xf32>
    tpu.vector_store %arg21[%c3_414, %c0_415, %c0_416], %444 {strides = array<i32>} : memref<6x8x32xf32, #tpu.memory_space<vmem>>, vector<1x1x32xf32>,
    %c3_417 = arith.constant 3 : index
    %c1_418 = arith.constant 1 : index
    %445 = memref.load %arg0[%c3_417, %c1_418] : memref<6x8xi32, #tpu.memory_space<smem>>
    %446 = arith.index_cast %445 : i32 to index
    %c0_419 = arith.constant 0 : index
    %447 = vector.load %arg17[%446, %c0_419] : memref<10x32xf32, #tpu.memory_space<vmem>>, vector<1x32xf32>
    %c3_420 = arith.constant 3 : index
    %c1_421 = arith.constant 1 : index
    %c0_422 = arith.constant 0 : index
    %448 = vector.load %arg18[%c3_420, %c1_421, %c0_422] : memref<6x8x32xf32, #tpu.memory_space<vmem>>, vector<1x1x32xf32>
    %449 = vector.shape_cast %448 : vector<1x1x32xf32> to vector<1x32xf32>
    %450 = vector.shape_cast %447 : vector<1x32xf32> to vector<1x1x32xf32>
    tpu.vector_store %arg18[%c3_420, %c1_421, %c0_422], %450 {strides = array<i32>} : memref<6x8x32xf32, #tpu.memory_space<vmem>>, vector<1x1x32xf32>,
    %c3_423 = arith.constant 3 : index
    %c1_424 = arith.constant 1 : index
    %451 = memref.load %arg2[%c3_423, %c1_424] : memref<6x8xi32, #tpu.memory_space<smem>>
    %452 = arith.index_cast %451 : i32 to index
    %c0_425 = arith.constant 0 : index
    %453 = vector.load %arg7[%452, %c0_425] : memref<8x32xf32, #tpu.memory_space<vmem>>, vector<1x32xf32>
    %c3_426 = arith.constant 3 : index
    %c1_427 = arith.constant 1 : index
    %c0_428 = arith.constant 0 : index
    %454 = vector.load %arg20[%c3_426, %c1_427, %c0_428] : memref<6x8x32xf32, #tpu.memory_space<vmem>>, vector<1x1x32xf32>
    %455 = vector.shape_cast %454 : vector<1x1x32xf32> to vector<1x32xf32>
    %456 = vector.shape_cast %453 : vector<1x32xf32> to vector<1x1x32xf32>
    tpu.vector_store %arg20[%c3_426, %c1_427, %c0_428], %456 {strides = array<i32>} : memref<6x8x32xf32, #tpu.memory_space<vmem>>, vector<1x1x32xf32>,
    %457 = arith.index_cast %451 : i32 to index
    %c0_429 = arith.constant 0 : index
    %458 = vector.load %arg8[%457, %c0_429] : memref<8x32xf32, #tpu.memory_space<vmem>>, vector<1x32xf32>
    %c3_430 = arith.constant 3 : index
    %c1_431 = arith.constant 1 : index
    %c0_432 = arith.constant 0 : index
    %459 = vector.load %arg21[%c3_430, %c1_431, %c0_432] : memref<6x8x32xf32, #tpu.memory_space<vmem>>, vector<1x1x32xf32>
    %460 = vector.shape_cast %459 : vector<1x1x32xf32> to vector<1x32xf32>
    %461 = vector.shape_cast %458 : vector<1x32xf32> to vector<1x1x32xf32>
    tpu.vector_store %arg21[%c3_430, %c1_431, %c0_432], %461 {strides = array<i32>} : memref<6x8x32xf32, #tpu.memory_space<vmem>>, vector<1x1x32xf32>,
    %c3_433 = arith.constant 3 : index
    %c2_434 = arith.constant 2 : index
    %462 = memref.load %arg0[%c3_433, %c2_434] : memref<6x8xi32, #tpu.memory_space<smem>>
    %463 = arith.index_cast %462 : i32 to index
    %c0_435 = arith.constant 0 : index
    %464 = vector.load %arg17[%463, %c0_435] : memref<10x32xf32, #tpu.memory_space<vmem>>, vector<1x32xf32>
    %c3_436 = arith.constant 3 : index
    %c2_437 = arith.constant 2 : index
    %c0_438 = arith.constant 0 : index
    %465 = vector.load %arg18[%c3_436, %c2_437, %c0_438] : memref<6x8x32xf32, #tpu.memory_space<vmem>>, vector<1x1x32xf32>
    %466 = vector.shape_cast %465 : vector<1x1x32xf32> to vector<1x32xf32>
    %467 = vector.shape_cast %464 : vector<1x32xf32> to vector<1x1x32xf32>
    tpu.vector_store %arg18[%c3_436, %c2_437, %c0_438], %467 {strides = array<i32>} : memref<6x8x32xf32, #tpu.memory_space<vmem>>, vector<1x1x32xf32>,
    %c3_439 = arith.constant 3 : index
    %c2_440 = arith.constant 2 : index
    %468 = memref.load %arg2[%c3_439, %c2_440] : memref<6x8xi32, #tpu.memory_space<smem>>
    %469 = arith.index_cast %468 : i32 to index
    %c0_441 = arith.constant 0 : index
    %470 = vector.load %arg7[%469, %c0_441] : memref<8x32xf32, #tpu.memory_space<vmem>>, vector<1x32xf32>
    %c3_442 = arith.constant 3 : index
    %c2_443 = arith.constant 2 : index
    %c0_444 = arith.constant 0 : index
    %471 = vector.load %arg20[%c3_442, %c2_443, %c0_444] : memref<6x8x32xf32, #tpu.memory_space<vmem>>, vector<1x1x32xf32>
    %472 = vector.shape_cast %471 : vector<1x1x32xf32> to vector<1x32xf32>
    %473 = vector.shape_cast %470 : vector<1x32xf32> to vector<1x1x32xf32>
    tpu.vector_store %arg20[%c3_442, %c2_443, %c0_444], %473 {strides = array<i32>} : memref<6x8x32xf32, #tpu.memory_space<vmem>>, vector<1x1x32xf32>,
    %474 = arith.index_cast %468 : i32 to index
    %c0_445 = arith.constant 0 : index
    %475 = vector.load %arg8[%474, %c0_445] : memref<8x32xf32, #tpu.memory_space<vmem>>, vector<1x32xf32>
    %c3_446 = arith.constant 3 : index
    %c2_447 = arith.constant 2 : index
    %c0_448 = arith.constant 0 : index
    %476 = vector.load %arg21[%c3_446, %c2_447, %c0_448] : memref<6x8x32xf32, #tpu.memory_space<vmem>>, vector<1x1x32xf32>
    %477 = vector.shape_cast %476 : vector<1x1x32xf32> to vector<1x32xf32>
    %478 = vector.shape_cast %475 : vector<1x32xf32> to vector<1x1x32xf32>
    tpu.vector_store %arg21[%c3_446, %c2_447, %c0_448], %478 {strides = array<i32>} : memref<6x8x32xf32, #tpu.memory_space<vmem>>, vector<1x1x32xf32>,
    %c3_449 = arith.constant 3 : index
    %c3_450 = arith.constant 3 : index
    %479 = memref.load %arg0[%c3_449, %c3_450] : memref<6x8xi32, #tpu.memory_space<smem>>
    %480 = arith.index_cast %479 : i32 to index
    %c0_451 = arith.constant 0 : index
    %481 = vector.load %arg17[%480, %c0_451] : memref<10x32xf32, #tpu.memory_space<vmem>>, vector<1x32xf32>
    %c3_452 = arith.constant 3 : index
    %c3_453 = arith.constant 3 : index
    %c0_454 = arith.constant 0 : index
    %482 = vector.load %arg18[%c3_452, %c3_453, %c0_454] : memref<6x8x32xf32, #tpu.memory_space<vmem>>, vector<1x1x32xf32>
    %483 = vector.shape_cast %482 : vector<1x1x32xf32> to vector<1x32xf32>
    %484 = vector.shape_cast %481 : vector<1x32xf32> to vector<1x1x32xf32>
    tpu.vector_store %arg18[%c3_452, %c3_453, %c0_454], %484 {strides = array<i32>} : memref<6x8x32xf32, #tpu.memory_space<vmem>>, vector<1x1x32xf32>,
    %c3_455 = arith.constant 3 : index
    %c3_456 = arith.constant 3 : index
    %485 = memref.load %arg2[%c3_455, %c3_456] : memref<6x8xi32, #tpu.memory_space<smem>>
    %486 = arith.index_cast %485 : i32 to index
    %c0_457 = arith.constant 0 : index
    %487 = vector.load %arg7[%486, %c0_457] : memref<8x32xf32, #tpu.memory_space<vmem>>, vector<1x32xf32>
    %c3_458 = arith.constant 3 : index
    %c3_459 = arith.constant 3 : index
    %c0_460 = arith.constant 0 : index
    %488 = vector.load %arg20[%c3_458, %c3_459, %c0_460] : memref<6x8x32xf32, #tpu.memory_space<vmem>>, vector<1x1x32xf32>
    %489 = vector.shape_cast %488 : vector<1x1x32xf32> to vector<1x32xf32>
    %490 = vector.shape_cast %487 : vector<1x32xf32> to vector<1x1x32xf32>
    tpu.vector_store %arg20[%c3_458, %c3_459, %c0_460], %490 {strides = array<i32>} : memref<6x8x32xf32, #tpu.memory_space<vmem>>, vector<1x1x32xf32>,
    %491 = arith.index_cast %485 : i32 to index
    %c0_461 = arith.constant 0 : index
    %492 = vector.load %arg8[%491, %c0_461] : memref<8x32xf32, #tpu.memory_space<vmem>>, vector<1x32xf32>
    %c3_462 = arith.constant 3 : index
    %c3_463 = arith.constant 3 : index
    %c0_464 = arith.constant 0 : index
    %493 = vector.load %arg21[%c3_462, %c3_463, %c0_464] : memref<6x8x32xf32, #tpu.memory_space<vmem>>, vector<1x1x32xf32>
    %494 = vector.shape_cast %493 : vector<1x1x32xf32> to vector<1x32xf32>
    %495 = vector.shape_cast %492 : vector<1x32xf32> to vector<1x1x32xf32>
    tpu.vector_store %arg21[%c3_462, %c3_463, %c0_464], %495 {strides = array<i32>} : memref<6x8x32xf32, #tpu.memory_space<vmem>>, vector<1x1x32xf32>,
    %c3_465 = arith.constant 3 : index
    %c4_466 = arith.constant 4 : index
    %496 = memref.load %arg0[%c3_465, %c4_466] : memref<6x8xi32, #tpu.memory_space<smem>>
    %497 = arith.index_cast %496 : i32 to index
    %c0_467 = arith.constant 0 : index
    %498 = vector.load %arg17[%497, %c0_467] : memref<10x32xf32, #tpu.memory_space<vmem>>, vector<1x32xf32>
    %c3_468 = arith.constant 3 : index
    %c4_469 = arith.constant 4 : index
    %c0_470 = arith.constant 0 : index
    %499 = vector.load %arg18[%c3_468, %c4_469, %c0_470] : memref<6x8x32xf32, #tpu.memory_space<vmem>>, vector<1x1x32xf32>
    %500 = vector.shape_cast %499 : vector<1x1x32xf32> to vector<1x32xf32>
    %501 = vector.shape_cast %498 : vector<1x32xf32> to vector<1x1x32xf32>
    tpu.vector_store %arg18[%c3_468, %c4_469, %c0_470], %501 {strides = array<i32>} : memref<6x8x32xf32, #tpu.memory_space<vmem>>, vector<1x1x32xf32>,
    %c3_471 = arith.constant 3 : index
    %c4_472 = arith.constant 4 : index
    %502 = memref.load %arg2[%c3_471, %c4_472] : memref<6x8xi32, #tpu.memory_space<smem>>
    %503 = arith.index_cast %502 : i32 to index
    %c0_473 = arith.constant 0 : index
    %504 = vector.load %arg7[%503, %c0_473] : memref<8x32xf32, #tpu.memory_space<vmem>>, vector<1x32xf32>
    %c3_474 = arith.constant 3 : index
    %c4_475 = arith.constant 4 : index
    %c0_476 = arith.constant 0 : index
    %505 = vector.load %arg20[%c3_474, %c4_475, %c0_476] : memref<6x8x32xf32, #tpu.memory_space<vmem>>, vector<1x1x32xf32>
    %506 = vector.shape_cast %505 : vector<1x1x32xf32> to vector<1x32xf32>
    %507 = vector.shape_cast %504 : vector<1x32xf32> to vector<1x1x32xf32>
    tpu.vector_store %arg20[%c3_474, %c4_475, %c0_476], %507 {strides = array<i32>} : memref<6x8x32xf32, #tpu.memory_space<vmem>>, vector<1x1x32xf32>,
    %508 = arith.index_cast %502 : i32 to index
    %c0_477 = arith.constant 0 : index
    %509 = vector.load %arg8[%508, %c0_477] : memref<8x32xf32, #tpu.memory_space<vmem>>, vector<1x32xf32>
    %c3_478 = arith.constant 3 : index
    %c4_479 = arith.constant 4 : index
    %c0_480 = arith.constant 0 : index
    %510 = vector.load %arg21[%c3_478, %c4_479, %c0_480] : memref<6x8x32xf32, #tpu.memory_space<vmem>>, vector<1x1x32xf32>
    %511 = vector.shape_cast %510 : vector<1x1x32xf32> to vector<1x32xf32>
    %512 = vector.shape_cast %509 : vector<1x32xf32> to vector<1x1x32xf32>
    tpu.vector_store %arg21[%c3_478, %c4_479, %c0_480], %512 {strides = array<i32>} : memref<6x8x32xf32, #tpu.memory_space<vmem>>, vector<1x1x32xf32>,
    %c3_481 = arith.constant 3 : index
    %c5_482 = arith.constant 5 : index
    %513 = memref.load %arg0[%c3_481, %c5_482] : memref<6x8xi32, #tpu.memory_space<smem>>
    %514 = arith.index_cast %513 : i32 to index
    %c0_483 = arith.constant 0 : index
    %515 = vector.load %arg17[%514, %c0_483] : memref<10x32xf32, #tpu.memory_space<vmem>>, vector<1x32xf32>
    %c3_484 = arith.constant 3 : index
    %c5_485 = arith.constant 5 : index
    %c0_486 = arith.constant 0 : index
    %516 = vector.load %arg18[%c3_484, %c5_485, %c0_486] : memref<6x8x32xf32, #tpu.memory_space<vmem>>, vector<1x1x32xf32>
    %517 = vector.shape_cast %516 : vector<1x1x32xf32> to vector<1x32xf32>
    %518 = vector.shape_cast %515 : vector<1x32xf32> to vector<1x1x32xf32>
    tpu.vector_store %arg18[%c3_484, %c5_485, %c0_486], %518 {strides = array<i32>} : memref<6x8x32xf32, #tpu.memory_space<vmem>>, vector<1x1x32xf32>,
    %c3_487 = arith.constant 3 : index
    %c5_488 = arith.constant 5 : index
    %519 = memref.load %arg2[%c3_487, %c5_488] : memref<6x8xi32, #tpu.memory_space<smem>>
    %520 = arith.index_cast %519 : i32 to index
    %c0_489 = arith.constant 0 : index
    %521 = vector.load %arg7[%520, %c0_489] : memref<8x32xf32, #tpu.memory_space<vmem>>, vector<1x32xf32>
    %c3_490 = arith.constant 3 : index
    %c5_491 = arith.constant 5 : index
    %c0_492 = arith.constant 0 : index
    %522 = vector.load %arg20[%c3_490, %c5_491, %c0_492] : memref<6x8x32xf32, #tpu.memory_space<vmem>>, vector<1x1x32xf32>
    %523 = vector.shape_cast %522 : vector<1x1x32xf32> to vector<1x32xf32>
    %524 = vector.shape_cast %521 : vector<1x32xf32> to vector<1x1x32xf32>
    tpu.vector_store %arg20[%c3_490, %c5_491, %c0_492], %524 {strides = array<i32>} : memref<6x8x32xf32, #tpu.memory_space<vmem>>, vector<1x1x32xf32>,
    %525 = arith.index_cast %519 : i32 to index
    %c0_493 = arith.constant 0 : index
    %526 = vector.load %arg8[%525, %c0_493] : memref<8x32xf32, #tpu.memory_space<vmem>>, vector<1x32xf32>
    %c3_494 = arith.constant 3 : index
    %c5_495 = arith.constant 5 : index
    %c0_496 = arith.constant 0 : index
    %527 = vector.load %arg21[%c3_494, %c5_495, %c0_496] : memref<6x8x32xf32, #tpu.memory_space<vmem>>, vector<1x1x32xf32>
    %528 = vector.shape_cast %527 : vector<1x1x32xf32> to vector<1x32xf32>
    %529 = vector.shape_cast %526 : vector<1x32xf32> to vector<1x1x32xf32>
    tpu.vector_store %arg21[%c3_494, %c5_495, %c0_496], %529 {strides = array<i32>} : memref<6x8x32xf32, #tpu.memory_space<vmem>>, vector<1x1x32xf32>,
    %c3_497 = arith.constant 3 : index
    %c6_498 = arith.constant 6 : index
    %530 = memref.load %arg0[%c3_497, %c6_498] : memref<6x8xi32, #tpu.memory_space<smem>>
    %531 = arith.index_cast %530 : i32 to index
    %c0_499 = arith.constant 0 : index
    %532 = vector.load %arg17[%531, %c0_499] : memref<10x32xf32, #tpu.memory_space<vmem>>, vector<1x32xf32>
    %c3_500 = arith.constant 3 : index
    %c6_501 = arith.constant 6 : index
    %c0_502 = arith.constant 0 : index
    %533 = vector.load %arg18[%c3_500, %c6_501, %c0_502] : memref<6x8x32xf32, #tpu.memory_space<vmem>>, vector<1x1x32xf32>
    %534 = vector.shape_cast %533 : vector<1x1x32xf32> to vector<1x32xf32>
    %535 = vector.shape_cast %532 : vector<1x32xf32> to vector<1x1x32xf32>
    tpu.vector_store %arg18[%c3_500, %c6_501, %c0_502], %535 {strides = array<i32>} : memref<6x8x32xf32, #tpu.memory_space<vmem>>, vector<1x1x32xf32>,
    %c3_503 = arith.constant 3 : index
    %c6_504 = arith.constant 6 : index
    %536 = memref.load %arg2[%c3_503, %c6_504] : memref<6x8xi32, #tpu.memory_space<smem>>
    %537 = arith.index_cast %536 : i32 to index
    %c0_505 = arith.constant 0 : index
    %538 = vector.load %arg7[%537, %c0_505] : memref<8x32xf32, #tpu.memory_space<vmem>>, vector<1x32xf32>
    %c3_506 = arith.constant 3 : index
    %c6_507 = arith.constant 6 : index
    %c0_508 = arith.constant 0 : index
    %539 = vector.load %arg20[%c3_506, %c6_507, %c0_508] : memref<6x8x32xf32, #tpu.memory_space<vmem>>, vector<1x1x32xf32>
    %540 = vector.shape_cast %539 : vector<1x1x32xf32> to vector<1x32xf32>
    %541 = vector.shape_cast %538 : vector<1x32xf32> to vector<1x1x32xf32>
    tpu.vector_store %arg20[%c3_506, %c6_507, %c0_508], %541 {strides = array<i32>} : memref<6x8x32xf32, #tpu.memory_space<vmem>>, vector<1x1x32xf32>,
    %542 = arith.index_cast %536 : i32 to index
    %c0_509 = arith.constant 0 : index
    %543 = vector.load %arg8[%542, %c0_509] : memref<8x32xf32, #tpu.memory_space<vmem>>, vector<1x32xf32>
    %c3_510 = arith.constant 3 : index
    %c6_511 = arith.constant 6 : index
    %c0_512 = arith.constant 0 : index
    %544 = vector.load %arg21[%c3_510, %c6_511, %c0_512] : memref<6x8x32xf32, #tpu.memory_space<vmem>>, vector<1x1x32xf32>
    %545 = vector.shape_cast %544 : vector<1x1x32xf32> to vector<1x32xf32>
    %546 = vector.shape_cast %543 : vector<1x32xf32> to vector<1x1x32xf32>
    tpu.vector_store %arg21[%c3_510, %c6_511, %c0_512], %546 {strides = array<i32>} : memref<6x8x32xf32, #tpu.memory_space<vmem>>, vector<1x1x32xf32>,
    %c3_513 = arith.constant 3 : index
    %c7_514 = arith.constant 7 : index
    %547 = memref.load %arg0[%c3_513, %c7_514] : memref<6x8xi32, #tpu.memory_space<smem>>
    %548 = arith.index_cast %547 : i32 to index
    %c0_515 = arith.constant 0 : index
    %549 = vector.load %arg17[%548, %c0_515] : memref<10x32xf32, #tpu.memory_space<vmem>>, vector<1x32xf32>
    %c3_516 = arith.constant 3 : index
    %c7_517 = arith.constant 7 : index
    %c0_518 = arith.constant 0 : index
    %550 = vector.load %arg18[%c3_516, %c7_517, %c0_518] : memref<6x8x32xf32, #tpu.memory_space<vmem>>, vector<1x1x32xf32>
    %551 = vector.shape_cast %550 : vector<1x1x32xf32> to vector<1x32xf32>
    %552 = vector.shape_cast %549 : vector<1x32xf32> to vector<1x1x32xf32>
    tpu.vector_store %arg18[%c3_516, %c7_517, %c0_518], %552 {strides = array<i32>} : memref<6x8x32xf32, #tpu.memory_space<vmem>>, vector<1x1x32xf32>,
    %c3_519 = arith.constant 3 : index
    %c7_520 = arith.constant 7 : index
    %553 = memref.load %arg2[%c3_519, %c7_520] : memref<6x8xi32, #tpu.memory_space<smem>>
    %554 = arith.index_cast %553 : i32 to index
    %c0_521 = arith.constant 0 : index
    %555 = vector.load %arg7[%554, %c0_521] : memref<8x32xf32, #tpu.memory_space<vmem>>, vector<1x32xf32>
    %c3_522 = arith.constant 3 : index
    %c7_523 = arith.constant 7 : index
    %c0_524 = arith.constant 0 : index
    %556 = vector.load %arg20[%c3_522, %c7_523, %c0_524] : memref<6x8x32xf32, #tpu.memory_space<vmem>>, vector<1x1x32xf32>
    %557 = vector.shape_cast %556 : vector<1x1x32xf32> to vector<1x32xf32>
    %558 = vector.shape_cast %555 : vector<1x32xf32> to vector<1x1x32xf32>
    tpu.vector_store %arg20[%c3_522, %c7_523, %c0_524], %558 {strides = array<i32>} : memref<6x8x32xf32, #tpu.memory_space<vmem>>, vector<1x1x32xf32>,
    %559 = arith.index_cast %553 : i32 to index
    %c0_525 = arith.constant 0 : index
    %560 = vector.load %arg8[%559, %c0_525] : memref<8x32xf32, #tpu.memory_space<vmem>>, vector<1x32xf32>
    %c3_526 = arith.constant 3 : index
    %c7_527 = arith.constant 7 : index
    %c0_528 = arith.constant 0 : index
    %561 = vector.load %arg21[%c3_526, %c7_527, %c0_528] : memref<6x8x32xf32, #tpu.memory_space<vmem>>, vector<1x1x32xf32>
    %562 = vector.shape_cast %561 : vector<1x1x32xf32> to vector<1x32xf32>
    %563 = vector.shape_cast %560 : vector<1x32xf32> to vector<1x1x32xf32>
    tpu.vector_store %arg21[%c3_526, %c7_527, %c0_528], %563 {strides = array<i32>} : memref<6x8x32xf32, #tpu.memory_space<vmem>>, vector<1x1x32xf32>,
    %c3_529 = arith.constant 3 : index
    %564 = memref.load %arg3[%c3_529] : memref<6xi32, #tpu.memory_space<smem>>
    %565 = arith.index_cast %564 : i32 to index
    %c0_530 = arith.constant 0 : index
    %566 = vector.load %arg17[%565, %c0_530] : memref<10x32xf32, #tpu.memory_space<vmem>>, vector<1x32xf32>
    %c3_531 = arith.constant 3 : index
    %c0_532 = arith.constant 0 : index
    %567 = vector.load %arg22[%c3_531, %c0_532] : memref<6x32xf32, #tpu.memory_space<vmem>>, vector<1x32xf32>
    tpu.vector_store %arg22[%c3_531, %c0_532], %566 {strides = array<i32>} : memref<6x32xf32, #tpu.memory_space<vmem>>, vector<1x32xf32>,
    %c4_533 = arith.constant 4 : index
    %c0_534 = arith.constant 0 : index
    %568 = memref.load %arg0[%c4_533, %c0_534] : memref<6x8xi32, #tpu.memory_space<smem>>
    %569 = arith.index_cast %568 : i32 to index
    %c0_535 = arith.constant 0 : index
    %570 = vector.load %arg17[%569, %c0_535] : memref<10x32xf32, #tpu.memory_space<vmem>>, vector<1x32xf32>
    %c4_536 = arith.constant 4 : index
    %c0_537 = arith.constant 0 : index
    %c0_538 = arith.constant 0 : index
    %571 = vector.load %arg18[%c4_536, %c0_537, %c0_538] : memref<6x8x32xf32, #tpu.memory_space<vmem>>, vector<1x1x32xf32>
    %572 = vector.shape_cast %571 : vector<1x1x32xf32> to vector<1x32xf32>
    %573 = vector.shape_cast %570 : vector<1x32xf32> to vector<1x1x32xf32>
    tpu.vector_store %arg18[%c4_536, %c0_537, %c0_538], %573 {strides = array<i32>} : memref<6x8x32xf32, #tpu.memory_space<vmem>>, vector<1x1x32xf32>,
    %c4_539 = arith.constant 4 : index
    %c0_540 = arith.constant 0 : index
    %574 = memref.load %arg2[%c4_539, %c0_540] : memref<6x8xi32, #tpu.memory_space<smem>>
    %575 = arith.index_cast %574 : i32 to index
    %c0_541 = arith.constant 0 : index
    %576 = vector.load %arg7[%575, %c0_541] : memref<8x32xf32, #tpu.memory_space<vmem>>, vector<1x32xf32>
    %c4_542 = arith.constant 4 : index
    %c0_543 = arith.constant 0 : index
    %c0_544 = arith.constant 0 : index
    %577 = vector.load %arg20[%c4_542, %c0_543, %c0_544] : memref<6x8x32xf32, #tpu.memory_space<vmem>>, vector<1x1x32xf32>
    %578 = vector.shape_cast %577 : vector<1x1x32xf32> to vector<1x32xf32>
    %579 = vector.shape_cast %576 : vector<1x32xf32> to vector<1x1x32xf32>
    tpu.vector_store %arg20[%c4_542, %c0_543, %c0_544], %579 {strides = array<i32>} : memref<6x8x32xf32, #tpu.memory_space<vmem>>, vector<1x1x32xf32>,
    %580 = arith.index_cast %574 : i32 to index
    %c0_545 = arith.constant 0 : index
    %581 = vector.load %arg8[%580, %c0_545] : memref<8x32xf32, #tpu.memory_space<vmem>>, vector<1x32xf32>
    %c4_546 = arith.constant 4 : index
    %c0_547 = arith.constant 0 : index
    %c0_548 = arith.constant 0 : index
    %582 = vector.load %arg21[%c4_546, %c0_547, %c0_548] : memref<6x8x32xf32, #tpu.memory_space<vmem>>, vector<1x1x32xf32>
    %583 = vector.shape_cast %582 : vector<1x1x32xf32> to vector<1x32xf32>
    %584 = vector.shape_cast %581 : vector<1x32xf32> to vector<1x1x32xf32>
    tpu.vector_store %arg21[%c4_546, %c0_547, %c0_548], %584 {strides = array<i32>} : memref<6x8x32xf32, #tpu.memory_space<vmem>>, vector<1x1x32xf32>,
    %c4_549 = arith.constant 4 : index
    %c1_550 = arith.constant 1 : index
    %585 = memref.load %arg0[%c4_549, %c1_550] : memref<6x8xi32, #tpu.memory_space<smem>>
    %586 = arith.index_cast %585 : i32 to index
    %c0_551 = arith.constant 0 : index
    %587 = vector.load %arg17[%586, %c0_551] : memref<10x32xf32, #tpu.memory_space<vmem>>, vector<1x32xf32>
    %c4_552 = arith.constant 4 : index
    %c1_553 = arith.constant 1 : index
    %c0_554 = arith.constant 0 : index
    %588 = vector.load %arg18[%c4_552, %c1_553, %c0_554] : memref<6x8x32xf32, #tpu.memory_space<vmem>>, vector<1x1x32xf32>
    %589 = vector.shape_cast %588 : vector<1x1x32xf32> to vector<1x32xf32>
    %590 = vector.shape_cast %587 : vector<1x32xf32> to vector<1x1x32xf32>
    tpu.vector_store %arg18[%c4_552, %c1_553, %c0_554], %590 {strides = array<i32>} : memref<6x8x32xf32, #tpu.memory_space<vmem>>, vector<1x1x32xf32>,
    %c4_555 = arith.constant 4 : index
    %c1_556 = arith.constant 1 : index
    %591 = memref.load %arg2[%c4_555, %c1_556] : memref<6x8xi32, #tpu.memory_space<smem>>
    %592 = arith.index_cast %591 : i32 to index
    %c0_557 = arith.constant 0 : index
    %593 = vector.load %arg7[%592, %c0_557] : memref<8x32xf32, #tpu.memory_space<vmem>>, vector<1x32xf32>
    %c4_558 = arith.constant 4 : index
    %c1_559 = arith.constant 1 : index
    %c0_560 = arith.constant 0 : index
    %594 = vector.load %arg20[%c4_558, %c1_559, %c0_560] : memref<6x8x32xf32, #tpu.memory_space<vmem>>, vector<1x1x32xf32>
    %595 = vector.shape_cast %594 : vector<1x1x32xf32> to vector<1x32xf32>
    %596 = vector.shape_cast %593 : vector<1x32xf32> to vector<1x1x32xf32>
    tpu.vector_store %arg20[%c4_558, %c1_559, %c0_560], %596 {strides = array<i32>} : memref<6x8x32xf32, #tpu.memory_space<vmem>>, vector<1x1x32xf32>,
    %597 = arith.index_cast %591 : i32 to index
    %c0_561 = arith.constant 0 : index
    %598 = vector.load %arg8[%597, %c0_561] : memref<8x32xf32, #tpu.memory_space<vmem>>, vector<1x32xf32>
    %c4_562 = arith.constant 4 : index
    %c1_563 = arith.constant 1 : index
    %c0_564 = arith.constant 0 : index
    %599 = vector.load %arg21[%c4_562, %c1_563, %c0_564] : memref<6x8x32xf32, #tpu.memory_space<vmem>>, vector<1x1x32xf32>
    %600 = vector.shape_cast %599 : vector<1x1x32xf32> to vector<1x32xf32>
    %601 = vector.shape_cast %598 : vector<1x32xf32> to vector<1x1x32xf32>
    tpu.vector_store %arg21[%c4_562, %c1_563, %c0_564], %601 {strides = array<i32>} : memref<6x8x32xf32, #tpu.memory_space<vmem>>, vector<1x1x32xf32>,
    %c4_565 = arith.constant 4 : index
    %c2_566 = arith.constant 2 : index
    %602 = memref.load %arg0[%c4_565, %c2_566] : memref<6x8xi32, #tpu.memory_space<smem>>
    %603 = arith.index_cast %602 : i32 to index
    %c0_567 = arith.constant 0 : index
    %604 = vector.load %arg17[%603, %c0_567] : memref<10x32xf32, #tpu.memory_space<vmem>>, vector<1x32xf32>
    %c4_568 = arith.constant 4 : index
    %c2_569 = arith.constant 2 : index
    %c0_570 = arith.constant 0 : index
    %605 = vector.load %arg18[%c4_568, %c2_569, %c0_570] : memref<6x8x32xf32, #tpu.memory_space<vmem>>, vector<1x1x32xf32>
    %606 = vector.shape_cast %605 : vector<1x1x32xf32> to vector<1x32xf32>
    %607 = vector.shape_cast %604 : vector<1x32xf32> to vector<1x1x32xf32>
    tpu.vector_store %arg18[%c4_568, %c2_569, %c0_570], %607 {strides = array<i32>} : memref<6x8x32xf32, #tpu.memory_space<vmem>>, vector<1x1x32xf32>,
    %c4_571 = arith.constant 4 : index
    %c2_572 = arith.constant 2 : index
    %608 = memref.load %arg2[%c4_571, %c2_572] : memref<6x8xi32, #tpu.memory_space<smem>>
    %609 = arith.index_cast %608 : i32 to index
    %c0_573 = arith.constant 0 : index
    %610 = vector.load %arg7[%609, %c0_573] : memref<8x32xf32, #tpu.memory_space<vmem>>, vector<1x32xf32>
    %c4_574 = arith.constant 4 : index
    %c2_575 = arith.constant 2 : index
    %c0_576 = arith.constant 0 : index
    %611 = vector.load %arg20[%c4_574, %c2_575, %c0_576] : memref<6x8x32xf32, #tpu.memory_space<vmem>>, vector<1x1x32xf32>
    %612 = vector.shape_cast %611 : vector<1x1x32xf32> to vector<1x32xf32>
    %613 = vector.shape_cast %610 : vector<1x32xf32> to vector<1x1x32xf32>
    tpu.vector_store %arg20[%c4_574, %c2_575, %c0_576], %613 {strides = array<i32>} : memref<6x8x32xf32, #tpu.memory_space<vmem>>, vector<1x1x32xf32>,
    %614 = arith.index_cast %608 : i32 to index
    %c0_577 = arith.constant 0 : index
    %615 = vector.load %arg8[%614, %c0_577] : memref<8x32xf32, #tpu.memory_space<vmem>>, vector<1x32xf32>
    %c4_578 = arith.constant 4 : index
    %c2_579 = arith.constant 2 : index
    %c0_580 = arith.constant 0 : index
    %616 = vector.load %arg21[%c4_578, %c2_579, %c0_580] : memref<6x8x32xf32, #tpu.memory_space<vmem>>, vector<1x1x32xf32>
    %617 = vector.shape_cast %616 : vector<1x1x32xf32> to vector<1x32xf32>
    %618 = vector.shape_cast %615 : vector<1x32xf32> to vector<1x1x32xf32>
    tpu.vector_store %arg21[%c4_578, %c2_579, %c0_580], %618 {strides = array<i32>} : memref<6x8x32xf32, #tpu.memory_space<vmem>>, vector<1x1x32xf32>,
    %c4_581 = arith.constant 4 : index
    %c3_582 = arith.constant 3 : index
    %619 = memref.load %arg0[%c4_581, %c3_582] : memref<6x8xi32, #tpu.memory_space<smem>>
    %620 = arith.index_cast %619 : i32 to index
    %c0_583 = arith.constant 0 : index
    %621 = vector.load %arg17[%620, %c0_583] : memref<10x32xf32, #tpu.memory_space<vmem>>, vector<1x32xf32>
    %c4_584 = arith.constant 4 : index
    %c3_585 = arith.constant 3 : index
    %c0_586 = arith.constant 0 : index
    %622 = vector.load %arg18[%c4_584, %c3_585, %c0_586] : memref<6x8x32xf32, #tpu.memory_space<vmem>>, vector<1x1x32xf32>
    %623 = vector.shape_cast %622 : vector<1x1x32xf32> to vector<1x32xf32>
    %624 = vector.shape_cast %621 : vector<1x32xf32> to vector<1x1x32xf32>
    tpu.vector_store %arg18[%c4_584, %c3_585, %c0_586], %624 {strides = array<i32>} : memref<6x8x32xf32, #tpu.memory_space<vmem>>, vector<1x1x32xf32>,
    %c4_587 = arith.constant 4 : index
    %c3_588 = arith.constant 3 : index
    %625 = memref.load %arg2[%c4_587, %c3_588] : memref<6x8xi32, #tpu.memory_space<smem>>
    %626 = arith.index_cast %625 : i32 to index
    %c0_589 = arith.constant 0 : index
    %627 = vector.load %arg7[%626, %c0_589] : memref<8x32xf32, #tpu.memory_space<vmem>>, vector<1x32xf32>
    %c4_590 = arith.constant 4 : index
    %c3_591 = arith.constant 3 : index
    %c0_592 = arith.constant 0 : index
    %628 = vector.load %arg20[%c4_590, %c3_591, %c0_592] : memref<6x8x32xf32, #tpu.memory_space<vmem>>, vector<1x1x32xf32>
    %629 = vector.shape_cast %628 : vector<1x1x32xf32> to vector<1x32xf32>
    %630 = vector.shape_cast %627 : vector<1x32xf32> to vector<1x1x32xf32>
    tpu.vector_store %arg20[%c4_590, %c3_591, %c0_592], %630 {strides = array<i32>} : memref<6x8x32xf32, #tpu.memory_space<vmem>>, vector<1x1x32xf32>,
    %631 = arith.index_cast %625 : i32 to index
    %c0_593 = arith.constant 0 : index
    %632 = vector.load %arg8[%631, %c0_593] : memref<8x32xf32, #tpu.memory_space<vmem>>, vector<1x32xf32>
    %c4_594 = arith.constant 4 : index
    %c3_595 = arith.constant 3 : index
    %c0_596 = arith.constant 0 : index
    %633 = vector.load %arg21[%c4_594, %c3_595, %c0_596] : memref<6x8x32xf32, #tpu.memory_space<vmem>>, vector<1x1x32xf32>
    %634 = vector.shape_cast %633 : vector<1x1x32xf32> to vector<1x32xf32>
    %635 = vector.shape_cast %632 : vector<1x32xf32> to vector<1x1x32xf32>
    tpu.vector_store %arg21[%c4_594, %c3_595, %c0_596], %635 {strides = array<i32>} : memref<6x8x32xf32, #tpu.memory_space<vmem>>, vector<1x1x32xf32>,
    %c4_597 = arith.constant 4 : index
    %c4_598 = arith.constant 4 : index
    %636 = memref.load %arg0[%c4_597, %c4_598] : memref<6x8xi32, #tpu.memory_space<smem>>
    %637 = arith.index_cast %636 : i32 to index
    %c0_599 = arith.constant 0 : index
    %638 = vector.load %arg17[%637, %c0_599] : memref<10x32xf32, #tpu.memory_space<vmem>>, vector<1x32xf32>
    %c4_600 = arith.constant 4 : index
    %c4_601 = arith.constant 4 : index
    %c0_602 = arith.constant 0 : index
    %639 = vector.load %arg18[%c4_600, %c4_601, %c0_602] : memref<6x8x32xf32, #tpu.memory_space<vmem>>, vector<1x1x32xf32>
    %640 = vector.shape_cast %639 : vector<1x1x32xf32> to vector<1x32xf32>
    %641 = vector.shape_cast %638 : vector<1x32xf32> to vector<1x1x32xf32>
    tpu.vector_store %arg18[%c4_600, %c4_601, %c0_602], %641 {strides = array<i32>} : memref<6x8x32xf32, #tpu.memory_space<vmem>>, vector<1x1x32xf32>,
    %c4_603 = arith.constant 4 : index
    %c4_604 = arith.constant 4 : index
    %642 = memref.load %arg2[%c4_603, %c4_604] : memref<6x8xi32, #tpu.memory_space<smem>>
    %643 = arith.index_cast %642 : i32 to index
    %c0_605 = arith.constant 0 : index
    %644 = vector.load %arg7[%643, %c0_605] : memref<8x32xf32, #tpu.memory_space<vmem>>, vector<1x32xf32>
    %c4_606 = arith.constant 4 : index
    %c4_607 = arith.constant 4 : index
    %c0_608 = arith.constant 0 : index
    %645 = vector.load %arg20[%c4_606, %c4_607, %c0_608] : memref<6x8x32xf32, #tpu.memory_space<vmem>>, vector<1x1x32xf32>
    %646 = vector.shape_cast %645 : vector<1x1x32xf32> to vector<1x32xf32>
    %647 = vector.shape_cast %644 : vector<1x32xf32> to vector<1x1x32xf32>
    tpu.vector_store %arg20[%c4_606, %c4_607, %c0_608], %647 {strides = array<i32>} : memref<6x8x32xf32, #tpu.memory_space<vmem>>, vector<1x1x32xf32>,
    %648 = arith.index_cast %642 : i32 to index
    %c0_609 = arith.constant 0 : index
    %649 = vector.load %arg8[%648, %c0_609] : memref<8x32xf32, #tpu.memory_space<vmem>>, vector<1x32xf32>
    %c4_610 = arith.constant 4 : index
    %c4_611 = arith.constant 4 : index
    %c0_612 = arith.constant 0 : index
    %650 = vector.load %arg21[%c4_610, %c4_611, %c0_612] : memref<6x8x32xf32, #tpu.memory_space<vmem>>, vector<1x1x32xf32>
    %651 = vector.shape_cast %650 : vector<1x1x32xf32> to vector<1x32xf32>
    %652 = vector.shape_cast %649 : vector<1x32xf32> to vector<1x1x32xf32>
    tpu.vector_store %arg21[%c4_610, %c4_611, %c0_612], %652 {strides = array<i32>} : memref<6x8x32xf32, #tpu.memory_space<vmem>>, vector<1x1x32xf32>,
    %c4_613 = arith.constant 4 : index
    %c5_614 = arith.constant 5 : index
    %653 = memref.load %arg0[%c4_613, %c5_614] : memref<6x8xi32, #tpu.memory_space<smem>>
    %654 = arith.index_cast %653 : i32 to index
    %c0_615 = arith.constant 0 : index
    %655 = vector.load %arg17[%654, %c0_615] : memref<10x32xf32, #tpu.memory_space<vmem>>, vector<1x32xf32>
    %c4_616 = arith.constant 4 : index
    %c5_617 = arith.constant 5 : index
    %c0_618 = arith.constant 0 : index
    %656 = vector.load %arg18[%c4_616, %c5_617, %c0_618] : memref<6x8x32xf32, #tpu.memory_space<vmem>>, vector<1x1x32xf32>
    %657 = vector.shape_cast %656 : vector<1x1x32xf32> to vector<1x32xf32>
    %658 = vector.shape_cast %655 : vector<1x32xf32> to vector<1x1x32xf32>
    tpu.vector_store %arg18[%c4_616, %c5_617, %c0_618], %658 {strides = array<i32>} : memref<6x8x32xf32, #tpu.memory_space<vmem>>, vector<1x1x32xf32>,
    %c4_619 = arith.constant 4 : index
    %c5_620 = arith.constant 5 : index
    %659 = memref.load %arg2[%c4_619, %c5_620] : memref<6x8xi32, #tpu.memory_space<smem>>
    %660 = arith.index_cast %659 : i32 to index
    %c0_621 = arith.constant 0 : index
    %661 = vector.load %arg7[%660, %c0_621] : memref<8x32xf32, #tpu.memory_space<vmem>>, vector<1x32xf32>
    %c4_622 = arith.constant 4 : index
    %c5_623 = arith.constant 5 : index
    %c0_624 = arith.constant 0 : index
    %662 = vector.load %arg20[%c4_622, %c5_623, %c0_624] : memref<6x8x32xf32, #tpu.memory_space<vmem>>, vector<1x1x32xf32>
    %663 = vector.shape_cast %662 : vector<1x1x32xf32> to vector<1x32xf32>
    %664 = vector.shape_cast %661 : vector<1x32xf32> to vector<1x1x32xf32>
    tpu.vector_store %arg20[%c4_622, %c5_623, %c0_624], %664 {strides = array<i32>} : memref<6x8x32xf32, #tpu.memory_space<vmem>>, vector<1x1x32xf32>,
    %665 = arith.index_cast %659 : i32 to index
    %c0_625 = arith.constant 0 : index
    %666 = vector.load %arg8[%665, %c0_625] : memref<8x32xf32, #tpu.memory_space<vmem>>, vector<1x32xf32>
    %c4_626 = arith.constant 4 : index
    %c5_627 = arith.constant 5 : index
    %c0_628 = arith.constant 0 : index
    %667 = vector.load %arg21[%c4_626, %c5_627, %c0_628] : memref<6x8x32xf32, #tpu.memory_space<vmem>>, vector<1x1x32xf32>
    %668 = vector.shape_cast %667 : vector<1x1x32xf32> to vector<1x32xf32>
    %669 = vector.shape_cast %666 : vector<1x32xf32> to vector<1x1x32xf32>
    tpu.vector_store %arg21[%c4_626, %c5_627, %c0_628], %669 {strides = array<i32>} : memref<6x8x32xf32, #tpu.memory_space<vmem>>, vector<1x1x32xf32>,
    %c4_629 = arith.constant 4 : index
    %c6_630 = arith.constant 6 : index
    %670 = memref.load %arg0[%c4_629, %c6_630] : memref<6x8xi32, #tpu.memory_space<smem>>
    %671 = arith.index_cast %670 : i32 to index
    %c0_631 = arith.constant 0 : index
    %672 = vector.load %arg17[%671, %c0_631] : memref<10x32xf32, #tpu.memory_space<vmem>>, vector<1x32xf32>
    %c4_632 = arith.constant 4 : index
    %c6_633 = arith.constant 6 : index
    %c0_634 = arith.constant 0 : index
    %673 = vector.load %arg18[%c4_632, %c6_633, %c0_634] : memref<6x8x32xf32, #tpu.memory_space<vmem>>, vector<1x1x32xf32>
    %674 = vector.shape_cast %673 : vector<1x1x32xf32> to vector<1x32xf32>
    %675 = vector.shape_cast %672 : vector<1x32xf32> to vector<1x1x32xf32>
    tpu.vector_store %arg18[%c4_632, %c6_633, %c0_634], %675 {strides = array<i32>} : memref<6x8x32xf32, #tpu.memory_space<vmem>>, vector<1x1x32xf32>,
    %c4_635 = arith.constant 4 : index
    %c6_636 = arith.constant 6 : index
    %676 = memref.load %arg2[%c4_635, %c6_636] : memref<6x8xi32, #tpu.memory_space<smem>>
    %677 = arith.index_cast %676 : i32 to index
    %c0_637 = arith.constant 0 : index
    %678 = vector.load %arg7[%677, %c0_637] : memref<8x32xf32, #tpu.memory_space<vmem>>, vector<1x32xf32>
    %c4_638 = arith.constant 4 : index
    %c6_639 = arith.constant 6 : index
    %c0_640 = arith.constant 0 : index
    %679 = vector.load %arg20[%c4_638, %c6_639, %c0_640] : memref<6x8x32xf32, #tpu.memory_space<vmem>>, vector<1x1x32xf32>
    %680 = vector.shape_cast %679 : vector<1x1x32xf32> to vector<1x32xf32>
    %681 = vector.shape_cast %678 : vector<1x32xf32> to vector<1x1x32xf32>
    tpu.vector_store %arg20[%c4_638, %c6_639, %c0_640], %681 {strides = array<i32>} : memref<6x8x32xf32, #tpu.memory_space<vmem>>, vector<1x1x32xf32>,
    %682 = arith.index_cast %676 : i32 to index
    %c0_641 = arith.constant 0 : index
    %683 = vector.load %arg8[%682, %c0_641] : memref<8x32xf32, #tpu.memory_space<vmem>>, vector<1x32xf32>
    %c4_642 = arith.constant 4 : index
    %c6_643 = arith.constant 6 : index
    %c0_644 = arith.constant 0 : index
    %684 = vector.load %arg21[%c4_642, %c6_643, %c0_644] : memref<6x8x32xf32, #tpu.memory_space<vmem>>, vector<1x1x32xf32>
    %685 = vector.shape_cast %684 : vector<1x1x32xf32> to vector<1x32xf32>
    %686 = vector.shape_cast %683 : vector<1x32xf32> to vector<1x1x32xf32>
    tpu.vector_store %arg21[%c4_642, %c6_643, %c0_644], %686 {strides = array<i32>} : memref<6x8x32xf32, #tpu.memory_space<vmem>>, vector<1x1x32xf32>,
    %c4_645 = arith.constant 4 : index
    %c7_646 = arith.constant 7 : index
    %687 = memref.load %arg0[%c4_645, %c7_646] : memref<6x8xi32, #tpu.memory_space<smem>>
    %688 = arith.index_cast %687 : i32 to index
    %c0_647 = arith.constant 0 : index
    %689 = vector.load %arg17[%688, %c0_647] : memref<10x32xf32, #tpu.memory_space<vmem>>, vector<1x32xf32>
    %c4_648 = arith.constant 4 : index
    %c7_649 = arith.constant 7 : index
    %c0_650 = arith.constant 0 : index
    %690 = vector.load %arg18[%c4_648, %c7_649, %c0_650] : memref<6x8x32xf32, #tpu.memory_space<vmem>>, vector<1x1x32xf32>
    %691 = vector.shape_cast %690 : vector<1x1x32xf32> to vector<1x32xf32>
    %692 = vector.shape_cast %689 : vector<1x32xf32> to vector<1x1x32xf32>
    tpu.vector_store %arg18[%c4_648, %c7_649, %c0_650], %692 {strides = array<i32>} : memref<6x8x32xf32, #tpu.memory_space<vmem>>, vector<1x1x32xf32>,
    %c4_651 = arith.constant 4 : index
    %c7_652 = arith.constant 7 : index
    %693 = memref.load %arg2[%c4_651, %c7_652] : memref<6x8xi32, #tpu.memory_space<smem>>
    %694 = arith.index_cast %693 : i32 to index
    %c0_653 = arith.constant 0 : index
    %695 = vector.load %arg7[%694, %c0_653] : memref<8x32xf32, #tpu.memory_space<vmem>>, vector<1x32xf32>
    %c4_654 = arith.constant 4 : index
    %c7_655 = arith.constant 7 : index
    %c0_656 = arith.constant 0 : index
    %696 = vector.load %arg20[%c4_654, %c7_655, %c0_656] : memref<6x8x32xf32, #tpu.memory_space<vmem>>, vector<1x1x32xf32>
    %697 = vector.shape_cast %696 : vector<1x1x32xf32> to vector<1x32xf32>
    %698 = vector.shape_cast %695 : vector<1x32xf32> to vector<1x1x32xf32>
    tpu.vector_store %arg20[%c4_654, %c7_655, %c0_656], %698 {strides = array<i32>} : memref<6x8x32xf32, #tpu.memory_space<vmem>>, vector<1x1x32xf32>,
    %699 = arith.index_cast %693 : i32 to index
    %c0_657 = arith.constant 0 : index
    %700 = vector.load %arg8[%699, %c0_657] : memref<8x32xf32, #tpu.memory_space<vmem>>, vector<1x32xf32>
    %c4_658 = arith.constant 4 : index
    %c7_659 = arith.constant 7 : index
    %c0_660 = arith.constant 0 : index
    %701 = vector.load %arg21[%c4_658, %c7_659, %c0_660] : memref<6x8x32xf32, #tpu.memory_space<vmem>>, vector<1x1x32xf32>
    %702 = vector.shape_cast %701 : vector<1x1x32xf32> to vector<1x32xf32>
    %703 = vector.shape_cast %700 : vector<1x32xf32> to vector<1x1x32xf32>
    tpu.vector_store %arg21[%c4_658, %c7_659, %c0_660], %703 {strides = array<i32>} : memref<6x8x32xf32, #tpu.memory_space<vmem>>, vector<1x1x32xf32>,
    %c4_661 = arith.constant 4 : index
    %704 = memref.load %arg3[%c4_661] : memref<6xi32, #tpu.memory_space<smem>>
    %705 = arith.index_cast %704 : i32 to index
    %c0_662 = arith.constant 0 : index
    %706 = vector.load %arg17[%705, %c0_662] : memref<10x32xf32, #tpu.memory_space<vmem>>, vector<1x32xf32>
    %c4_663 = arith.constant 4 : index
    %c0_664 = arith.constant 0 : index
    %707 = vector.load %arg22[%c4_663, %c0_664] : memref<6x32xf32, #tpu.memory_space<vmem>>, vector<1x32xf32>
    tpu.vector_store %arg22[%c4_663, %c0_664], %706 {strides = array<i32>} : memref<6x32xf32, #tpu.memory_space<vmem>>, vector<1x32xf32>,
    %c5_665 = arith.constant 5 : index
    %c0_666 = arith.constant 0 : index
    %708 = memref.load %arg0[%c5_665, %c0_666] : memref<6x8xi32, #tpu.memory_space<smem>>
    %709 = arith.index_cast %708 : i32 to index
    %c0_667 = arith.constant 0 : index
    %710 = vector.load %arg17[%709, %c0_667] : memref<10x32xf32, #tpu.memory_space<vmem>>, vector<1x32xf32>
    %c5_668 = arith.constant 5 : index
    %c0_669 = arith.constant 0 : index
    %c0_670 = arith.constant 0 : index
    %711 = vector.load %arg18[%c5_668, %c0_669, %c0_670] : memref<6x8x32xf32, #tpu.memory_space<vmem>>, vector<1x1x32xf32>
    %712 = vector.shape_cast %711 : vector<1x1x32xf32> to vector<1x32xf32>
    %713 = vector.shape_cast %710 : vector<1x32xf32> to vector<1x1x32xf32>
    tpu.vector_store %arg18[%c5_668, %c0_669, %c0_670], %713 {strides = array<i32>} : memref<6x8x32xf32, #tpu.memory_space<vmem>>, vector<1x1x32xf32>,
    %c5_671 = arith.constant 5 : index
    %c0_672 = arith.constant 0 : index
    %714 = memref.load %arg2[%c5_671, %c0_672] : memref<6x8xi32, #tpu.memory_space<smem>>
    %715 = arith.index_cast %714 : i32 to index
    %c0_673 = arith.constant 0 : index
    %716 = vector.load %arg7[%715, %c0_673] : memref<8x32xf32, #tpu.memory_space<vmem>>, vector<1x32xf32>
    %c5_674 = arith.constant 5 : index
    %c0_675 = arith.constant 0 : index
    %c0_676 = arith.constant 0 : index
    %717 = vector.load %arg20[%c5_674, %c0_675, %c0_676] : memref<6x8x32xf32, #tpu.memory_space<vmem>>, vector<1x1x32xf32>
    %718 = vector.shape_cast %717 : vector<1x1x32xf32> to vector<1x32xf32>
    %719 = vector.shape_cast %716 : vector<1x32xf32> to vector<1x1x32xf32>
    tpu.vector_store %arg20[%c5_674, %c0_675, %c0_676], %719 {strides = array<i32>} : memref<6x8x32xf32, #tpu.memory_space<vmem>>, vector<1x1x32xf32>,
    %720 = arith.index_cast %714 : i32 to index
    %c0_677 = arith.constant 0 : index
    %721 = vector.load %arg8[%720, %c0_677] : memref<8x32xf32, #tpu.memory_space<vmem>>, vector<1x32xf32>
    %c5_678 = arith.constant 5 : index
    %c0_679 = arith.constant 0 : index
    %c0_680 = arith.constant 0 : index
    %722 = vector.load %arg21[%c5_678, %c0_679, %c0_680] : memref<6x8x32xf32, #tpu.memory_space<vmem>>, vector<1x1x32xf32>
    %723 = vector.shape_cast %722 : vector<1x1x32xf32> to vector<1x32xf32>
    %724 = vector.shape_cast %721 : vector<1x32xf32> to vector<1x1x32xf32>
    tpu.vector_store %arg21[%c5_678, %c0_679, %c0_680], %724 {strides = array<i32>} : memref<6x8x32xf32, #tpu.memory_space<vmem>>, vector<1x1x32xf32>,
    %c5_681 = arith.constant 5 : index
    %c1_682 = arith.constant 1 : index
    %725 = memref.load %arg0[%c5_681, %c1_682] : memref<6x8xi32, #tpu.memory_space<smem>>
    %726 = arith.index_cast %725 : i32 to index
    %c0_683 = arith.constant 0 : index
    %727 = vector.load %arg17[%726, %c0_683] : memref<10x32xf32, #tpu.memory_space<vmem>>, vector<1x32xf32>
    %c5_684 = arith.constant 5 : index
    %c1_685 = arith.constant 1 : index
    %c0_686 = arith.constant 0 : index
    %728 = vector.load %arg18[%c5_684, %c1_685, %c0_686] : memref<6x8x32xf32, #tpu.memory_space<vmem>>, vector<1x1x32xf32>
    %729 = vector.shape_cast %728 : vector<1x1x32xf32> to vector<1x32xf32>
    %730 = vector.shape_cast %727 : vector<1x32xf32> to vector<1x1x32xf32>
    tpu.vector_store %arg18[%c5_684, %c1_685, %c0_686], %730 {strides = array<i32>} : memref<6x8x32xf32, #tpu.memory_space<vmem>>, vector<1x1x32xf32>,
    %c5_687 = arith.constant 5 : index
    %c1_688 = arith.constant 1 : index
    %731 = memref.load %arg2[%c5_687, %c1_688] : memref<6x8xi32, #tpu.memory_space<smem>>
    %732 = arith.index_cast %731 : i32 to index
    %c0_689 = arith.constant 0 : index
    %733 = vector.load %arg7[%732, %c0_689] : memref<8x32xf32, #tpu.memory_space<vmem>>, vector<1x32xf32>
    %c5_690 = arith.constant 5 : index
    %c1_691 = arith.constant 1 : index
    %c0_692 = arith.constant 0 : index
    %734 = vector.load %arg20[%c5_690, %c1_691, %c0_692] : memref<6x8x32xf32, #tpu.memory_space<vmem>>, vector<1x1x32xf32>
    %735 = vector.shape_cast %734 : vector<1x1x32xf32> to vector<1x32xf32>
    %736 = vector.shape_cast %733 : vector<1x32xf32> to vector<1x1x32xf32>
    tpu.vector_store %arg20[%c5_690, %c1_691, %c0_692], %736 {strides = array<i32>} : memref<6x8x32xf32, #tpu.memory_space<vmem>>, vector<1x1x32xf32>,
    %737 = arith.index_cast %731 : i32 to index
    %c0_693 = arith.constant 0 : index
    %738 = vector.load %arg8[%737, %c0_693] : memref<8x32xf32, #tpu.memory_space<vmem>>, vector<1x32xf32>
    %c5_694 = arith.constant 5 : index
    %c1_695 = arith.constant 1 : index
    %c0_696 = arith.constant 0 : index
    %739 = vector.load %arg21[%c5_694, %c1_695, %c0_696] : memref<6x8x32xf32, #tpu.memory_space<vmem>>, vector<1x1x32xf32>
    %740 = vector.shape_cast %739 : vector<1x1x32xf32> to vector<1x32xf32>
    %741 = vector.shape_cast %738 : vector<1x32xf32> to vector<1x1x32xf32>
    tpu.vector_store %arg21[%c5_694, %c1_695, %c0_696], %741 {strides = array<i32>} : memref<6x8x32xf32, #tpu.memory_space<vmem>>, vector<1x1x32xf32>,
    %c5_697 = arith.constant 5 : index
    %c2_698 = arith.constant 2 : index
    %742 = memref.load %arg0[%c5_697, %c2_698] : memref<6x8xi32, #tpu.memory_space<smem>>
    %743 = arith.index_cast %742 : i32 to index
    %c0_699 = arith.constant 0 : index
    %744 = vector.load %arg17[%743, %c0_699] : memref<10x32xf32, #tpu.memory_space<vmem>>, vector<1x32xf32>
    %c5_700 = arith.constant 5 : index
    %c2_701 = arith.constant 2 : index
    %c0_702 = arith.constant 0 : index
    %745 = vector.load %arg18[%c5_700, %c2_701, %c0_702] : memref<6x8x32xf32, #tpu.memory_space<vmem>>, vector<1x1x32xf32>
    %746 = vector.shape_cast %745 : vector<1x1x32xf32> to vector<1x32xf32>
    %747 = vector.shape_cast %744 : vector<1x32xf32> to vector<1x1x32xf32>
    tpu.vector_store %arg18[%c5_700, %c2_701, %c0_702], %747 {strides = array<i32>} : memref<6x8x32xf32, #tpu.memory_space<vmem>>, vector<1x1x32xf32>,
    %c5_703 = arith.constant 5 : index
    %c2_704 = arith.constant 2 : index
    %748 = memref.load %arg2[%c5_703, %c2_704] : memref<6x8xi32, #tpu.memory_space<smem>>
    %749 = arith.index_cast %748 : i32 to index
    %c0_705 = arith.constant 0 : index
    %750 = vector.load %arg7[%749, %c0_705] : memref<8x32xf32, #tpu.memory_space<vmem>>, vector<1x32xf32>
    %c5_706 = arith.constant 5 : index
    %c2_707 = arith.constant 2 : index
    %c0_708 = arith.constant 0 : index
    %751 = vector.load %arg20[%c5_706, %c2_707, %c0_708] : memref<6x8x32xf32, #tpu.memory_space<vmem>>, vector<1x1x32xf32>
    %752 = vector.shape_cast %751 : vector<1x1x32xf32> to vector<1x32xf32>
    %753 = vector.shape_cast %750 : vector<1x32xf32> to vector<1x1x32xf32>
    tpu.vector_store %arg20[%c5_706, %c2_707, %c0_708], %753 {strides = array<i32>} : memref<6x8x32xf32, #tpu.memory_space<vmem>>, vector<1x1x32xf32>,
    %754 = arith.index_cast %748 : i32 to index
    %c0_709 = arith.constant 0 : index
    %755 = vector.load %arg8[%754, %c0_709] : memref<8x32xf32, #tpu.memory_space<vmem>>, vector<1x32xf32>
    %c5_710 = arith.constant 5 : index
    %c2_711 = arith.constant 2 : index
    %c0_712 = arith.constant 0 : index
    %756 = vector.load %arg21[%c5_710, %c2_711, %c0_712] : memref<6x8x32xf32, #tpu.memory_space<vmem>>, vector<1x1x32xf32>
    %757 = vector.shape_cast %756 : vector<1x1x32xf32> to vector<1x32xf32>
    %758 = vector.shape_cast %755 : vector<1x32xf32> to vector<1x1x32xf32>
    tpu.vector_store %arg21[%c5_710, %c2_711, %c0_712], %758 {strides = array<i32>} : memref<6x8x32xf32, #tpu.memory_space<vmem>>, vector<1x1x32xf32>,
    %c5_713 = arith.constant 5 : index
    %c3_714 = arith.constant 3 : index
    %759 = memref.load %arg0[%c5_713, %c3_714] : memref<6x8xi32, #tpu.memory_space<smem>>
    %760 = arith.index_cast %759 : i32 to index
    %c0_715 = arith.constant 0 : index
    %761 = vector.load %arg17[%760, %c0_715] : memref<10x32xf32, #tpu.memory_space<vmem>>, vector<1x32xf32>
    %c5_716 = arith.constant 5 : index
    %c3_717 = arith.constant 3 : index
    %c0_718 = arith.constant 0 : index
    %762 = vector.load %arg18[%c5_716, %c3_717, %c0_718] : memref<6x8x32xf32, #tpu.memory_space<vmem>>, vector<1x1x32xf32>
    %763 = vector.shape_cast %762 : vector<1x1x32xf32> to vector<1x32xf32>
    %764 = vector.shape_cast %761 : vector<1x32xf32> to vector<1x1x32xf32>
    tpu.vector_store %arg18[%c5_716, %c3_717, %c0_718], %764 {strides = array<i32>} : memref<6x8x32xf32, #tpu.memory_space<vmem>>, vector<1x1x32xf32>,
    %c5_719 = arith.constant 5 : index
    %c3_720 = arith.constant 3 : index
    %765 = memref.load %arg2[%c5_719, %c3_720] : memref<6x8xi32, #tpu.memory_space<smem>>
    %766 = arith.index_cast %765 : i32 to index
    %c0_721 = arith.constant 0 : index
    %767 = vector.load %arg7[%766, %c0_721] : memref<8x32xf32, #tpu.memory_space<vmem>>, vector<1x32xf32>
    %c5_722 = arith.constant 5 : index
    %c3_723 = arith.constant 3 : index
    %c0_724 = arith.constant 0 : index
    %768 = vector.load %arg20[%c5_722, %c3_723, %c0_724] : memref<6x8x32xf32, #tpu.memory_space<vmem>>, vector<1x1x32xf32>
    %769 = vector.shape_cast %768 : vector<1x1x32xf32> to vector<1x32xf32>
    %770 = vector.shape_cast %767 : vector<1x32xf32> to vector<1x1x32xf32>
    tpu.vector_store %arg20[%c5_722, %c3_723, %c0_724], %770 {strides = array<i32>} : memref<6x8x32xf32, #tpu.memory_space<vmem>>, vector<1x1x32xf32>,
    %771 = arith.index_cast %765 : i32 to index
    %c0_725 = arith.constant 0 : index
    %772 = vector.load %arg8[%771, %c0_725] : memref<8x32xf32, #tpu.memory_space<vmem>>, vector<1x32xf32>
    %c5_726 = arith.constant 5 : index
    %c3_727 = arith.constant 3 : index
    %c0_728 = arith.constant 0 : index
    %773 = vector.load %arg21[%c5_726, %c3_727, %c0_728] : memref<6x8x32xf32, #tpu.memory_space<vmem>>, vector<1x1x32xf32>
    %774 = vector.shape_cast %773 : vector<1x1x32xf32> to vector<1x32xf32>
    %775 = vector.shape_cast %772 : vector<1x32xf32> to vector<1x1x32xf32>
    tpu.vector_store %arg21[%c5_726, %c3_727, %c0_728], %775 {strides = array<i32>} : memref<6x8x32xf32, #tpu.memory_space<vmem>>, vector<1x1x32xf32>,
    %c5_729 = arith.constant 5 : index
    %c4_730 = arith.constant 4 : index
    %776 = memref.load %arg0[%c5_729, %c4_730] : memref<6x8xi32, #tpu.memory_space<smem>>
    %777 = arith.index_cast %776 : i32 to index
    %c0_731 = arith.constant 0 : index
    %778 = vector.load %arg17[%777, %c0_731] : memref<10x32xf32, #tpu.memory_space<vmem>>, vector<1x32xf32>
    %c5_732 = arith.constant 5 : index
    %c4_733 = arith.constant 4 : index
    %c0_734 = arith.constant 0 : index
    %779 = vector.load %arg18[%c5_732, %c4_733, %c0_734] : memref<6x8x32xf32, #tpu.memory_space<vmem>>, vector<1x1x32xf32>
    %780 = vector.shape_cast %779 : vector<1x1x32xf32> to vector<1x32xf32>
    %781 = vector.shape_cast %778 : vector<1x32xf32> to vector<1x1x32xf32>
    tpu.vector_store %arg18[%c5_732, %c4_733, %c0_734], %781 {strides = array<i32>} : memref<6x8x32xf32, #tpu.memory_space<vmem>>, vector<1x1x32xf32>,
    %c5_735 = arith.constant 5 : index
    %c4_736 = arith.constant 4 : index
    %782 = memref.load %arg2[%c5_735, %c4_736] : memref<6x8xi32, #tpu.memory_space<smem>>
    %783 = arith.index_cast %782 : i32 to index
    %c0_737 = arith.constant 0 : index
    %784 = vector.load %arg7[%783, %c0_737] : memref<8x32xf32, #tpu.memory_space<vmem>>, vector<1x32xf32>
    %c5_738 = arith.constant 5 : index
    %c4_739 = arith.constant 4 : index
    %c0_740 = arith.constant 0 : index
    %785 = vector.load %arg20[%c5_738, %c4_739, %c0_740] : memref<6x8x32xf32, #tpu.memory_space<vmem>>, vector<1x1x32xf32>
    %786 = vector.shape_cast %785 : vector<1x1x32xf32> to vector<1x32xf32>
    %787 = vector.shape_cast %784 : vector<1x32xf32> to vector<1x1x32xf32>
    tpu.vector_store %arg20[%c5_738, %c4_739, %c0_740], %787 {strides = array<i32>} : memref<6x8x32xf32, #tpu.memory_space<vmem>>, vector<1x1x32xf32>,
    %788 = arith.index_cast %782 : i32 to index
    %c0_741 = arith.constant 0 : index
    %789 = vector.load %arg8[%788, %c0_741] : memref<8x32xf32, #tpu.memory_space<vmem>>, vector<1x32xf32>
    %c5_742 = arith.constant 5 : index
    %c4_743 = arith.constant 4 : index
    %c0_744 = arith.constant 0 : index
    %790 = vector.load %arg21[%c5_742, %c4_743, %c0_744] : memref<6x8x32xf32, #tpu.memory_space<vmem>>, vector<1x1x32xf32>
    %791 = vector.shape_cast %790 : vector<1x1x32xf32> to vector<1x32xf32>
    %792 = vector.shape_cast %789 : vector<1x32xf32> to vector<1x1x32xf32>
    tpu.vector_store %arg21[%c5_742, %c4_743, %c0_744], %792 {strides = array<i32>} : memref<6x8x32xf32, #tpu.memory_space<vmem>>, vector<1x1x32xf32>,
    %c5_745 = arith.constant 5 : index
    %c5_746 = arith.constant 5 : index
    %793 = memref.load %arg0[%c5_745, %c5_746] : memref<6x8xi32, #tpu.memory_space<smem>>
    %794 = arith.index_cast %793 : i32 to index
    %c0_747 = arith.constant 0 : index
    %795 = vector.load %arg17[%794, %c0_747] : memref<10x32xf32, #tpu.memory_space<vmem>>, vector<1x32xf32>
    %c5_748 = arith.constant 5 : index
    %c5_749 = arith.constant 5 : index
    %c0_750 = arith.constant 0 : index
    %796 = vector.load %arg18[%c5_748, %c5_749, %c0_750] : memref<6x8x32xf32, #tpu.memory_space<vmem>>, vector<1x1x32xf32>
    %797 = vector.shape_cast %796 : vector<1x1x32xf32> to vector<1x32xf32>
    %798 = vector.shape_cast %795 : vector<1x32xf32> to vector<1x1x32xf32>
    tpu.vector_store %arg18[%c5_748, %c5_749, %c0_750], %798 {strides = array<i32>} : memref<6x8x32xf32, #tpu.memory_space<vmem>>, vector<1x1x32xf32>,
    %c5_751 = arith.constant 5 : index
    %c5_752 = arith.constant 5 : index
    %799 = memref.load %arg2[%c5_751, %c5_752] : memref<6x8xi32, #tpu.memory_space<smem>>
    %800 = arith.index_cast %799 : i32 to index
    %c0_753 = arith.constant 0 : index
    %801 = vector.load %arg7[%800, %c0_753] : memref<8x32xf32, #tpu.memory_space<vmem>>, vector<1x32xf32>
    %c5_754 = arith.constant 5 : index
    %c5_755 = arith.constant 5 : index
    %c0_756 = arith.constant 0 : index
    %802 = vector.load %arg20[%c5_754, %c5_755, %c0_756] : memref<6x8x32xf32, #tpu.memory_space<vmem>>, vector<1x1x32xf32>
    %803 = vector.shape_cast %802 : vector<1x1x32xf32> to vector<1x32xf32>
    %804 = vector.shape_cast %801 : vector<1x32xf32> to vector<1x1x32xf32>
    tpu.vector_store %arg20[%c5_754, %c5_755, %c0_756], %804 {strides = array<i32>} : memref<6x8x32xf32, #tpu.memory_space<vmem>>, vector<1x1x32xf32>,
    %805 = arith.index_cast %799 : i32 to index
    %c0_757 = arith.constant 0 : index
    %806 = vector.load %arg8[%805, %c0_757] : memref<8x32xf32, #tpu.memory_space<vmem>>, vector<1x32xf32>
    %c5_758 = arith.constant 5 : index
    %c5_759 = arith.constant 5 : index
    %c0_760 = arith.constant 0 : index
    %807 = vector.load %arg21[%c5_758, %c5_759, %c0_760] : memref<6x8x32xf32, #tpu.memory_space<vmem>>, vector<1x1x32xf32>
    %808 = vector.shape_cast %807 : vector<1x1x32xf32> to vector<1x32xf32>
    %809 = vector.shape_cast %806 : vector<1x32xf32> to vector<1x1x32xf32>
    tpu.vector_store %arg21[%c5_758, %c5_759, %c0_760], %809 {strides = array<i32>} : memref<6x8x32xf32, #tpu.memory_space<vmem>>, vector<1x1x32xf32>,
    %c5_761 = arith.constant 5 : index
    %c6_762 = arith.constant 6 : index
    %810 = memref.load %arg0[%c5_761, %c6_762] : memref<6x8xi32, #tpu.memory_space<smem>>
    %811 = arith.index_cast %810 : i32 to index
    %c0_763 = arith.constant 0 : index
    %812 = vector.load %arg17[%811, %c0_763] : memref<10x32xf32, #tpu.memory_space<vmem>>, vector<1x32xf32>
    %c5_764 = arith.constant 5 : index
    %c6_765 = arith.constant 6 : index
    %c0_766 = arith.constant 0 : index
    %813 = vector.load %arg18[%c5_764, %c6_765, %c0_766] : memref<6x8x32xf32, #tpu.memory_space<vmem>>, vector<1x1x32xf32>
    %814 = vector.shape_cast %813 : vector<1x1x32xf32> to vector<1x32xf32>
    %815 = vector.shape_cast %812 : vector<1x32xf32> to vector<1x1x32xf32>
    tpu.vector_store %arg18[%c5_764, %c6_765, %c0_766], %815 {strides = array<i32>} : memref<6x8x32xf32, #tpu.memory_space<vmem>>, vector<1x1x32xf32>,
    %c5_767 = arith.constant 5 : index
    %c6_768 = arith.constant 6 : index
    %816 = memref.load %arg2[%c5_767, %c6_768] : memref<6x8xi32, #tpu.memory_space<smem>>
    %817 = arith.index_cast %816 : i32 to index
    %c0_769 = arith.constant 0 : index
    %818 = vector.load %arg7[%817, %c0_769] : memref<8x32xf32, #tpu.memory_space<vmem>>, vector<1x32xf32>
    %c5_770 = arith.constant 5 : index
    %c6_771 = arith.constant 6 : index
    %c0_772 = arith.constant 0 : index
    %819 = vector.load %arg20[%c5_770, %c6_771, %c0_772] : memref<6x8x32xf32, #tpu.memory_space<vmem>>, vector<1x1x32xf32>
    %820 = vector.shape_cast %819 : vector<1x1x32xf32> to vector<1x32xf32>
    %821 = vector.shape_cast %818 : vector<1x32xf32> to vector<1x1x32xf32>
    tpu.vector_store %arg20[%c5_770, %c6_771, %c0_772], %821 {strides = array<i32>} : memref<6x8x32xf32, #tpu.memory_space<vmem>>, vector<1x1x32xf32>,
    %822 = arith.index_cast %816 : i32 to index
    %c0_773 = arith.constant 0 : index
    %823 = vector.load %arg8[%822, %c0_773] : memref<8x32xf32, #tpu.memory_space<vmem>>, vector<1x32xf32>
    %c5_774 = arith.constant 5 : index
    %c6_775 = arith.constant 6 : index
    %c0_776 = arith.constant 0 : index
    %824 = vector.load %arg21[%c5_774, %c6_775, %c0_776] : memref<6x8x32xf32, #tpu.memory_space<vmem>>, vector<1x1x32xf32>
    %825 = vector.shape_cast %824 : vector<1x1x32xf32> to vector<1x32xf32>
    %826 = vector.shape_cast %823 : vector<1x32xf32> to vector<1x1x32xf32>
    tpu.vector_store %arg21[%c5_774, %c6_775, %c0_776], %826 {strides = array<i32>} : memref<6x8x32xf32, #tpu.memory_space<vmem>>, vector<1x1x32xf32>,
    %c5_777 = arith.constant 5 : index
    %c7_778 = arith.constant 7 : index
    %827 = memref.load %arg0[%c5_777, %c7_778] : memref<6x8xi32, #tpu.memory_space<smem>>
    %828 = arith.index_cast %827 : i32 to index
    %c0_779 = arith.constant 0 : index
    %829 = vector.load %arg17[%828, %c0_779] : memref<10x32xf32, #tpu.memory_space<vmem>>, vector<1x32xf32>
    %c5_780 = arith.constant 5 : index
    %c7_781 = arith.constant 7 : index
    %c0_782 = arith.constant 0 : index
    %830 = vector.load %arg18[%c5_780, %c7_781, %c0_782] : memref<6x8x32xf32, #tpu.memory_space<vmem>>, vector<1x1x32xf32>
    %831 = vector.shape_cast %830 : vector<1x1x32xf32> to vector<1x32xf32>
    %832 = vector.shape_cast %829 : vector<1x32xf32> to vector<1x1x32xf32>
    tpu.vector_store %arg18[%c5_780, %c7_781, %c0_782], %832 {strides = array<i32>} : memref<6x8x32xf32, #tpu.memory_space<vmem>>, vector<1x1x32xf32>,
    %c5_783 = arith.constant 5 : index
    %c7_784 = arith.constant 7 : index
    %833 = memref.load %arg2[%c5_783, %c7_784] : memref<6x8xi32, #tpu.memory_space<smem>>
    %834 = arith.index_cast %833 : i32 to index
    %c0_785 = arith.constant 0 : index
    %835 = vector.load %arg7[%834, %c0_785] : memref<8x32xf32, #tpu.memory_space<vmem>>, vector<1x32xf32>
    %c5_786 = arith.constant 5 : index
    %c7_787 = arith.constant 7 : index
    %c0_788 = arith.constant 0 : index
    %836 = vector.load %arg20[%c5_786, %c7_787, %c0_788] : memref<6x8x32xf32, #tpu.memory_space<vmem>>, vector<1x1x32xf32>
    %837 = vector.shape_cast %836 : vector<1x1x32xf32> to vector<1x32xf32>
    %838 = vector.shape_cast %835 : vector<1x32xf32> to vector<1x1x32xf32>
    tpu.vector_store %arg20[%c5_786, %c7_787, %c0_788], %838 {strides = array<i32>} : memref<6x8x32xf32, #tpu.memory_space<vmem>>, vector<1x1x32xf32>,
    %839 = arith.index_cast %833 : i32 to index
    %c0_789 = arith.constant 0 : index
    %840 = vector.load %arg8[%839, %c0_789] : memref<8x32xf32, #tpu.memory_space<vmem>>, vector<1x32xf32>
    %c5_790 = arith.constant 5 : index
    %c7_791 = arith.constant 7 : index
    %c0_792 = arith.constant 0 : index
    %841 = vector.load %arg21[%c5_790, %c7_791, %c0_792] : memref<6x8x32xf32, #tpu.memory_space<vmem>>, vector<1x1x32xf32>
    %842 = vector.shape_cast %841 : vector<1x1x32xf32> to vector<1x32xf32>
    %843 = vector.shape_cast %840 : vector<1x32xf32> to vector<1x1x32xf32>
    tpu.vector_store %arg21[%c5_790, %c7_791, %c0_792], %843 {strides = array<i32>} : memref<6x8x32xf32, #tpu.memory_space<vmem>>, vector<1x1x32xf32>,
    %c5_793 = arith.constant 5 : index
    %844 = memref.load %arg3[%c5_793] : memref<6xi32, #tpu.memory_space<smem>>
    %845 = arith.index_cast %844 : i32 to index
    %c0_794 = arith.constant 0 : index
    %846 = vector.load %arg17[%845, %c0_794] : memref<10x32xf32, #tpu.memory_space<vmem>>, vector<1x32xf32>
    %c5_795 = arith.constant 5 : index
    %c0_796 = arith.constant 0 : index
    %847 = vector.load %arg22[%c5_795, %c0_796] : memref<6x32xf32, #tpu.memory_space<vmem>>, vector<1x32xf32>
    tpu.vector_store %arg22[%c5_795, %c0_796], %846 {strides = array<i32>} : memref<6x32xf32, #tpu.memory_space<vmem>>, vector<1x32xf32>,
    %c0_797 = arith.constant 0 : index
    %c0_798 = arith.constant 0 : index
    %848 = memref.load %arg1[%c0_797, %c0_798] : memref<10x8xi32, #tpu.memory_space<smem>>
    %849 = arith.index_cast %848 : i32 to index
    %c0_799 = arith.constant 0 : index
    %850 = vector.load %arg16[%849, %c0_799] : memref<6x32xf32, #tpu.memory_space<vmem>>, vector<1x32xf32>
    %c0_800 = arith.constant 0 : index
    %c0_801 = arith.constant 0 : index
    %c0_802 = arith.constant 0 : index
    %851 = vector.load %arg19[%c0_800, %c0_801, %c0_802] : memref<10x8x32xf32, #tpu.memory_space<vmem>>, vector<1x1x32xf32>
    %852 = vector.shape_cast %851 : vector<1x1x32xf32> to vector<1x32xf32>
    %853 = vector.shape_cast %850 : vector<1x32xf32> to vector<1x1x32xf32>
    tpu.vector_store %arg19[%c0_800, %c0_801, %c0_802], %853 {strides = array<i32>} : memref<10x8x32xf32, #tpu.memory_space<vmem>>, vector<1x1x32xf32>,
    %c0_803 = arith.constant 0 : index
    %c1_804 = arith.constant 1 : index
    %854 = memref.load %arg1[%c0_803, %c1_804] : memref<10x8xi32, #tpu.memory_space<smem>>
    %855 = arith.index_cast %854 : i32 to index
    %c0_805 = arith.constant 0 : index
    %856 = vector.load %arg16[%855, %c0_805] : memref<6x32xf32, #tpu.memory_space<vmem>>, vector<1x32xf32>
    %c0_806 = arith.constant 0 : index
    %c1_807 = arith.constant 1 : index
    %c0_808 = arith.constant 0 : index
    %857 = vector.load %arg19[%c0_806, %c1_807, %c0_808] : memref<10x8x32xf32, #tpu.memory_space<vmem>>, vector<1x1x32xf32>
    %858 = vector.shape_cast %857 : vector<1x1x32xf32> to vector<1x32xf32>
    %859 = vector.shape_cast %856 : vector<1x32xf32> to vector<1x1x32xf32>
    tpu.vector_store %arg19[%c0_806, %c1_807, %c0_808], %859 {strides = array<i32>} : memref<10x8x32xf32, #tpu.memory_space<vmem>>, vector<1x1x32xf32>,
    %c0_809 = arith.constant 0 : index
    %c2_810 = arith.constant 2 : index
    %860 = memref.load %arg1[%c0_809, %c2_810] : memref<10x8xi32, #tpu.memory_space<smem>>
    %861 = arith.index_cast %860 : i32 to index
    %c0_811 = arith.constant 0 : index
    %862 = vector.load %arg16[%861, %c0_811] : memref<6x32xf32, #tpu.memory_space<vmem>>, vector<1x32xf32>
    %c0_812 = arith.constant 0 : index
    %c2_813 = arith.constant 2 : index
    %c0_814 = arith.constant 0 : index
    %863 = vector.load %arg19[%c0_812, %c2_813, %c0_814] : memref<10x8x32xf32, #tpu.memory_space<vmem>>, vector<1x1x32xf32>
    %864 = vector.shape_cast %863 : vector<1x1x32xf32> to vector<1x32xf32>
    %865 = vector.shape_cast %862 : vector<1x32xf32> to vector<1x1x32xf32>
    tpu.vector_store %arg19[%c0_812, %c2_813, %c0_814], %865 {strides = array<i32>} : memref<10x8x32xf32, #tpu.memory_space<vmem>>, vector<1x1x32xf32>,
    %c0_815 = arith.constant 0 : index
    %c3_816 = arith.constant 3 : index
    %866 = memref.load %arg1[%c0_815, %c3_816] : memref<10x8xi32, #tpu.memory_space<smem>>
    %867 = arith.index_cast %866 : i32 to index
    %c0_817 = arith.constant 0 : index
    %868 = vector.load %arg16[%867, %c0_817] : memref<6x32xf32, #tpu.memory_space<vmem>>, vector<1x32xf32>
    %c0_818 = arith.constant 0 : index
    %c3_819 = arith.constant 3 : index
    %c0_820 = arith.constant 0 : index
    %869 = vector.load %arg19[%c0_818, %c3_819, %c0_820] : memref<10x8x32xf32, #tpu.memory_space<vmem>>, vector<1x1x32xf32>
    %870 = vector.shape_cast %869 : vector<1x1x32xf32> to vector<1x32xf32>
    %871 = vector.shape_cast %868 : vector<1x32xf32> to vector<1x1x32xf32>
    tpu.vector_store %arg19[%c0_818, %c3_819, %c0_820], %871 {strides = array<i32>} : memref<10x8x32xf32, #tpu.memory_space<vmem>>, vector<1x1x32xf32>,
    %c0_821 = arith.constant 0 : index
    %c4_822 = arith.constant 4 : index
    %872 = memref.load %arg1[%c0_821, %c4_822] : memref<10x8xi32, #tpu.memory_space<smem>>
    %873 = arith.index_cast %872 : i32 to index
    %c0_823 = arith.constant 0 : index
    %874 = vector.load %arg16[%873, %c0_823] : memref<6x32xf32, #tpu.memory_space<vmem>>, vector<1x32xf32>
    %c0_824 = arith.constant 0 : index
    %c4_825 = arith.constant 4 : index
    %c0_826 = arith.constant 0 : index
    %875 = vector.load %arg19[%c0_824, %c4_825, %c0_826] : memref<10x8x32xf32, #tpu.memory_space<vmem>>, vector<1x1x32xf32>
    %876 = vector.shape_cast %875 : vector<1x1x32xf32> to vector<1x32xf32>
    %877 = vector.shape_cast %874 : vector<1x32xf32> to vector<1x1x32xf32>
    tpu.vector_store %arg19[%c0_824, %c4_825, %c0_826], %877 {strides = array<i32>} : memref<10x8x32xf32, #tpu.memory_space<vmem>>, vector<1x1x32xf32>,
    %c0_827 = arith.constant 0 : index
    %c5_828 = arith.constant 5 : index
    %878 = memref.load %arg1[%c0_827, %c5_828] : memref<10x8xi32, #tpu.memory_space<smem>>
    %879 = arith.index_cast %878 : i32 to index
    %c0_829 = arith.constant 0 : index
    %880 = vector.load %arg16[%879, %c0_829] : memref<6x32xf32, #tpu.memory_space<vmem>>, vector<1x32xf32>
    %c0_830 = arith.constant 0 : index
    %c5_831 = arith.constant 5 : index
    %c0_832 = arith.constant 0 : index
    %881 = vector.load %arg19[%c0_830, %c5_831, %c0_832] : memref<10x8x32xf32, #tpu.memory_space<vmem>>, vector<1x1x32xf32>
    %882 = vector.shape_cast %881 : vector<1x1x32xf32> to vector<1x32xf32>
    %883 = vector.shape_cast %880 : vector<1x32xf32> to vector<1x1x32xf32>
    tpu.vector_store %arg19[%c0_830, %c5_831, %c0_832], %883 {strides = array<i32>} : memref<10x8x32xf32, #tpu.memory_space<vmem>>, vector<1x1x32xf32>,
    %c0_833 = arith.constant 0 : index
    %c6_834 = arith.constant 6 : index
    %884 = memref.load %arg1[%c0_833, %c6_834] : memref<10x8xi32, #tpu.memory_space<smem>>
    %885 = arith.index_cast %884 : i32 to index
    %c0_835 = arith.constant 0 : index
    %886 = vector.load %arg16[%885, %c0_835] : memref<6x32xf32, #tpu.memory_space<vmem>>, vector<1x32xf32>
    %c0_836 = arith.constant 0 : index
    %c6_837 = arith.constant 6 : index
    %c0_838 = arith.constant 0 : index
    %887 = vector.load %arg19[%c0_836, %c6_837, %c0_838] : memref<10x8x32xf32, #tpu.memory_space<vmem>>, vector<1x1x32xf32>
    %888 = vector.shape_cast %887 : vector<1x1x32xf32> to vector<1x32xf32>
    %889 = vector.shape_cast %886 : vector<1x32xf32> to vector<1x1x32xf32>
    tpu.vector_store %arg19[%c0_836, %c6_837, %c0_838], %889 {strides = array<i32>} : memref<10x8x32xf32, #tpu.memory_space<vmem>>, vector<1x1x32xf32>,
    %c0_839 = arith.constant 0 : index
    %c7_840 = arith.constant 7 : index
    %890 = memref.load %arg1[%c0_839, %c7_840] : memref<10x8xi32, #tpu.memory_space<smem>>
    %891 = arith.index_cast %890 : i32 to index
    %c0_841 = arith.constant 0 : index
    %892 = vector.load %arg16[%891, %c0_841] : memref<6x32xf32, #tpu.memory_space<vmem>>, vector<1x32xf32>
    %c0_842 = arith.constant 0 : index
    %c7_843 = arith.constant 7 : index
    %c0_844 = arith.constant 0 : index
    %893 = vector.load %arg19[%c0_842, %c7_843, %c0_844] : memref<10x8x32xf32, #tpu.memory_space<vmem>>, vector<1x1x32xf32>
    %894 = vector.shape_cast %893 : vector<1x1x32xf32> to vector<1x32xf32>
    %895 = vector.shape_cast %892 : vector<1x32xf32> to vector<1x1x32xf32>
    tpu.vector_store %arg19[%c0_842, %c7_843, %c0_844], %895 {strides = array<i32>} : memref<10x8x32xf32, #tpu.memory_space<vmem>>, vector<1x1x32xf32>,
    %c0_845 = arith.constant 0 : index
    %896 = memref.load %arg4[%c0_845] : memref<10xi32, #tpu.memory_space<smem>>
    %897 = arith.index_cast %896 : i32 to index
    %c0_846 = arith.constant 0 : index
    %898 = vector.load %arg16[%897, %c0_846] : memref<6x32xf32, #tpu.memory_space<vmem>>, vector<1x32xf32>
    %c0_847 = arith.constant 0 : index
    %c0_848 = arith.constant 0 : index
    %899 = vector.load %arg23[%c0_847, %c0_848] : memref<10x32xf32, #tpu.memory_space<vmem>>, vector<1x32xf32>
    tpu.vector_store %arg23[%c0_847, %c0_848], %898 {strides = array<i32>} : memref<10x32xf32, #tpu.memory_space<vmem>>, vector<1x32xf32>,
    %c1_849 = arith.constant 1 : index
    %c0_850 = arith.constant 0 : index
    %900 = memref.load %arg1[%c1_849, %c0_850] : memref<10x8xi32, #tpu.memory_space<smem>>
    %901 = arith.index_cast %900 : i32 to index
    %c0_851 = arith.constant 0 : index
    %902 = vector.load %arg16[%901, %c0_851] : memref<6x32xf32, #tpu.memory_space<vmem>>, vector<1x32xf32>
    %c1_852 = arith.constant 1 : index
    %c0_853 = arith.constant 0 : index
    %c0_854 = arith.constant 0 : index
    %903 = vector.load %arg19[%c1_852, %c0_853, %c0_854] : memref<10x8x32xf32, #tpu.memory_space<vmem>>, vector<1x1x32xf32>
    %904 = vector.shape_cast %903 : vector<1x1x32xf32> to vector<1x32xf32>
    %905 = vector.shape_cast %902 : vector<1x32xf32> to vector<1x1x32xf32>
    tpu.vector_store %arg19[%c1_852, %c0_853, %c0_854], %905 {strides = array<i32>} : memref<10x8x32xf32, #tpu.memory_space<vmem>>, vector<1x1x32xf32>,
    %c1_855 = arith.constant 1 : index
    %c1_856 = arith.constant 1 : index
    %906 = memref.load %arg1[%c1_855, %c1_856] : memref<10x8xi32, #tpu.memory_space<smem>>
    %907 = arith.index_cast %906 : i32 to index
    %c0_857 = arith.constant 0 : index
    %908 = vector.load %arg16[%907, %c0_857] : memref<6x32xf32, #tpu.memory_space<vmem>>, vector<1x32xf32>
    %c1_858 = arith.constant 1 : index
    %c1_859 = arith.constant 1 : index
    %c0_860 = arith.constant 0 : index
    %909 = vector.load %arg19[%c1_858, %c1_859, %c0_860] : memref<10x8x32xf32, #tpu.memory_space<vmem>>, vector<1x1x32xf32>
    %910 = vector.shape_cast %909 : vector<1x1x32xf32> to vector<1x32xf32>
    %911 = vector.shape_cast %908 : vector<1x32xf32> to vector<1x1x32xf32>
    tpu.vector_store %arg19[%c1_858, %c1_859, %c0_860], %911 {strides = array<i32>} : memref<10x8x32xf32, #tpu.memory_space<vmem>>, vector<1x1x32xf32>,
    %c1_861 = arith.constant 1 : index
    %c2_862 = arith.constant 2 : index
    %912 = memref.load %arg1[%c1_861, %c2_862] : memref<10x8xi32, #tpu.memory_space<smem>>
    %913 = arith.index_cast %912 : i32 to index
    %c0_863 = arith.constant 0 : index
    %914 = vector.load %arg16[%913, %c0_863] : memref<6x32xf32, #tpu.memory_space<vmem>>, vector<1x32xf32>
    %c1_864 = arith.constant 1 : index
    %c2_865 = arith.constant 2 : index
    %c0_866 = arith.constant 0 : index
    %915 = vector.load %arg19[%c1_864, %c2_865, %c0_866] : memref<10x8x32xf32, #tpu.memory_space<vmem>>, vector<1x1x32xf32>
    %916 = vector.shape_cast %915 : vector<1x1x32xf32> to vector<1x32xf32>
    %917 = vector.shape_cast %914 : vector<1x32xf32> to vector<1x1x32xf32>
    tpu.vector_store %arg19[%c1_864, %c2_865, %c0_866], %917 {strides = array<i32>} : memref<10x8x32xf32, #tpu.memory_space<vmem>>, vector<1x1x32xf32>,
    %c1_867 = arith.constant 1 : index
    %c3_868 = arith.constant 3 : index
    %918 = memref.load %arg1[%c1_867, %c3_868] : memref<10x8xi32, #tpu.memory_space<smem>>
    %919 = arith.index_cast %918 : i32 to index
    %c0_869 = arith.constant 0 : index
    %920 = vector.load %arg16[%919, %c0_869] : memref<6x32xf32, #tpu.memory_space<vmem>>, vector<1x32xf32>
    %c1_870 = arith.constant 1 : index
    %c3_871 = arith.constant 3 : index
    %c0_872 = arith.constant 0 : index
    %921 = vector.load %arg19[%c1_870, %c3_871, %c0_872] : memref<10x8x32xf32, #tpu.memory_space<vmem>>, vector<1x1x32xf32>
    %922 = vector.shape_cast %921 : vector<1x1x32xf32> to vector<1x32xf32>
    %923 = vector.shape_cast %920 : vector<1x32xf32> to vector<1x1x32xf32>
    tpu.vector_store %arg19[%c1_870, %c3_871, %c0_872], %923 {strides = array<i32>} : memref<10x8x32xf32, #tpu.memory_space<vmem>>, vector<1x1x32xf32>,
    %c1_873 = arith.constant 1 : index
    %c4_874 = arith.constant 4 : index
    %924 = memref.load %arg1[%c1_873, %c4_874] : memref<10x8xi32, #tpu.memory_space<smem>>
    %925 = arith.index_cast %924 : i32 to index
    %c0_875 = arith.constant 0 : index
    %926 = vector.load %arg16[%925, %c0_875] : memref<6x32xf32, #tpu.memory_space<vmem>>, vector<1x32xf32>
    %c1_876 = arith.constant 1 : index
    %c4_877 = arith.constant 4 : index
    %c0_878 = arith.constant 0 : index
    %927 = vector.load %arg19[%c1_876, %c4_877, %c0_878] : memref<10x8x32xf32, #tpu.memory_space<vmem>>, vector<1x1x32xf32>
    %928 = vector.shape_cast %927 : vector<1x1x32xf32> to vector<1x32xf32>
    %929 = vector.shape_cast %926 : vector<1x32xf32> to vector<1x1x32xf32>
    tpu.vector_store %arg19[%c1_876, %c4_877, %c0_878], %929 {strides = array<i32>} : memref<10x8x32xf32, #tpu.memory_space<vmem>>, vector<1x1x32xf32>,
    %c1_879 = arith.constant 1 : index
    %c5_880 = arith.constant 5 : index
    %930 = memref.load %arg1[%c1_879, %c5_880] : memref<10x8xi32, #tpu.memory_space<smem>>
    %931 = arith.index_cast %930 : i32 to index
    %c0_881 = arith.constant 0 : index
    %932 = vector.load %arg16[%931, %c0_881] : memref<6x32xf32, #tpu.memory_space<vmem>>, vector<1x32xf32>
    %c1_882 = arith.constant 1 : index
    %c5_883 = arith.constant 5 : index
    %c0_884 = arith.constant 0 : index
    %933 = vector.load %arg19[%c1_882, %c5_883, %c0_884] : memref<10x8x32xf32, #tpu.memory_space<vmem>>, vector<1x1x32xf32>
    %934 = vector.shape_cast %933 : vector<1x1x32xf32> to vector<1x32xf32>
    %935 = vector.shape_cast %932 : vector<1x32xf32> to vector<1x1x32xf32>
    tpu.vector_store %arg19[%c1_882, %c5_883, %c0_884], %935 {strides = array<i32>} : memref<10x8x32xf32, #tpu.memory_space<vmem>>, vector<1x1x32xf32>,
    %c1_885 = arith.constant 1 : index
    %c6_886 = arith.constant 6 : index
    %936 = memref.load %arg1[%c1_885, %c6_886] : memref<10x8xi32, #tpu.memory_space<smem>>
    %937 = arith.index_cast %936 : i32 to index
    %c0_887 = arith.constant 0 : index
    %938 = vector.load %arg16[%937, %c0_887] : memref<6x32xf32, #tpu.memory_space<vmem>>, vector<1x32xf32>
    %c1_888 = arith.constant 1 : index
    %c6_889 = arith.constant 6 : index
    %c0_890 = arith.constant 0 : index
    %939 = vector.load %arg19[%c1_888, %c6_889, %c0_890] : memref<10x8x32xf32, #tpu.memory_space<vmem>>, vector<1x1x32xf32>
    %940 = vector.shape_cast %939 : vector<1x1x32xf32> to vector<1x32xf32>
    %941 = vector.shape_cast %938 : vector<1x32xf32> to vector<1x1x32xf32>
    tpu.vector_store %arg19[%c1_888, %c6_889, %c0_890], %941 {strides = array<i32>} : memref<10x8x32xf32, #tpu.memory_space<vmem>>, vector<1x1x32xf32>,
    %c1_891 = arith.constant 1 : index
    %c7_892 = arith.constant 7 : index
    %942 = memref.load %arg1[%c1_891, %c7_892] : memref<10x8xi32, #tpu.memory_space<smem>>
    %943 = arith.index_cast %942 : i32 to index
    %c0_893 = arith.constant 0 : index
    %944 = vector.load %arg16[%943, %c0_893] : memref<6x32xf32, #tpu.memory_space<vmem>>, vector<1x32xf32>
    %c1_894 = arith.constant 1 : index
    %c7_895 = arith.constant 7 : index
    %c0_896 = arith.constant 0 : index
    %945 = vector.load %arg19[%c1_894, %c7_895, %c0_896] : memref<10x8x32xf32, #tpu.memory_space<vmem>>, vector<1x1x32xf32>
    %946 = vector.shape_cast %945 : vector<1x1x32xf32> to vector<1x32xf32>
    %947 = vector.shape_cast %944 : vector<1x32xf32> to vector<1x1x32xf32>
    tpu.vector_store %arg19[%c1_894, %c7_895, %c0_896], %947 {strides = array<i32>} : memref<10x8x32xf32, #tpu.memory_space<vmem>>, vector<1x1x32xf32>,
    %c1_897 = arith.constant 1 : index
    %948 = memref.load %arg4[%c1_897] : memref<10xi32, #tpu.memory_space<smem>>
    %949 = arith.index_cast %948 : i32 to index
    %c0_898 = arith.constant 0 : index
    %950 = vector.load %arg16[%949, %c0_898] : memref<6x32xf32, #tpu.memory_space<vmem>>, vector<1x32xf32>
    %c1_899 = arith.constant 1 : index
    %c0_900 = arith.constant 0 : index
    %951 = vector.load %arg23[%c1_899, %c0_900] : memref<10x32xf32, #tpu.memory_space<vmem>>, vector<1x32xf32>
    tpu.vector_store %arg23[%c1_899, %c0_900], %950 {strides = array<i32>} : memref<10x32xf32, #tpu.memory_space<vmem>>, vector<1x32xf32>,
    %c2_901 = arith.constant 2 : index
    %c0_902 = arith.constant 0 : index
    %952 = memref.load %arg1[%c2_901, %c0_902] : memref<10x8xi32, #tpu.memory_space<smem>>
    %953 = arith.index_cast %952 : i32 to index
    %c0_903 = arith.constant 0 : index
    %954 = vector.load %arg16[%953, %c0_903] : memref<6x32xf32, #tpu.memory_space<vmem>>, vector<1x32xf32>
    %c2_904 = arith.constant 2 : index
    %c0_905 = arith.constant 0 : index
    %c0_906 = arith.constant 0 : index
    %955 = vector.load %arg19[%c2_904, %c0_905, %c0_906] : memref<10x8x32xf32, #tpu.memory_space<vmem>>, vector<1x1x32xf32>
    %956 = vector.shape_cast %955 : vector<1x1x32xf32> to vector<1x32xf32>
    %957 = vector.shape_cast %954 : vector<1x32xf32> to vector<1x1x32xf32>
    tpu.vector_store %arg19[%c2_904, %c0_905, %c0_906], %957 {strides = array<i32>} : memref<10x8x32xf32, #tpu.memory_space<vmem>>, vector<1x1x32xf32>,
    %c2_907 = arith.constant 2 : index
    %c1_908 = arith.constant 1 : index
    %958 = memref.load %arg1[%c2_907, %c1_908] : memref<10x8xi32, #tpu.memory_space<smem>>
    %959 = arith.index_cast %958 : i32 to index
    %c0_909 = arith.constant 0 : index
    %960 = vector.load %arg16[%959, %c0_909] : memref<6x32xf32, #tpu.memory_space<vmem>>, vector<1x32xf32>
    %c2_910 = arith.constant 2 : index
    %c1_911 = arith.constant 1 : index
    %c0_912 = arith.constant 0 : index
    %961 = vector.load %arg19[%c2_910, %c1_911, %c0_912] : memref<10x8x32xf32, #tpu.memory_space<vmem>>, vector<1x1x32xf32>
    %962 = vector.shape_cast %961 : vector<1x1x32xf32> to vector<1x32xf32>
    %963 = vector.shape_cast %960 : vector<1x32xf32> to vector<1x1x32xf32>
    tpu.vector_store %arg19[%c2_910, %c1_911, %c0_912], %963 {strides = array<i32>} : memref<10x8x32xf32, #tpu.memory_space<vmem>>, vector<1x1x32xf32>,
    %c2_913 = arith.constant 2 : index
    %c2_914 = arith.constant 2 : index
    %964 = memref.load %arg1[%c2_913, %c2_914] : memref<10x8xi32, #tpu.memory_space<smem>>
    %965 = arith.index_cast %964 : i32 to index
    %c0_915 = arith.constant 0 : index
    %966 = vector.load %arg16[%965, %c0_915] : memref<6x32xf32, #tpu.memory_space<vmem>>, vector<1x32xf32>
    %c2_916 = arith.constant 2 : index
    %c2_917 = arith.constant 2 : index
    %c0_918 = arith.constant 0 : index
    %967 = vector.load %arg19[%c2_916, %c2_917, %c0_918] : memref<10x8x32xf32, #tpu.memory_space<vmem>>, vector<1x1x32xf32>
    %968 = vector.shape_cast %967 : vector<1x1x32xf32> to vector<1x32xf32>
    %969 = vector.shape_cast %966 : vector<1x32xf32> to vector<1x1x32xf32>
    tpu.vector_store %arg19[%c2_916, %c2_917, %c0_918], %969 {strides = array<i32>} : memref<10x8x32xf32, #tpu.memory_space<vmem>>, vector<1x1x32xf32>,
    %c2_919 = arith.constant 2 : index
    %c3_920 = arith.constant 3 : index
    %970 = memref.load %arg1[%c2_919, %c3_920] : memref<10x8xi32, #tpu.memory_space<smem>>
    %971 = arith.index_cast %970 : i32 to index
    %c0_921 = arith.constant 0 : index
    %972 = vector.load %arg16[%971, %c0_921] : memref<6x32xf32, #tpu.memory_space<vmem>>, vector<1x32xf32>
    %c2_922 = arith.constant 2 : index
    %c3_923 = arith.constant 3 : index
    %c0_924 = arith.constant 0 : index
    %973 = vector.load %arg19[%c2_922, %c3_923, %c0_924] : memref<10x8x32xf32, #tpu.memory_space<vmem>>, vector<1x1x32xf32>
    %974 = vector.shape_cast %973 : vector<1x1x32xf32> to vector<1x32xf32>
    %975 = vector.shape_cast %972 : vector<1x32xf32> to vector<1x1x32xf32>
    tpu.vector_store %arg19[%c2_922, %c3_923, %c0_924], %975 {strides = array<i32>} : memref<10x8x32xf32, #tpu.memory_space<vmem>>, vector<1x1x32xf32>,
    %c2_925 = arith.constant 2 : index
    %c4_926 = arith.constant 4 : index
    %976 = memref.load %arg1[%c2_925, %c4_926] : memref<10x8xi32, #tpu.memory_space<smem>>
    %977 = arith.index_cast %976 : i32 to index
    %c0_927 = arith.constant 0 : index
    %978 = vector.load %arg16[%977, %c0_927] : memref<6x32xf32, #tpu.memory_space<vmem>>, vector<1x32xf32>
    %c2_928 = arith.constant 2 : index
    %c4_929 = arith.constant 4 : index
    %c0_930 = arith.constant 0 : index
    %979 = vector.load %arg19[%c2_928, %c4_929, %c0_930] : memref<10x8x32xf32, #tpu.memory_space<vmem>>, vector<1x1x32xf32>
    %980 = vector.shape_cast %979 : vector<1x1x32xf32> to vector<1x32xf32>
    %981 = vector.shape_cast %978 : vector<1x32xf32> to vector<1x1x32xf32>
    tpu.vector_store %arg19[%c2_928, %c4_929, %c0_930], %981 {strides = array<i32>} : memref<10x8x32xf32, #tpu.memory_space<vmem>>, vector<1x1x32xf32>,
    %c2_931 = arith.constant 2 : index
    %c5_932 = arith.constant 5 : index
    %982 = memref.load %arg1[%c2_931, %c5_932] : memref<10x8xi32, #tpu.memory_space<smem>>
    %983 = arith.index_cast %982 : i32 to index
    %c0_933 = arith.constant 0 : index
    %984 = vector.load %arg16[%983, %c0_933] : memref<6x32xf32, #tpu.memory_space<vmem>>, vector<1x32xf32>
    %c2_934 = arith.constant 2 : index
    %c5_935 = arith.constant 5 : index
    %c0_936 = arith.constant 0 : index
    %985 = vector.load %arg19[%c2_934, %c5_935, %c0_936] : memref<10x8x32xf32, #tpu.memory_space<vmem>>, vector<1x1x32xf32>
    %986 = vector.shape_cast %985 : vector<1x1x32xf32> to vector<1x32xf32>
    %987 = vector.shape_cast %984 : vector<1x32xf32> to vector<1x1x32xf32>
    tpu.vector_store %arg19[%c2_934, %c5_935, %c0_936], %987 {strides = array<i32>} : memref<10x8x32xf32, #tpu.memory_space<vmem>>, vector<1x1x32xf32>,
    %c2_937 = arith.constant 2 : index
    %c6_938 = arith.constant 6 : index
    %988 = memref.load %arg1[%c2_937, %c6_938] : memref<10x8xi32, #tpu.memory_space<smem>>
    %989 = arith.index_cast %988 : i32 to index
    %c0_939 = arith.constant 0 : index
    %990 = vector.load %arg16[%989, %c0_939] : memref<6x32xf32, #tpu.memory_space<vmem>>, vector<1x32xf32>
    %c2_940 = arith.constant 2 : index
    %c6_941 = arith.constant 6 : index
    %c0_942 = arith.constant 0 : index
    %991 = vector.load %arg19[%c2_940, %c6_941, %c0_942] : memref<10x8x32xf32, #tpu.memory_space<vmem>>, vector<1x1x32xf32>
    %992 = vector.shape_cast %991 : vector<1x1x32xf32> to vector<1x32xf32>
    %993 = vector.shape_cast %990 : vector<1x32xf32> to vector<1x1x32xf32>
    tpu.vector_store %arg19[%c2_940, %c6_941, %c0_942], %993 {strides = array<i32>} : memref<10x8x32xf32, #tpu.memory_space<vmem>>, vector<1x1x32xf32>,
    %c2_943 = arith.constant 2 : index
    %c7_944 = arith.constant 7 : index
    %994 = memref.load %arg1[%c2_943, %c7_944] : memref<10x8xi32, #tpu.memory_space<smem>>
    %995 = arith.index_cast %994 : i32 to index
    %c0_945 = arith.constant 0 : index
    %996 = vector.load %arg16[%995, %c0_945] : memref<6x32xf32, #tpu.memory_space<vmem>>, vector<1x32xf32>
    %c2_946 = arith.constant 2 : index
    %c7_947 = arith.constant 7 : index
    %c0_948 = arith.constant 0 : index
    %997 = vector.load %arg19[%c2_946, %c7_947, %c0_948] : memref<10x8x32xf32, #tpu.memory_space<vmem>>, vector<1x1x32xf32>
    %998 = vector.shape_cast %997 : vector<1x1x32xf32> to vector<1x32xf32>
    %999 = vector.shape_cast %996 : vector<1x32xf32> to vector<1x1x32xf32>
    tpu.vector_store %arg19[%c2_946, %c7_947, %c0_948], %999 {strides = array<i32>} : memref<10x8x32xf32, #tpu.memory_space<vmem>>, vector<1x1x32xf32>,
    %c2_949 = arith.constant 2 : index
    %1000 = memref.load %arg4[%c2_949] : memref<10xi32, #tpu.memory_space<smem>>
    %1001 = arith.index_cast %1000 : i32 to index
    %c0_950 = arith.constant 0 : index
    %1002 = vector.load %arg16[%1001, %c0_950] : memref<6x32xf32, #tpu.memory_space<vmem>>, vector<1x32xf32>
    %c2_951 = arith.constant 2 : index
    %c0_952 = arith.constant 0 : index
    %1003 = vector.load %arg23[%c2_951, %c0_952] : memref<10x32xf32, #tpu.memory_space<vmem>>, vector<1x32xf32>
    tpu.vector_store %arg23[%c2_951, %c0_952], %1002 {strides = array<i32>} : memref<10x32xf32, #tpu.memory_space<vmem>>, vector<1x32xf32>,
    %c3_953 = arith.constant 3 : index
    %c0_954 = arith.constant 0 : index
    %1004 = memref.load %arg1[%c3_953, %c0_954] : memref<10x8xi32, #tpu.memory_space<smem>>
    %1005 = arith.index_cast %1004 : i32 to index
    %c0_955 = arith.constant 0 : index
    %1006 = vector.load %arg16[%1005, %c0_955] : memref<6x32xf32, #tpu.memory_space<vmem>>, vector<1x32xf32>
    %c3_956 = arith.constant 3 : index
    %c0_957 = arith.constant 0 : index
    %c0_958 = arith.constant 0 : index
    %1007 = vector.load %arg19[%c3_956, %c0_957, %c0_958] : memref<10x8x32xf32, #tpu.memory_space<vmem>>, vector<1x1x32xf32>
    %1008 = vector.shape_cast %1007 : vector<1x1x32xf32> to vector<1x32xf32>
    %1009 = vector.shape_cast %1006 : vector<1x32xf32> to vector<1x1x32xf32>
    tpu.vector_store %arg19[%c3_956, %c0_957, %c0_958], %1009 {strides = array<i32>} : memref<10x8x32xf32, #tpu.memory_space<vmem>>, vector<1x1x32xf32>,
    %c3_959 = arith.constant 3 : index
    %c1_960 = arith.constant 1 : index
    %1010 = memref.load %arg1[%c3_959, %c1_960] : memref<10x8xi32, #tpu.memory_space<smem>>
    %1011 = arith.index_cast %1010 : i32 to index
    %c0_961 = arith.constant 0 : index
    %1012 = vector.load %arg16[%1011, %c0_961] : memref<6x32xf32, #tpu.memory_space<vmem>>, vector<1x32xf32>
    %c3_962 = arith.constant 3 : index
    %c1_963 = arith.constant 1 : index
    %c0_964 = arith.constant 0 : index
    %1013 = vector.load %arg19[%c3_962, %c1_963, %c0_964] : memref<10x8x32xf32, #tpu.memory_space<vmem>>, vector<1x1x32xf32>
    %1014 = vector.shape_cast %1013 : vector<1x1x32xf32> to vector<1x32xf32>
    %1015 = vector.shape_cast %1012 : vector<1x32xf32> to vector<1x1x32xf32>
    tpu.vector_store %arg19[%c3_962, %c1_963, %c0_964], %1015 {strides = array<i32>} : memref<10x8x32xf32, #tpu.memory_space<vmem>>, vector<1x1x32xf32>,
    %c3_965 = arith.constant 3 : index
    %c2_966 = arith.constant 2 : index
    %1016 = memref.load %arg1[%c3_965, %c2_966] : memref<10x8xi32, #tpu.memory_space<smem>>
    %1017 = arith.index_cast %1016 : i32 to index
    %c0_967 = arith.constant 0 : index
    %1018 = vector.load %arg16[%1017, %c0_967] : memref<6x32xf32, #tpu.memory_space<vmem>>, vector<1x32xf32>
    %c3_968 = arith.constant 3 : index
    %c2_969 = arith.constant 2 : index
    %c0_970 = arith.constant 0 : index
    %1019 = vector.load %arg19[%c3_968, %c2_969, %c0_970] : memref<10x8x32xf32, #tpu.memory_space<vmem>>, vector<1x1x32xf32>
    %1020 = vector.shape_cast %1019 : vector<1x1x32xf32> to vector<1x32xf32>
    %1021 = vector.shape_cast %1018 : vector<1x32xf32> to vector<1x1x32xf32>
    tpu.vector_store %arg19[%c3_968, %c2_969, %c0_970], %1021 {strides = array<i32>} : memref<10x8x32xf32, #tpu.memory_space<vmem>>, vector<1x1x32xf32>,
    %c3_971 = arith.constant 3 : index
    %c3_972 = arith.constant 3 : index
    %1022 = memref.load %arg1[%c3_971, %c3_972] : memref<10x8xi32, #tpu.memory_space<smem>>
    %1023 = arith.index_cast %1022 : i32 to index
    %c0_973 = arith.constant 0 : index
    %1024 = vector.load %arg16[%1023, %c0_973] : memref<6x32xf32, #tpu.memory_space<vmem>>, vector<1x32xf32>
    %c3_974 = arith.constant 3 : index
    %c3_975 = arith.constant 3 : index
    %c0_976 = arith.constant 0 : index
    %1025 = vector.load %arg19[%c3_974, %c3_975, %c0_976] : memref<10x8x32xf32, #tpu.memory_space<vmem>>, vector<1x1x32xf32>
    %1026 = vector.shape_cast %1025 : vector<1x1x32xf32> to vector<1x32xf32>
    %1027 = vector.shape_cast %1024 : vector<1x32xf32> to vector<1x1x32xf32>
    tpu.vector_store %arg19[%c3_974, %c3_975, %c0_976], %1027 {strides = array<i32>} : memref<10x8x32xf32, #tpu.memory_space<vmem>>, vector<1x1x32xf32>,
    %c3_977 = arith.constant 3 : index
    %c4_978 = arith.constant 4 : index
    %1028 = memref.load %arg1[%c3_977, %c4_978] : memref<10x8xi32, #tpu.memory_space<smem>>
    %1029 = arith.index_cast %1028 : i32 to index
    %c0_979 = arith.constant 0 : index
    %1030 = vector.load %arg16[%1029, %c0_979] : memref<6x32xf32, #tpu.memory_space<vmem>>, vector<1x32xf32>
    %c3_980 = arith.constant 3 : index
    %c4_981 = arith.constant 4 : index
    %c0_982 = arith.constant 0 : index
    %1031 = vector.load %arg19[%c3_980, %c4_981, %c0_982] : memref<10x8x32xf32, #tpu.memory_space<vmem>>, vector<1x1x32xf32>
    %1032 = vector.shape_cast %1031 : vector<1x1x32xf32> to vector<1x32xf32>
    %1033 = vector.shape_cast %1030 : vector<1x32xf32> to vector<1x1x32xf32>
    tpu.vector_store %arg19[%c3_980, %c4_981, %c0_982], %1033 {strides = array<i32>} : memref<10x8x32xf32, #tpu.memory_space<vmem>>, vector<1x1x32xf32>,
    %c3_983 = arith.constant 3 : index
    %c5_984 = arith.constant 5 : index
    %1034 = memref.load %arg1[%c3_983, %c5_984] : memref<10x8xi32, #tpu.memory_space<smem>>
    %1035 = arith.index_cast %1034 : i32 to index
    %c0_985 = arith.constant 0 : index
    %1036 = vector.load %arg16[%1035, %c0_985] : memref<6x32xf32, #tpu.memory_space<vmem>>, vector<1x32xf32>
    %c3_986 = arith.constant 3 : index
    %c5_987 = arith.constant 5 : index
    %c0_988 = arith.constant 0 : index
    %1037 = vector.load %arg19[%c3_986, %c5_987, %c0_988] : memref<10x8x32xf32, #tpu.memory_space<vmem>>, vector<1x1x32xf32>
    %1038 = vector.shape_cast %1037 : vector<1x1x32xf32> to vector<1x32xf32>
    %1039 = vector.shape_cast %1036 : vector<1x32xf32> to vector<1x1x32xf32>
    tpu.vector_store %arg19[%c3_986, %c5_987, %c0_988], %1039 {strides = array<i32>} : memref<10x8x32xf32, #tpu.memory_space<vmem>>, vector<1x1x32xf32>,
    %c3_989 = arith.constant 3 : index
    %c6_990 = arith.constant 6 : index
    %1040 = memref.load %arg1[%c3_989, %c6_990] : memref<10x8xi32, #tpu.memory_space<smem>>
    %1041 = arith.index_cast %1040 : i32 to index
    %c0_991 = arith.constant 0 : index
    %1042 = vector.load %arg16[%1041, %c0_991] : memref<6x32xf32, #tpu.memory_space<vmem>>, vector<1x32xf32>
    %c3_992 = arith.constant 3 : index
    %c6_993 = arith.constant 6 : index
    %c0_994 = arith.constant 0 : index
    %1043 = vector.load %arg19[%c3_992, %c6_993, %c0_994] : memref<10x8x32xf32, #tpu.memory_space<vmem>>, vector<1x1x32xf32>
    %1044 = vector.shape_cast %1043 : vector<1x1x32xf32> to vector<1x32xf32>
    %1045 = vector.shape_cast %1042 : vector<1x32xf32> to vector<1x1x32xf32>
    tpu.vector_store %arg19[%c3_992, %c6_993, %c0_994], %1045 {strides = array<i32>} : memref<10x8x32xf32, #tpu.memory_space<vmem>>, vector<1x1x32xf32>,
    %c3_995 = arith.constant 3 : index
    %c7_996 = arith.constant 7 : index
    %1046 = memref.load %arg1[%c3_995, %c7_996] : memref<10x8xi32, #tpu.memory_space<smem>>
    %1047 = arith.index_cast %1046 : i32 to index
    %c0_997 = arith.constant 0 : index
    %1048 = vector.load %arg16[%1047, %c0_997] : memref<6x32xf32, #tpu.memory_space<vmem>>, vector<1x32xf32>
    %c3_998 = arith.constant 3 : index
    %c7_999 = arith.constant 7 : index
    %c0_1000 = arith.constant 0 : index
    %1049 = vector.load %arg19[%c3_998, %c7_999, %c0_1000] : memref<10x8x32xf32, #tpu.memory_space<vmem>>, vector<1x1x32xf32>
    %1050 = vector.shape_cast %1049 : vector<1x1x32xf32> to vector<1x32xf32>
    %1051 = vector.shape_cast %1048 : vector<1x32xf32> to vector<1x1x32xf32>
    tpu.vector_store %arg19[%c3_998, %c7_999, %c0_1000], %1051 {strides = array<i32>} : memref<10x8x32xf32, #tpu.memory_space<vmem>>, vector<1x1x32xf32>,
    %c3_1001 = arith.constant 3 : index
    %1052 = memref.load %arg4[%c3_1001] : memref<10xi32, #tpu.memory_space<smem>>
    %1053 = arith.index_cast %1052 : i32 to index
    %c0_1002 = arith.constant 0 : index
    %1054 = vector.load %arg16[%1053, %c0_1002] : memref<6x32xf32, #tpu.memory_space<vmem>>, vector<1x32xf32>
    %c3_1003 = arith.constant 3 : index
    %c0_1004 = arith.constant 0 : index
    %1055 = vector.load %arg23[%c3_1003, %c0_1004] : memref<10x32xf32, #tpu.memory_space<vmem>>, vector<1x32xf32>
    tpu.vector_store %arg23[%c3_1003, %c0_1004], %1054 {strides = array<i32>} : memref<10x32xf32, #tpu.memory_space<vmem>>, vector<1x32xf32>,
    %c4_1005 = arith.constant 4 : index
    %c0_1006 = arith.constant 0 : index
    %1056 = memref.load %arg1[%c4_1005, %c0_1006] : memref<10x8xi32, #tpu.memory_space<smem>>
    %1057 = arith.index_cast %1056 : i32 to index
    %c0_1007 = arith.constant 0 : index
    %1058 = vector.load %arg16[%1057, %c0_1007] : memref<6x32xf32, #tpu.memory_space<vmem>>, vector<1x32xf32>
    %c4_1008 = arith.constant 4 : index
    %c0_1009 = arith.constant 0 : index
    %c0_1010 = arith.constant 0 : index
    %1059 = vector.load %arg19[%c4_1008, %c0_1009, %c0_1010] : memref<10x8x32xf32, #tpu.memory_space<vmem>>, vector<1x1x32xf32>
    %1060 = vector.shape_cast %1059 : vector<1x1x32xf32> to vector<1x32xf32>
    %1061 = vector.shape_cast %1058 : vector<1x32xf32> to vector<1x1x32xf32>
    tpu.vector_store %arg19[%c4_1008, %c0_1009, %c0_1010], %1061 {strides = array<i32>} : memref<10x8x32xf32, #tpu.memory_space<vmem>>, vector<1x1x32xf32>,
    %c4_1011 = arith.constant 4 : index
    %c1_1012 = arith.constant 1 : index
    %1062 = memref.load %arg1[%c4_1011, %c1_1012] : memref<10x8xi32, #tpu.memory_space<smem>>
    %1063 = arith.index_cast %1062 : i32 to index
    %c0_1013 = arith.constant 0 : index
    %1064 = vector.load %arg16[%1063, %c0_1013] : memref<6x32xf32, #tpu.memory_space<vmem>>, vector<1x32xf32>
    %c4_1014 = arith.constant 4 : index
    %c1_1015 = arith.constant 1 : index
    %c0_1016 = arith.constant 0 : index
    %1065 = vector.load %arg19[%c4_1014, %c1_1015, %c0_1016] : memref<10x8x32xf32, #tpu.memory_space<vmem>>, vector<1x1x32xf32>
    %1066 = vector.shape_cast %1065 : vector<1x1x32xf32> to vector<1x32xf32>
    %1067 = vector.shape_cast %1064 : vector<1x32xf32> to vector<1x1x32xf32>
    tpu.vector_store %arg19[%c4_1014, %c1_1015, %c0_1016], %1067 {strides = array<i32>} : memref<10x8x32xf32, #tpu.memory_space<vmem>>, vector<1x1x32xf32>,
    %c4_1017 = arith.constant 4 : index
    %c2_1018 = arith.constant 2 : index
    %1068 = memref.load %arg1[%c4_1017, %c2_1018] : memref<10x8xi32, #tpu.memory_space<smem>>
    %1069 = arith.index_cast %1068 : i32 to index
    %c0_1019 = arith.constant 0 : index
    %1070 = vector.load %arg16[%1069, %c0_1019] : memref<6x32xf32, #tpu.memory_space<vmem>>, vector<1x32xf32>
    %c4_1020 = arith.constant 4 : index
    %c2_1021 = arith.constant 2 : index
    %c0_1022 = arith.constant 0 : index
    %1071 = vector.load %arg19[%c4_1020, %c2_1021, %c0_1022] : memref<10x8x32xf32, #tpu.memory_space<vmem>>, vector<1x1x32xf32>
    %1072 = vector.shape_cast %1071 : vector<1x1x32xf32> to vector<1x32xf32>
    %1073 = vector.shape_cast %1070 : vector<1x32xf32> to vector<1x1x32xf32>
    tpu.vector_store %arg19[%c4_1020, %c2_1021, %c0_1022], %1073 {strides = array<i32>} : memref<10x8x32xf32, #tpu.memory_space<vmem>>, vector<1x1x32xf32>,
    %c4_1023 = arith.constant 4 : index
    %c3_1024 = arith.constant 3 : index
    %1074 = memref.load %arg1[%c4_1023, %c3_1024] : memref<10x8xi32, #tpu.memory_space<smem>>
    %1075 = arith.index_cast %1074 : i32 to index
    %c0_1025 = arith.constant 0 : index
    %1076 = vector.load %arg16[%1075, %c0_1025] : memref<6x32xf32, #tpu.memory_space<vmem>>, vector<1x32xf32>
    %c4_1026 = arith.constant 4 : index
    %c3_1027 = arith.constant 3 : index
    %c0_1028 = arith.constant 0 : index
    %1077 = vector.load %arg19[%c4_1026, %c3_1027, %c0_1028] : memref<10x8x32xf32, #tpu.memory_space<vmem>>, vector<1x1x32xf32>
    %1078 = vector.shape_cast %1077 : vector<1x1x32xf32> to vector<1x32xf32>
    %1079 = vector.shape_cast %1076 : vector<1x32xf32> to vector<1x1x32xf32>
    tpu.vector_store %arg19[%c4_1026, %c3_1027, %c0_1028], %1079 {strides = array<i32>} : memref<10x8x32xf32, #tpu.memory_space<vmem>>, vector<1x1x32xf32>,
    %c4_1029 = arith.constant 4 : index
    %c4_1030 = arith.constant 4 : index
    %1080 = memref.load %arg1[%c4_1029, %c4_1030] : memref<10x8xi32, #tpu.memory_space<smem>>
    %1081 = arith.index_cast %1080 : i32 to index
    %c0_1031 = arith.constant 0 : index
    %1082 = vector.load %arg16[%1081, %c0_1031] : memref<6x32xf32, #tpu.memory_space<vmem>>, vector<1x32xf32>
    %c4_1032 = arith.constant 4 : index
    %c4_1033 = arith.constant 4 : index
    %c0_1034 = arith.constant 0 : index
    %1083 = vector.load %arg19[%c4_1032, %c4_1033, %c0_1034] : memref<10x8x32xf32, #tpu.memory_space<vmem>>, vector<1x1x32xf32>
    %1084 = vector.shape_cast %1083 : vector<1x1x32xf32> to vector<1x32xf32>
    %1085 = vector.shape_cast %1082 : vector<1x32xf32> to vector<1x1x32xf32>
    tpu.vector_store %arg19[%c4_1032, %c4_1033, %c0_1034], %1085 {strides = array<i32>} : memref<10x8x32xf32, #tpu.memory_space<vmem>>, vector<1x1x32xf32>,
    %c4_1035 = arith.constant 4 : index
    %c5_1036 = arith.constant 5 : index
    %1086 = memref.load %arg1[%c4_1035, %c5_1036] : memref<10x8xi32, #tpu.memory_space<smem>>
    %1087 = arith.index_cast %1086 : i32 to index
    %c0_1037 = arith.constant 0 : index
    %1088 = vector.load %arg16[%1087, %c0_1037] : memref<6x32xf32, #tpu.memory_space<vmem>>, vector<1x32xf32>
    %c4_1038 = arith.constant 4 : index
    %c5_1039 = arith.constant 5 : index
    %c0_1040 = arith.constant 0 : index
    %1089 = vector.load %arg19[%c4_1038, %c5_1039, %c0_1040] : memref<10x8x32xf32, #tpu.memory_space<vmem>>, vector<1x1x32xf32>
    %1090 = vector.shape_cast %1089 : vector<1x1x32xf32> to vector<1x32xf32>
    %1091 = vector.shape_cast %1088 : vector<1x32xf32> to vector<1x1x32xf32>
    tpu.vector_store %arg19[%c4_1038, %c5_1039, %c0_1040], %1091 {strides = array<i32>} : memref<10x8x32xf32, #tpu.memory_space<vmem>>, vector<1x1x32xf32>,
    %c4_1041 = arith.constant 4 : index
    %c6_1042 = arith.constant 6 : index
    %1092 = memref.load %arg1[%c4_1041, %c6_1042] : memref<10x8xi32, #tpu.memory_space<smem>>
    %1093 = arith.index_cast %1092 : i32 to index
    %c0_1043 = arith.constant 0 : index
    %1094 = vector.load %arg16[%1093, %c0_1043] : memref<6x32xf32, #tpu.memory_space<vmem>>, vector<1x32xf32>
    %c4_1044 = arith.constant 4 : index
    %c6_1045 = arith.constant 6 : index
    %c0_1046 = arith.constant 0 : index
    %1095 = vector.load %arg19[%c4_1044, %c6_1045, %c0_1046] : memref<10x8x32xf32, #tpu.memory_space<vmem>>, vector<1x1x32xf32>
    %1096 = vector.shape_cast %1095 : vector<1x1x32xf32> to vector<1x32xf32>
    %1097 = vector.shape_cast %1094 : vector<1x32xf32> to vector<1x1x32xf32>
    tpu.vector_store %arg19[%c4_1044, %c6_1045, %c0_1046], %1097 {strides = array<i32>} : memref<10x8x32xf32, #tpu.memory_space<vmem>>, vector<1x1x32xf32>,
    %c4_1047 = arith.constant 4 : index
    %c7_1048 = arith.constant 7 : index
    %1098 = memref.load %arg1[%c4_1047, %c7_1048] : memref<10x8xi32, #tpu.memory_space<smem>>
    %1099 = arith.index_cast %1098 : i32 to index
    %c0_1049 = arith.constant 0 : index
    %1100 = vector.load %arg16[%1099, %c0_1049] : memref<6x32xf32, #tpu.memory_space<vmem>>, vector<1x32xf32>
    %c4_1050 = arith.constant 4 : index
    %c7_1051 = arith.constant 7 : index
    %c0_1052 = arith.constant 0 : index
    %1101 = vector.load %arg19[%c4_1050, %c7_1051, %c0_1052] : memref<10x8x32xf32, #tpu.memory_space<vmem>>, vector<1x1x32xf32>
    %1102 = vector.shape_cast %1101 : vector<1x1x32xf32> to vector<1x32xf32>
    %1103 = vector.shape_cast %1100 : vector<1x32xf32> to vector<1x1x32xf32>
    tpu.vector_store %arg19[%c4_1050, %c7_1051, %c0_1052], %1103 {strides = array<i32>} : memref<10x8x32xf32, #tpu.memory_space<vmem>>, vector<1x1x32xf32>,
    %c4_1053 = arith.constant 4 : index
    %1104 = memref.load %arg4[%c4_1053] : memref<10xi32, #tpu.memory_space<smem>>
    %1105 = arith.index_cast %1104 : i32 to index
    %c0_1054 = arith.constant 0 : index
    %1106 = vector.load %arg16[%1105, %c0_1054] : memref<6x32xf32, #tpu.memory_space<vmem>>, vector<1x32xf32>
    %c4_1055 = arith.constant 4 : index
    %c0_1056 = arith.constant 0 : index
    %1107 = vector.load %arg23[%c4_1055, %c0_1056] : memref<10x32xf32, #tpu.memory_space<vmem>>, vector<1x32xf32>
    tpu.vector_store %arg23[%c4_1055, %c0_1056], %1106 {strides = array<i32>} : memref<10x32xf32, #tpu.memory_space<vmem>>, vector<1x32xf32>,
    %c5_1057 = arith.constant 5 : index
    %c0_1058 = arith.constant 0 : index
    %1108 = memref.load %arg1[%c5_1057, %c0_1058] : memref<10x8xi32, #tpu.memory_space<smem>>
    %1109 = arith.index_cast %1108 : i32 to index
    %c0_1059 = arith.constant 0 : index
    %1110 = vector.load %arg16[%1109, %c0_1059] : memref<6x32xf32, #tpu.memory_space<vmem>>, vector<1x32xf32>
    %c5_1060 = arith.constant 5 : index
    %c0_1061 = arith.constant 0 : index
    %c0_1062 = arith.constant 0 : index
    %1111 = vector.load %arg19[%c5_1060, %c0_1061, %c0_1062] : memref<10x8x32xf32, #tpu.memory_space<vmem>>, vector<1x1x32xf32>
    %1112 = vector.shape_cast %1111 : vector<1x1x32xf32> to vector<1x32xf32>
    %1113 = vector.shape_cast %1110 : vector<1x32xf32> to vector<1x1x32xf32>
    tpu.vector_store %arg19[%c5_1060, %c0_1061, %c0_1062], %1113 {strides = array<i32>} : memref<10x8x32xf32, #tpu.memory_space<vmem>>, vector<1x1x32xf32>,
    %c5_1063 = arith.constant 5 : index
    %c1_1064 = arith.constant 1 : index
    %1114 = memref.load %arg1[%c5_1063, %c1_1064] : memref<10x8xi32, #tpu.memory_space<smem>>
    %1115 = arith.index_cast %1114 : i32 to index
    %c0_1065 = arith.constant 0 : index
    %1116 = vector.load %arg16[%1115, %c0_1065] : memref<6x32xf32, #tpu.memory_space<vmem>>, vector<1x32xf32>
    %c5_1066 = arith.constant 5 : index
    %c1_1067 = arith.constant 1 : index
    %c0_1068 = arith.constant 0 : index
    %1117 = vector.load %arg19[%c5_1066, %c1_1067, %c0_1068] : memref<10x8x32xf32, #tpu.memory_space<vmem>>, vector<1x1x32xf32>
    %1118 = vector.shape_cast %1117 : vector<1x1x32xf32> to vector<1x32xf32>
    %1119 = vector.shape_cast %1116 : vector<1x32xf32> to vector<1x1x32xf32>
    tpu.vector_store %arg19[%c5_1066, %c1_1067, %c0_1068], %1119 {strides = array<i32>} : memref<10x8x32xf32, #tpu.memory_space<vmem>>, vector<1x1x32xf32>,
    %c5_1069 = arith.constant 5 : index
    %c2_1070 = arith.constant 2 : index
    %1120 = memref.load %arg1[%c5_1069, %c2_1070] : memref<10x8xi32, #tpu.memory_space<smem>>
    %1121 = arith.index_cast %1120 : i32 to index
    %c0_1071 = arith.constant 0 : index
    %1122 = vector.load %arg16[%1121, %c0_1071] : memref<6x32xf32, #tpu.memory_space<vmem>>, vector<1x32xf32>
    %c5_1072 = arith.constant 5 : index
    %c2_1073 = arith.constant 2 : index
    %c0_1074 = arith.constant 0 : index
    %1123 = vector.load %arg19[%c5_1072, %c2_1073, %c0_1074] : memref<10x8x32xf32, #tpu.memory_space<vmem>>, vector<1x1x32xf32>
    %1124 = vector.shape_cast %1123 : vector<1x1x32xf32> to vector<1x32xf32>
    %1125 = vector.shape_cast %1122 : vector<1x32xf32> to vector<1x1x32xf32>
    tpu.vector_store %arg19[%c5_1072, %c2_1073, %c0_1074], %1125 {strides = array<i32>} : memref<10x8x32xf32, #tpu.memory_space<vmem>>, vector<1x1x32xf32>,
    %c5_1075 = arith.constant 5 : index
    %c3_1076 = arith.constant 3 : index
    %1126 = memref.load %arg1[%c5_1075, %c3_1076] : memref<10x8xi32, #tpu.memory_space<smem>>
    %1127 = arith.index_cast %1126 : i32 to index
    %c0_1077 = arith.constant 0 : index
    %1128 = vector.load %arg16[%1127, %c0_1077] : memref<6x32xf32, #tpu.memory_space<vmem>>, vector<1x32xf32>
    %c5_1078 = arith.constant 5 : index
    %c3_1079 = arith.constant 3 : index
    %c0_1080 = arith.constant 0 : index
    %1129 = vector.load %arg19[%c5_1078, %c3_1079, %c0_1080] : memref<10x8x32xf32, #tpu.memory_space<vmem>>, vector<1x1x32xf32>
    %1130 = vector.shape_cast %1129 : vector<1x1x32xf32> to vector<1x32xf32>
    %1131 = vector.shape_cast %1128 : vector<1x32xf32> to vector<1x1x32xf32>
    tpu.vector_store %arg19[%c5_1078, %c3_1079, %c0_1080], %1131 {strides = array<i32>} : memref<10x8x32xf32, #tpu.memory_space<vmem>>, vector<1x1x32xf32>,
    %c5_1081 = arith.constant 5 : index
    %c4_1082 = arith.constant 4 : index
    %1132 = memref.load %arg1[%c5_1081, %c4_1082] : memref<10x8xi32, #tpu.memory_space<smem>>
    %1133 = arith.index_cast %1132 : i32 to index
    %c0_1083 = arith.constant 0 : index
    %1134 = vector.load %arg16[%1133, %c0_1083] : memref<6x32xf32, #tpu.memory_space<vmem>>, vector<1x32xf32>
    %c5_1084 = arith.constant 5 : index
    %c4_1085 = arith.constant 4 : index
    %c0_1086 = arith.constant 0 : index
    %1135 = vector.load %arg19[%c5_1084, %c4_1085, %c0_1086] : memref<10x8x32xf32, #tpu.memory_space<vmem>>, vector<1x1x32xf32>
    %1136 = vector.shape_cast %1135 : vector<1x1x32xf32> to vector<1x32xf32>
    %1137 = vector.shape_cast %1134 : vector<1x32xf32> to vector<1x1x32xf32>
    tpu.vector_store %arg19[%c5_1084, %c4_1085, %c0_1086], %1137 {strides = array<i32>} : memref<10x8x32xf32, #tpu.memory_space<vmem>>, vector<1x1x32xf32>,
    %c5_1087 = arith.constant 5 : index
    %c5_1088 = arith.constant 5 : index
    %1138 = memref.load %arg1[%c5_1087, %c5_1088] : memref<10x8xi32, #tpu.memory_space<smem>>
    %1139 = arith.index_cast %1138 : i32 to index
    %c0_1089 = arith.constant 0 : index
    %1140 = vector.load %arg16[%1139, %c0_1089] : memref<6x32xf32, #tpu.memory_space<vmem>>, vector<1x32xf32>
    %c5_1090 = arith.constant 5 : index
    %c5_1091 = arith.constant 5 : index
    %c0_1092 = arith.constant 0 : index
    %1141 = vector.load %arg19[%c5_1090, %c5_1091, %c0_1092] : memref<10x8x32xf32, #tpu.memory_space<vmem>>, vector<1x1x32xf32>
    %1142 = vector.shape_cast %1141 : vector<1x1x32xf32> to vector<1x32xf32>
    %1143 = vector.shape_cast %1140 : vector<1x32xf32> to vector<1x1x32xf32>
    tpu.vector_store %arg19[%c5_1090, %c5_1091, %c0_1092], %1143 {strides = array<i32>} : memref<10x8x32xf32, #tpu.memory_space<vmem>>, vector<1x1x32xf32>,
    %c5_1093 = arith.constant 5 : index
    %c6_1094 = arith.constant 6 : index
    %1144 = memref.load %arg1[%c5_1093, %c6_1094] : memref<10x8xi32, #tpu.memory_space<smem>>
    %1145 = arith.index_cast %1144 : i32 to index
    %c0_1095 = arith.constant 0 : index
    %1146 = vector.load %arg16[%1145, %c0_1095] : memref<6x32xf32, #tpu.memory_space<vmem>>, vector<1x32xf32>
    %c5_1096 = arith.constant 5 : index
    %c6_1097 = arith.constant 6 : index
    %c0_1098 = arith.constant 0 : index
    %1147 = vector.load %arg19[%c5_1096, %c6_1097, %c0_1098] : memref<10x8x32xf32, #tpu.memory_space<vmem>>, vector<1x1x32xf32>
    %1148 = vector.shape_cast %1147 : vector<1x1x32xf32> to vector<1x32xf32>
    %1149 = vector.shape_cast %1146 : vector<1x32xf32> to vector<1x1x32xf32>
    tpu.vector_store %arg19[%c5_1096, %c6_1097, %c0_1098], %1149 {strides = array<i32>} : memref<10x8x32xf32, #tpu.memory_space<vmem>>, vector<1x1x32xf32>,
    %c5_1099 = arith.constant 5 : index
    %c7_1100 = arith.constant 7 : index
    %1150 = memref.load %arg1[%c5_1099, %c7_1100] : memref<10x8xi32, #tpu.memory_space<smem>>
    %1151 = arith.index_cast %1150 : i32 to index
    %c0_1101 = arith.constant 0 : index
    %1152 = vector.load %arg16[%1151, %c0_1101] : memref<6x32xf32, #tpu.memory_space<vmem>>, vector<1x32xf32>
    %c5_1102 = arith.constant 5 : index
    %c7_1103 = arith.constant 7 : index
    %c0_1104 = arith.constant 0 : index
    %1153 = vector.load %arg19[%c5_1102, %c7_1103, %c0_1104] : memref<10x8x32xf32, #tpu.memory_space<vmem>>, vector<1x1x32xf32>
    %1154 = vector.shape_cast %1153 : vector<1x1x32xf32> to vector<1x32xf32>
    %1155 = vector.shape_cast %1152 : vector<1x32xf32> to vector<1x1x32xf32>
    tpu.vector_store %arg19[%c5_1102, %c7_1103, %c0_1104], %1155 {strides = array<i32>} : memref<10x8x32xf32, #tpu.memory_space<vmem>>, vector<1x1x32xf32>,
    %c5_1105 = arith.constant 5 : index
    %1156 = memref.load %arg4[%c5_1105] : memref<10xi32, #tpu.memory_space<smem>>
    %1157 = arith.index_cast %1156 : i32 to index
    %c0_1106 = arith.constant 0 : index
    %1158 = vector.load %arg16[%1157, %c0_1106] : memref<6x32xf32, #tpu.memory_space<vmem>>, vector<1x32xf32>
    %c5_1107 = arith.constant 5 : index
    %c0_1108 = arith.constant 0 : index
    %1159 = vector.load %arg23[%c5_1107, %c0_1108] : memref<10x32xf32, #tpu.memory_space<vmem>>, vector<1x32xf32>
    tpu.vector_store %arg23[%c5_1107, %c0_1108], %1158 {strides = array<i32>} : memref<10x32xf32, #tpu.memory_space<vmem>>, vector<1x32xf32>,
    %c6_1109 = arith.constant 6 : index
    %c0_1110 = arith.constant 0 : index
    %1160 = memref.load %arg1[%c6_1109, %c0_1110] : memref<10x8xi32, #tpu.memory_space<smem>>
    %1161 = arith.index_cast %1160 : i32 to index
    %c0_1111 = arith.constant 0 : index
    %1162 = vector.load %arg16[%1161, %c0_1111] : memref<6x32xf32, #tpu.memory_space<vmem>>, vector<1x32xf32>
    %c6_1112 = arith.constant 6 : index
    %c0_1113 = arith.constant 0 : index
    %c0_1114 = arith.constant 0 : index
    %1163 = vector.load %arg19[%c6_1112, %c0_1113, %c0_1114] : memref<10x8x32xf32, #tpu.memory_space<vmem>>, vector<1x1x32xf32>
    %1164 = vector.shape_cast %1163 : vector<1x1x32xf32> to vector<1x32xf32>
    %1165 = vector.shape_cast %1162 : vector<1x32xf32> to vector<1x1x32xf32>
    tpu.vector_store %arg19[%c6_1112, %c0_1113, %c0_1114], %1165 {strides = array<i32>} : memref<10x8x32xf32, #tpu.memory_space<vmem>>, vector<1x1x32xf32>,
    %c6_1115 = arith.constant 6 : index
    %c1_1116 = arith.constant 1 : index
    %1166 = memref.load %arg1[%c6_1115, %c1_1116] : memref<10x8xi32, #tpu.memory_space<smem>>
    %1167 = arith.index_cast %1166 : i32 to index
    %c0_1117 = arith.constant 0 : index
    %1168 = vector.load %arg16[%1167, %c0_1117] : memref<6x32xf32, #tpu.memory_space<vmem>>, vector<1x32xf32>
    %c6_1118 = arith.constant 6 : index
    %c1_1119 = arith.constant 1 : index
    %c0_1120 = arith.constant 0 : index
    %1169 = vector.load %arg19[%c6_1118, %c1_1119, %c0_1120] : memref<10x8x32xf32, #tpu.memory_space<vmem>>, vector<1x1x32xf32>
    %1170 = vector.shape_cast %1169 : vector<1x1x32xf32> to vector<1x32xf32>
    %1171 = vector.shape_cast %1168 : vector<1x32xf32> to vector<1x1x32xf32>
    tpu.vector_store %arg19[%c6_1118, %c1_1119, %c0_1120], %1171 {strides = array<i32>} : memref<10x8x32xf32, #tpu.memory_space<vmem>>, vector<1x1x32xf32>,
    %c6_1121 = arith.constant 6 : index
    %c2_1122 = arith.constant 2 : index
    %1172 = memref.load %arg1[%c6_1121, %c2_1122] : memref<10x8xi32, #tpu.memory_space<smem>>
    %1173 = arith.index_cast %1172 : i32 to index
    %c0_1123 = arith.constant 0 : index
    %1174 = vector.load %arg16[%1173, %c0_1123] : memref<6x32xf32, #tpu.memory_space<vmem>>, vector<1x32xf32>
    %c6_1124 = arith.constant 6 : index
    %c2_1125 = arith.constant 2 : index
    %c0_1126 = arith.constant 0 : index
    %1175 = vector.load %arg19[%c6_1124, %c2_1125, %c0_1126] : memref<10x8x32xf32, #tpu.memory_space<vmem>>, vector<1x1x32xf32>
    %1176 = vector.shape_cast %1175 : vector<1x1x32xf32> to vector<1x32xf32>
    %1177 = vector.shape_cast %1174 : vector<1x32xf32> to vector<1x1x32xf32>
    tpu.vector_store %arg19[%c6_1124, %c2_1125, %c0_1126], %1177 {strides = array<i32>} : memref<10x8x32xf32, #tpu.memory_space<vmem>>, vector<1x1x32xf32>,
    %c6_1127 = arith.constant 6 : index
    %c3_1128 = arith.constant 3 : index
    %1178 = memref.load %arg1[%c6_1127, %c3_1128] : memref<10x8xi32, #tpu.memory_space<smem>>
    %1179 = arith.index_cast %1178 : i32 to index
    %c0_1129 = arith.constant 0 : index
    %1180 = vector.load %arg16[%1179, %c0_1129] : memref<6x32xf32, #tpu.memory_space<vmem>>, vector<1x32xf32>
    %c6_1130 = arith.constant 6 : index
    %c3_1131 = arith.constant 3 : index
    %c0_1132 = arith.constant 0 : index
    %1181 = vector.load %arg19[%c6_1130, %c3_1131, %c0_1132] : memref<10x8x32xf32, #tpu.memory_space<vmem>>, vector<1x1x32xf32>
    %1182 = vector.shape_cast %1181 : vector<1x1x32xf32> to vector<1x32xf32>
    %1183 = vector.shape_cast %1180 : vector<1x32xf32> to vector<1x1x32xf32>
    tpu.vector_store %arg19[%c6_1130, %c3_1131, %c0_1132], %1183 {strides = array<i32>} : memref<10x8x32xf32, #tpu.memory_space<vmem>>, vector<1x1x32xf32>,
    %c6_1133 = arith.constant 6 : index
    %c4_1134 = arith.constant 4 : index
    %1184 = memref.load %arg1[%c6_1133, %c4_1134] : memref<10x8xi32, #tpu.memory_space<smem>>
    %1185 = arith.index_cast %1184 : i32 to index
    %c0_1135 = arith.constant 0 : index
    %1186 = vector.load %arg16[%1185, %c0_1135] : memref<6x32xf32, #tpu.memory_space<vmem>>, vector<1x32xf32>
    %c6_1136 = arith.constant 6 : index
    %c4_1137 = arith.constant 4 : index
    %c0_1138 = arith.constant 0 : index
    %1187 = vector.load %arg19[%c6_1136, %c4_1137, %c0_1138] : memref<10x8x32xf32, #tpu.memory_space<vmem>>, vector<1x1x32xf32>
    %1188 = vector.shape_cast %1187 : vector<1x1x32xf32> to vector<1x32xf32>
    %1189 = vector.shape_cast %1186 : vector<1x32xf32> to vector<1x1x32xf32>
    tpu.vector_store %arg19[%c6_1136, %c4_1137, %c0_1138], %1189 {strides = array<i32>} : memref<10x8x32xf32, #tpu.memory_space<vmem>>, vector<1x1x32xf32>,
    %c6_1139 = arith.constant 6 : index
    %c5_1140 = arith.constant 5 : index
    %1190 = memref.load %arg1[%c6_1139, %c5_1140] : memref<10x8xi32, #tpu.memory_space<smem>>
    %1191 = arith.index_cast %1190 : i32 to index
    %c0_1141 = arith.constant 0 : index
    %1192 = vector.load %arg16[%1191, %c0_1141] : memref<6x32xf32, #tpu.memory_space<vmem>>, vector<1x32xf32>
    %c6_1142 = arith.constant 6 : index
    %c5_1143 = arith.constant 5 : index
    %c0_1144 = arith.constant 0 : index
    %1193 = vector.load %arg19[%c6_1142, %c5_1143, %c0_1144] : memref<10x8x32xf32, #tpu.memory_space<vmem>>, vector<1x1x32xf32>
    %1194 = vector.shape_cast %1193 : vector<1x1x32xf32> to vector<1x32xf32>
    %1195 = vector.shape_cast %1192 : vector<1x32xf32> to vector<1x1x32xf32>
    tpu.vector_store %arg19[%c6_1142, %c5_1143, %c0_1144], %1195 {strides = array<i32>} : memref<10x8x32xf32, #tpu.memory_space<vmem>>, vector<1x1x32xf32>,
    %c6_1145 = arith.constant 6 : index
    %c6_1146 = arith.constant 6 : index
    %1196 = memref.load %arg1[%c6_1145, %c6_1146] : memref<10x8xi32, #tpu.memory_space<smem>>
    %1197 = arith.index_cast %1196 : i32 to index
    %c0_1147 = arith.constant 0 : index
    %1198 = vector.load %arg16[%1197, %c0_1147] : memref<6x32xf32, #tpu.memory_space<vmem>>, vector<1x32xf32>
    %c6_1148 = arith.constant 6 : index
    %c6_1149 = arith.constant 6 : index
    %c0_1150 = arith.constant 0 : index
    %1199 = vector.load %arg19[%c6_1148, %c6_1149, %c0_1150] : memref<10x8x32xf32, #tpu.memory_space<vmem>>, vector<1x1x32xf32>
    %1200 = vector.shape_cast %1199 : vector<1x1x32xf32> to vector<1x32xf32>
    %1201 = vector.shape_cast %1198 : vector<1x32xf32> to vector<1x1x32xf32>
    tpu.vector_store %arg19[%c6_1148, %c6_1149, %c0_1150], %1201 {strides = array<i32>} : memref<10x8x32xf32, #tpu.memory_space<vmem>>, vector<1x1x32xf32>,
    %c6_1151 = arith.constant 6 : index
    %c7_1152 = arith.constant 7 : index
    %1202 = memref.load %arg1[%c6_1151, %c7_1152] : memref<10x8xi32, #tpu.memory_space<smem>>
    %1203 = arith.index_cast %1202 : i32 to index
    %c0_1153 = arith.constant 0 : index
    %1204 = vector.load %arg16[%1203, %c0_1153] : memref<6x32xf32, #tpu.memory_space<vmem>>, vector<1x32xf32>
    %c6_1154 = arith.constant 6 : index
    %c7_1155 = arith.constant 7 : index
    %c0_1156 = arith.constant 0 : index
    %1205 = vector.load %arg19[%c6_1154, %c7_1155, %c0_1156] : memref<10x8x32xf32, #tpu.memory_space<vmem>>, vector<1x1x32xf32>
    %1206 = vector.shape_cast %1205 : vector<1x1x32xf32> to vector<1x32xf32>
    %1207 = vector.shape_cast %1204 : vector<1x32xf32> to vector<1x1x32xf32>
    tpu.vector_store %arg19[%c6_1154, %c7_1155, %c0_1156], %1207 {strides = array<i32>} : memref<10x8x32xf32, #tpu.memory_space<vmem>>, vector<1x1x32xf32>,
    %c6_1157 = arith.constant 6 : index
    %1208 = memref.load %arg4[%c6_1157] : memref<10xi32, #tpu.memory_space<smem>>
    %1209 = arith.index_cast %1208 : i32 to index
    %c0_1158 = arith.constant 0 : index
    %1210 = vector.load %arg16[%1209, %c0_1158] : memref<6x32xf32, #tpu.memory_space<vmem>>, vector<1x32xf32>
    %c6_1159 = arith.constant 6 : index
    %c0_1160 = arith.constant 0 : index
    %1211 = vector.load %arg23[%c6_1159, %c0_1160] : memref<10x32xf32, #tpu.memory_space<vmem>>, vector<1x32xf32>
    tpu.vector_store %arg23[%c6_1159, %c0_1160], %1210 {strides = array<i32>} : memref<10x32xf32, #tpu.memory_space<vmem>>, vector<1x32xf32>,
    %c7_1161 = arith.constant 7 : index
    %c0_1162 = arith.constant 0 : index
    %1212 = memref.load %arg1[%c7_1161, %c0_1162] : memref<10x8xi32, #tpu.memory_space<smem>>
    %1213 = arith.index_cast %1212 : i32 to index
    %c0_1163 = arith.constant 0 : index
    %1214 = vector.load %arg16[%1213, %c0_1163] : memref<6x32xf32, #tpu.memory_space<vmem>>, vector<1x32xf32>
    %c7_1164 = arith.constant 7 : index
    %c0_1165 = arith.constant 0 : index
    %c0_1166 = arith.constant 0 : index
    %1215 = vector.load %arg19[%c7_1164, %c0_1165, %c0_1166] : memref<10x8x32xf32, #tpu.memory_space<vmem>>, vector<1x1x32xf32>
    %1216 = vector.shape_cast %1215 : vector<1x1x32xf32> to vector<1x32xf32>
    %1217 = vector.shape_cast %1214 : vector<1x32xf32> to vector<1x1x32xf32>
    tpu.vector_store %arg19[%c7_1164, %c0_1165, %c0_1166], %1217 {strides = array<i32>} : memref<10x8x32xf32, #tpu.memory_space<vmem>>, vector<1x1x32xf32>,
    %c7_1167 = arith.constant 7 : index
    %c1_1168 = arith.constant 1 : index
    %1218 = memref.load %arg1[%c7_1167, %c1_1168] : memref<10x8xi32, #tpu.memory_space<smem>>
    %1219 = arith.index_cast %1218 : i32 to index
    %c0_1169 = arith.constant 0 : index
    %1220 = vector.load %arg16[%1219, %c0_1169] : memref<6x32xf32, #tpu.memory_space<vmem>>, vector<1x32xf32>
    %c7_1170 = arith.constant 7 : index
    %c1_1171 = arith.constant 1 : index
    %c0_1172 = arith.constant 0 : index
    %1221 = vector.load %arg19[%c7_1170, %c1_1171, %c0_1172] : memref<10x8x32xf32, #tpu.memory_space<vmem>>, vector<1x1x32xf32>
    %1222 = vector.shape_cast %1221 : vector<1x1x32xf32> to vector<1x32xf32>
    %1223 = vector.shape_cast %1220 : vector<1x32xf32> to vector<1x1x32xf32>
    tpu.vector_store %arg19[%c7_1170, %c1_1171, %c0_1172], %1223 {strides = array<i32>} : memref<10x8x32xf32, #tpu.memory_space<vmem>>, vector<1x1x32xf32>,
    %c7_1173 = arith.constant 7 : index
    %c2_1174 = arith.constant 2 : index
    %1224 = memref.load %arg1[%c7_1173, %c2_1174] : memref<10x8xi32, #tpu.memory_space<smem>>
    %1225 = arith.index_cast %1224 : i32 to index
    %c0_1175 = arith.constant 0 : index
    %1226 = vector.load %arg16[%1225, %c0_1175] : memref<6x32xf32, #tpu.memory_space<vmem>>, vector<1x32xf32>
    %c7_1176 = arith.constant 7 : index
    %c2_1177 = arith.constant 2 : index
    %c0_1178 = arith.constant 0 : index
    %1227 = vector.load %arg19[%c7_1176, %c2_1177, %c0_1178] : memref<10x8x32xf32, #tpu.memory_space<vmem>>, vector<1x1x32xf32>
    %1228 = vector.shape_cast %1227 : vector<1x1x32xf32> to vector<1x32xf32>
    %1229 = vector.shape_cast %1226 : vector<1x32xf32> to vector<1x1x32xf32>
    tpu.vector_store %arg19[%c7_1176, %c2_1177, %c0_1178], %1229 {strides = array<i32>} : memref<10x8x32xf32, #tpu.memory_space<vmem>>, vector<1x1x32xf32>,
    %c7_1179 = arith.constant 7 : index
    %c3_1180 = arith.constant 3 : index
    %1230 = memref.load %arg1[%c7_1179, %c3_1180] : memref<10x8xi32, #tpu.memory_space<smem>>
    %1231 = arith.index_cast %1230 : i32 to index
    %c0_1181 = arith.constant 0 : index
    %1232 = vector.load %arg16[%1231, %c0_1181] : memref<6x32xf32, #tpu.memory_space<vmem>>, vector<1x32xf32>
    %c7_1182 = arith.constant 7 : index
    %c3_1183 = arith.constant 3 : index
    %c0_1184 = arith.constant 0 : index
    %1233 = vector.load %arg19[%c7_1182, %c3_1183, %c0_1184] : memref<10x8x32xf32, #tpu.memory_space<vmem>>, vector<1x1x32xf32>
    %1234 = vector.shape_cast %1233 : vector<1x1x32xf32> to vector<1x32xf32>
    %1235 = vector.shape_cast %1232 : vector<1x32xf32> to vector<1x1x32xf32>
    tpu.vector_store %arg19[%c7_1182, %c3_1183, %c0_1184], %1235 {strides = array<i32>} : memref<10x8x32xf32, #tpu.memory_space<vmem>>, vector<1x1x32xf32>,
    %c7_1185 = arith.constant 7 : index
    %c4_1186 = arith.constant 4 : index
    %1236 = memref.load %arg1[%c7_1185, %c4_1186] : memref<10x8xi32, #tpu.memory_space<smem>>
    %1237 = arith.index_cast %1236 : i32 to index
    %c0_1187 = arith.constant 0 : index
    %1238 = vector.load %arg16[%1237, %c0_1187] : memref<6x32xf32, #tpu.memory_space<vmem>>, vector<1x32xf32>
    %c7_1188 = arith.constant 7 : index
    %c4_1189 = arith.constant 4 : index
    %c0_1190 = arith.constant 0 : index
    %1239 = vector.load %arg19[%c7_1188, %c4_1189, %c0_1190] : memref<10x8x32xf32, #tpu.memory_space<vmem>>, vector<1x1x32xf32>
    %1240 = vector.shape_cast %1239 : vector<1x1x32xf32> to vector<1x32xf32>
    %1241 = vector.shape_cast %1238 : vector<1x32xf32> to vector<1x1x32xf32>
    tpu.vector_store %arg19[%c7_1188, %c4_1189, %c0_1190], %1241 {strides = array<i32>} : memref<10x8x32xf32, #tpu.memory_space<vmem>>, vector<1x1x32xf32>,
    %c7_1191 = arith.constant 7 : index
    %c5_1192 = arith.constant 5 : index
    %1242 = memref.load %arg1[%c7_1191, %c5_1192] : memref<10x8xi32, #tpu.memory_space<smem>>
    %1243 = arith.index_cast %1242 : i32 to index
    %c0_1193 = arith.constant 0 : index
    %1244 = vector.load %arg16[%1243, %c0_1193] : memref<6x32xf32, #tpu.memory_space<vmem>>, vector<1x32xf32>
    %c7_1194 = arith.constant 7 : index
    %c5_1195 = arith.constant 5 : index
    %c0_1196 = arith.constant 0 : index
    %1245 = vector.load %arg19[%c7_1194, %c5_1195, %c0_1196] : memref<10x8x32xf32, #tpu.memory_space<vmem>>, vector<1x1x32xf32>
    %1246 = vector.shape_cast %1245 : vector<1x1x32xf32> to vector<1x32xf32>
    %1247 = vector.shape_cast %1244 : vector<1x32xf32> to vector<1x1x32xf32>
    tpu.vector_store %arg19[%c7_1194, %c5_1195, %c0_1196], %1247 {strides = array<i32>} : memref<10x8x32xf32, #tpu.memory_space<vmem>>, vector<1x1x32xf32>,
    %c7_1197 = arith.constant 7 : index
    %c6_1198 = arith.constant 6 : index
    %1248 = memref.load %arg1[%c7_1197, %c6_1198] : memref<10x8xi32, #tpu.memory_space<smem>>
    %1249 = arith.index_cast %1248 : i32 to index
    %c0_1199 = arith.constant 0 : index
    %1250 = vector.load %arg16[%1249, %c0_1199] : memref<6x32xf32, #tpu.memory_space<vmem>>, vector<1x32xf32>
    %c7_1200 = arith.constant 7 : index
    %c6_1201 = arith.constant 6 : index
    %c0_1202 = arith.constant 0 : index
    %1251 = vector.load %arg19[%c7_1200, %c6_1201, %c0_1202] : memref<10x8x32xf32, #tpu.memory_space<vmem>>, vector<1x1x32xf32>
    %1252 = vector.shape_cast %1251 : vector<1x1x32xf32> to vector<1x32xf32>
    %1253 = vector.shape_cast %1250 : vector<1x32xf32> to vector<1x1x32xf32>
    tpu.vector_store %arg19[%c7_1200, %c6_1201, %c0_1202], %1253 {strides = array<i32>} : memref<10x8x32xf32, #tpu.memory_space<vmem>>, vector<1x1x32xf32>,
    %c7_1203 = arith.constant 7 : index
    %c7_1204 = arith.constant 7 : index
    %1254 = memref.load %arg1[%c7_1203, %c7_1204] : memref<10x8xi32, #tpu.memory_space<smem>>
    %1255 = arith.index_cast %1254 : i32 to index
    %c0_1205 = arith.constant 0 : index
    %1256 = vector.load %arg16[%1255, %c0_1205] : memref<6x32xf32, #tpu.memory_space<vmem>>, vector<1x32xf32>
    %c7_1206 = arith.constant 7 : index
    %c7_1207 = arith.constant 7 : index
    %c0_1208 = arith.constant 0 : index
    %1257 = vector.load %arg19[%c7_1206, %c7_1207, %c0_1208] : memref<10x8x32xf32, #tpu.memory_space<vmem>>, vector<1x1x32xf32>
    %1258 = vector.shape_cast %1257 : vector<1x1x32xf32> to vector<1x32xf32>
    %1259 = vector.shape_cast %1256 : vector<1x32xf32> to vector<1x1x32xf32>
    tpu.vector_store %arg19[%c7_1206, %c7_1207, %c0_1208], %1259 {strides = array<i32>} : memref<10x8x32xf32, #tpu.memory_space<vmem>>, vector<1x1x32xf32>,
    %c7_1209 = arith.constant 7 : index
    %1260 = memref.load %arg4[%c7_1209] : memref<10xi32, #tpu.memory_space<smem>>
    %1261 = arith.index_cast %1260 : i32 to index
    %c0_1210 = arith.constant 0 : index
    %1262 = vector.load %arg16[%1261, %c0_1210] : memref<6x32xf32, #tpu.memory_space<vmem>>, vector<1x32xf32>
    %c7_1211 = arith.constant 7 : index
    %c0_1212 = arith.constant 0 : index
    %1263 = vector.load %arg23[%c7_1211, %c0_1212] : memref<10x32xf32, #tpu.memory_space<vmem>>, vector<1x32xf32>
    tpu.vector_store %arg23[%c7_1211, %c0_1212], %1262 {strides = array<i32>} : memref<10x32xf32, #tpu.memory_space<vmem>>, vector<1x32xf32>,
    %c8 = arith.constant 8 : index
    %c0_1213 = arith.constant 0 : index
    %1264 = memref.load %arg1[%c8, %c0_1213] : memref<10x8xi32, #tpu.memory_space<smem>>
    %1265 = arith.index_cast %1264 : i32 to index
    %c0_1214 = arith.constant 0 : index
    %1266 = vector.load %arg16[%1265, %c0_1214] : memref<6x32xf32, #tpu.memory_space<vmem>>, vector<1x32xf32>
    %c8_1215 = arith.constant 8 : index
    %c0_1216 = arith.constant 0 : index
    %c0_1217 = arith.constant 0 : index
    %1267 = vector.load %arg19[%c8_1215, %c0_1216, %c0_1217] : memref<10x8x32xf32, #tpu.memory_space<vmem>>, vector<1x1x32xf32>
    %1268 = vector.shape_cast %1267 : vector<1x1x32xf32> to vector<1x32xf32>
    %1269 = vector.shape_cast %1266 : vector<1x32xf32> to vector<1x1x32xf32>
    tpu.vector_store %arg19[%c8_1215, %c0_1216, %c0_1217], %1269 {strides = array<i32>} : memref<10x8x32xf32, #tpu.memory_space<vmem>>, vector<1x1x32xf32>,
    %c8_1218 = arith.constant 8 : index
    %c1_1219 = arith.constant 1 : index
    %1270 = memref.load %arg1[%c8_1218, %c1_1219] : memref<10x8xi32, #tpu.memory_space<smem>>
    %1271 = arith.index_cast %1270 : i32 to index
    %c0_1220 = arith.constant 0 : index
    %1272 = vector.load %arg16[%1271, %c0_1220] : memref<6x32xf32, #tpu.memory_space<vmem>>, vector<1x32xf32>
    %c8_1221 = arith.constant 8 : index
    %c1_1222 = arith.constant 1 : index
    %c0_1223 = arith.constant 0 : index
    %1273 = vector.load %arg19[%c8_1221, %c1_1222, %c0_1223] : memref<10x8x32xf32, #tpu.memory_space<vmem>>, vector<1x1x32xf32>
    %1274 = vector.shape_cast %1273 : vector<1x1x32xf32> to vector<1x32xf32>
    %1275 = vector.shape_cast %1272 : vector<1x32xf32> to vector<1x1x32xf32>
    tpu.vector_store %arg19[%c8_1221, %c1_1222, %c0_1223], %1275 {strides = array<i32>} : memref<10x8x32xf32, #tpu.memory_space<vmem>>, vector<1x1x32xf32>,
    %c8_1224 = arith.constant 8 : index
    %c2_1225 = arith.constant 2 : index
    %1276 = memref.load %arg1[%c8_1224, %c2_1225] : memref<10x8xi32, #tpu.memory_space<smem>>
    %1277 = arith.index_cast %1276 : i32 to index
    %c0_1226 = arith.constant 0 : index
    %1278 = vector.load %arg16[%1277, %c0_1226] : memref<6x32xf32, #tpu.memory_space<vmem>>, vector<1x32xf32>
    %c8_1227 = arith.constant 8 : index
    %c2_1228 = arith.constant 2 : index
    %c0_1229 = arith.constant 0 : index
    %1279 = vector.load %arg19[%c8_1227, %c2_1228, %c0_1229] : memref<10x8x32xf32, #tpu.memory_space<vmem>>, vector<1x1x32xf32>
    %1280 = vector.shape_cast %1279 : vector<1x1x32xf32> to vector<1x32xf32>
    %1281 = vector.shape_cast %1278 : vector<1x32xf32> to vector<1x1x32xf32>
    tpu.vector_store %arg19[%c8_1227, %c2_1228, %c0_1229], %1281 {strides = array<i32>} : memref<10x8x32xf32, #tpu.memory_space<vmem>>, vector<1x1x32xf32>,
    %c8_1230 = arith.constant 8 : index
    %c3_1231 = arith.constant 3 : index
    %1282 = memref.load %arg1[%c8_1230, %c3_1231] : memref<10x8xi32, #tpu.memory_space<smem>>
    %1283 = arith.index_cast %1282 : i32 to index
    %c0_1232 = arith.constant 0 : index
    %1284 = vector.load %arg16[%1283, %c0_1232] : memref<6x32xf32, #tpu.memory_space<vmem>>, vector<1x32xf32>
    %c8_1233 = arith.constant 8 : index
    %c3_1234 = arith.constant 3 : index
    %c0_1235 = arith.constant 0 : index
    %1285 = vector.load %arg19[%c8_1233, %c3_1234, %c0_1235] : memref<10x8x32xf32, #tpu.memory_space<vmem>>, vector<1x1x32xf32>
    %1286 = vector.shape_cast %1285 : vector<1x1x32xf32> to vector<1x32xf32>
    %1287 = vector.shape_cast %1284 : vector<1x32xf32> to vector<1x1x32xf32>
    tpu.vector_store %arg19[%c8_1233, %c3_1234, %c0_1235], %1287 {strides = array<i32>} : memref<10x8x32xf32, #tpu.memory_space<vmem>>, vector<1x1x32xf32>,
    %c8_1236 = arith.constant 8 : index
    %c4_1237 = arith.constant 4 : index
    %1288 = memref.load %arg1[%c8_1236, %c4_1237] : memref<10x8xi32, #tpu.memory_space<smem>>
    %1289 = arith.index_cast %1288 : i32 to index
    %c0_1238 = arith.constant 0 : index
    %1290 = vector.load %arg16[%1289, %c0_1238] : memref<6x32xf32, #tpu.memory_space<vmem>>, vector<1x32xf32>
    %c8_1239 = arith.constant 8 : index
    %c4_1240 = arith.constant 4 : index
    %c0_1241 = arith.constant 0 : index
    %1291 = vector.load %arg19[%c8_1239, %c4_1240, %c0_1241] : memref<10x8x32xf32, #tpu.memory_space<vmem>>, vector<1x1x32xf32>
    %1292 = vector.shape_cast %1291 : vector<1x1x32xf32> to vector<1x32xf32>
    %1293 = vector.shape_cast %1290 : vector<1x32xf32> to vector<1x1x32xf32>
    tpu.vector_store %arg19[%c8_1239, %c4_1240, %c0_1241], %1293 {strides = array<i32>} : memref<10x8x32xf32, #tpu.memory_space<vmem>>, vector<1x1x32xf32>,
    %c8_1242 = arith.constant 8 : index
    %c5_1243 = arith.constant 5 : index
    %1294 = memref.load %arg1[%c8_1242, %c5_1243] : memref<10x8xi32, #tpu.memory_space<smem>>
    %1295 = arith.index_cast %1294 : i32 to index
    %c0_1244 = arith.constant 0 : index
    %1296 = vector.load %arg16[%1295, %c0_1244] : memref<6x32xf32, #tpu.memory_space<vmem>>, vector<1x32xf32>
    %c8_1245 = arith.constant 8 : index
    %c5_1246 = arith.constant 5 : index
    %c0_1247 = arith.constant 0 : index
    %1297 = vector.load %arg19[%c8_1245, %c5_1246, %c0_1247] : memref<10x8x32xf32, #tpu.memory_space<vmem>>, vector<1x1x32xf32>
    %1298 = vector.shape_cast %1297 : vector<1x1x32xf32> to vector<1x32xf32>
    %1299 = vector.shape_cast %1296 : vector<1x32xf32> to vector<1x1x32xf32>
    tpu.vector_store %arg19[%c8_1245, %c5_1246, %c0_1247], %1299 {strides = array<i32>} : memref<10x8x32xf32, #tpu.memory_space<vmem>>, vector<1x1x32xf32>,
    %c8_1248 = arith.constant 8 : index
    %c6_1249 = arith.constant 6 : index
    %1300 = memref.load %arg1[%c8_1248, %c6_1249] : memref<10x8xi32, #tpu.memory_space<smem>>
    %1301 = arith.index_cast %1300 : i32 to index
    %c0_1250 = arith.constant 0 : index
    %1302 = vector.load %arg16[%1301, %c0_1250] : memref<6x32xf32, #tpu.memory_space<vmem>>, vector<1x32xf32>
    %c8_1251 = arith.constant 8 : index
    %c6_1252 = arith.constant 6 : index
    %c0_1253 = arith.constant 0 : index
    %1303 = vector.load %arg19[%c8_1251, %c6_1252, %c0_1253] : memref<10x8x32xf32, #tpu.memory_space<vmem>>, vector<1x1x32xf32>
    %1304 = vector.shape_cast %1303 : vector<1x1x32xf32> to vector<1x32xf32>
    %1305 = vector.shape_cast %1302 : vector<1x32xf32> to vector<1x1x32xf32>
    tpu.vector_store %arg19[%c8_1251, %c6_1252, %c0_1253], %1305 {strides = array<i32>} : memref<10x8x32xf32, #tpu.memory_space<vmem>>, vector<1x1x32xf32>,
    %c8_1254 = arith.constant 8 : index
    %c7_1255 = arith.constant 7 : index
    %1306 = memref.load %arg1[%c8_1254, %c7_1255] : memref<10x8xi32, #tpu.memory_space<smem>>
    %1307 = arith.index_cast %1306 : i32 to index
    %c0_1256 = arith.constant 0 : index
    %1308 = vector.load %arg16[%1307, %c0_1256] : memref<6x32xf32, #tpu.memory_space<vmem>>, vector<1x32xf32>
    %c8_1257 = arith.constant 8 : index
    %c7_1258 = arith.constant 7 : index
    %c0_1259 = arith.constant 0 : index
    %1309 = vector.load %arg19[%c8_1257, %c7_1258, %c0_1259] : memref<10x8x32xf32, #tpu.memory_space<vmem>>, vector<1x1x32xf32>
    %1310 = vector.shape_cast %1309 : vector<1x1x32xf32> to vector<1x32xf32>
    %1311 = vector.shape_cast %1308 : vector<1x32xf32> to vector<1x1x32xf32>
    tpu.vector_store %arg19[%c8_1257, %c7_1258, %c0_1259], %1311 {strides = array<i32>} : memref<10x8x32xf32, #tpu.memory_space<vmem>>, vector<1x1x32xf32>,
    %c8_1260 = arith.constant 8 : index
    %1312 = memref.load %arg4[%c8_1260] : memref<10xi32, #tpu.memory_space<smem>>
    %1313 = arith.index_cast %1312 : i32 to index
    %c0_1261 = arith.constant 0 : index
    %1314 = vector.load %arg16[%1313, %c0_1261] : memref<6x32xf32, #tpu.memory_space<vmem>>, vector<1x32xf32>
    %c8_1262 = arith.constant 8 : index
    %c0_1263 = arith.constant 0 : index
    %1315 = vector.load %arg23[%c8_1262, %c0_1263] : memref<10x32xf32, #tpu.memory_space<vmem>>, vector<1x32xf32>
    tpu.vector_store %arg23[%c8_1262, %c0_1263], %1314 {strides = array<i32>} : memref<10x32xf32, #tpu.memory_space<vmem>>, vector<1x32xf32>,
    %c9 = arith.constant 9 : index
    %c0_1264 = arith.constant 0 : index
    %1316 = memref.load %arg1[%c9, %c0_1264] : memref<10x8xi32, #tpu.memory_space<smem>>
    %1317 = arith.index_cast %1316 : i32 to index
    %c0_1265 = arith.constant 0 : index
    %1318 = vector.load %arg16[%1317, %c0_1265] : memref<6x32xf32, #tpu.memory_space<vmem>>, vector<1x32xf32>
    %c9_1266 = arith.constant 9 : index
    %c0_1267 = arith.constant 0 : index
    %c0_1268 = arith.constant 0 : index
    %1319 = vector.load %arg19[%c9_1266, %c0_1267, %c0_1268] : memref<10x8x32xf32, #tpu.memory_space<vmem>>, vector<1x1x32xf32>
    %1320 = vector.shape_cast %1319 : vector<1x1x32xf32> to vector<1x32xf32>
    %1321 = vector.shape_cast %1318 : vector<1x32xf32> to vector<1x1x32xf32>
    tpu.vector_store %arg19[%c9_1266, %c0_1267, %c0_1268], %1321 {strides = array<i32>} : memref<10x8x32xf32, #tpu.memory_space<vmem>>, vector<1x1x32xf32>,
    %c9_1269 = arith.constant 9 : index
    %c1_1270 = arith.constant 1 : index
    %1322 = memref.load %arg1[%c9_1269, %c1_1270] : memref<10x8xi32, #tpu.memory_space<smem>>
    %1323 = arith.index_cast %1322 : i32 to index
    %c0_1271 = arith.constant 0 : index
    %1324 = vector.load %arg16[%1323, %c0_1271] : memref<6x32xf32, #tpu.memory_space<vmem>>, vector<1x32xf32>
    %c9_1272 = arith.constant 9 : index
    %c1_1273 = arith.constant 1 : index
    %c0_1274 = arith.constant 0 : index
    %1325 = vector.load %arg19[%c9_1272, %c1_1273, %c0_1274] : memref<10x8x32xf32, #tpu.memory_space<vmem>>, vector<1x1x32xf32>
    %1326 = vector.shape_cast %1325 : vector<1x1x32xf32> to vector<1x32xf32>
    %1327 = vector.shape_cast %1324 : vector<1x32xf32> to vector<1x1x32xf32>
    tpu.vector_store %arg19[%c9_1272, %c1_1273, %c0_1274], %1327 {strides = array<i32>} : memref<10x8x32xf32, #tpu.memory_space<vmem>>, vector<1x1x32xf32>,
    %c9_1275 = arith.constant 9 : index
    %c2_1276 = arith.constant 2 : index
    %1328 = memref.load %arg1[%c9_1275, %c2_1276] : memref<10x8xi32, #tpu.memory_space<smem>>
    %1329 = arith.index_cast %1328 : i32 to index
    %c0_1277 = arith.constant 0 : index
    %1330 = vector.load %arg16[%1329, %c0_1277] : memref<6x32xf32, #tpu.memory_space<vmem>>, vector<1x32xf32>
    %c9_1278 = arith.constant 9 : index
    %c2_1279 = arith.constant 2 : index
    %c0_1280 = arith.constant 0 : index
    %1331 = vector.load %arg19[%c9_1278, %c2_1279, %c0_1280] : memref<10x8x32xf32, #tpu.memory_space<vmem>>, vector<1x1x32xf32>
    %1332 = vector.shape_cast %1331 : vector<1x1x32xf32> to vector<1x32xf32>
    %1333 = vector.shape_cast %1330 : vector<1x32xf32> to vector<1x1x32xf32>
    tpu.vector_store %arg19[%c9_1278, %c2_1279, %c0_1280], %1333 {strides = array<i32>} : memref<10x8x32xf32, #tpu.memory_space<vmem>>, vector<1x1x32xf32>,
    %c9_1281 = arith.constant 9 : index
    %c3_1282 = arith.constant 3 : index
    %1334 = memref.load %arg1[%c9_1281, %c3_1282] : memref<10x8xi32, #tpu.memory_space<smem>>
    %1335 = arith.index_cast %1334 : i32 to index
    %c0_1283 = arith.constant 0 : index
    %1336 = vector.load %arg16[%1335, %c0_1283] : memref<6x32xf32, #tpu.memory_space<vmem>>, vector<1x32xf32>
    %c9_1284 = arith.constant 9 : index
    %c3_1285 = arith.constant 3 : index
    %c0_1286 = arith.constant 0 : index
    %1337 = vector.load %arg19[%c9_1284, %c3_1285, %c0_1286] : memref<10x8x32xf32, #tpu.memory_space<vmem>>, vector<1x1x32xf32>
    %1338 = vector.shape_cast %1337 : vector<1x1x32xf32> to vector<1x32xf32>
    %1339 = vector.shape_cast %1336 : vector<1x32xf32> to vector<1x1x32xf32>
    tpu.vector_store %arg19[%c9_1284, %c3_1285, %c0_1286], %1339 {strides = array<i32>} : memref<10x8x32xf32, #tpu.memory_space<vmem>>, vector<1x1x32xf32>,
    %c9_1287 = arith.constant 9 : index
    %c4_1288 = arith.constant 4 : index
    %1340 = memref.load %arg1[%c9_1287, %c4_1288] : memref<10x8xi32, #tpu.memory_space<smem>>
    %1341 = arith.index_cast %1340 : i32 to index
    %c0_1289 = arith.constant 0 : index
    %1342 = vector.load %arg16[%1341, %c0_1289] : memref<6x32xf32, #tpu.memory_space<vmem>>, vector<1x32xf32>
    %c9_1290 = arith.constant 9 : index
    %c4_1291 = arith.constant 4 : index
    %c0_1292 = arith.constant 0 : index
    %1343 = vector.load %arg19[%c9_1290, %c4_1291, %c0_1292] : memref<10x8x32xf32, #tpu.memory_space<vmem>>, vector<1x1x32xf32>
    %1344 = vector.shape_cast %1343 : vector<1x1x32xf32> to vector<1x32xf32>
    %1345 = vector.shape_cast %1342 : vector<1x32xf32> to vector<1x1x32xf32>
    tpu.vector_store %arg19[%c9_1290, %c4_1291, %c0_1292], %1345 {strides = array<i32>} : memref<10x8x32xf32, #tpu.memory_space<vmem>>, vector<1x1x32xf32>,
    %c9_1293 = arith.constant 9 : index
    %c5_1294 = arith.constant 5 : index
    %1346 = memref.load %arg1[%c9_1293, %c5_1294] : memref<10x8xi32, #tpu.memory_space<smem>>
    %1347 = arith.index_cast %1346 : i32 to index
    %c0_1295 = arith.constant 0 : index
    %1348 = vector.load %arg16[%1347, %c0_1295] : memref<6x32xf32, #tpu.memory_space<vmem>>, vector<1x32xf32>
    %c9_1296 = arith.constant 9 : index
    %c5_1297 = arith.constant 5 : index
    %c0_1298 = arith.constant 0 : index
    %1349 = vector.load %arg19[%c9_1296, %c5_1297, %c0_1298] : memref<10x8x32xf32, #tpu.memory_space<vmem>>, vector<1x1x32xf32>
    %1350 = vector.shape_cast %1349 : vector<1x1x32xf32> to vector<1x32xf32>
    %1351 = vector.shape_cast %1348 : vector<1x32xf32> to vector<1x1x32xf32>
    tpu.vector_store %arg19[%c9_1296, %c5_1297, %c0_1298], %1351 {strides = array<i32>} : memref<10x8x32xf32, #tpu.memory_space<vmem>>, vector<1x1x32xf32>,
    %c9_1299 = arith.constant 9 : index
    %c6_1300 = arith.constant 6 : index
    %1352 = memref.load %arg1[%c9_1299, %c6_1300] : memref<10x8xi32, #tpu.memory_space<smem>>
    %1353 = arith.index_cast %1352 : i32 to index
    %c0_1301 = arith.constant 0 : index
    %1354 = vector.load %arg16[%1353, %c0_1301] : memref<6x32xf32, #tpu.memory_space<vmem>>, vector<1x32xf32>
    %c9_1302 = arith.constant 9 : index
    %c6_1303 = arith.constant 6 : index
    %c0_1304 = arith.constant 0 : index
    %1355 = vector.load %arg19[%c9_1302, %c6_1303, %c0_1304] : memref<10x8x32xf32, #tpu.memory_space<vmem>>, vector<1x1x32xf32>
    %1356 = vector.shape_cast %1355 : vector<1x1x32xf32> to vector<1x32xf32>
    %1357 = vector.shape_cast %1354 : vector<1x32xf32> to vector<1x1x32xf32>
    tpu.vector_store %arg19[%c9_1302, %c6_1303, %c0_1304], %1357 {strides = array<i32>} : memref<10x8x32xf32, #tpu.memory_space<vmem>>, vector<1x1x32xf32>,
    %c9_1305 = arith.constant 9 : index
    %c7_1306 = arith.constant 7 : index
    %1358 = memref.load %arg1[%c9_1305, %c7_1306] : memref<10x8xi32, #tpu.memory_space<smem>>
    %1359 = arith.index_cast %1358 : i32 to index
    %c0_1307 = arith.constant 0 : index
    %1360 = vector.load %arg16[%1359, %c0_1307] : memref<6x32xf32, #tpu.memory_space<vmem>>, vector<1x32xf32>
    %c9_1308 = arith.constant 9 : index
    %c7_1309 = arith.constant 7 : index
    %c0_1310 = arith.constant 0 : index
    %1361 = vector.load %arg19[%c9_1308, %c7_1309, %c0_1310] : memref<10x8x32xf32, #tpu.memory_space<vmem>>, vector<1x1x32xf32>
    %1362 = vector.shape_cast %1361 : vector<1x1x32xf32> to vector<1x32xf32>
    %1363 = vector.shape_cast %1360 : vector<1x32xf32> to vector<1x1x32xf32>
    tpu.vector_store %arg19[%c9_1308, %c7_1309, %c0_1310], %1363 {strides = array<i32>} : memref<10x8x32xf32, #tpu.memory_space<vmem>>, vector<1x1x32xf32>,
    %c9_1311 = arith.constant 9 : index
    %1364 = memref.load %arg4[%c9_1311] : memref<10xi32, #tpu.memory_space<smem>>
    %1365 = arith.index_cast %1364 : i32 to index
    %c0_1312 = arith.constant 0 : index
    %1366 = vector.load %arg16[%1365, %c0_1312] : memref<6x32xf32, #tpu.memory_space<vmem>>, vector<1x32xf32>
    %c9_1313 = arith.constant 9 : index
    %c0_1314 = arith.constant 0 : index
    %1367 = vector.load %arg23[%c9_1313, %c0_1314] : memref<10x32xf32, #tpu.memory_space<vmem>>, vector<1x32xf32>
    tpu.vector_store %arg23[%c9_1313, %c0_1314], %1366 {strides = array<i32>} : memref<10x32xf32, #tpu.memory_space<vmem>>, vector<1x32xf32>,
    %c0_1315 = arith.constant 0 : index
    %c0_1316 = arith.constant 0 : index
    %1368 = vector.load %arg16[%c0_1315, %c0_1316] : memref<6x32xf32, #tpu.memory_space<vmem>>, vector<6x32xf32>
    %c0_1317 = arith.constant 0 : index
    %c0_1318 = arith.constant 0 : index
    %c0_1319 = arith.constant 0 : index
    %1369 = vector.load %arg18[%c0_1317, %c0_1318, %c0_1319] : memref<6x8x32xf32, #tpu.memory_space<vmem>>, vector<6x8x32xf32>
    %c0_1320 = arith.constant 0 : index
    %c0_1321 = arith.constant 0 : index
    %c0_1322 = arith.constant 0 : index
    %1370 = vector.load %arg20[%c0_1320, %c0_1321, %c0_1322] : memref<6x8x32xf32, #tpu.memory_space<vmem>>, vector<6x8x32xf32>
    %c0_1323 = arith.constant 0 : index
    %c0_1324 = arith.constant 0 : index
    %c0_1325 = arith.constant 0 : index
    %1371 = vector.load %arg21[%c0_1323, %c0_1324, %c0_1325] : memref<6x8x32xf32, #tpu.memory_space<vmem>>, vector<6x8x32xf32>
    %1372 = arith.addf %1370, %1369 : vector<6x8x32xf32>
    %1373 = vector.shape_cast %1368 : vector<6x32xf32> to vector<6x1x32xf32>
    %1374 = vector.broadcast %1373 : vector<6x1x32xf32> to vector<6x8x32xf32>
    %1375 = arith.mulf %1372, %1374 : vector<6x8x32xf32>
    %cst_1326 = arith.constant dense<0.000000e+00> : vector<6x8xf32>
    %1376 = vector.multi_reduction <add>, %1375, %cst_1326 [2] : vector<6x8x32xf32> to vector<6x8xf32>
    %cst_1327 = arith.constant 0.176776692 : f32
    %1377 = vector.broadcast %cst_1327 : f32 to vector<6x8xf32>
    %1378 = arith.mulf %1376, %1377 : vector<6x8xf32>
    %cst_1328 = arith.constant dense<0xFF800000> : vector<6xf32>
    %1379 = vector.multi_reduction <maximumf>, %1378, %cst_1328 [1] : vector<6x8xf32> to vector<6xf32>
    %1380 = vector.shape_cast %1379 : vector<6xf32> to vector<6x1xf32>
    %1381 = vector.broadcast %1380 : vector<6x1xf32> to vector<6x8xf32>
    %1382 = arith.subf %1378, %1381 : vector<6x8xf32>
    %1383 = math.exp %1382 : vector<6x8xf32>
    %cst_1329 = arith.constant dense<0.000000e+00> : vector<6xf32>
    %1384 = vector.multi_reduction <add>, %1383, %cst_1329 [1] : vector<6x8xf32> to vector<6xf32>
    %1385 = vector.shape_cast %1384 : vector<6xf32> to vector<6x1xf32>
    %1386 = tpu.reciprocal %1385 {approx = true} : vector<6x1xf32> -> vector<6x1xf32>
    %1387 = vector.broadcast %1386 : vector<6x1xf32> to vector<6x8xf32>
    %1388 = arith.mulf %1383, %1387 : vector<6x8xf32>
    %1389 = vector.shape_cast %1388 : vector<6x8xf32> to vector<6x8x1xf32>
    %1390 = arith.addf %1369, %1371 : vector<6x8x32xf32>
    %1391 = vector.broadcast %1389 : vector<6x8x1xf32> to vector<6x8x32xf32>
    %1392 = arith.mulf %1391, %1390 : vector<6x8x32xf32>
    %cst_1330 = arith.constant dense<0.000000e+00> : vector<6x32xf32>
    %1393 = vector.multi_reduction <add>, %1392, %cst_1330 [1] : vector<6x8x32xf32> to vector<6x32xf32>
    %c0_1331 = arith.constant 0 : index
    %c0_1332 = arith.constant 0 : index
    %1394 = vector.load %arg22[%c0_1331, %c0_1332] : memref<6x32xf32, #tpu.memory_space<vmem>>, vector<6x32xf32>
    %1395 = vector.shape_cast %1394 : vector<6x32xf32> to vector<6x1x32xf32>
    %1396 = vector.broadcast %1395 : vector<6x1x32xf32> to vector<6x8x32xf32>
    %1397 = arith.mulf %1396, %1369 : vector<6x8x32xf32>
    %cst_1333 = arith.constant dense<0.000000e+00> : vector<6x8xf32>
    %1398 = vector.multi_reduction <add>, %1397, %cst_1333 [2] : vector<6x8x32xf32> to vector<6x8xf32>
    %cst_1334 = arith.constant 0.176776692 : f32
    %1399 = vector.broadcast %cst_1334 : f32 to vector<6x8xf32>
    %1400 = arith.mulf %1398, %1399 : vector<6x8xf32>
    %cst_1335 = arith.constant dense<0xFF800000> : vector<6xf32>
    %1401 = vector.multi_reduction <maximumf>, %1400, %cst_1335 [1] : vector<6x8xf32> to vector<6xf32>
    %1402 = vector.shape_cast %1401 : vector<6xf32> to vector<6x1xf32>
    %1403 = vector.broadcast %1402 : vector<6x1xf32> to vector<6x8xf32>
    %1404 = arith.subf %1400, %1403 : vector<6x8xf32>
    %1405 = math.exp %1404 : vector<6x8xf32>
    %cst_1336 = arith.constant dense<0.000000e+00> : vector<6xf32>
    %1406 = vector.multi_reduction <add>, %1405, %cst_1336 [1] : vector<6x8xf32> to vector<6xf32>
    %1407 = vector.shape_cast %1406 : vector<6xf32> to vector<6x1xf32>
    %1408 = tpu.reciprocal %1407 {approx = true} : vector<6x1xf32> -> vector<6x1xf32>
    %1409 = vector.broadcast %1408 : vector<6x1xf32> to vector<6x8xf32>
    %1410 = arith.mulf %1405, %1409 : vector<6x8xf32>
    %1411 = vector.shape_cast %1410 : vector<6x8xf32> to vector<6x8x1xf32>
    %1412 = vector.broadcast %1411 : vector<6x8x1xf32> to vector<6x8x32xf32>
    %1413 = arith.mulf %1412, %1369 : vector<6x8x32xf32>
    %cst_1337 = arith.constant dense<0.000000e+00> : vector<6x32xf32>
    %1414 = vector.multi_reduction <add>, %1413, %cst_1337 [1] : vector<6x8x32xf32> to vector<6x32xf32>
    %1415 = tpu.concatenate %1393, %1414 in 1 : vector<6x32xf32>, vector<6x32xf32> -> vector<6x64xf32>
    %1416 = arith.truncf %1415 : vector<6x64xf32> to vector<6x64xbf16>
    %c0_1338 = arith.constant 0 : index
    %c0_1339 = arith.constant 0 : index
    %1417 = vector.load %arg11[%c0_1338, %c0_1339] : memref<64x32xbf16, #tpu.memory_space<vmem>>, vector<64x32xbf16>
    %cst_1340 = arith.constant dense<0.000000e+00> : vector<6x32xf32>
    %1418 = tpu.matmul %1416, %1417, %cst_1340 {dimension_numbers = #tpu.dot_dimension_numbers<[1], [0], [0], [1], [0, 0, 1, 1], [], []>} : vector<6x64xbf16>, vector<64x32xbf16>, vector<6x32xf32> -> vector<6x32xf32>
    %c0_1341 = arith.constant 0 : index
    %c0_1342 = arith.constant 0 : index
    %c0_1343 = arith.constant 0 : index
    %1419 = vector.load %arg19[%c0_1341, %c0_1342, %c0_1343] : memref<10x8x32xf32, #tpu.memory_space<vmem>>, vector<10x8x32xf32>
    %c0_1344 = arith.constant 0 : index
    %c0_1345 = arith.constant 0 : index
    %1420 = vector.load %arg23[%c0_1344, %c0_1345] : memref<10x32xf32, #tpu.memory_space<vmem>>, vector<10x32xf32>
    %1421 = vector.shape_cast %1420 : vector<10x32xf32> to vector<10x1x32xf32>
    %1422 = vector.broadcast %1421 : vector<10x1x32xf32> to vector<10x8x32xf32>
    %1423 = arith.mulf %1422, %1419 : vector<10x8x32xf32>
    %cst_1346 = arith.constant dense<0.000000e+00> : vector<10x8xf32>
    %1424 = vector.multi_reduction <add>, %1423, %cst_1346 [2] : vector<10x8x32xf32> to vector<10x8xf32>
    %cst_1347 = arith.constant 0.176776692 : f32
    %1425 = vector.broadcast %cst_1347 : f32 to vector<10x8xf32>
    %1426 = arith.mulf %1424, %1425 : vector<10x8xf32>
    %cst_1348 = arith.constant dense<0xFF800000> : vector<10xf32>
    %1427 = vector.multi_reduction <maximumf>, %1426, %cst_1348 [1] : vector<10x8xf32> to vector<10xf32>
    %1428 = vector.shape_cast %1427 : vector<10xf32> to vector<10x1xf32>
    %1429 = vector.broadcast %1428 : vector<10x1xf32> to vector<10x8xf32>
    %1430 = arith.subf %1426, %1429 : vector<10x8xf32>
    %1431 = math.exp %1430 : vector<10x8xf32>
    %cst_1349 = arith.constant dense<0.000000e+00> : vector<10xf32>
    %1432 = vector.multi_reduction <add>, %1431, %cst_1349 [1] : vector<10x8xf32> to vector<10xf32>
    %1433 = vector.shape_cast %1432 : vector<10xf32> to vector<10x1xf32>
    %1434 = tpu.reciprocal %1433 {approx = true} : vector<10x1xf32> -> vector<10x1xf32>
    %1435 = vector.broadcast %1434 : vector<10x1xf32> to vector<10x8xf32>
    %1436 = arith.mulf %1431, %1435 : vector<10x8xf32>
    %1437 = vector.shape_cast %1436 : vector<10x8xf32> to vector<10x8x1xf32>
    %1438 = vector.broadcast %1437 : vector<10x8x1xf32> to vector<10x8x32xf32>
    %1439 = arith.mulf %1438, %1419 : vector<10x8x32xf32>
    %cst_1350 = arith.constant dense<0.000000e+00> : vector<10x32xf32>
    %1440 = vector.multi_reduction <add>, %1439, %cst_1350 [1] : vector<10x8x32xf32> to vector<10x32xf32>
    %1441 = arith.truncf %1418 : vector<6x32xf32> to vector<6x32xbf16>
    %c0_1351 = arith.constant 0 : index
    %c0_1352 = arith.constant 0 : index
    %1442 = vector.load %arg5[%c0_1351, %c0_1352] : memref<6x32xbf16, #tpu.memory_space<vmem>>, vector<6x32xbf16>
    %1443 = tpu.concatenate %1441, %1442 in 1 : vector<6x32xbf16>, vector<6x32xbf16> -> vector<6x64xbf16>
    %c0_1353 = arith.constant 0 : index
    %c0_1354 = arith.constant 0 : index
    %1444 = vector.load %arg12[%c0_1353, %c0_1354] : memref<64x32xbf16, #tpu.memory_space<vmem>>, vector<64x32xbf16>
    %cst_1355 = arith.constant dense<0.000000e+00> : vector<6x32xf32>
    %1445 = tpu.matmul %1443, %1444, %cst_1355 {dimension_numbers = #tpu.dot_dimension_numbers<[1], [0], [0], [1], [0, 0, 1, 1], [], []>} : vector<6x64xbf16>, vector<64x32xbf16>, vector<6x32xf32> -> vector<6x32xf32>
    %1446 = math.tanh %1445 : vector<6x32xf32>
    %1447 = arith.truncf %1446 : vector<6x32xf32> to vector<6x32xbf16>
    %c0_1356 = arith.constant 0 : index
    %c0_1357 = arith.constant 0 : index
    %1448 = vector.load %arg14[%c0_1356, %c0_1357] : memref<6x32xbf16, #tpu.memory_space<vmem>>, vector<6x32xbf16>
    tpu.vector_store %arg14[%c0_1356, %c0_1357], %1447 {strides = array<i32>} : memref<6x32xbf16, #tpu.memory_space<vmem>>, vector<6x32xbf16>,
    %1449 = arith.truncf %1440 : vector<10x32xf32> to vector<10x32xbf16>
    %c0_1358 = arith.constant 0 : index
    %c0_1359 = arith.constant 0 : index
    %1450 = vector.load %arg6[%c0_1358, %c0_1359] : memref<10x32xbf16, #tpu.memory_space<vmem>>, vector<10x32xbf16>
    %1451 = tpu.concatenate %1449, %1450 in 1 : vector<10x32xbf16>, vector<10x32xbf16> -> vector<10x64xbf16>
    %c0_1360 = arith.constant 0 : index
    %c0_1361 = arith.constant 0 : index
    %1452 = vector.load %arg13[%c0_1360, %c0_1361] : memref<64x32xbf16, #tpu.memory_space<vmem>>, vector<64x32xbf16>
    %cst_1362 = arith.constant dense<0.000000e+00> : vector<10x32xf32>
    %1453 = tpu.matmul %1451, %1452, %cst_1362 {dimension_numbers = #tpu.dot_dimension_numbers<[1], [0], [0], [1], [0, 0, 1, 1], [], []>} : vector<10x64xbf16>, vector<64x32xbf16>, vector<10x32xf32> -> vector<10x32xf32>
    %1454 = math.tanh %1453 : vector<10x32xf32>
    %1455 = arith.truncf %1454 : vector<10x32xf32> to vector<10x32xbf16>
    %c0_1363 = arith.constant 0 : index
    %c0_1364 = arith.constant 0 : index
    %1456 = vector.load %arg15[%c0_1363, %c0_1364] : memref<10x32xbf16, #tpu.memory_space<vmem>>, vector<10x32xbf16>
    tpu.vector_store %arg15[%c0_1363, %c0_1364], %1455 {strides = array<i32>} : memref<10x32xbf16, #tpu.memory_space<vmem>>, vector<10x32xbf16>,
    return
  }
}

</mosaic_0001>

<bundles_post_ra>
// kernel: dgsr_forward.7
= control target key start
LH: loop header
LB: loop body
LE: loop exit
PB: predicated region body
PF: predicated region fallthrough
CT: control target
= control target key end

     0   :  { %vm110_vm0 = vcmask 261120   ;;  %vm127_vm1 = vcmask 320512   ;;  %s240_s1 = inlined_call_operand.vmem [shape: bf16[128,32], index: 1, kind: input, shape index: {}]   ;;  %s241_s2 = inlined_call_operand.vmem [shape: bf16[32,40], index: 2, kind: input, shape index: {}]   ;;  %s242_s0 = inlined_call_operand.vmem [shape: bf16[2,128], index: 0, kind: input, shape index: {}]   ;;  %s243_s3 = inlined_call_operand.vmem [shape: f32[2,40], index: 3, kind: output, shape index: {}]  }
   0x1   :  { %v181_v0 = vld [vmem:[%s240_s1 + $0x38] sm:$0xff]  ;;  %v180_v1 = vld [vmem:[%s240_s1 + $0x30] sm:$0xff]  ;;  %v183_v2 = vld [vmem:[%s241_s2 + $0x8] sm:$0xff] }
   0x2   :  { %80 = vmatpush.bf16.msra.mxu0 %v181_v0  ;;  %120 = vmatpush.bf16.msra.mxu1 %v183_v2  ;;  %v179_v3 = vld [vmem:[%s240_s1 + $0x28] sm:$0xff]  ;;  %v178_v4 = vld [vmem:[%s240_s1 + $0x20] sm:$0xff]  ;;  %v177_v5 = vld [vmem:[%s240_s1 + $0x18] sm:$0xff] }
   0x3   :  { %v176_v6 = vld [vmem:[%s240_s1 + $0x10] sm:$0xff]  ;;  %v175_v7 = vld [vmem:[%s240_s1 + $0x8] sm:$0xff]  ;;  %v174_v8 = vld [vmem:[%s240_s1] sm:$0xff] }
   0x4   :  { %v15_v9 = vld [vmem:[%s242_s0] sm:$0x1] }
   0x5   :  { %v182_v10 = vld [vmem:[%s241_s2] sm:$0xff] }
   0x6   :  { %81 = vmatpush.bf16.msra.mxu0 %v180_v1  ;;  %121 = vmatpush.bf16.msra.mxu1 %v182_v10 }
   0xa   :  { %82 = vmatpush.bf16.msra.mxu0 %v179_v3 }
   0xe   :  { %83 = vmatpush.bf16.msra.mxu0 %v178_v4 }
  0x12   :  { %84 = vmatpush.bf16.msra.mxu0 %v177_v5 }
  0x16   :  { %85 = vmatpush.bf16.msra.mxu0 %v176_v6 }
  0x1a   :  { %86 = vmatpush.bf16.msra.mxu0 %v175_v7 }
  0x1e   :  { %87 = vmatpush.bf16.msra.mxu0 %v174_v8 }
  0x21   :  { %88 = vmatmul.bf16.vlgmr.msra.gmra.mxu0 %v15_v9 }
  0x9e   :  { %v89_v11 = vpop.f32.mrf.mxu0 }
  0x9f   :  { %v93_v12 = vpack.c.bf16 %v89_v11, %v89_v11 }
  0xa1   :  { %173 = vmatmul.msk.bf16.vlgmr.msra.gmra.mxu1 %vm110_vm0, %v93_v12 }
  0xa6   :  { %v91_v13 = vpop.f32.mrf.mxu0 }
 0x11e   :  { %v123_v14 = vpop.f32.mrf.mxu1 }
 0x11f   :  { %128 = vst.msk [vmem:[%s243_s3] sm:$0x3] %vm127_vm1, %v123_v14 }
 0x126   :  { %v125_v15 = vpop.f32.mrf.mxu1 }

// kernel: dgsr_forward.4
= control target key start
LH: loop header
LB: loop body
LE: loop exit
PB: predicated region body
PF: predicated region fallthrough
CT: control target
= control target key end

     0   :  { %s4767_s0 = inlined_call_operand.vmem [shape: s32[6,8], index: 0, kind: input, shape index: {}]   ;;  %s4768_s1 = inlined_call_operand.vmem [shape: s32[10,8], index: 1, kind: input, shape index: {}]   ;;  %s4769_s2 = inlined_call_operand.vmem [shape: s32[6,8], index: 2, kind: input, shape index: {}]   ;;  %s4770_s3 = inlined_call_operand.vmem [shape: s32[6], index: 3, kind: input, shape index: {}]   ;;  %s4771_s4 = inlined_call_operand.vmem [shape: s32[10], index: 4, kind: input, shape index: {}]   ;;  %s4772_s5 = inlined_call_operand.vmem [shape: bf16[6,32], index: 5, kind: input, shape index: {}]   ;;  %s4773_s6 = inlined_call_operand.vmem [shape: bf16[10,32], index: 6, kind: input, shape index: {}]   ;;  %s4774_s7 = inlined_call_operand.vmem [shape: f32[8,32], index: 7, kind: input, shape index: {}]   ;;  %s4775_s8 = inlined_call_operand.vmem [shape: f32[8,32], index: 8, kind: input, shape index: {}]   ;;  %s4776_s9 = inlined_call_operand.vmem [shape: bf16[32,32], index: 9, kind: input, shape index: {}]   ;;  %s4777_s10 = inlined_call_operand.vmem [shape: bf16[32,32], index: 10, kind: input, shape index: {}]   ;;  %s4778_s11 = inlined_call_operand.vmem [shape: bf16[64,32], index: 11, kind: input, shape index: {}]   ;;  %s4779_s12 = inlined_call_operand.vmem [shape: bf16[64,32], index: 12, kind: input, shape index: {}]   ;;  %s4780_s13 = inlined_call_operand.vmem [shape: bf16[64,32], index: 13, kind: input, shape index: {}]   ;;  %s4781_s14 = inlined_call_operand.vmem [shape: bf16[6,32], index: 14, kind: output, shape index: {0}]   ;;  %s4782_s15 = inlined_call_operand.vmem [shape: bf16[10,32], index: 15, kind: output, shape index: {1}]  }
   0x1   :  { %4838 = sst [smem:[#allocation88_spill]] %s4772_s5 }
   0x2   :  { %4839 = sst [smem:[#allocation89_spill]] %s4773_s6 }
   0x3   :  { %4840 = sst [smem:[#allocation90_spill]] %s4775_s8 }
   0x4   :  { %4841 = sst [smem:[#allocation91_spill]] %s4778_s11 }
   0x5   :  { %4842 = sst [smem:[#allocation92_spill]] %s4779_s12 }
   0x6   :  { %4843 = sst [smem:[#allocation93_spill]] %s4780_s13 }
   0x7   :  { %4844 = sst [smem:[#allocation94_spill]] %s4781_s14 }
   0x8   :  { %4845 = sst [smem:[#allocation95_spill]] %s4782_s15 }
   0x9   :  { %21 = vsyncpa [#allocation11], 0 }
   0xa   :  { %22 = vsyncpa [#allocation13], 0  ;;  %s37_s20 = sshll.u32 %s4768_s1, 4  ;;  %s38_s20 = int_to_ptr.vmem [resolvable:$true] %s37_s20 }
   0xb   :  { %23 = vsyncpa [#allocation16], 0  ;;  %s58_s23 = sshll.u32 %s4770_s3, 4  ;;  %s2987_s24 = smov [#allocation12]   ;;  %s59_s23 = int_to_ptr.vmem [resolvable:$true] %s58_s23 }
   0xc   :  { %s2988_s25 = smov 128   ;;  %s2989_s26 = smov 8  }
   0xd   :  { %43 = dma.vmem_to_smem %s38_s20, 256, %s2987_s24, [#allocation13], %s2988_s25, %s2988_s25, %s2989_s26  }
   0xe   :  { %s2990_s27 = smov [#allocation15]   ;;  %s29_s30 = sshll.u32 %s4767_s0, 4  ;;  %s30_s30 = int_to_ptr.vmem [resolvable:$true] %s29_s30 }
   0xf   :  { %61 = dma.vmem_to_smem %s59_s23, 16, %s2990_s27, [#allocation16]  }
  0x10   :  { %s49_s17 = sshll.u32 %s4769_s2, 4  ;;  %s2991_s18 = smov [#allocation10]   ;;  %s50_s17 = int_to_ptr.vmem [resolvable:$true] %s49_s17 }
  0x11   :  { %32 = dma.vmem_to_smem %s30_s30, 128, %s2991_s18, [#allocation11]  }
  0x12   :  { %s2992_s3 = smov [#allocation14]   ;;  %s67_s20 = sshll.u32 %s4771_s4, 4  ;;  %s68_s20 = int_to_ptr.vmem [resolvable:$true] %s67_s20 }
  0x13   :  { %52 = dma.vmem_to_smem %s50_s17, 128, %s2992_s3, [#allocation13]  }
  0x14   :  { %s2993_s22 = smov [#allocation17]  }
  0x15   :  { %70 = dma.vmem_to_smem %s68_s20, 16, %s2993_s22, [#allocation16]  }
  0x16   :  { %2981 = dma.done.wait [#allocation11], 128  }
  0x17   :  { %2982 = vsyncadd [#allocation11], 4294967168 }
  0x18   :  { %2983 = dma.done.wait [#allocation13], 384  }
  0x19   :  { %2984 = vsyncadd [#allocation13], 4294966912 }
  0x1a   :  { %2985 = dma.done.wait [#allocation16], 32  }
  0x1b   :  { %2986 = vsyncadd [#allocation16], 4294967264 }
  0x1c   :  { %109 = sfence }
  0x1d   :  { %v2828_v0 = vld [vmem:[%s4777_s10 + $0x8] sm:$0xff]  ;;  %v2827_v2 = vld [vmem:[%s4777_s10] sm:$0xff]  ;;  %vm128_vm0 = vcmask 261120   ;;  %s3114_s10 = sld [smem:[#allocation10]]  ;;  %vm193_vm1 = vcmask 253952   ;;  %vm145_vm2 = vcmask 259072  }
  0x1e   :  { %v2825_v1 = vld [vmem:[%s4776_s9 + $0x8] sm:$0xff]  ;;  %179 = vmatpush.bf16.msra.mxu1 %v2828_v0  ;;  %v2571_v3 = vld [vmem:[%s4773_s6] sm:$0xf]  ;;  %v2826_v4 = vld [vmem:[%s4773_s6] sm:$0x10]  ;;  %s3116_s18 = sld [smem:[#allocation10 + $0x1]] }
  0x1f   :  { %138 = vmatpush.bf16.msra.mxu0 %v2825_v1  ;;  %v2824_v5 = vld [vmem:[%s4776_s9] sm:$0xff]  ;;  %v2572_v6 = vor.u32 %v2826_v4, %v2571_v3  ;;  %s3118_s3 = sld [smem:[#allocation10 + $0x2]]  ;;  %vm188_vm3 = vcmask 254976   ;;  %vm1214_vm4 = vcmask 1041409   ;;  %vm1216_vm5 = vcmask 1042434  }
  0x20   :  { %v111_v7 = vld [vmem:[%s4772_s5] sm:$0x7]  ;;  %s3120_s19 = sld [smem:[#allocation10 + $0x3]]  ;;  %vm1218_vm6 = vcmask 1043459   ;;  %vm1220_vm7 = vcmask 1044484   ;;  %vm1222_vm8 = vcmask 1045509  }
  0x21   :  { %s3122_s9 = sld [smem:[#allocation10 + $0x4]]  ;;  %vm1225_vm9 = vcmask 62464   ;;  %vm1835_vm10 = vcmask 1046534   ;;  %vm1837_vm11 = vcmask 1047559   ;;  %vm1842_vm12 = vcmask 64512  }
  0x22   :  { %180 = vmatpush.bf16.msra.mxu1 %v2827_v2  ;;  %s3124_s21 = sld [smem:[#allocation10 + $0x5]]  ;;  %vm1846_vm13 = vcmask 58368   ;;  %vm1701_vm14 = vcmask 523264   ;;  %vm2191_vm15 = vcmask 256000  }
  0x23   :  { %139 = vmatpush.bf16.msra.mxu0 %v2824_v5  ;;  %s3126_s20 = sld [smem:[#allocation10 + $0x6]] }
  0x24   :  { %s3128_s22 = sld [smem:[#allocation10 + $0x7]] }
  0x25   :  { %2581 = vmatmul.msk.bf16.vlgmr.msra.gmra.mxu1 %vm128_vm0, %v2572_v6  ;;  %s3130_s0 = sld [smem:[#allocation15]] }
  0x26   :  { %2568 = vmatmul.msk.bf16.vlgmr.msra.gmra.mxu0 %vm128_vm0, %v111_v7  ;;  %s3132_s2 = sld [smem:[#allocation15 + $0x1]] }
  0x27   :  { %s3134_s23 = sld [smem:[#allocation15 + $0x2]] }
  0x28   :  { %s3136_s24 = sld [smem:[#allocation15 + $0x3]] }
  0x29   :  { %s3138_s4 = sld [smem:[#allocation15 + $0x4]] }
  0x2a   :  { %s3140_s25 = sld [smem:[#allocation15 + $0x5]] }
  0x2b   :  { %4846 = sst [smem:[#allocation21_spill]] %s3130_s0 }
  0x2c   :  { %4847 = sst [smem:[#allocation22_spill]] %s3132_s2 }
  0x2d   :  { %4848 = sst [smem:[#allocation23_spill]] %s3134_s23 }
  0x2e   :  { %4849 = sst [smem:[#allocation24_spill]] %s3136_s24 }
  0x2f   :  { %4850 = sst [smem:[#allocation25_spill]] %s3138_s4 }
  0x30   :  { %4851 = sst [smem:[#allocation26_spill]] %s3140_s25 }
  0x31   :  { %s3142_s26 = sld [smem:[#allocation10 + $0x100]] }
  0x32   :  { %s3144_s27 = sld [smem:[#allocation14 + $0x100]] }
  0x33   :  { %s3146_s28 = sld [smem:[#allocation10 + $0x101]] }
  0x34   :  { %s3148_s29 = sld [smem:[#allocation14 + $0x101]] }
  0x35   :  { %s3150_s30 = sld [smem:[#allocation10 + $0x102]] }
  0x36   :  { %s3152_s16 = sld [smem:[#allocation14 + $0x102]] }
  0x37   :  { %4852 = sst [smem:[#allocation27_spill]] %s3142_s26 }
  0x38   :  { %4853 = sst [smem:[#allocation28_spill]] %s3144_s27 }
  0x39   :  { %4854 = sst [smem:[#allocation29_spill]] %s3146_s28 }
  0x3a   :  { %4855 = sst [smem:[#allocation30_spill]] %s3148_s29 }
  0x3b   :  { %4856 = sst [smem:[#allocation31_spill]] %s3150_s30 }
  0x3c   :  { %4857 = sst [smem:[#allocation32_spill]] %s3152_s16 }
  0x3d   :  { %s3154_s1 = sld [smem:[#allocation10 + $0x103]] }
  0x3e   :  { %s3156_s17 = sld [smem:[#allocation14 + $0x103]] }
  0x3f   :  { %s3158_s15 = sld [smem:[#allocation10 + $0x104]] }
  0x40   :  { %s3160_s14 = sld [smem:[#allocation14 + $0x104]] }
  0x41   :  { %s3162_s13 = sld [smem:[#allocation10 + $0x105]] }
  0x42   :  { %s3164_s12 = sld [smem:[#allocation14 + $0x105]] }
  0x43   :  { %4858 = sst [smem:[#allocation33_spill]] %s3154_s1 }
  0x44   :  { %4859 = sst [smem:[#allocation34_spill]] %s3156_s17 }
  0x45   :  { %4860 = sst [smem:[#allocation35_spill]] %s3158_s15 }
  0x46   :  { %4861 = sst [smem:[#allocation36_spill]] %s3160_s14 }
  0x47   :  { %4862 = sst [smem:[#allocation37_spill]] %s3162_s13 }
  0x48   :  { %4863 = sst [smem:[#allocation38_spill]] %s3164_s12 }
  0x49   :  { %s3166_s6 = sld [smem:[#allocation10 + $0x106]] }
  0x4a   :  { %s3168_s5 = sld [smem:[#allocation14 + $0x106]] }
  0x4b   :  { %s3170_s11 = sld [smem:[#allocation10 + $0x107]] }
  0x4c   :  { %s3172_s8 = sld [smem:[#allocation14 + $0x107]] }
  0x4d   :  { %s3174_s30 = sld [smem:[#allocation10 + $0x80]] }
  0x4e   :  { %s3176_s1 = sld [smem:[#allocation10 + $0x81]] }
  0x4f   :  { %4864 = sst [smem:[#allocation39_spill]] %s3166_s6 }
  0x50   :  { %4865 = sst [smem:[#allocation40_spill]] %s3168_s5 }
  0x51   :  { %4866 = sst [smem:[#allocation41_spill]] %s3170_s11 }
  0x52   :  { %4867 = sst [smem:[#allocation42_spill]] %s3172_s8 }
  0x53   :  { %4868 = sst [smem:[#allocation43_spill]] %s3174_s30 }
  0x54   :  { %4869 = sst [smem:[#allocation44_spill]] %s3176_s1 }
  0x55   :  { %s3178_s15 = sld [smem:[#allocation10 + $0x82]] }
  0x56   :  { %s3180_s28 = sld [smem:[#allocation10 + $0x83]] }
  0x57   :  { %s3182_s13 = sld [smem:[#allocation10 + $0x84]] }
  0x58   :  { %s3184_s26 = sld [smem:[#allocation10 + $0x85]] }
  0x59   :  { %s3186_s6 = sld [smem:[#allocation10 + $0x86]] }
  0x5a   :  { %s3188_s11 = sld [smem:[#allocation10 + $0x87]] }
  0x5b   :  { %4870 = sst [smem:[#allocation45_spill]] %s3178_s15 }
  0x5c   :  { %4871 = sst [smem:[#allocation46_spill]] %s3180_s28 }
  0x5d   :  { %4872 = sst [smem:[#allocation47_spill]] %s3182_s13 }
  0x5e   :  { %4873 = sst [smem:[#allocation48_spill]] %s3184_s26 }
  0x5f   :  { %4874 = sst [smem:[#allocation49_spill]] %s3186_s6 }
  0x60   :  { %4875 = sst [smem:[#allocation50_spill]] %s3188_s11 }
  0x61   :  { %s3190_s25 = sld [smem:[#allocation10 + $0x200]] }
  0x62   :  { %s3192_s30 = sld [smem:[#allocation10 + $0x201]] }
  0x63   :  { %s3194_s1 = sld [smem:[#allocation10 + $0x202]] }
  0x64   :  { %s3196_s15 = sld [smem:[#allocation10 + $0x203]] }
  0x65   :  { %s3198_s28 = sld [smem:[#allocation10 + $0x204]] }
  0x66   :  { %s3200_s13 = sld [smem:[#allocation10 + $0x205]] }
  0x67   :  { %4876 = sst [smem:[#allocation51_spill]] %s3190_s25  ;;  %s384_s25 = scalar_lea.vmem %s4774_s7, %s3144_s27 }
  0x68   :  { %4877 = sst [smem:[#allocation52_spill]] %s3192_s30  ;;  %v385_v8 = vld [vmem:[%s384_s25] sm:$0x1] }
  0x69   :  { %4878 = sst [smem:[#allocation53_spill]] %s3194_s1  ;;  %387 = vst.msk [vmem:[#allocation6 + $0x10] sm:$0x1] %vm193_vm1, %v385_v8 }
  0x6a   :  { %4879 = sst [smem:[#allocation54_spill]] %s3196_s15  ;;  %s397_s15 = scalar_lea.vmem %s4774_s7, %s3148_s29 }
  0x6b   :  { %4880 = sst [smem:[#allocation55_spill]] %s3198_s28  ;;  %v398_v9 = vld [vmem:[%s397_s15] sm:$0x1] }
  0x6c   :  { %4881 = sst [smem:[#allocation56_spill]] %s3200_s13  ;;  %399 = vst.msk [vmem:[#allocation6 + $0x11] sm:$0x1] %vm193_vm1, %v398_v9 }
  0x6d   :  { %s3202_s26 = sld [smem:[#allocation10 + $0x206]] }
  0x6e   :  { %s3204_s6 = sld [smem:[#allocation10 + $0x207]] }
  0x6f   :  { %s3210_s24 = sld [smem:[#allocation10 + $0x180]] }
  0x70   :  { %s3212_s30 = sld [smem:[#allocation10 + $0x181]] }
  0x71   :  { %s3218_s28 = sld [smem:[#allocation10 + $0x182]] }
  0x72   :  { %s3220_s2 = sld [smem:[#allocation10 + $0x183]] }
  0x73   :  { %4882 = sst [smem:[#allocation57_spill]] %s3202_s26 }
  0x74   :  { %4883 = sst [smem:[#allocation58_spill]] %s3204_s6  ;;  %s408_s6 = scalar_lea.vmem %s4774_s7, %s3152_s16 }
  0x75   :  { %4884 = sst [smem:[#allocation59_spill]] %s3210_s24  ;;  %v409_v11 = vld [vmem:[%s408_s6] sm:$0x1] }
  0x76   :  { %4885 = sst [smem:[#allocation60_spill]] %s3212_s30  ;;  %s419_s30 = scalar_lea.vmem %s4774_s7, %s3156_s17  ;;  %410 = vst.msk [vmem:[#allocation6 + $0x12] sm:$0x1] %vm193_vm1, %v409_v11 }
  0x77   :  { %4886 = sst [smem:[#allocation61_spill]] %s3218_s28  ;;  %v420_v13 = vld [vmem:[%s419_s30] sm:$0x1] }
  0x78   :  { %4887 = sst [smem:[#allocation62_spill]] %s3220_s2  ;;  %s430_s2 = scalar_lea.vmem %s4774_s7, %s3160_s14  ;;  %421 = vst.msk [vmem:[#allocation6 + $0x13] sm:$0x1] %vm193_vm1, %v420_v13 }
  0x79   :  { %s3226_s0 = sld [smem:[#allocation10 + $0x184]]  ;;  %v431_v14 = vld [vmem:[%s430_s2] sm:$0x1] }
  0x7a   :  { %s3228_s11 = sld [smem:[#allocation10 + $0x185]]  ;;  %432 = vst.msk [vmem:[#allocation6 + $0x14] sm:$0x1] %vm193_vm1, %v431_v14 }
  0x7b   :  { %s3234_s24 = sld [smem:[#allocation10 + $0x186]] }
  0x7c   :  { %s3236_s23 = sld [smem:[#allocation10 + $0x187]] }
  0x7d   :  { %s3242_s28 = sld [smem:[#allocation14]] }
  0x7e   :  { %s3244_s13 = sld [smem:[#allocation14 + $0x1]] }
  0x7f   :  { %s3246_s26 = sld [smem:[#allocation14 + $0x2]] }
  0x80   :  { %s3248_s16 = sld [smem:[#allocation14 + $0x3]] }
  0x81   :  { %s3250_s27 = sld [smem:[#allocation14 + $0x4]] }
  0x82   :  { %4888 = sst [smem:[#allocation63_spill]] %s3236_s23 }
  0x83   :  { %4889 = sst [smem:[#allocation64_spill]] %s3242_s28 }
  0x84   :  { %4890 = sst [smem:[#allocation65_spill]] %s3244_s13 }
  0x85   :  { %4891 = sst [smem:[#allocation66_spill]] %s3246_s26 }
  0x86   :  { %4892 = sst [smem:[#allocation67_spill]] %s3248_s16  ;;  %s463_s16 = scalar_lea.vmem %s4774_s7, %s3172_s8 }
  0x87   :  { %4893 = sst [smem:[#allocation68_spill]] %s3250_s27  ;;  %s441_s27 = scalar_lea.vmem %s4774_s7, %s3164_s12  ;;  %v464_v17 = vld [vmem:[%s463_s16] sm:$0x1] }
  0x88   :  { %s3252_s4 = sld [smem:[#allocation14 + $0x5]]  ;;  %v442_v15 = vld [vmem:[%s441_s27] sm:$0x1]  ;;  %465 = vst.msk [vmem:[#allocation6 + $0x17] sm:$0x1] %vm193_vm1, %v464_v17 }
  0x89   :  { %s3254_s17 = sld [smem:[#allocation14 + $0x6]]  ;;  %443 = vst.msk [vmem:[#allocation6 + $0x15] sm:$0x1] %vm193_vm1, %v442_v15 }
  0x8a   :  { %s3256_s23 = sld [smem:[#allocation14 + $0x7]] }
  0x8b   :  { %s3258_s29 = sld [smem:[#allocation10 + $0x280]] }
  0x8c   :  { %s3260_s1 = sld [smem:[#allocation10 + $0x281]] }
  0x8d   :  { %s3272_s25 = sld [smem:[#allocation10 + $0x282]] }
  0x8e   :  { %4894 = sst [smem:[#allocation69_spill]] %s3252_s4 }
  0x8f   :  { %4895 = sst [smem:[#allocation70_spill]] %s3254_s17 }
  0x90   :  { %4896 = sst [smem:[#allocation71_spill]] %s3256_s23 }
  0x91   :  { %4897 = sst [smem:[#allocation72_spill]] %s3258_s29  ;;  %s452_s29 = scalar_lea.vmem %s4774_s7, %s3168_s5 }
  0x92   :  { %4898 = sst [smem:[#allocation73_spill]] %s3260_s1  ;;  %v453_v16 = vld [vmem:[%s452_s29] sm:$0x1] }
  0x93   :  { %s3275_s1 = sld [smem:[#allocation10 + $0x283]]  ;;  %454 = vst.msk [vmem:[#allocation6 + $0x16] sm:$0x1] %vm193_vm1, %v453_v16 }
  0x94   :  { %s3281_s12 = sld [smem:[#allocation10 + $0x284]] }
  0x95   :  { %s3284_s6 = sld [smem:[#allocation10 + $0x285]] }
  0x96   :  { %s3287_s17 = sld [smem:[#allocation10 + $0x286]] }
  0x97   :  { %s3290_s2 = sld [smem:[#allocation10 + $0x287]] }
  0x98   :  { %s3293_s30 = sld [smem:[#allocation14 + $0x80]] }
  0x99   :  { %s3296_s23 = sld [smem:[#allocation14 + $0x81]] }
  0x9a   :  { %s3299_s27 = sld [smem:[#allocation14 + $0x82]]  ;;  %v1136_v58 = vld [vmem:[#allocation6 + $0x10] sm:$0xff] }
  0x9b   :  { %s3301_s29 = sld [smem:[#allocation14 + $0x83]] }
  0x9c   :  { %4899 = sst [smem:[#allocation74_spill]] %s3287_s17  ;;  %s203_s17 = scalar_lea.vmem [#allocation3], %s3116_s18 }
  0x9d   :  { %4900 = sst [smem:[#allocation75_spill]] %s3290_s2 }
  0x9e   :  { %4901 = sst [smem:[#allocation76_spill]] %s3293_s30 }
  0x9f   :  { %4902 = sst [smem:[#allocation77_spill]] %s3296_s23 }
  0xa0   :  { %4903 = sst [smem:[#allocation78_spill]] %s3299_s27  ;;  %s191_s27 = scalar_lea.vmem [#allocation3], %s3114_s10 }
  0xa1   :  { %4904 = sst [smem:[#allocation79_spill]] %s3301_s29  ;;  %s214_s29 = scalar_lea.vmem [#allocation3], %s3118_s3 }
  0xa2   :  { %v182_v10 = vpop.f32.mrf.mxu1  ;;  %s3303_s14 = sld [smem:[#allocation14 + $0x84]]  ;;  %s247_s10 = scalar_lea.vmem [#allocation3], %s3124_s21 }
  0xa3   :  { %187 = vst.msk [vmem:[#allocation3] sm:$0xff] %vm128_vm0, %v182_v10  ;;  %v141_v12 = vpop.f32.mrf.mxu0  ;;  %s3305_s15 = sld [smem:[#allocation14 + $0x85]] }
  0xa4   :  { %146 = vst.msk [vmem:[#allocation2] sm:$0x3f] %vm145_vm2, %v141_v12  ;;  %s3307_s16 = sld [smem:[#allocation14 + $0x86]]  ;;  %vm2306_vm2 = vcmask 257024  }
  0xa5   :  { %s3309_s8 = sld [smem:[#allocation14 + $0x87]] }
  0xa6   :  { %s3311_s5 = sld [smem:[#allocation14 + $0x180]] }
  0xa7   :  { %s3313_s2 = sld [smem:[#allocation14 + $0x181]] }
  0xa8   :  { %4905 = sst [smem:[#allocation80_spill]] %s3303_s14 }
  0xa9   :  { %4906 = sst [smem:[#allocation81_spill]] %s3305_s15  ;;  %s225_s15 = scalar_lea.vmem [#allocation3], %s3120_s19 }
  0xaa   :  { %v184_v18 = vpop.f32.mrf.mxu1  ;;  %4907 = sst [smem:[#allocation82_spill]] %s3307_s16  ;;  %s258_s19 = scalar_lea.vmem [#allocation3], %s3126_s20 }
  0xab   :  { %189 = vst.msk [vmem:[#allocation3 + $0x8] sm:$0x3] %vm188_vm3, %v184_v18  ;;  %v143_v19 = vpop.f32.mrf.mxu0  ;;  %4908 = sst [smem:[#allocation83_spill]] %s3309_s8  ;;  %v3395_v42 = vld [vmem:[#allocation2] sm:$0x3f] }
  0xac   :  { %4909 = sst [smem:[#allocation84_spill]] %s3311_s5  ;;  %s236_s5 = scalar_lea.vmem [#allocation3], %s3122_s9  ;;  %v1154_v52 = vrot.slane %v3395_v42, 2 }
  0xad   :  { %4910 = sst [smem:[#allocation85_spill]] %s3313_s2  ;;  %s269_s9 = scalar_lea.vmem [#allocation3], %s3128_s22 }
  0xae   :  { %s3320_s16 = sld [smem:[#allocation14 + $0x182]]  ;;  %v1160_v60 = vperm.slane %v1154_v52, 0 }
  0xaf   :  { %s4912_s8 = sld [smem:[#allocation21_spill]] }
  0xb0   :  { %s3324_s2 = sld [smem:[#allocation14 + $0x183]] }
  0xb1   :  { %s4914_s18 = sld [smem:[#allocation22_spill]] }
  0xb2   :  { %v192_v20 = vld [vmem:[%s191_s27] sm:$0x1]  ;;  %s3328_s3 = sld [smem:[#allocation14 + $0x184]] }
  0xb3   :  { %v204_v21 = vld [vmem:[%s203_s17] sm:$0x1]  ;;  %194 = vst.msk [vmem:[#allocation4] sm:$0x1] %vm193_vm1, %v192_v20  ;;  %s4916_s17 = sld [smem:[#allocation23_spill]] }
  0xb4   :  { %v215_v22 = vld [vmem:[%s214_s29] sm:$0x1]  ;;  %4911 = sst [smem:[#allocation86_spill]] %s3320_s16  ;;  %205 = vst.msk [vmem:[#allocation4 + $0x1] sm:$0x1] %vm193_vm1, %v204_v21 }
  0xb5   :  { %v226_v23 = vld [vmem:[%s225_s15] sm:$0x1]  ;;  %216 = vst.msk [vmem:[#allocation4 + $0x2] sm:$0x1] %vm193_vm1, %v215_v22  ;;  %s3332_s27 = sld [smem:[#allocation14 + $0x185]]  ;;  %s280_s21 = scalar_lea.vmem [#allocation3], %s4912_s8 }
  0xb6   :  { %v237_v24 = vld [vmem:[%s236_s5] sm:$0x1]  ;;  %4913 = sst [smem:[#allocation21_spill]] %s3324_s2  ;;  %227 = vst.msk [vmem:[#allocation4 + $0x3] sm:$0x1] %vm193_vm1, %v226_v23 }
  0xb7   :  { %v248_v25 = vld [vmem:[%s247_s10] sm:$0x1]  ;;  %238 = vst.msk [vmem:[#allocation4 + $0x4] sm:$0x1] %vm193_vm1, %v237_v24  ;;  %s4918_s5 = sld [smem:[#allocation24_spill]]  ;;  %s375_s20 = scalar_lea.vmem [#allocation3], %s4914_s18 }
  0xb8   :  { %4915 = sst [smem:[#allocation22_spill]] %s3328_s3  ;;  %v259_v26 = vld [vmem:[%s258_s19] sm:$0x1]  ;;  %249 = vst.msk [vmem:[#allocation4 + $0x5] sm:$0x1] %vm193_vm1, %v248_v25 }
  0xb9   :  { %v270_v27 = vld [vmem:[%s269_s9] sm:$0x1]  ;;  %s3336_s29 = sld [smem:[#allocation14 + $0x186]]  ;;  %260 = vst.msk [vmem:[#allocation4 + $0x6] sm:$0x1] %vm193_vm1, %v259_v26  ;;  %s470_s22 = scalar_lea.vmem [#allocation3], %s4916_s17 }
  0xba   :  { %s4920_s15 = sld [smem:[#allocation25_spill]]  ;;  %v281_v28 = vld [vmem:[%s280_s21] sm:$0x1]  ;;  %271 = vst.msk [vmem:[#allocation4 + $0x7] sm:$0x1] %vm193_vm1, %v270_v27 }
  0xbb   :  { %4917 = sst [smem:[#allocation23_spill]] %s3332_s27  ;;  %v376_v29 = vld [vmem:[%s375_s20] sm:$0x1]  ;;  %282 = vst.msk [vmem:[#allocation8] sm:$0x1] %vm193_vm1, %v281_v28 }
  0xbc   :  { %s3340_s10 = sld [smem:[#allocation14 + $0x187]]  ;;  %v471_v30 = vld [vmem:[%s470_s22] sm:$0x1]  ;;  %377 = vst.msk [vmem:[#allocation8 + $0x1] sm:$0x1] %vm193_vm1, %v376_v29 }
  0xbd   :  { %s4922_s19 = sld [smem:[#allocation26_spill]]  ;;  %s565_s8 = scalar_lea.vmem [#allocation3], %s4918_s5  ;;  %472 = vst.msk [vmem:[#allocation8 + $0x2] sm:$0x1] %vm193_vm1, %v471_v30 }
  0xbe   :  { %s3344_s27 = sld [smem:[#allocation14 + $0x280]]  ;;  %v566_v31 = vld [vmem:[%s565_s8] sm:$0x1] }
  0xbf   :  { %4919 = sst [smem:[#allocation24_spill]] %s3336_s29  ;;  %567 = vst.msk [vmem:[#allocation8 + $0x3] sm:$0x1] %vm193_vm1, %v566_v31 }
  0xc0   :  { %s4924_s9 = sld [smem:[#allocation27_spill]]  ;;  %s660_s18 = scalar_lea.vmem [#allocation3], %s4920_s15 }
  0xc1   :  { %s3348_s29 = sld [smem:[#allocation14 + $0x281]]  ;;  %v661_v32 = vld [vmem:[%s660_s18] sm:$0x1]  ;;  %v3406_v49 = vld [vmem:[#allocation4] sm:$0xff] }
  0xc2   :  { %4921 = sst [smem:[#allocation25_spill]] %s3340_s10  ;;  %662 = vst.msk [vmem:[#allocation8 + $0x4] sm:$0x1] %vm193_vm1, %v661_v32 }
  0xc3   :  { %s4926_s21 = sld [smem:[#allocation29_spill]]  ;;  %s755_s17 = scalar_lea.vmem [#allocation3], %s4922_s19 }
  0xc4   :  { %4923 = sst [smem:[#allocation26_spill]] %s3344_s27  ;;  %v756_v33 = vld [vmem:[%s755_s17] sm:$0x1] }
  0xc5   :  { %s3352_s10 = sld [smem:[#allocation14 + $0x282]]  ;;  %757 = vst.msk [vmem:[#allocation8 + $0x5] sm:$0x1] %vm193_vm1, %v756_v33 }
  0xc6   :  { %s4928_s20 = sld [smem:[#allocation31_spill]]  ;;  %s379_s5 = scalar_lea.vmem [#allocation3], %s4924_s9 }
  0xc7   :  { %4925 = sst [smem:[#allocation27_spill]] %s3348_s29  ;;  %v380_v34 = vld [vmem:[%s379_s5] sm:$0x1] }
  0xc8   :  { %s3356_s27 = sld [smem:[#allocation14 + $0x283]]  ;;  %382 = vst.msk [vmem:[#allocation4 + $0x10] sm:$0x1] %vm193_vm1, %v380_v34 }
  0xc9   :  { %s4930_s22 = sld [smem:[#allocation33_spill]]  ;;  %s393_s15 = scalar_lea.vmem [#allocation3], %s4926_s21 }
  0xca   :  { %s3360_s29 = sld [smem:[#allocation14 + $0x284]]  ;;  %v394_v35 = vld [vmem:[%s393_s15] sm:$0x1] }
  0xcb   :  { %4927 = sst [smem:[#allocation29_spill]] %s3352_s10  ;;  %395 = vst.msk [vmem:[#allocation4 + $0x11] sm:$0x1] %vm193_vm1, %v394_v35 }
  0xcc   :  { %s4932_s8 = sld [smem:[#allocation35_spill]]  ;;  %s404_s19 = scalar_lea.vmem [#allocation3], %s4928_s20  ;;  %v3398_v44 = vld [vmem:[#allocation8] sm:$0x3f] }
  0xcd   :  { %s3364_s10 = sld [smem:[#allocation14 + $0x285]]  ;;  %v405_v36 = vld [vmem:[%s404_s19] sm:$0x1]  ;;  %v1410_v46 = vperm.slane %v3398_v44, 0  ;;  %v1406_v47 = vrot.slane %v3398_v44, 2  ;;  %v1405_v2 = vrot.slane %v3398_v44, 1 }
  0xce   :  { %4929 = sst [smem:[#allocation31_spill]] %s3356_s27  ;;  %406 = vst.msk [vmem:[#allocation4 + $0x12] sm:$0x1] %vm193_vm1, %v405_v36  ;;  %v1408_v17 = vrot.slane %v3398_v44, 4  ;;  %v1407_v30 = vrot.slane %v3398_v44, 3 }
  0xcf   :  { %s4934_s18 = sld [smem:[#allocation37_spill]]  ;;  %s415_s9 = scalar_lea.vmem [#allocation3], %s4930_s22  ;;  %v1422_v51 = vmul.f32 %v1410_v46, %v3406_v49  ;;  %v1412_v56 = vperm.slane %v1406_v47, 0  ;;  %v1411_v10 = vperm.slane %v1405_v2, 0 }
  0xd0   :  { %4931 = sst [smem:[#allocation33_spill]] %s3360_s29  ;;  %v416_v37 = vld [vmem:[%s415_s9] sm:$0x1]  ;;  %v1414_v23 = vperm.slane %v1408_v17, 0  ;;  %v1413_v36 = vperm.slane %v1407_v30, 0 }
  0xd1   :  { %s3368_s27 = sld [smem:[#allocation14 + $0x286]]  ;;  %417 = vst.msk [vmem:[#allocation4 + $0x13] sm:$0x1] %vm193_vm1, %v416_v37  ;;  %v1428_v55 = vsel %vm128_vm0, %v1422_v51, 0.0 }
  0xd2   :  { %s4936_s17 = sld [smem:[#allocation39_spill]]  ;;  %s426_s21 = scalar_lea.vmem [#allocation3], %s4932_s8  ;;  %1429 = vadd.xlane.f32.xlu0 %v1428_v55 }
  0xd3   :  { %4933 = sst [smem:[#allocation35_spill]] %s3364_s10  ;;  %v427_v38 = vld [vmem:[%s426_s21] sm:$0x1] }
  0xd4   :  { %s3372_s29 = sld [smem:[#allocation14 + $0x287]]  ;;  %428 = vst.msk [vmem:[#allocation4 + $0x14] sm:$0x1] %vm193_vm1, %v427_v38 }
  0xd5   :  { %s4938_s5 = sld [smem:[#allocation41_spill]]  ;;  %s437_s20 = scalar_lea.vmem [#allocation3], %s4934_s18 }
  0xd6   :  { %s3376_s10 = sld [smem:[#allocation14 + $0x200]]  ;;  %v438_v39 = vld [vmem:[%s437_s20] sm:$0x1] }
  0xd7   :  { %4935 = sst [smem:[#allocation37_spill]] %s3368_s27  ;;  %439 = vst.msk [vmem:[#allocation4 + $0x15] sm:$0x1] %vm193_vm1, %v438_v39 }
  0xd8   :  { %s4940_s15 = sld [smem:[#allocation43_spill]]  ;;  %s448_s22 = scalar_lea.vmem [#allocation3], %s4936_s17 }
  0xd9   :  { %s3380_s27 = sld [smem:[#allocation14 + $0x201]]  ;;  %v449_v40 = vld [vmem:[%s448_s22] sm:$0x1] }
  0xda   :  { %4937 = sst [smem:[#allocation39_spill]] %s3372_s29  ;;  %450 = vst.msk [vmem:[#allocation4 + $0x16] sm:$0x1] %vm193_vm1, %v449_v40 }
  0xdb   :  { %s4942_s19 = sld [smem:[#allocation44_spill]]  ;;  %s459_s8 = scalar_lea.vmem [#allocation3], %s4938_s5 }
  0xdc   :  { %4939 = sst [smem:[#allocation41_spill]] %s3376_s10  ;;  %v460_v41 = vld [vmem:[%s459_s8] sm:$0x1] }
  0xdd   :  { %s3384_s29 = sld [smem:[#allocation14 + $0x202]]  ;;  %461 = vst.msk [vmem:[#allocation4 + $0x17] sm:$0x1] %vm193_vm1, %v460_v41 }
  0xde   :  { %s3388_s9 = sld [smem:[#allocation14 + $0x203]]  ;;  %s284_s18 = scalar_lea.vmem [#allocation3], %s4940_s15 }
  0xdf   :  { %4941 = sst [smem:[#allocation43_spill]] %s3380_s27  ;;  %v285_v43 = vld [vmem:[%s284_s18] sm:$0x1] }
  0xe0   :  { %s4945_s10 = sld [smem:[#allocation45_spill]]  ;;  %287 = vst.msk [vmem:[#allocation4 + $0x8] sm:$0x1] %vm193_vm1, %v285_v43 }
  0xe1   :  { %s3392_s21 = sld [smem:[#allocation14 + $0x204]]  ;;  %s298_s20 = scalar_lea.vmem [#allocation3], %s4942_s19 }
  0xe2   :  { %s4947_s27 = sld [smem:[#allocation46_spill]]  ;;  %v299_v45 = vld [vmem:[%s298_s20] sm:$0x1] }
  0xe3   :  { %4943 = sst [smem:[#allocation44_spill]] %s3384_s29  ;;  %300 = vst.msk [vmem:[#allocation4 + $0x9] sm:$0x1] %vm193_vm1, %v299_v45 }
  0xe4   :  { %4944 = sst [smem:[#allocation87_spill]] %s3388_s9  ;;  %v1130_v62 = vld [vmem:[#allocation4 + $0x10] sm:$0xff] }
  0xe5   :  { %s4948_s17 = sld [smem:[#allocation47_spill]]  ;;  %v1148_v0 = vadd.f32 %v1136_v58, %v1130_v62  ;;  %v1424_v1 = vmul.f32 %v1412_v56, %v1130_v62  ;;  %v1409_v58 = vrot.slane %v3398_v44, 5 }
  0xe6   :  { %s4949_s22 = sld [smem:[#allocation48_spill]]  ;;  %s309_s5 = scalar_lea.vmem [#allocation3], %s4945_s10 }
  0xe7   :  { %4946 = sst [smem:[#allocation45_spill]] %s3392_s21  ;;  %v310_v48 = vld [vmem:[%s309_s5] sm:$0x1]  ;;  %v1172_v5 = vmul.f32 %v1160_v60, %v1148_v0  ;;  %v1434_v6 = vsel %vm128_vm0, %v1424_v1, 0.0 }
  0xe8   :  { %s4950_s15 = sld [smem:[#allocation49_spill]]  ;;  %s320_s8 = scalar_lea.vmem [#allocation3], %s4947_s27  ;;  %311 = vst.msk [vmem:[#allocation4 + $0xa] sm:$0x1] %vm193_vm1, %v310_v48  ;;  %1435 = vadd.xlane.f32.xlu1 %v1434_v6 }
  0xe9   :  { %v321_v50 = vld [vmem:[%s320_s8] sm:$0x1]  ;;  %s4951_s19 = sld [smem:[#allocation50_spill]]  ;;  %v1182_v9 = vsel %vm128_vm0, %v1172_v5, 0.0 }
  0xea   :  { %s4952_s10 = sld [smem:[#allocation51_spill]]  ;;  %322 = vst.msk [vmem:[#allocation4 + $0xb] sm:$0x1] %vm193_vm1, %v321_v50  ;;  %1183 = vadd.xlane.f32.xlu2 %v1182_v9  ;;  %v1153_v9 = vrot.slane %v3395_v42, 1 }
  0xeb   :  { %s331_s18 = scalar_lea.vmem [#allocation3], %s4948_s17  ;;  %s3416_s5 = sld [smem:[#allocation14 + $0x205]] }
  0xec   :  { %v332_v53 = vld [vmem:[%s331_s18] sm:$0x1]  ;;  %s342_s20 = scalar_lea.vmem [#allocation3], %s4949_s22  ;;  %s4954_s27 = sld [smem:[#allocation52_spill]] }
  0xed   :  { %v343_v54 = vld [vmem:[%s342_s20] sm:$0x1]  ;;  %s4955_s17 = sld [smem:[#allocation53_spill]]  ;;  %333 = vst.msk [vmem:[#allocation4 + $0xc] sm:$0x1] %vm193_vm1, %v332_v53  ;;  %v1158_v53 = vperm.slane %v3395_v42, 0 }
  0xee   :  { %s353_s8 = scalar_lea.vmem [#allocation3], %s4950_s15  ;;  %s4956_s21 = sld [smem:[#allocation54_spill]]  ;;  %344 = vst.msk [vmem:[#allocation4 + $0xd] sm:$0x1] %vm193_vm1, %v343_v54 }
  0xef   :  { %v354_v57 = vld [vmem:[%s353_s8] sm:$0x1]  ;;  %s364_s18 = scalar_lea.vmem [#allocation3], %s4951_s19  ;;  %s4957_s20 = sld [smem:[#allocation55_spill]] }
  0xf0   :  { %v365_v59 = vld [vmem:[%s364_s18] sm:$0x1]  ;;  %s569_s22 = scalar_lea.vmem [#allocation3], %s4952_s10  ;;  %355 = vst.msk [vmem:[#allocation4 + $0xe] sm:$0x1] %vm193_vm1, %v354_v57  ;;  %s4958_s15 = sld [smem:[#allocation56_spill]] }
  0xf1   :  { %4953 = sst [smem:[#allocation46_spill]] %s3416_s5  ;;  %v570_v61 = vld [vmem:[%s569_s22] sm:$0x1]  ;;  %366 = vst.msk [vmem:[#allocation4 + $0xf] sm:$0x1] %vm193_vm1, %v365_v59 }
  0xf2   :  { %s583_s5 = scalar_lea.vmem [#allocation3], %s4954_s27  ;;  %572 = vst.msk [vmem:[#allocation4 + $0x20] sm:$0x1] %vm193_vm1, %v570_v61  ;;  %s4959_s10 = sld [smem:[#allocation57_spill]] }
  0xf3   :  { %v584_v63 = vld [vmem:[%s583_s5] sm:$0x1]  ;;  %s594_s19 = scalar_lea.vmem [#allocation3], %s4955_s17  ;;  %s3432_s18 = sld [smem:[#allocation14 + $0x206]] }
  0xf4   :  { %v595_v3 = vld [vmem:[%s594_s19] sm:$0x1]  ;;  %s605_s8 = scalar_lea.vmem [#allocation3], %s4956_s21  ;;  %s4961_s5 = sld [smem:[#allocation58_spill]]  ;;  %585 = vst.msk [vmem:[#allocation4 + $0x21] sm:$0x1] %vm193_vm1, %v584_v63 }
  0xf5   :  { %v606_v4 = vld [vmem:[%s605_s8] sm:$0x1]  ;;  %s616_s27 = scalar_lea.vmem [#allocation3], %s4957_s20  ;;  %s4962_s22 = sld [smem:[#allocation59_spill]]  ;;  %596 = vst.msk [vmem:[#allocation4 + $0x22] sm:$0x1] %vm193_vm1, %v595_v3 }
  0xf6   :  { %v617_v7 = vld [vmem:[%s616_s27] sm:$0x1]  ;;  %s627_s17 = scalar_lea.vmem [#allocation3], %s4958_s15  ;;  %s3439_s19 = sld [smem:[#allocation14 + $0x207]]  ;;  %607 = vst.msk [vmem:[#allocation4 + $0x23] sm:$0x1] %vm193_vm1, %v606_v4 }
  0xf7   :  { %v628_v8 = vld [vmem:[%s627_s17] sm:$0x1]  ;;  %s4963_s21 = sld [smem:[#allocation60_spill]]  ;;  %618 = vst.msk [vmem:[#allocation4 + $0x24] sm:$0x1] %vm193_vm1, %v617_v7  ;;  %v1415_v63 = vperm.slane %v1409_v58, 0 }
  0xf8   :  { %s638_s8 = scalar_lea.vmem [#allocation3], %s4959_s10  ;;  %s4964_s20 = sld [smem:[#allocation61_spill]]  ;;  %629 = vst.msk [vmem:[#allocation4 + $0x25] sm:$0x1] %vm193_vm1, %v628_v8  ;;  %v3452_v14 = vld [vmem:[#allocation4 + $0x8] sm:$0xff] }
  0xf9   :  { %4960 = sst [smem:[#allocation47_spill]] %s3432_s18  ;;  %v639_v11 = vld [vmem:[%s638_s8] sm:$0x1]  ;;  %v1423_v16 = vmul.f32 %v1411_v10, %v3452_v14 }
  0xfa   :  { %s649_s27 = scalar_lea.vmem [#allocation3], %s4961_s5  ;;  %s4965_s18 = sld [smem:[#allocation62_spill]]  ;;  %640 = vst.msk [vmem:[#allocation4 + $0x26] sm:$0x1] %vm193_vm1, %v639_v11 }
  0xfb   :  { %v650_v12 = vld [vmem:[%s649_s27] sm:$0x1]  ;;  %s3446_s9 = sld [smem:[#allocation17]]  ;;  %s474_s15 = scalar_lea.vmem [#allocation3], %s4962_s22  ;;  %v1431_v20 = vsel %vm128_vm0, %v1423_v16, 0.0 }
  0xfc   :  { %v475_v13 = vld [vmem:[%s474_s15] sm:$0x1]  ;;  %s3450_s17 = sld [smem:[#allocation17 + $0x1]]  ;;  %651 = vst.msk [vmem:[#allocation4 + $0x27] sm:$0x1] %vm193_vm1, %v650_v12  ;;  %s521_s27 = scalar_lea.vmem [#allocation3], %s3226_s0  ;;  %1432 = vadd.xlane.f32.xlu0 %v1431_v20 }
  0xfd   :  { %s488_s10 = scalar_lea.vmem [#allocation3], %s4963_s21  ;;  %477 = vst.msk [vmem:[#allocation4 + $0x18] sm:$0x1] %vm193_vm1, %v475_v13  ;;  %s3462_s8 = sld [smem:[#allocation12 + $0x100]]  ;;  %v522_v21 = vld [vmem:[%s521_s27] sm:$0x1] }
  0xfe   :  { %v489_v15 = vld [vmem:[%s488_s10] sm:$0x1]  ;;  %s499_s5 = scalar_lea.vmem [#allocation3], %s4964_s20  ;;  %s4969_s21 = sld [smem:[#allocation63_spill]]  ;;  %523 = vst.msk [vmem:[#allocation4 + $0x1c] sm:$0x1] %vm193_vm1, %v522_v21 }
  0xff   :  { %v500_v18 = vld [vmem:[%s499_s5] sm:$0x1]  ;;  %490 = vst.msk [vmem:[#allocation4 + $0x19] sm:$0x1] %vm193_vm1, %v489_v15  ;;  %s532_s20 = scalar_lea.vmem [#allocation3], %s3228_s11  ;;  %s4970_s15 = sld [smem:[#allocation67_spill]] }
 0x100   :  { %s510_s22 = scalar_lea.vmem [#allocation3], %s4965_s18  ;;  %501 = vst.msk [vmem:[#allocation4 + $0x1a] sm:$0x1] %vm193_vm1, %v500_v18  ;;  %v533_v22 = vld [vmem:[%s532_s20] sm:$0x1]  ;;  %s196_s5 = scalar_lea.vmem %s4774_s7, %s3242_s28  ;;  %v1159_v15 = vperm.slane %v1153_v9, 0 }
 0x101   :  { %4966 = sst [smem:[#allocation48_spill]] %s3446_s9  ;;  %v511_v19 = vld [vmem:[%s510_s22] sm:$0x1]  ;;  %s207_s9 = scalar_lea.vmem %s4774_s7, %s3244_s13  ;;  %534 = vst.msk [vmem:[#allocation4 + $0x1d] sm:$0x1] %vm193_vm1, %v533_v22  ;;  %v1155_v22 = vrot.slane %v3395_v42, 3 }
 0x102   :  { %4967 = sst [smem:[#allocation49_spill]] %s3450_s17  ;;  %512 = vst.msk [vmem:[#allocation4 + $0x1b] sm:$0x1] %vm193_vm1, %v511_v19  ;;  %s543_s17 = scalar_lea.vmem [#allocation3], %s3234_s24  ;;  %v197_v26 = vld [vmem:[%s196_s5] sm:$0x1] }
 0x103   :  { %4968 = sst [smem:[#allocation50_spill]] %s3462_s8  ;;  %v544_v24 = vld [vmem:[%s543_s17] sm:$0x1]  ;;  %s218_s18 = scalar_lea.vmem %s4774_s7, %s3246_s26  ;;  %v3496_v27 = vld [vmem:[#allocation4 + $0x20] sm:$0xff]  ;;  %198 = vst.msk [vmem:[#allocation6] sm:$0x1] %vm193_vm1, %v197_v26 }
 0x104   :  { %s3473_s22 = sld [smem:[#allocation12 + $0x101]]  ;;  %s554_s11 = scalar_lea.vmem [#allocation3], %s4969_s21  ;;  %545 = vst.msk [vmem:[#allocation4 + $0x1e] sm:$0x1] %vm193_vm1, %v544_v24  ;;  %v208_v28 = vld [vmem:[%s207_s9] sm:$0x1]  ;;  %v1426_v29 = vmul.f32 %v1414_v23, %v3496_v27 }
 0x105   :  { %s4972_s8 = sld [smem:[#allocation68_spill]]  ;;  %v555_v25 = vld [vmem:[%s554_s11] sm:$0x1]  ;;  %s229_s0 = scalar_lea.vmem %s4774_s7, %s4970_s15  ;;  %209 = vst.msk [vmem:[#allocation6 + $0x1] sm:$0x1] %vm193_vm1, %v208_v28 }
 0x106   :  { %s3487_s28 = sld [smem:[#allocation12 + $0x102]]  ;;  %556 = vst.msk [vmem:[#allocation4 + $0x1f] sm:$0x1] %vm193_vm1, %v555_v25  ;;  %v219_v31 = vld [vmem:[%s218_s18] sm:$0x1]  ;;  %s251_s17 = scalar_lea.vmem %s4774_s7, %s3252_s4  ;;  %v1440_v33 = vsel %vm128_vm0, %v1426_v29, 0.0 }
 0x107   :  { %s3494_s27 = sld [smem:[#allocation12 + $0x103]]  ;;  %v230_v32 = vld [vmem:[%s229_s0] sm:$0x1]  ;;  %1441 = vadd.xlane.f32.xlu2 %v1440_v33  ;;  %220 = vst.msk [vmem:[#allocation6 + $0x2] sm:$0x1] %vm193_vm1, %v219_v31  ;;  %s302_s4 = scalar_lea.vmem %s4774_s7, %s3296_s23  ;;  %v1161_v29 = vperm.slane %v1155_v22, 0 }
 0x108   :  { %s4974_s21 = sld [smem:[#allocation71_spill]]  ;;  %v252_v35 = vld [vmem:[%s251_s17] sm:$0x1]  ;;  %231 = vst.msk [vmem:[#allocation6 + $0x3] sm:$0x1] %vm193_vm1, %v230_v32 }
 0x109   :  { %s4975_s11 = sld [smem:[#allocation72_spill]]  ;;  %253 = vst.msk [vmem:[#allocation6 + $0x5] sm:$0x1] %vm193_vm1, %v252_v35  ;;  %v303_v56 = vld [vmem:[%s302_s4] sm:$0x1] }
 0x10a   :  { %4971 = sst [smem:[#allocation51_spill]] %s3473_s22  ;;  %304 = vst.msk [vmem:[#allocation6 + $0x9] sm:$0x1] %vm193_vm1, %v303_v56 }
 0x10b   :  { %s4973_s22 = sld [smem:[#allocation70_spill]]  ;;  %s240_s10 = scalar_lea.vmem %s4774_s7, %s4972_s8 }
 0x10c   :  { %s3515_s20 = sld [smem:[#allocation12 + $0x104]]  ;;  %v241_v34 = vld [vmem:[%s240_s10] sm:$0x1] }
 0x10d   :  { %s4976_s24 = sld [smem:[#allocation73_spill]]  ;;  %242 = vst.msk [vmem:[#allocation6 + $0x4] sm:$0x1] %vm193_vm1, %v241_v34  ;;  %v3532_v40 = vld [vmem:[#allocation4 + $0x18] sm:$0xff] }
 0x10e   :  { %s273_s5 = scalar_lea.vmem %s4774_s7, %s4974_s21  ;;  %s3524_s0 = sld [smem:[#allocation12 + $0x105]]  ;;  %v1425_v43 = vmul.f32 %v1413_v36, %v3532_v40 }
 0x10f   :  { %v274_v38 = vld [vmem:[%s273_s5] sm:$0x1]  ;;  %s664_s8 = scalar_lea.vmem [#allocation3], %s4975_s11  ;;  %s3530_s15 = sld [smem:[#allocation12 + $0x106]] }
 0x110   :  { %v665_v39 = vld [vmem:[%s664_s8] sm:$0x1]  ;;  %275 = vst.msk [vmem:[#allocation6 + $0x7] sm:$0x1] %vm193_vm1, %v274_v38  ;;  %s3539_s17 = sld [smem:[#allocation12 + $0x107]]  ;;  %s700_s11 = scalar_lea.vmem [#allocation3], %s3275_s1 }
 0x111   :  { %s262_s26 = scalar_lea.vmem %s4774_s7, %s4973_s22  ;;  %667 = vst.msk [vmem:[#allocation4 + $0x28] sm:$0x1] %vm193_vm1, %v665_v39  ;;  %s4977_s9 = sld [smem:[#allocation74_spill]]  ;;  %v701_v46 = vld [vmem:[%s700_s11] sm:$0x1]  ;;  %v1437_v47 = vsel %vm128_vm0, %v1425_v43, 0.0 }
 0x112   :  { %v263_v37 = vld [vmem:[%s262_s26] sm:$0x1]  ;;  %s689_s26 = scalar_lea.vmem [#allocation3], %s3272_s25  ;;  %s4978_s18 = sld [smem:[#allocation78_spill]]  ;;  %1438 = vadd.xlane.f32.xlu1 %v1437_v47  ;;  %702 = vst.msk [vmem:[#allocation4 + $0x2b] sm:$0x1] %vm193_vm1, %v701_v46 }
 0x113   :  { %264 = vst.msk [vmem:[#allocation6 + $0x6] sm:$0x1] %vm193_vm1, %v263_v37  ;;  %s678_s10 = scalar_lea.vmem [#allocation3], %s4976_s24  ;;  %v690_v45 = vld [vmem:[%s689_s26] sm:$0x1]  ;;  %s3543_s5 = sld [smem:[#allocation17 + $0x2]] }
 0x114   :  { %v679_v41 = vld [vmem:[%s678_s10] sm:$0x1]  ;;  %s4980_s24 = sld [smem:[#allocation75_spill]]  ;;  %s711_s8 = scalar_lea.vmem [#allocation3], %s3281_s12  ;;  %691 = vst.msk [vmem:[#allocation4 + $0x2a] sm:$0x1] %vm193_vm1, %v690_v45 }
 0x115   :  { %680 = vst.msk [vmem:[#allocation4 + $0x29] sm:$0x1] %vm193_vm1, %v679_v41  ;;  %v712_v48 = vld [vmem:[%s711_s8] sm:$0x1]  ;;  %s4981_s26 = sld [smem:[#allocation79_spill]]  ;;  %s289_s21 = scalar_lea.vmem %s4774_s7, %s3293_s30  ;;  %v1157_v37 = vrot.slane %v3395_v42, 5 }
 0x116   :  { %s722_s1 = scalar_lea.vmem [#allocation3], %s3284_s6  ;;  %s3558_s13 = sld [smem:[#allocation17 + $0x3]]  ;;  %713 = vst.msk [vmem:[#allocation4 + $0x2c] sm:$0x1] %vm193_vm1, %v712_v48  ;;  %v290_v54 = vld [vmem:[%s289_s21] sm:$0x1] }
 0x117   :  { %v723_v50 = vld [vmem:[%s722_s1] sm:$0x1]  ;;  %s733_s12 = scalar_lea.vmem [#allocation3], %s4977_s9  ;;  %s4983_s8 = sld [smem:[#allocation81_spill]]  ;;  %292 = vst.msk [vmem:[#allocation6 + $0x8] sm:$0x1] %vm193_vm1, %v290_v54 }
 0x118   :  { %v734_v51 = vld [vmem:[%s733_s12] sm:$0x1]  ;;  %s313_s30 = scalar_lea.vmem %s4774_s7, %s4978_s18  ;;  %s4984_s1 = sld [smem:[#allocation82_spill]]  ;;  %724 = vst.msk [vmem:[#allocation4 + $0x2d] sm:$0x1] %vm193_vm1, %v723_v50  ;;  %v1163_v45 = vperm.slane %v1157_v37, 0 }
 0x119   :  { %4979 = sst [smem:[#allocation52_spill]] %s3543_s5  ;;  %s335_s10 = scalar_lea.vmem %s4774_s7, %s3303_s14  ;;  %735 = vst.msk [vmem:[#allocation4 + $0x2e] sm:$0x1] %vm193_vm1, %v734_v51  ;;  %v314_v59 = vld [vmem:[%s313_s30] sm:$0x1]  ;;  %v1156_v54 = vrot.slane %v3395_v42, 4 }
 0x11a   :  { %s3566_s5 = sld [smem:[#allocation17 + $0x4]]  ;;  %s744_s6 = scalar_lea.vmem [#allocation3], %s4980_s24  ;;  %v1134_v55 = vld [vmem:[#allocation6] sm:$0xff]  ;;  %v336_v44 = vld [vmem:[%s335_s10] sm:$0x1] }
 0x11b   :  { %v745_v52 = vld [vmem:[%s744_s6] sm:$0x1]  ;;  %s324_s23 = scalar_lea.vmem %s4774_s7, %s4981_s26  ;;  %s4985_s9 = sld [smem:[#allocation83_spill]]  ;;  %v1146_v57 = vadd.f32 %v1134_v55, %v3406_v49  ;;  %315 = vst.msk [vmem:[#allocation6 + $0xa] sm:$0x1] %vm193_vm1, %v314_v59  ;;  %v1162_v59 = vperm.slane %v1156_v54, 0 }
 0x11c   :  { %4982 = sst [smem:[#allocation53_spill]] %s3558_s13  ;;  %746 = vst.msk [vmem:[#allocation4 + $0x2f] sm:$0x1] %vm193_vm1, %v745_v52  ;;  %v325_v60 = vld [vmem:[%s324_s23] sm:$0x1]  ;;  %s514_s14 = scalar_lea.vmem %s4774_s7, %s3324_s2 }
 0x11d   :  { %s3574_s13 = sld [smem:[#allocation17 + $0x5]]  ;;  %s346_s11 = scalar_lea.vmem %s4774_s7, %s4983_s8  ;;  %v1170_v49 = vmul.f32 %v1158_v53, %v1146_v57  ;;  %326 = vst.msk [vmem:[#allocation6 + $0xb] sm:$0x1] %vm193_vm1, %v325_v60  ;;  %v515_v7 = vld [vmem:[%s514_s14] sm:$0x1] }
 0x11e   :  { %s4986_s22 = sld [smem:[#allocation84_spill]]  ;;  %s357_s12 = scalar_lea.vmem %s4774_s7, %s4984_s1  ;;  %v347_v61 = vld [vmem:[%s346_s11] sm:$0x1]  ;;  %337 = vst.msk [vmem:[#allocation6 + $0xc] sm:$0x1] %vm193_vm1, %v336_v44 }
 0x11f   :  { %s4987_s25 = sld [smem:[#allocation85_spill]]  ;;  %v1176_v62 = vsel %vm128_vm0, %v1170_v49, 0.0  ;;  %v358_v0 = vld [vmem:[%s357_s12] sm:$0x1]  ;;  %348 = vst.msk [vmem:[#allocation6 + $0xd] sm:$0x1] %vm193_vm1, %v347_v61 }
 0x120   :  { %s3599_s6 = sld [smem:[#allocation17 + $0x6]]  ;;  %1177 = vadd.xlane.f32.xlu0 %v1176_v62  ;;  %359 = vst.msk [vmem:[#allocation6 + $0xe] sm:$0x1] %vm193_vm1, %v358_v0 }
 0x121   :  { %s368_s24 = scalar_lea.vmem %s4774_s7, %s4985_s9  ;;  %s3607_s23 = sld [smem:[#allocation17 + $0x7]]  ;;  %516 = vst.msk [vmem:[#allocation6 + $0x1b] sm:$0x1] %vm193_vm1, %v515_v7 }
 0x122   :  { %s4988_s11 = sld [smem:[#allocation23_spill]]  ;;  %v369_v1 = vld [vmem:[%s368_s24] sm:$0x1] }
 0x123   :  { %s3620_s9 = sld [smem:[#allocation12]]  ;;  %v3629_v3 = vld [vmem:[#allocation4 + $0x28] sm:$0xff]  ;;  %370 = vst.msk [vmem:[#allocation6 + $0xf] sm:$0x1] %vm193_vm1, %v369_v1 }
 0x124   :  { %s479_s21 = scalar_lea.vmem %s4774_s7, %s4986_s22  ;;  %s503_s22 = scalar_lea.vmem %s4774_s7, %s3320_s16  ;;  %v1427_v5 = vmul.f32 %v1415_v63, %v3629_v3 }
 0x125   :  { %s492_s10 = scalar_lea.vmem %s4774_s7, %s4987_s25  ;;  %s4990_s1 = sld [smem:[#allocation24_spill]]  ;;  %v480_v2 = vld [vmem:[%s479_s21] sm:$0x1] }
 0x126   :  { %s3627_s4 = sld [smem:[#allocation12 + $0x1]]  ;;  %v493_v4 = vld [vmem:[%s492_s10] sm:$0x1]  ;;  %s525_s16 = scalar_lea.vmem %s4774_s7, %s3328_s3  ;;  %482 = vst.msk [vmem:[#allocation6 + $0x18] sm:$0x1] %vm193_vm1, %v480_v2  ;;  %v1443_v8 = vsel %vm128_vm0, %v1427_v5, 0.0 }
 0x127   :  { %s4992_s24 = sld [smem:[#allocation25_spill]]  ;;  %v504_v6 = vld [vmem:[%s503_s22] sm:$0x1]  ;;  %494 = vst.msk [vmem:[#allocation6 + $0x19] sm:$0x1] %vm193_vm1, %v493_v4  ;;  %1444 = vadd.xlane.f32.xlu2 %v1443_v8 }
 0x128   :  { %s4993_s21 = sld [smem:[#allocation26_spill]]  ;;  %s536_s2 = scalar_lea.vmem %s4774_s7, %s4988_s11  ;;  %v526_v10 = vld [vmem:[%s525_s16] sm:$0x1]  ;;  %505 = vst.msk [vmem:[#allocation6 + $0x1a] sm:$0x1] %vm193_vm1, %v504_v6 }
 0x129   :  { %4989 = sst [smem:[#allocation54_spill]] %s3620_s9  ;;  %v537_v11 = vld [vmem:[%s536_s2] sm:$0x1]  ;;  %527 = vst.msk [vmem:[#allocation6 + $0x1c] sm:$0x1] %vm193_vm1, %v526_v10 }
 0x12a   :  { %s3642_s25 = sld [smem:[#allocation12 + $0x2]]  ;;  %538 = vst.msk [vmem:[#allocation6 + $0x1d] sm:$0x1] %vm193_vm1, %v537_v11  ;;  %v1135_v17 = vld [vmem:[#allocation6 + $0x8] sm:$0xff] }
 0x12b   :  { %s4995_s18 = sld [smem:[#allocation27_spill]]  ;;  %s547_s30 = scalar_lea.vmem %s4774_s7, %s4990_s1  ;;  %v1147_v19 = vadd.f32 %v1135_v17, %v3452_v14 }
 0x12c   :  { %4991 = sst [smem:[#allocation55_spill]] %s3627_s4  ;;  %v548_v12 = vld [vmem:[%s547_s30] sm:$0x1] }
 0x12d   :  { %s3649_s26 = sld [smem:[#allocation12 + $0x3]]  ;;  %s558_s11 = scalar_lea.vmem %s4774_s7, %s4992_s24  ;;  %549 = vst.msk [vmem:[#allocation6 + $0x1e] sm:$0x1] %vm193_vm1, %v548_v12  ;;  %v1171_v14 = vmul.f32 %v1159_v15, %v1147_v19 }
 0x12e   :  { %s4997_s22 = sld [smem:[#allocation29_spill]]  ;;  %s669_s1 = scalar_lea.vmem %s4774_s7, %s4993_s21  ;;  %v559_v13 = vld [vmem:[%s558_s11] sm:$0x1] }
 0x12f   :  { %s4998_s14 = sld [smem:[#allocation31_spill]]  ;;  %v670_v16 = vld [vmem:[%s669_s1] sm:$0x1]  ;;  %560 = vst.msk [vmem:[#allocation6 + $0x1f] sm:$0x1] %vm193_vm1, %v559_v13  ;;  %v1179_v25 = vsel %vm128_vm0, %v1171_v14, 0.0 }
 0x130   :  { %4994 = sst [smem:[#allocation56_spill]] %s3642_s25  ;;  %672 = vst.msk [vmem:[#allocation6 + $0x28] sm:$0x1] %vm193_vm1, %v670_v16  ;;  %1180 = vadd.xlane.f32.xlu1 %v1179_v25 }
 0x131   :  { %s3663_s3 = sld [smem:[#allocation12 + $0x4]]  ;;  %s682_s8 = scalar_lea.vmem %s4774_s7, %s4995_s18 }
 0x132   :  { %s3670_s12 = sld [smem:[#allocation12 + $0x5]]  ;;  %v683_v18 = vld [vmem:[%s682_s8] sm:$0x1] }
 0x133   :  { %4996 = sst [smem:[#allocation57_spill]] %s3649_s26  ;;  %684 = vst.msk [vmem:[#allocation6 + $0x29] sm:$0x1] %vm193_vm1, %v683_v18 }
 0x134   :  { %s4999_s26 = sld [smem:[#allocation33_spill]]  ;;  %s693_s4 = scalar_lea.vmem %s4774_s7, %s4997_s22 }
 0x135   :  { %s5001_s24 = sld [smem:[#allocation35_spill]]  ;;  %s704_s16 = scalar_lea.vmem %s4774_s7, %s4998_s14  ;;  %v694_v20 = vld [vmem:[%s693_s4] sm:$0x1] }
 0x136   :  { %s3677_s10 = sld [smem:[#allocation12 + $0x6]]  ;;  %v705_v21 = vld [vmem:[%s704_s16] sm:$0x1]  ;;  %695 = vst.msk [vmem:[#allocation6 + $0x2a] sm:$0x1] %vm193_vm1, %v694_v20  ;;  %v1137_v31 = vld [vmem:[#allocation6 + $0x18] sm:$0xff] }
 0x137   :  { %s5003_s21 = sld [smem:[#allocation37_spill]]  ;;  %706 = vst.msk [vmem:[#allocation6 + $0x2b] sm:$0x1] %vm193_vm1, %v705_v21  ;;  %v1149_v33 = vadd.f32 %v1137_v31, %v3532_v40 }
 0x138   :  { %5000 = sst [smem:[#allocation58_spill]] %s3670_s12 }
 0x139   :  { %s5004_s18 = sld [smem:[#allocation39_spill]]  ;;  %v1173_v36 = vmul.f32 %v1161_v29, %v1149_v33 }
 0x13a   :  { %s715_s9 = scalar_lea.vmem %s4774_s7, %s4999_s26  ;;  %s5005_s2 = sld [smem:[#allocation41_spill]] }
 0x13b   :  { %s726_s30 = scalar_lea.vmem %s4774_s7, %s5001_s24  ;;  %s3695_s25 = sld [smem:[#allocation12 + $0x7]]  ;;  %v716_v23 = vld [vmem:[%s715_s9] sm:$0x1]  ;;  %v1185_v40 = vsel %vm128_vm0, %v1173_v36, 0.0 }
 0x13c   :  { %5002 = sst [smem:[#allocation59_spill]] %s3677_s10  ;;  %v727_v24 = vld [vmem:[%s726_s30] sm:$0x1]  ;;  %717 = vst.msk [vmem:[#allocation6 + $0x2c] sm:$0x1] %vm193_vm1, %v716_v23  ;;  %s598_s10 = scalar_lea.vmem %s4774_s7, %s3384_s29  ;;  %1186 = vadd.xlane.f32.xlu0 %v1185_v40 }
 0x13d   :  { %s5006_s14 = sld [smem:[#allocation43_spill]]  ;;  %s737_s12 = scalar_lea.vmem %s4774_s7, %s5003_s21  ;;  %728 = vst.msk [vmem:[#allocation6 + $0x2d] sm:$0x1] %vm193_vm1, %v727_v24  ;;  %v599_v34 = vld [vmem:[%s598_s10] sm:$0x1] }
 0x13e   :  { %s3702_s11 = sld [smem:[#allocation12 + $0x80]]  ;;  %v738_v26 = vld [vmem:[%s737_s12] sm:$0x1]  ;;  %600 = vst.msk [vmem:[#allocation6 + $0x22] sm:$0x1] %vm193_vm1, %v599_v34 }
 0x13f   :  { %s748_s1 = scalar_lea.vmem %s4774_s7, %s5004_s18  ;;  %s5008_s16 = sld [smem:[#allocation87_spill]]  ;;  %739 = vst.msk [vmem:[#allocation6 + $0x2e] sm:$0x1] %vm193_vm1, %v738_v26 }
 0x140   :  { %s574_s8 = scalar_lea.vmem %s4774_s7, %s5005_s2  ;;  %s3715_s21 = sld [smem:[#allocation12 + $0x81]]  ;;  %v749_v28 = vld [vmem:[%s748_s1] sm:$0x1] }
 0x141   :  { %s5010_s26 = sld [smem:[#allocation45_spill]]  ;;  %v575_v30 = vld [vmem:[%s574_s8] sm:$0x1]  ;;  %750 = vst.msk [vmem:[#allocation6 + $0x2f] sm:$0x1] %vm193_vm1, %v749_v28  ;;  %s653_s8 = scalar_lea.vmem %s4774_s7, %s3439_s19 }
 0x142   :  { %s5011_s4 = sld [smem:[#allocation46_spill]]  ;;  %577 = vst.msk [vmem:[#allocation6 + $0x20] sm:$0x1] %vm193_vm1, %v575_v30  ;;  %v654_v43 = vld [vmem:[%s653_s8] sm:$0x1]  ;;  %s841_s8 = scalar_lea.vmem [#allocation2], %s3487_s28 }
 0x143   :  { %s587_s22 = scalar_lea.vmem %s4774_s7, %s5006_s14  ;;  %s3728_s2 = sld [smem:[#allocation12 + $0x82]]  ;;  %655 = vst.msk [vmem:[#allocation6 + $0x27] sm:$0x1] %vm193_vm1, %v654_v43  ;;  %v842_v55 = vld [vmem:[%s841_s8] sm:$0x1] }
 0x144   :  { %5007 = sst [smem:[#allocation60_spill]] %s3702_s11  ;;  %v588_v32 = vld [vmem:[%s587_s22] sm:$0x1]  ;;  %843 = vst.msk [vmem:[#allocation5 + $0x12] sm:$0x1] %vm193_vm1, %v842_v55  ;;  %s853_s28 = scalar_lea.vmem [#allocation2], %s3524_s0 }
 0x145   :  { %s5012_s18 = sld [smem:[#allocation47_spill]]  ;;  %s609_s11 = scalar_lea.vmem %s4774_s7, %s5008_s16  ;;  %589 = vst.msk [vmem:[#allocation6 + $0x21] sm:$0x1] %vm193_vm1, %v588_v32  ;;  %v854_v42 = vld [vmem:[%s853_s28] sm:$0x1] }
 0x146   :  { %5009 = sst [smem:[#allocation61_spill]] %s3715_s21  ;;  %v610_v35 = vld [vmem:[%s609_s11] sm:$0x1]  ;;  %855 = vst.msk [vmem:[#allocation5 + $0x15] sm:$0x1] %vm193_vm1, %v854_v42  ;;  %s1013_s28 = scalar_lea.vmem [#allocation2], %s3599_s6 }
 0x147   :  { %s620_s30 = scalar_lea.vmem %s4774_s7, %s5010_s26  ;;  %s3746_s21 = sld [smem:[#allocation12 + $0x83]]  ;;  %611 = vst.msk [vmem:[#allocation6 + $0x23] sm:$0x1] %vm193_vm1, %v610_v35 }
 0x148   :  { %s631_s29 = scalar_lea.vmem %s4774_s7, %s5011_s4  ;;  %s3753_s1 = sld [smem:[#allocation12 + $0x84]]  ;;  %v621_v38 = vld [vmem:[%s620_s30] sm:$0x1] }
 0x149   :  { %s5013_s10 = sld [smem:[#allocation48_spill]]  ;;  %v632_v39 = vld [vmem:[%s631_s29] sm:$0x1]  ;;  %622 = vst.msk [vmem:[#allocation6 + $0x24] sm:$0x1] %vm193_vm1, %v621_v38 }
 0x14a   :  { %s5014_s11 = sld [smem:[#allocation49_spill]]  ;;  %633 = vst.msk [vmem:[#allocation6 + $0x25] sm:$0x1] %vm193_vm1, %v632_v39  ;;  %v1139_v47 = vld [vmem:[#allocation6 + $0x28] sm:$0xff] }
 0x14b   :  { %s642_s16 = scalar_lea.vmem %s4774_s7, %s5012_s18  ;;  %s3762_s4 = sld [smem:[#allocation12 + $0x85]]  ;;  %v1151_v50 = vadd.f32 %v1139_v47, %v3629_v3  ;;  %v1014_v3 = vld [vmem:[%s1013_s28] sm:$0x1] }
 0x14c   :  { %s5015_s12 = sld [smem:[#allocation50_spill]]  ;;  %v643_v41 = vld [vmem:[%s642_s16] sm:$0x1]  ;;  %1015 = vst.msk [vmem:[#allocation9 + $0x6] sm:$0x1] %vm193_vm1, %v1014_v3 }
 0x14d   :  { %s5016_s30 = sld [smem:[#allocation51_spill]]  ;;  %644 = vst.msk [vmem:[#allocation6 + $0x26] sm:$0x1] %vm193_vm1, %v643_v41  ;;  %v1175_v53 = vmul.f32 %v1163_v45, %v1151_v50 }
 0x14e   :  { %s3767_s22 = sld [smem:[#allocation12 + $0x86]] }
 0x14f   :  { %s791_s7 = scalar_lea.vmem [#allocation2], %s5013_s10  ;;  %s3776_s9 = sld [smem:[#allocation12 + $0x87]]  ;;  %v1191_v57 = vsel %vm128_vm0, %v1175_v53, 0.0 }
 0x150   :  { %v792_v46 = vld [vmem:[%s791_s7] sm:$0x1]  ;;  %s828_s29 = scalar_lea.vmem [#allocation2], %s5014_s11  ;;  %s3780_s24 = sld [smem:[#allocation12 + $0x200]]  ;;  %1192 = vadd.xlane.f32.xlu2 %v1191_v57 }
 0x151   :  { %v829_v48 = vld [vmem:[%s828_s29] sm:$0x1]  ;;  %793 = vst.msk [vmem:[#allocation9] sm:$0x1] %vm193_vm1, %v792_v46  ;;  %s845_s11 = scalar_lea.vmem [#allocation2], %s3494_s27  ;;  %s5017_s7 = sld [smem:[#allocation52_spill]] }
 0x152   :  { %s832_s16 = scalar_lea.vmem [#allocation2], %s5015_s12  ;;  %830 = vst.msk [vmem:[#allocation9 + $0x1] sm:$0x1] %vm193_vm1, %v829_v48  ;;  %v846_v56 = vld [vmem:[%s845_s11] sm:$0x1]  ;;  %s3787_s12 = sld [smem:[#allocation12 + $0x201]] }
 0x153   :  { %v833_v51 = vld [vmem:[%s832_s16] sm:$0x1]  ;;  %s837_s10 = scalar_lea.vmem [#allocation2], %s5016_s30  ;;  %s849_s30 = scalar_lea.vmem [#allocation2], %s3515_s20  ;;  %847 = vst.msk [vmem:[#allocation5 + $0x13] sm:$0x1] %vm193_vm1, %v846_v56 }
 0x154   :  { %v838_v52 = vld [vmem:[%s837_s10] sm:$0x1]  ;;  %835 = vst.msk [vmem:[#allocation5 + $0x10] sm:$0x1] %vm193_vm1, %v833_v51  ;;  %s5018_s29 = sld [smem:[#allocation53_spill]]  ;;  %s857_s27 = scalar_lea.vmem [#allocation2], %s3530_s15 }
 0x155   :  { %839 = vst.msk [vmem:[#allocation5 + $0x11] sm:$0x1] %vm193_vm1, %v838_v52  ;;  %v850_v58 = vld [vmem:[%s849_s30] sm:$0x1]  ;;  %s3794_s16 = sld [smem:[#allocation12 + $0x202]]  ;;  %v1138_v49 = vld [vmem:[#allocation6 + $0x20] sm:$0xff] }
 0x156   :  { %v858_v60 = vld [vmem:[%s857_s27] sm:$0x1]  ;;  %851 = vst.msk [vmem:[#allocation5 + $0x14] sm:$0x1] %vm193_vm1, %v850_v58  ;;  %s861_s20 = scalar_lea.vmem [#allocation2], %s3539_s17  ;;  %v1150_v61 = vadd.f32 %v1138_v49, %v3496_v27  ;;  %s3803_s10 = sld [smem:[#allocation12 + $0x203]] }
 0x157   :  { %v862_v44 = vld [vmem:[%s861_s20] sm:$0x1]  ;;  %s865_s0 = scalar_lea.vmem [#allocation2], %s5017_s7  ;;  %859 = vst.msk [vmem:[#allocation5 + $0x16] sm:$0x1] %vm193_vm1, %v858_v60  ;;  %s5019_s8 = sld [smem:[#allocation54_spill]] }
 0x158   :  { %v866_v62 = vld [vmem:[%s865_s0] sm:$0x1]  ;;  %v1174_v0 = vmul.f32 %v1162_v59, %v1150_v61  ;;  %863 = vst.msk [vmem:[#allocation5 + $0x17] sm:$0x1] %vm193_vm1, %v862_v44  ;;  %s939_s17 = scalar_lea.vmem [#allocation2], %s3566_s5  ;;  %s5020_s11 = sld [smem:[#allocation55_spill]] }
 0x159   :  { %v940_v1 = vld [vmem:[%s939_s17] sm:$0x1]  ;;  %867 = vst.msk [vmem:[#allocation9 + $0x2] sm:$0x1] %vm193_vm1, %v866_v62  ;;  %s976_s30 = scalar_lea.vmem [#allocation2], %s3574_s13  ;;  %s5021_s7 = sld [smem:[#allocation56_spill]] }
 0x15a   :  { %s902_s15 = scalar_lea.vmem [#allocation2], %s5018_s29  ;;  %v977_v27 = vld [vmem:[%s976_s30] sm:$0x1]  ;;  %v1188_v2 = vsel %vm128_vm0, %v1174_v0, 0.0  ;;  %s5022_s29 = sld [smem:[#allocation57_spill]] }
 0x15b   :  { %v903_v63 = vld [vmem:[%s902_s15] sm:$0x1]  ;;  %1189 = vadd.xlane.f32.xlu1 %v1188_v2  ;;  %941 = vst.msk [vmem:[#allocation9 + $0x4] sm:$0x1] %vm193_vm1, %v940_v1  ;;  %s1050_s27 = scalar_lea.vmem [#allocation2], %s3607_s23  ;;  %s3816_s5 = sld [smem:[#allocation12 + $0x204]] }
 0x15c   :  { %904 = vst.msk [vmem:[#allocation9 + $0x3] sm:$0x1] %vm193_vm1, %v903_v63  ;;  %v1051_v4 = vld [vmem:[%s1050_s27] sm:$0x1]  ;;  %s5023_s20 = sld [smem:[#allocation58_spill]] }
 0x15d   :  { %978 = vst.msk [vmem:[#allocation9 + $0x5] sm:$0x1] %vm193_vm1, %v977_v27  ;;  %s759_s13 = scalar_lea.vmem [#allocation2], %s5019_s8  ;;  %s3822_s6 = sld [smem:[#allocation12 + $0x205]] }
 0x15e   :  { %v760_v5 = vld [vmem:[%s759_s13] sm:$0x1]  ;;  %s763_s0 = scalar_lea.vmem [#allocation2], %s5020_s11  ;;  %1052 = vst.msk [vmem:[#allocation9 + $0x7] sm:$0x1] %vm193_vm1, %v1051_v4  ;;  %s5024_s15 = sld [smem:[#allocation59_spill]] }
 0x15f   :  { %v764_v6 = vld [vmem:[%s763_s0] sm:$0x1]  ;;  %s767_s17 = scalar_lea.vmem [#allocation2], %s5021_s7  ;;  %761 = vst.msk [vmem:[#allocation5] sm:$0x1] %vm193_vm1, %v760_v5  ;;  %s5025_s30 = sld [smem:[#allocation60_spill]] }
 0x160   :  { %v768_v7 = vld [vmem:[%s767_s17] sm:$0x1]  ;;  %s771_s23 = scalar_lea.vmem [#allocation2], %s5022_s29  ;;  %s3828_s8 = sld [smem:[#allocation12 + $0x206]]  ;;  %765 = vst.msk [vmem:[#allocation5 + $0x1] sm:$0x1] %vm193_vm1, %v764_v6 }
 0x161   :  { %v772_v8 = vld [vmem:[%s771_s23] sm:$0x1]  ;;  %s5026_s28 = sld [smem:[#allocation61_spill]]  ;;  %s775_s11 = scalar_lea.vmem [#allocation2], %s3663_s3  ;;  %769 = vst.msk [vmem:[#allocation5 + $0x2] sm:$0x1] %vm193_vm1, %v768_v7  ;;  %v1430_v7 = vpop.xlane.xlu0 %1429 }
 0x162   :  { %v776_v9 = vld [vmem:[%s775_s11] sm:$0x1]  ;;  %s3832_s27 = sld [smem:[#allocation12 + $0x207]]  ;;  %s779_s7 = scalar_lea.vmem [#allocation2], %s5023_s20  ;;  %773 = vst.msk [vmem:[#allocation5 + $0x3] sm:$0x1] %vm193_vm1, %v772_v8 }
 0x163   :  { %v780_v10 = vld [vmem:[%s779_s7] sm:$0x1]  ;;  %s3836_s13 = sld [smem:[#allocation12 + $0x280]]  ;;  %s787_s0 = scalar_lea.vmem [#allocation2], %s3695_s25  ;;  %777 = vst.msk [vmem:[#allocation5 + $0x4] sm:$0x1] %vm193_vm1, %v776_v9 }
 0x164   :  { %s783_s29 = scalar_lea.vmem [#allocation2], %s5024_s15  ;;  %v788_v12 = vld [vmem:[%s787_s0] sm:$0x1]  ;;  %781 = vst.msk [vmem:[#allocation5 + $0x5] sm:$0x1] %vm193_vm1, %v780_v10  ;;  %s804_s20 = scalar_lea.vmem [#allocation2], %s3728_s2  ;;  %v1436_v10 = vpop.xlane.xlu1 %1435 }
 0x165   :  { %v784_v11 = vld [vmem:[%s783_s29] sm:$0x1]  ;;  %s795_s3 = scalar_lea.vmem [#allocation2], %s5025_s30  ;;  %s3846_s23 = sld [smem:[#allocation12 + $0x281]]  ;;  %789 = vst.msk [vmem:[#allocation5 + $0x7] sm:$0x1] %vm193_vm1, %v788_v12 }
 0x166   :  { %v796_v13 = vld [vmem:[%s795_s3] sm:$0x1]  ;;  %785 = vst.msk [vmem:[#allocation5 + $0x6] sm:$0x1] %vm193_vm1, %v784_v11  ;;  %s808_s15 = scalar_lea.vmem [#allocation2], %s3746_s21  ;;  %s3850_s25 = sld [smem:[#allocation12 + $0x282]] }
 0x167   :  { %s800_s17 = scalar_lea.vmem [#allocation2], %s5026_s28  ;;  %v805_v16 = vld [vmem:[%s804_s20] sm:$0x1]  ;;  %s812_s30 = scalar_lea.vmem [#allocation2], %s3753_s1  ;;  %v1720_v21 = vld [vmem:[#allocation5 + $0x10] sm:$0xff] }
 0x168   :  { %v801_v15 = vld [vmem:[%s800_s17] sm:$0x1]  ;;  %s3854_s28 = sld [smem:[#allocation12 + $0x283]]  ;;  %798 = vst.msk [vmem:[#allocation5 + $0x8] sm:$0x1] %vm193_vm1, %v796_v13  ;;  %s816_s2 = scalar_lea.vmem [#allocation2], %s3762_s4  ;;  %v4019_v13 = vpop.xlane.xlu2 %1183 }
 0x169   :  { %v1728_v17 = vld [vmem:[#allocation9] sm:$0xff]  ;;  %802 = vst.msk [vmem:[#allocation5 + $0x9] sm:$0x1] %vm193_vm1, %v801_v15  ;;  %s3859_s21 = sld [smem:[#allocation12 + $0x284]]  ;;  %s820_s11 = scalar_lea.vmem [#allocation2], %s3767_s22 }
 0x16a   :  { %v809_v18 = vld [vmem:[%s808_s15] sm:$0x1]  ;;  %v1733_v19 = vrot.slane %v1728_v17, 2  ;;  %806 = vst.msk [vmem:[#allocation5 + $0xa] sm:$0x1] %vm193_vm1, %v805_v16  ;;  %s824_s1 = scalar_lea.vmem [#allocation2], %s3776_s9 }
 0x16b   :  { %v813_v20 = vld [vmem:[%s812_s30] sm:$0x1]  ;;  %v1740_v26 = vperm.slane %v1728_v17, 0  ;;  %810 = vst.msk [vmem:[#allocation5 + $0xb] sm:$0x1] %vm193_vm1, %v809_v18  ;;  %s906_s4 = scalar_lea.vmem [#allocation2], %s3780_s24  ;;  %v1206_v17 = vlaneseq }
 0x16c   :  { %v817_v14 = vld [vmem:[%s816_s2] sm:$0x1]  ;;  %v1742_v22 = vperm.slane %v1733_v19, 0  ;;  %814 = vst.msk [vmem:[#allocation5 + $0xc] sm:$0x1] %vm193_vm1, %v813_v20  ;;  %s911_s7 = scalar_lea.vmem [#allocation2], %s3787_s12 }
 0x16d   :  { %v821_v23 = vld [vmem:[%s820_s11] sm:$0x1]  ;;  %s3868_s29 = sld [smem:[#allocation12 + $0x285]]  ;;  %818 = vst.msk [vmem:[#allocation5 + $0xd] sm:$0x1] %vm193_vm1, %v817_v14  ;;  %s915_s22 = scalar_lea.vmem [#allocation2], %s3794_s16 }
 0x16e   :  { %v825_v24 = vld [vmem:[%s824_s1] sm:$0x1]  ;;  %v1762_v25 = vmul.f32 %v1742_v22, %v1720_v21  ;;  %v1718_v32 = vld [vmem:[#allocation5] sm:$0xff]  ;;  %822 = vst.msk [vmem:[#allocation5 + $0xe] sm:$0x1] %vm193_vm1, %v821_v23  ;;  %s919_s9 = scalar_lea.vmem [#allocation2], %s3803_s10 }
 0x16f   :  { %v907_v28 = vld [vmem:[%s906_s4] sm:$0x1]  ;;  %s3875_s24 = sld [smem:[#allocation12 + $0x286]]  ;;  %v1760_v34 = vmul.f32 %v1740_v26, %v1718_v32  ;;  %826 = vst.msk [vmem:[#allocation5 + $0xf] sm:$0x1] %vm193_vm1, %v825_v24  ;;  %s923_s12 = scalar_lea.vmem [#allocation2], %s3816_s5  ;;  %v1433_v19 = vpop.xlane.xlu0 %1432 }
 0x170   :  { %v912_v29 = vld [vmem:[%s911_s7] sm:$0x1]  ;;  %v1776_v30 = vsel %vm128_vm0, %v1762_v25, 0.0  ;;  %s3879_s0 = sld [smem:[#allocation12 + $0x287]]  ;;  %909 = vst.msk [vmem:[#allocation5 + $0x20] sm:$0x1] %vm193_vm1, %v907_v28 }
 0x171   :  { %v916_v31 = vld [vmem:[%s915_s22] sm:$0x1]  ;;  %1777 = vadd.xlane.f32.xlu2 %v1776_v30  ;;  %s927_s16 = scalar_lea.vmem [#allocation2], %s3822_s6  ;;  %s3883_s3 = sld [smem:[#allocation12 + $0x180]]  ;;  %v1770_v37 = vsel %vm128_vm0, %v1760_v34, 0.0  ;;  %v4050_v25 = vand.u32 127, %v1206_v17 }
 0x172   :  { %v920_v33 = vld [vmem:[%s919_s9] sm:$0x1]  ;;  %913 = vst.msk [vmem:[#allocation5 + $0x21] sm:$0x1] %vm193_vm1, %v912_v29  ;;  %s931_s10 = scalar_lea.vmem [#allocation2], %s3828_s8  ;;  %s3888_s17 = sld [smem:[#allocation12 + $0x181]]  ;;  %1771 = vadd.xlane.f32.xlu1 %v1770_v37 }
 0x173   :  { %v924_v35 = vld [vmem:[%s923_s12] sm:$0x1]  ;;  %917 = vst.msk [vmem:[#allocation5 + $0x22] sm:$0x1] %vm193_vm1, %v916_v31  ;;  %s935_s5 = scalar_lea.vmem [#allocation2], %s3832_s27  ;;  %s3892_s6 = sld [smem:[#allocation12 + $0x182]] }
 0x174   :  { %v928_v36 = vld [vmem:[%s927_s16] sm:$0x1]  ;;  %921 = vst.msk [vmem:[#allocation5 + $0x23] sm:$0x1] %vm193_vm1, %v920_v33  ;;  %s943_s20 = scalar_lea.vmem [#allocation2], %s3836_s13  ;;  %s3896_s15 = sld [smem:[#allocation12 + $0x183]] }
 0x175   :  { %v932_v38 = vld [vmem:[%s931_s10] sm:$0x1]  ;;  %925 = vst.msk [vmem:[#allocation5 + $0x24] sm:$0x1] %vm193_vm1, %v924_v35  ;;  %s948_s8 = scalar_lea.vmem [#allocation2], %s3846_s23  ;;  %s3900_s30 = sld [smem:[#allocation12 + $0x184]] }
 0x176   :  { %v936_v39 = vld [vmem:[%s935_s5] sm:$0x1]  ;;  %929 = vst.msk [vmem:[#allocation5 + $0x25] sm:$0x1] %vm193_vm1, %v928_v36  ;;  %s952_s27 = scalar_lea.vmem [#allocation2], %s3850_s25  ;;  %s3904_s2 = sld [smem:[#allocation12 + $0x185]] }
 0x177   :  { %v944_v40 = vld [vmem:[%s943_s20] sm:$0x1]  ;;  %933 = vst.msk [vmem:[#allocation5 + $0x26] sm:$0x1] %vm193_vm1, %v932_v38  ;;  %s956_s13 = scalar_lea.vmem [#allocation2], %s3854_s28  ;;  %s3908_s11 = sld [smem:[#allocation12 + $0x186]] }
 0x178   :  { %v949_v41 = vld [vmem:[%s948_s8] sm:$0x1]  ;;  %937 = vst.msk [vmem:[#allocation5 + $0x27] sm:$0x1] %vm193_vm1, %v936_v39  ;;  %s960_s23 = scalar_lea.vmem [#allocation2], %s3859_s21  ;;  %s3912_s1 = sld [smem:[#allocation12 + $0x187]] }
 0x179   :  { %v953_v43 = vld [vmem:[%s952_s27] sm:$0x1]  ;;  %946 = vst.msk [vmem:[#allocation5 + $0x28] sm:$0x1] %vm193_vm1, %v944_v40  ;;  %s964_s25 = scalar_lea.vmem [#allocation2], %s3868_s29  ;;  %s3916_s4 = sld [smem:[#allocation12 + $0x380]] }
 0x17a   :  { %v957_v45 = vld [vmem:[%s956_s13] sm:$0x1]  ;;  %950 = vst.msk [vmem:[#allocation5 + $0x29] sm:$0x1] %vm193_vm1, %v949_v41  ;;  %s968_s28 = scalar_lea.vmem [#allocation2], %s3875_s24  ;;  %s3920_s7 = sld [smem:[#allocation12 + $0x381]]  ;;  %v1442_v30 = vpop.xlane.xlu2 %1441 }
 0x17b   :  { %v961_v46 = vld [vmem:[%s960_s23] sm:$0x1]  ;;  %954 = vst.msk [vmem:[#allocation5 + $0x2a] sm:$0x1] %vm193_vm1, %v953_v43  ;;  %s972_s21 = scalar_lea.vmem [#allocation2], %s3879_s0  ;;  %s3924_s22 = sld [smem:[#allocation12 + $0x382]] }
 0x17c   :  { %v965_v47 = vld [vmem:[%s964_s25] sm:$0x1]  ;;  %958 = vst.msk [vmem:[#allocation5 + $0x2b] sm:$0x1] %vm193_vm1, %v957_v45  ;;  %s869_s29 = scalar_lea.vmem [#allocation2], %s3883_s3  ;;  %s3928_s9 = sld [smem:[#allocation12 + $0x383]] }
 0x17d   :  { %v969_v48 = vld [vmem:[%s968_s28] sm:$0x1]  ;;  %962 = vst.msk [vmem:[#allocation5 + $0x2c] sm:$0x1] %vm193_vm1, %v961_v46  ;;  %s874_s24 = scalar_lea.vmem [#allocation2], %s3888_s17  ;;  %s3932_s12 = sld [smem:[#allocation12 + $0x384]] }
 0x17e   :  { %v973_v50 = vld [vmem:[%s972_s21] sm:$0x1]  ;;  %966 = vst.msk [vmem:[#allocation5 + $0x2d] sm:$0x1] %vm193_vm1, %v965_v47  ;;  %s878_s0 = scalar_lea.vmem [#allocation2], %s3892_s6  ;;  %s3936_s16 = sld [smem:[#allocation12 + $0x385]] }
 0x17f   :  { %v870_v51 = vld [vmem:[%s869_s29] sm:$0x1]  ;;  %970 = vst.msk [vmem:[#allocation5 + $0x2e] sm:$0x1] %vm193_vm1, %v969_v48  ;;  %s882_s3 = scalar_lea.vmem [#allocation2], %s3896_s15  ;;  %s3940_s10 = sld [smem:[#allocation12 + $0x386]] }
 0x180   :  { %v875_v52 = vld [vmem:[%s874_s24] sm:$0x1]  ;;  %974 = vst.msk [vmem:[#allocation5 + $0x2f] sm:$0x1] %vm193_vm1, %v973_v50  ;;  %s886_s17 = scalar_lea.vmem [#allocation2], %s3900_s30  ;;  %s3944_s5 = sld [smem:[#allocation12 + $0x387]] }
 0x181   :  { %v879_v53 = vld [vmem:[%s878_s0] sm:$0x1]  ;;  %872 = vst.msk [vmem:[#allocation5 + $0x18] sm:$0x1] %vm193_vm1, %v870_v51  ;;  %s890_s6 = scalar_lea.vmem [#allocation2], %s3904_s2  ;;  %s3948_s20 = sld [smem:[#allocation12 + $0x400]] }
 0x182   :  { %v883_v54 = vld [vmem:[%s882_s3] sm:$0x1]  ;;  %876 = vst.msk [vmem:[#allocation5 + $0x19] sm:$0x1] %vm193_vm1, %v875_v52  ;;  %s894_s15 = scalar_lea.vmem [#allocation2], %s3908_s11  ;;  %s3952_s8 = sld [smem:[#allocation12 + $0x401]] }
 0x183   :  { %v887_v55 = vld [vmem:[%s886_s17] sm:$0x1]  ;;  %880 = vst.msk [vmem:[#allocation5 + $0x1a] sm:$0x1] %vm193_vm1, %v879_v53  ;;  %s898_s30 = scalar_lea.vmem [#allocation2], %s3912_s1  ;;  %s3956_s27 = sld [smem:[#allocation12 + $0x402]] }
 0x184   :  { %v891_v56 = vld [vmem:[%s890_s6] sm:$0x1]  ;;  %884 = vst.msk [vmem:[#allocation5 + $0x1b] sm:$0x1] %vm193_vm1, %v883_v54  ;;  %s1017_s2 = scalar_lea.vmem [#allocation2], %s3916_s4  ;;  %s3960_s13 = sld [smem:[#allocation12 + $0x403]] }
 0x185   :  { %v895_v57 = vld [vmem:[%s894_s15] sm:$0x1]  ;;  %888 = vst.msk [vmem:[#allocation5 + $0x1c] sm:$0x1] %vm193_vm1, %v887_v55  ;;  %s1022_s11 = scalar_lea.vmem [#allocation2], %s3920_s7  ;;  %s3964_s23 = sld [smem:[#allocation12 + $0x404]]  ;;  %v1439_v26 = vpop.xlane.xlu1 %1438 }
 0x186   :  { %v899_v58 = vld [vmem:[%s898_s30] sm:$0x1]  ;;  %892 = vst.msk [vmem:[#allocation5 + $0x1d] sm:$0x1] %vm193_vm1, %v891_v56  ;;  %s1026_s1 = scalar_lea.vmem [#allocation2], %s3924_s22  ;;  %s1030_s25 = scalar_lea.vmem [#allocation2], %s3928_s9 }
 0x187   :  { %v1018_v42 = vld [vmem:[%s1017_s2] sm:$0x1]  ;;  %896 = vst.msk [vmem:[#allocation5 + $0x1e] sm:$0x1] %vm193_vm1, %v895_v57  ;;  %s3970_s4 = sld [smem:[#allocation12 + $0x405]]  ;;  %s1034_s28 = scalar_lea.vmem [#allocation2], %s3932_s12 }
 0x188   :  { %v1023_v59 = vld [vmem:[%s1022_s11] sm:$0x1]  ;;  %900 = vst.msk [vmem:[#allocation5 + $0x1f] sm:$0x1] %vm193_vm1, %v899_v58  ;;  %s3974_s7 = sld [smem:[#allocation12 + $0x406]]  ;;  %s1038_s21 = scalar_lea.vmem [#allocation2], %s3936_s16 }
 0x189   :  { %v1027_v60 = vld [vmem:[%s1026_s1] sm:$0x1]  ;;  %1020 = vst.msk [vmem:[#allocation5 + $0x38] sm:$0x1] %vm193_vm1, %v1018_v42  ;;  %s1042_s22 = scalar_lea.vmem [#allocation2], %s3940_s10  ;;  %s1046_s29 = scalar_lea.vmem [#allocation2], %s3944_s5 }
 0x18a   :  { %v1031_v49 = vld [vmem:[%s1030_s25] sm:$0x1]  ;;  %1024 = vst.msk [vmem:[#allocation5 + $0x39] sm:$0x1] %vm193_vm1, %v1023_v59  ;;  %s3982_s9 = sld [smem:[#allocation12 + $0x407]]  ;;  %s1054_s24 = scalar_lea.vmem [#allocation2], %s3948_s20 }
 0x18b   :  { %v1035_v44 = vld [vmem:[%s1034_s28] sm:$0x1]  ;;  %1028 = vst.msk [vmem:[#allocation5 + $0x3a] sm:$0x1] %vm193_vm1, %v1027_v60  ;;  %s3986_s12 = sld [smem:[#allocation17 + $0x8]]  ;;  %s1059_s0 = scalar_lea.vmem [#allocation2], %s3952_s8 }
 0x18c   :  { %v1039_v61 = vld [vmem:[%s1038_s21] sm:$0x1]  ;;  %1032 = vst.msk [vmem:[#allocation5 + $0x3b] sm:$0x1] %vm193_vm1, %v1031_v49  ;;  %s3990_s16 = sld [smem:[#allocation17 + $0x9]]  ;;  %s1063_s3 = scalar_lea.vmem [#allocation2], %s3956_s27 }
 0x18d   :  { %v1043_v62 = vld [vmem:[%s1042_s22] sm:$0x1]  ;;  %1036 = vst.msk [vmem:[#allocation5 + $0x3c] sm:$0x1] %vm193_vm1, %v1035_v44  ;;  %s3994_s10 = sld [smem:[#allocation12 + $0x300]]  ;;  %s1067_s17 = scalar_lea.vmem [#allocation2], %s3960_s13 }
 0x18e   :  { %v1047_v63 = vld [vmem:[%s1046_s29] sm:$0x1]  ;;  %1040 = vst.msk [vmem:[#allocation5 + $0x3d] sm:$0x1] %vm193_vm1, %v1039_v61  ;;  %s1071_s5 = scalar_lea.vmem [#allocation2], %s3964_s23  ;;  %s2734_s6 = sld [smem:[#allocation12 + $0x301]] }
 0x18f   :  { %v1055_v0 = vld [vmem:[%s1054_s24] sm:$0x1]  ;;  %1044 = vst.msk [vmem:[#allocation5 + $0x3e] sm:$0x1] %vm193_vm1, %v1043_v62  ;;  %s4001_s20 = sld [smem:[#allocation12 + $0x302]]  ;;  %s1075_s15 = scalar_lea.vmem [#allocation2], %s3970_s4 }
 0x190   :  { %v1060_v1 = vld [vmem:[%s1059_s0] sm:$0x1]  ;;  %1048 = vst.msk [vmem:[#allocation5 + $0x3f] sm:$0x1] %vm193_vm1, %v1047_v63  ;;  %s1079_s8 = scalar_lea.vmem [#allocation2], %s3974_s7  ;;  %s1083_s30 = scalar_lea.vmem [#allocation2], %s3982_s9 }
 0x191   :  { %v1064_v27 = vld [vmem:[%s1063_s3] sm:$0x1]  ;;  %1057 = vst.msk [vmem:[#allocation5 + $0x40] sm:$0x1] %vm193_vm1, %v1055_v0  ;;  %s1087_s27 = scalar_lea.vmem [#allocation2], %s3986_s12  ;;  %s2736_s2 = sld [smem:[#allocation12 + $0x303]] }
 0x192   :  { %v1068_v2 = vld [vmem:[%s1067_s17] sm:$0x1]  ;;  %1061 = vst.msk [vmem:[#allocation5 + $0x41] sm:$0x1] %vm193_vm1, %v1060_v1  ;;  %s4012_s13 = sld [smem:[#allocation12 + $0x304]]  ;;  %s1124_s11 = scalar_lea.vmem [#allocation2], %s3990_s16 }
 0x193   :  { %v1072_v3 = vld [vmem:[%s1071_s5] sm:$0x1]  ;;  %1065 = vst.msk [vmem:[#allocation5 + $0x42] sm:$0x1] %vm193_vm1, %v1064_v27  ;;  %s980_s23 = scalar_lea.vmem [#allocation2], %s3994_s10  ;;  %s5027_s1 = sld [smem:[#allocation64_spill]] }
 0x194   :  { %v1076_v4 = vld [vmem:[%s1075_s15] sm:$0x1]  ;;  %1069 = vst.msk [vmem:[#allocation5 + $0x43] sm:$0x1] %vm193_vm1, %v1068_v2  ;;  %s985_s25 = scalar_lea.vmem [#allocation2], %s2734_s6  ;;  %s2738_s4 = sld [smem:[#allocation12 + $0x305]] }
 0x195   :  { %v1080_v5 = vld [vmem:[%s1079_s8] sm:$0x1]  ;;  %1073 = vst.msk [vmem:[#allocation5 + $0x44] sm:$0x1] %vm193_vm1, %v1072_v3  ;;  %s989_s28 = scalar_lea.vmem [#allocation2], %s4001_s20  ;;  %s2739_s7 = sld [smem:[#allocation12 + $0x306]] }
 0x196   :  { %v1084_v6 = vld [vmem:[%s1083_s30] sm:$0x1]  ;;  %1077 = vst.msk [vmem:[#allocation5 + $0x45] sm:$0x1] %vm193_vm1, %v1076_v4  ;;  %s5028_s21 = sld [smem:[#allocation65_spill]] }
 0x197   :  { %v1088_v8 = vld [vmem:[%s1087_s27] sm:$0x1]  ;;  %1081 = vst.msk [vmem:[#allocation5 + $0x46] sm:$0x1] %vm193_vm1, %v1080_v5  ;;  %s4024_s22 = sld [smem:[#allocation12 + $0x307]]  ;;  %s993_s29 = scalar_lea.vmem [#allocation2], %s2736_s2 }
 0x198   :  { %v1125_v9 = vld [vmem:[%s1124_s11] sm:$0x1]  ;;  %1085 = vst.msk [vmem:[#allocation5 + $0x47] sm:$0x1] %vm193_vm1, %v1084_v6  ;;  %s5029_s12 = sld [smem:[#allocation90_spill]]  ;;  %s997_s3 = scalar_lea.vmem [#allocation2], %s4012_s13  ;;  %v1178_v6 = vpop.xlane.xlu0 %1177 }
 0x199   :  { %v981_v11 = vld [vmem:[%s980_s23] sm:$0x1]  ;;  %1089 = vst.msk [vmem:[#allocation9 + $0x8] sm:$0x1] %vm193_vm1, %v1088_v8  ;;  %v4032_v18 = vmul.f32 0.17677669, %v1430_v7 }
 0x19a   :  { %v986_v12 = vld [vmem:[%s985_s25] sm:$0x1]  ;;  %1126 = vst.msk [vmem:[#allocation9 + $0x9] sm:$0x1] %vm193_vm1, %v1125_v9  ;;  %s5030_s16 = sld [smem:[#allocation66_spill]]  ;;  %s1001_s6 = scalar_lea.vmem [#allocation2], %s2738_s4  ;;  %v1445_v51 = vpop.xlane.xlu2 %1444 }
 0x19b   :  { %v990_v15 = vld [vmem:[%s989_s28] sm:$0x1]  ;;  %983 = vst.msk [vmem:[#allocation5 + $0x30] sm:$0x1] %vm193_vm1, %v981_v11  ;;  %v4036_v21 = vmul.f32 0.17677669, %v1436_v10  ;;  %v1458_v34 = vperm.slane %v4032_v18, %v4050_v25 }
 0x19c   :  { %987 = vst.msk [vmem:[#allocation5 + $0x31] sm:$0x1] %vm193_vm1, %v986_v12  ;;  %v994_v16 = vld [vmem:[%s993_s29] sm:$0x1]  ;;  %s2760_s20 = sld [smem:[#allocation12 + $0x480]]  ;;  %s1005_s15 = scalar_lea.vmem [#allocation2], %s2739_s7 }
 0x19d   :  { %991 = vst.msk [vmem:[#allocation5 + $0x32] sm:$0x1] %vm193_vm1, %v990_v15  ;;  %v998_v20 = vld [vmem:[%s997_s3] sm:$0x1]  ;;  %v4043_v23 = vmul.f32 0.17677669, %v1433_v19  ;;  %v1460_v39 = vperm.slane %v4036_v21, %v4050_v25 }
 0x19e   :  { %s199_s0 = scalar_lea.vmem %s5029_s12, %s5027_s1  ;;  %995 = vst.msk [vmem:[#allocation5 + $0x33] sm:$0x1] %vm193_vm1, %v994_v16  ;;  %s210_s5 = scalar_lea.vmem %s5029_s12, %s5028_s21  ;;  %v1002_v14 = vld [vmem:[%s1001_s6] sm:$0x1]  ;;  %v4061_v33 = vmul.f32 0.17677669, %v1439_v26 }
 0x19f   :  { %999 = vst.msk [vmem:[#allocation5 + $0x34] sm:$0x1] %vm193_vm1, %v998_v20  ;;  %v200_v22 = vld [vmem:[%s199_s0] sm:$0x1]  ;;  %s2761_s2 = sld [smem:[#allocation12 + $0x481]]  ;;  %s1009_s13 = scalar_lea.vmem [#allocation2], %s4024_s22  ;;  %v1459_v32 = vperm.slane %v4043_v23, %v4050_v25 }
 0x1a0   :  { %1003 = vst.msk [vmem:[#allocation5 + $0x35] sm:$0x1] %vm193_vm1, %v1002_v14  ;;  %v1006_v24 = vld [vmem:[%s1005_s15] sm:$0x1]  ;;  %s221_s27 = scalar_lea.vmem %s5029_s12, %s5030_s16  ;;  %s4054_s11 = sld [smem:[#allocation12 + $0x482]]  ;;  %v1461_v41 = vperm.slane %v4061_v33, %v4050_v25 }
 0x1a1   :  { %1007 = vst.msk [vmem:[#allocation5 + $0x36] sm:$0x1] %vm193_vm1, %v1006_v24  ;;  %v1010_v28 = vld [vmem:[%s1009_s13] sm:$0x1]  ;;  %s4057_s23 = sld [smem:[#allocation12 + $0x483]]  ;;  %v1464_v36 = vsel %vm1214_vm4, %v1459_v32, %v1458_v34 }
 0x1a2   :  { %v211_v29 = vld [vmem:[%s210_s5] sm:$0x1]  ;;  %1011 = vst.msk [vmem:[#allocation5 + $0x37] sm:$0x1] %vm193_vm1, %v1010_v28  ;;  %s4063_s1 = sld [smem:[#allocation12 + $0x484]]  ;;  %s1091_s28 = scalar_lea.vmem [#allocation2], %s2760_s20  ;;  %v1465_v45 = vsel %vm1216_vm5, %v1460_v39, %v1464_v36 }
 0x1a3   :  { %v222_v31 = vld [vmem:[%s221_s27] sm:$0x1]  ;;  %201 = vst.msk [vmem:[#allocation7] sm:$0x1] %vm193_vm1, %v200_v22  ;;  %s5031_s25 = sld [smem:[#allocation67_spill]]  ;;  %v1466_v54 = vsel %vm1218_vm6, %v1461_v41, %v1465_v45  ;;  %v1181_v15 = vpop.xlane.xlu1 %1180 }
 0x1a4   :  { %s4066_s4 = sld [smem:[#allocation12 + $0x485]]  ;;  %212 = vst.msk [vmem:[#allocation7 + $0x1] sm:$0x1] %vm193_vm1, %v211_v29  ;;  %v1092_v35 = vld [vmem:[%s1091_s28] sm:$0x1] }
 0x1a5   :  { %s5032_s7 = sld [smem:[#allocation68_spill]]  ;;  %223 = vst.msk [vmem:[#allocation7 + $0x2] sm:$0x1] %vm193_vm1, %v222_v31  ;;  %v4078_v37 = vmul.f32 0.17677669, %v1442_v30  ;;  %s1096_s29 = scalar_lea.vmem [#allocation2], %s2761_s2 }
 0x1a6   :  { %s4071_s21 = sld [smem:[#allocation12 + $0x486]]  ;;  %1094 = vst.msk [vmem:[#allocation5 + $0x48] sm:$0x1] %vm193_vm1, %v1092_v35  ;;  %v1097_v38 = vld [vmem:[%s1096_s29] sm:$0x1]  ;;  %s1100_s16 = scalar_lea.vmem [#allocation2], %s4054_s11 }
 0x1a7   :  { %s4075_s22 = sld [smem:[#allocation12 + $0x487]]  ;;  %1098 = vst.msk [vmem:[#allocation5 + $0x49] sm:$0x1] %vm193_vm1, %v1097_v38  ;;  %v1101_v40 = vld [vmem:[%s1100_s16] sm:$0x1]  ;;  %s1104_s6 = scalar_lea.vmem [#allocation2], %s4057_s23  ;;  %v1462_v56 = vperm.slane %v4078_v37, %v4050_v25 }
 0x1a8   :  { %s5033_s17 = sld [smem:[#allocation69_spill]]  ;;  %1102 = vst.msk [vmem:[#allocation5 + $0x4a] sm:$0x1] %vm193_vm1, %v1101_v40  ;;  %v1105_v43 = vld [vmem:[%s1104_s6] sm:$0x1]  ;;  %s1108_s15 = scalar_lea.vmem [#allocation2], %s4063_s1 }
 0x1a9   :  { %s232_s0 = scalar_lea.vmem %s5029_s12, %s5031_s25  ;;  %s5034_s20 = sld [smem:[#allocation70_spill]]  ;;  %1106 = vst.msk [vmem:[#allocation5 + $0x4b] sm:$0x1] %vm193_vm1, %v1105_v43  ;;  %v1109_v46 = vld [vmem:[%s1108_s15] sm:$0x1]  ;;  %v1467_v59 = vsel %vm1220_vm7, %v1462_v56, %v1466_v54 }
 0x1aa   :  { %v233_v47 = vld [vmem:[%s232_s0] sm:$0x1]  ;;  %1110 = vst.msk [vmem:[#allocation5 + $0x4c] sm:$0x1] %vm193_vm1, %v1109_v46  ;;  %s5035_s8 = sld [smem:[#allocation71_spill]]  ;;  %s1112_s30 = scalar_lea.vmem [#allocation2], %s4066_s4 }
 0x1ab   :  { %s243_s5 = scalar_lea.vmem %s5029_s12, %s5032_s7  ;;  %v1113_v48 = vld [vmem:[%s1112_s30] sm:$0x1]  ;;  %s5036_s11 = sld [smem:[#allocation76_spill]]  ;;  %v4111_v53 = vmul.f32 0.17677669, %v1445_v51 }
 0x1ac   :  { %v244_v50 = vld [vmem:[%s243_s5] sm:$0x1]  ;;  %1114 = vst.msk [vmem:[#allocation5 + $0x4d] sm:$0x1] %vm193_vm1, %v1113_v48  ;;  %s1116_s23 = scalar_lea.vmem [#allocation2], %s4071_s21  ;;  %s5037_s7 = sld [smem:[#allocation77_spill]] }
 0x1ad   :  { %v1117_v52 = vld [vmem:[%s1116_s23] sm:$0x1]  ;;  %s1120_s4 = scalar_lea.vmem [#allocation2], %s4075_s22  ;;  %s5038_s29 = sld [smem:[#allocation78_spill]]  ;;  %v1463_v58 = vperm.slane %v4111_v53, %v4050_v25  ;;  %234 = vst.msk [vmem:[#allocation7 + $0x3] sm:$0x1] %vm193_vm1, %v233_v47 }
 0x1ae   :  { %s254_s13 = scalar_lea.vmem %s5029_s12, %s5033_s17  ;;  %1118 = vst.msk [vmem:[#allocation5 + $0x4e] sm:$0x1] %vm193_vm1, %v1117_v52  ;;  %v1121_v55 = vld [vmem:[%s1120_s4] sm:$0x1]  ;;  %s5039_s21 = sld [smem:[#allocation79_spill]] }
 0x1af   :  { %s265_s28 = scalar_lea.vmem %s5029_s12, %s5034_s20  ;;  %1122 = vst.msk [vmem:[#allocation5 + $0x4f] sm:$0x1] %vm193_vm1, %v1121_v55  ;;  %v255_v57 = vld [vmem:[%s254_s13] sm:$0x1]  ;;  %s5040_s22 = sld [smem:[#allocation80_spill]]  ;;  %v1468_v49 = vsel %vm1222_vm8, %v1463_v58, %v1467_v59  ;;  %v1187_v22 = vpop.xlane.xlu0 %1186 }
 0x1b0   :  { %s276_s0 = scalar_lea.vmem %s5029_s12, %s5035_s8  ;;  %v266_v42 = vld [vmem:[%s265_s28] sm:$0x1]  ;;  %s5041_s20 = sld [smem:[#allocation81_spill]]  ;;  %245 = vst.msk [vmem:[#allocation7 + $0x4] sm:$0x1] %vm193_vm1, %v244_v50  ;;  %v1470_v61 = vsel %vm1225_vm9, %v1468_v49, -inf }
 0x1b1   :  { %s293_s10 = scalar_lea.vmem %s5029_s12, %s5036_s11  ;;  %v277_v60 = vld [vmem:[%s276_s0] sm:$0x1]  ;;  %s5042_s30 = sld [smem:[#allocation82_spill]]  ;;  %256 = vst.msk [vmem:[#allocation7 + $0x5] sm:$0x1] %vm193_vm1, %v255_v57  ;;  %1471 = vmax.xlane.f32.xlu0 %v1470_v61 }
 0x1b2   :  { %s305_s6 = scalar_lea.vmem %s5029_s12, %s5037_s7  ;;  %s5043_s2 = sld [smem:[#allocation83_spill]]  ;;  %v294_v44 = vld [vmem:[%s293_s10] sm:$0x1]  ;;  %267 = vst.msk [vmem:[#allocation7 + $0x6] sm:$0x1] %vm193_vm1, %v266_v42 }
 0x1b3   :  { %s316_s27 = scalar_lea.vmem %s5029_s12, %s5038_s29  ;;  %s5044_s1 = sld [smem:[#allocation28_spill]]  ;;  %v306_v62 = vld [vmem:[%s305_s6] sm:$0x1]  ;;  %278 = vst.msk [vmem:[#allocation7 + $0x7] sm:$0x1] %vm193_vm1, %v277_v60 }
 0x1b4   :  { %s327_s23 = scalar_lea.vmem %s5029_s12, %s5039_s21  ;;  %s5045_s4 = sld [smem:[#allocation30_spill]]  ;;  %v317_v63 = vld [vmem:[%s316_s27] sm:$0x1]  ;;  %296 = vst.msk [vmem:[#allocation7 + $0x8] sm:$0x1] %vm193_vm1, %v294_v44 }
 0x1b5   :  { %s338_s7 = scalar_lea.vmem %s5029_s12, %s5040_s22  ;;  %s5046_s24 = sld [smem:[#allocation32_spill]]  ;;  %v328_v0 = vld [vmem:[%s327_s23] sm:$0x1]  ;;  %307 = vst.msk [vmem:[#allocation7 + $0x9] sm:$0x1] %vm193_vm1, %v306_v62 }
 0x1b6   :  { %s349_s0 = scalar_lea.vmem %s5029_s12, %s5041_s20  ;;  %s5047_s3 = sld [smem:[#allocation34_spill]]  ;;  %v339_v1 = vld [vmem:[%s338_s7] sm:$0x1]  ;;  %318 = vst.msk [vmem:[#allocation7 + $0xa] sm:$0x1] %vm193_vm1, %v317_v63 }
 0x1b7   :  { %s360_s10 = scalar_lea.vmem %s5029_s12, %s5042_s30  ;;  %s5048_s5 = sld [smem:[#allocation36_spill]]  ;;  %v350_v27 = vld [vmem:[%s349_s0] sm:$0x1]  ;;  %329 = vst.msk [vmem:[#allocation7 + $0xb] sm:$0x1] %vm193_vm1, %v328_v0 }
 0x1b8   :  { %s371_s6 = scalar_lea.vmem %s5029_s12, %s5043_s2  ;;  %s5049_s27 = sld [smem:[#allocation38_spill]]  ;;  %v361_v2 = vld [vmem:[%s360_s10] sm:$0x1]  ;;  %340 = vst.msk [vmem:[#allocation7 + $0xc] sm:$0x1] %vm193_vm1, %v339_v1 }
 0x1b9   :  { %s388_s8 = scalar_lea.vmem %s5029_s12, %s5044_s1  ;;  %s5050_s23 = sld [smem:[#allocation40_spill]]  ;;  %v372_v3 = vld [vmem:[%s371_s6] sm:$0x1]  ;;  %351 = vst.msk [vmem:[#allocation7 + $0xd] sm:$0x1] %vm193_vm1, %v350_v27 }
 0x1ba   :  { %s400_s11 = scalar_lea.vmem %s5029_s12, %s5045_s4  ;;  %s5051_s7 = sld [smem:[#allocation42_spill]]  ;;  %v389_v4 = vld [vmem:[%s388_s8] sm:$0x1]  ;;  %362 = vst.msk [vmem:[#allocation7 + $0xe] sm:$0x1] %vm193_vm1, %v361_v2 }
 0x1bb   :  { %s411_s28 = scalar_lea.vmem %s5029_s12, %s5046_s24  ;;  %s5052_s0 = sld [smem:[#allocation84_spill]]  ;;  %v401_v5 = vld [vmem:[%s400_s11] sm:$0x1]  ;;  %373 = vst.msk [vmem:[#allocation7 + $0xf] sm:$0x1] %vm193_vm1, %v372_v3 }
 0x1bc   :  { %s422_s9 = scalar_lea.vmem %s5029_s12, %s5047_s3  ;;  %s5053_s10 = sld [smem:[#allocation85_spill]]  ;;  %v412_v7 = vld [vmem:[%s411_s28] sm:$0x1]  ;;  %391 = vst.msk [vmem:[#allocation7 + $0x10] sm:$0x1] %vm193_vm1, %v389_v4 }
 0x1bd   :  { %s433_s16 = scalar_lea.vmem %s5029_s12, %s5048_s5  ;;  %s5054_s17 = sld [smem:[#allocation86_spill]]  ;;  %v423_v8 = vld [vmem:[%s422_s9] sm:$0x1]  ;;  %402 = vst.msk [vmem:[#allocation7 + $0x11] sm:$0x1] %vm193_vm1, %v401_v5 }
 0x1be   :  { %s444_s6 = scalar_lea.vmem %s5029_s12, %s5049_s27  ;;  %s5055_s8 = sld [smem:[#allocation21_spill]]  ;;  %v434_v9 = vld [vmem:[%s433_s16] sm:$0x1]  ;;  %413 = vst.msk [vmem:[#allocation7 + $0x12] sm:$0x1] %vm193_vm1, %v412_v7  ;;  %v2994_v7 = vmov 0  }
 0x1bf   :  { %s455_s15 = scalar_lea.vmem %s5029_s12, %s5050_s23  ;;  %s5056_s11 = sld [smem:[#allocation22_spill]]  ;;  %v445_v10 = vld [vmem:[%s444_s6] sm:$0x1]  ;;  %424 = vst.msk [vmem:[#allocation7 + $0x13] sm:$0x1] %vm193_vm1, %v423_v8  ;;  %2853 = vset.pattern.permute.xlu2 %v2994_v7  ;;  %2852 = vset.pattern.permute.xlu0 %v2994_v7 }
 0x1c0   :  { %s466_s13 = scalar_lea.vmem %s5029_s12, %s5051_s7  ;;  %s5057_s28 = sld [smem:[#allocation23_spill]]  ;;  %v456_v11 = vld [vmem:[%s455_s15] sm:$0x1]  ;;  %435 = vst.msk [vmem:[#allocation7 + $0x14] sm:$0x1] %vm193_vm1, %v434_v9  ;;  %2851 = vset.pattern.permute.xlu1 %v2994_v7  ;;  %v4423_v7 = vld [vmem:[#allocation5 + $0x28] sm:$0xff] }
 0x1c1   :  { %s483_s25 = scalar_lea.vmem %s5029_s12, %s5052_s0  ;;  %s5058_s9 = sld [smem:[#allocation24_spill]]  ;;  %v467_v12 = vld [vmem:[%s466_s13] sm:$0x1]  ;;  %446 = vst.msk [vmem:[#allocation7 + $0x15] sm:$0x1] %vm193_vm1, %v445_v10 }
 0x1c2   :  { %s495_s29 = scalar_lea.vmem %s5029_s12, %s5053_s10  ;;  %s5059_s0 = sld [smem:[#allocation25_spill]]  ;;  %v484_v16 = vld [vmem:[%s483_s25] sm:$0x1]  ;;  %457 = vst.msk [vmem:[#allocation7 + $0x16] sm:$0x1] %vm193_vm1, %v456_v11 }
 0x1c3   :  { %s506_s21 = scalar_lea.vmem %s5029_s12, %s5054_s17  ;;  %v496_v17 = vld [vmem:[%s495_s29] sm:$0x1]  ;;  %s5060_s3 = sld [smem:[#allocation26_spill]]  ;;  %468 = vst.msk [vmem:[#allocation7 + $0x17] sm:$0x1] %vm193_vm1, %v467_v12 }
 0x1c4   :  { %s517_s22 = scalar_lea.vmem %s5029_s12, %s5055_s8  ;;  %v507_v19 = vld [vmem:[%s506_s21] sm:$0x1]  ;;  %s5061_s5 = sld [smem:[#allocation27_spill]]  ;;  %v4237_v20 = vmul.f32 0.17677669, %v1181_v15 }
 0x1c5   :  { %s528_s20 = scalar_lea.vmem %s5029_s12, %s5056_s11  ;;  %486 = vst.msk [vmem:[#allocation7 + $0x18] sm:$0x1] %vm193_vm1, %v484_v16  ;;  %v518_v14 = vld [vmem:[%s517_s22] sm:$0x1]  ;;  %s5062_s2 = sld [smem:[#allocation29_spill]] }
 0x1c6   :  { %s539_s30 = scalar_lea.vmem %s5029_s12, %s5057_s28  ;;  %497 = vst.msk [vmem:[#allocation7 + $0x19] sm:$0x1] %vm193_vm1, %v496_v17  ;;  %v529_v24 = vld [vmem:[%s528_s20] sm:$0x1]  ;;  %s5063_s1 = sld [smem:[#allocation31_spill]]  ;;  %v1209_v30 = vperm.slane %v4237_v20, %v4050_v25 }
 0x1c7   :  { %s550_s27 = scalar_lea.vmem %s5029_s12, %s5058_s9  ;;  %v4249_v26 = vmul.f32 0.17677669, %v1178_v6  ;;  %508 = vst.msk [vmem:[#allocation7 + $0x1a] sm:$0x1] %vm193_vm1, %v507_v19  ;;  %v540_v28 = vld [vmem:[%s539_s30] sm:$0x1]  ;;  %s656_s29 = scalar_lea.vmem %s5029_s12, %s3439_s19 }
 0x1c8   :  { %s561_s23 = scalar_lea.vmem %s5029_s12, %s5059_s0  ;;  %s5064_s9 = sld [smem:[#allocation33_spill]]  ;;  %519 = vst.msk [vmem:[#allocation7 + $0x1b] sm:$0x1] %vm193_vm1, %v518_v14  ;;  %v551_v29 = vld [vmem:[%s550_s27] sm:$0x1] }
 0x1c9   :  { %s673_s7 = scalar_lea.vmem %s5029_s12, %s5060_s3  ;;  %s5065_s0 = sld [smem:[#allocation35_spill]]  ;;  %v4263_v31 = vmul.f32 0.17677669, %v1187_v22  ;;  %530 = vst.msk [vmem:[#allocation7 + $0x1c] sm:$0x1] %vm193_vm1, %v529_v24  ;;  %v1208_v36 = vperm.slane %v4249_v26, %v4050_v25 }
 0x1ca   :  { %s685_s16 = scalar_lea.vmem %s5029_s12, %s5061_s5  ;;  %v562_v32 = vld [vmem:[%s561_s23] sm:$0x1]  ;;  %v4271_v34 = vmul.f32 0.17677669, %v4019_v13  ;;  %s5066_s6 = sld [smem:[#allocation37_spill]]  ;;  %v1193_v13 = vpop.xlane.xlu2 %1192 }
 0x1cb   :  { %s696_s10 = scalar_lea.vmem %s5029_s12, %s5062_s2  ;;  %541 = vst.msk [vmem:[#allocation7 + $0x1d] sm:$0x1] %vm193_vm1, %v540_v28  ;;  %v674_v35 = vld [vmem:[%s673_s7] sm:$0x1]  ;;  %s5067_s15 = sld [smem:[#allocation39_spill]]  ;;  %v1215_v40 = vsel %vm1214_vm4, %v1209_v30, %v1208_v36  ;;  %v1211_v41 = vperm.slane %v4263_v31, %v4050_v25 }
 0x1cc   :  { %s707_s17 = scalar_lea.vmem %s5029_s12, %s5063_s1  ;;  %552 = vst.msk [vmem:[#allocation7 + $0x1e] sm:$0x1] %vm193_vm1, %v551_v29  ;;  %v686_v38 = vld [vmem:[%s685_s16] sm:$0x1]  ;;  %s5068_s13 = sld [smem:[#allocation41_spill]]  ;;  %v1210_v45 = vperm.slane %v4271_v34, %v4050_v25 }
 0x1cd   :  { %563 = vst.msk [vmem:[#allocation7 + $0x1f] sm:$0x1] %vm193_vm1, %v562_v32  ;;  %v697_v39 = vld [vmem:[%s696_s10] sm:$0x1]  ;;  %s5069_s28 = sld [smem:[#allocation44_spill]]  ;;  %s590_s10 = scalar_lea.vmem %s5029_s12, %s5006_s14 }
 0x1ce   :  { %s718_s8 = scalar_lea.vmem %s5029_s12, %s5064_s9  ;;  %676 = vst.msk [vmem:[#allocation7 + $0x28] sm:$0x1] %vm193_vm1, %v674_v35  ;;  %v708_v43 = vld [vmem:[%s707_s17] sm:$0x1]  ;;  %v4305_v47 = vmul.f32 0.17677669, %v1193_v13  ;;  %v1190_v48 = vpop.xlane.xlu1 %1189  ;;  %v1217_v52 = vsel %vm1216_vm5, %v1210_v45, %v1215_v40 }
 0x1cf   :  { %s729_s11 = scalar_lea.vmem %s5029_s12, %s5065_s0  ;;  %687 = vst.msk [vmem:[#allocation7 + $0x29] sm:$0x1] %vm193_vm1, %v686_v38  ;;  %v719_v46 = vld [vmem:[%s718_s8] sm:$0x1]  ;;  %s5070_s4 = sld [smem:[#allocation87_spill]]  ;;  %v1219_v55 = vsel %vm1218_vm6, %v1211_v41, %v1217_v52 }
 0x1d0   :  { %s740_s1 = scalar_lea.vmem %s5029_s12, %s5066_s6  ;;  %698 = vst.msk [vmem:[#allocation7 + $0x2a] sm:$0x1] %vm193_vm1, %v697_v39  ;;  %v730_v50 = vld [vmem:[%s729_s11] sm:$0x1]  ;;  %v4312_v51 = vmul.f32 0.17677669, %v1190_v48  ;;  %v1213_v42 = vperm.slane %v4305_v47, %v4050_v25 }
 0x1d1   :  { %s751_s9 = scalar_lea.vmem %s5029_s12, %s5067_s15  ;;  %709 = vst.msk [vmem:[#allocation7 + $0x2b] sm:$0x1] %vm193_vm1, %v708_v43  ;;  %v741_v54 = vld [vmem:[%s740_s1] sm:$0x1]  ;;  %s5071_s6 = sld [smem:[#allocation46_spill]] }
 0x1d2   :  { %s578_s0 = scalar_lea.vmem %s5029_s12, %s5068_s13  ;;  %720 = vst.msk [vmem:[#allocation7 + $0x2c] sm:$0x1] %vm193_vm1, %v719_v46  ;;  %v752_v56 = vld [vmem:[%s751_s9] sm:$0x1]  ;;  %v1212_v57 = vperm.slane %v4312_v51, %v4050_v25  ;;  %s623_s13 = scalar_lea.vmem %s5029_s12, %s5010_s26 }
 0x1d3   :  { %s601_s17 = scalar_lea.vmem %s5029_s12, %s5069_s28  ;;  %731 = vst.msk [vmem:[#allocation7 + $0x2d] sm:$0x1] %vm193_vm1, %v730_v50  ;;  %v579_v58 = vld [vmem:[%s578_s0] sm:$0x1]  ;;  %s645_s1 = scalar_lea.vmem %s5029_s12, %s5012_s18 }
 0x1d4   :  { %742 = vst.msk [vmem:[#allocation7 + $0x2e] sm:$0x1] %vm193_vm1, %v741_v54  ;;  %v591_v59 = vld [vmem:[%s590_s10] sm:$0x1]  ;;  %v1221_v60 = vsel %vm1220_vm7, %v1212_v57, %v1219_v55  ;;  %s2995_s19 = smov 32   ;;  %s5072_s7 = sld [smem:[#allocation91_spill]] }
 0x1d5   :  { %s612_s14 = scalar_lea.vmem %s5029_s12, %s5070_s4  ;;  %753 = vst.msk [vmem:[#allocation7 + $0x2f] sm:$0x1] %vm193_vm1, %v752_v56  ;;  %v602_v49 = vld [vmem:[%s601_s17] sm:$0x1]  ;;  %v1223_v44 = vsel %vm1222_vm8, %v1213_v42, %v1221_v60  ;;  %s5074_s17 = sld [smem:[#allocation89_spill]] }
 0x1d6   :  { %581 = vst.msk [vmem:[#allocation7 + $0x20] sm:$0x1] %vm193_vm1, %v579_v58  ;;  %v613_v61 = vld [vmem:[%s612_s14] sm:$0x1]  ;;  %v1226_v62 = vsel %vm1225_vm9, %v1223_v44, -inf  ;;  %s5075_s8 = sld [smem:[#allocation92_spill]] }
 0x1d7   :  { %s634_s11 = scalar_lea.vmem %s5029_s12, %s5071_s6  ;;  %592 = vst.msk [vmem:[#allocation7 + $0x21] sm:$0x1] %vm193_vm1, %v591_v59  ;;  %v624_v63 = vld [vmem:[%s623_s13] sm:$0x1]  ;;  %1227 = vmax.xlane.f32.xlu1 %v1226_v62  ;;  %s5073_s6 = sld [smem:[#allocation88_spill]] }
 0x1d8   :  { %603 = vst.msk [vmem:[#allocation7 + $0x22] sm:$0x1] %vm193_vm1, %v602_v49  ;;  %v635_v0 = vld [vmem:[%s634_s11] sm:$0x1]  ;;  %v4414_v49 = vld [vmem:[#allocation5 + $0x8] sm:$0xff]  ;;  %s5076_s28 = sld [smem:[#allocation93_spill]] }
 0x1d9   :  { %614 = vst.msk [vmem:[#allocation7 + $0x23] sm:$0x1] %vm193_vm1, %v613_v61  ;;  %v646_v1 = vld [vmem:[%s645_s1] sm:$0x1]  ;;  %s5077_s16 = sld [smem:[#allocation94_spill]] }
 0x1da   :  { %625 = vst.msk [vmem:[#allocation7 + $0x24] sm:$0x1] %vm193_vm1, %v624_v63  ;;  %v657_v27 = vld [vmem:[%s656_s29] sm:$0x1]  ;;  %s5078_s22 = sld [smem:[#allocation95_spill]] }
 0x1db   :  { %636 = vst.msk [vmem:[#allocation7 + $0x25] sm:$0x1] %vm193_vm1, %v635_v0  ;;  %v2912_v42 = vld [vmem:[#allocation9] sm:$0xff] }
 0x1dc   :  { %647 = vst.msk [vmem:[#allocation7 + $0x26] sm:$0x1] %vm193_vm1, %v646_v1  ;;  %v1732_v59 = vrot.slane %v2912_v42, 1  ;;  %v1735_v44 = vrot.slane %v2912_v42, 4  ;;  %v1734_v61 = vrot.slane %v2912_v42, 3  ;;  %v1736_v63 = vrot.slane %v2912_v42, 5 }
 0x1dd   :  { %658 = vst.msk [vmem:[#allocation7 + $0x27] sm:$0x1] %vm193_vm1, %v657_v27  ;;  %v4417_v1 = vld [vmem:[#allocation5 + $0x20] sm:$0xff] }
 0x1de   :  { %v1741_v60 = vperm.slane %v1732_v59, 0  ;;  %v1744_v0 = vperm.slane %v1735_v44, 0  ;;  %v1743_v27 = vperm.slane %v1734_v61, 0 }
 0x1e0   :  { %v1761_v62 = vmul.f32 %v1741_v60, %v4414_v49 }
 0x1e5   :  { %v4368_v8 = vpop.xlane.xlu1 %1771 }
 0x224   :  { %v1472_v2 = vpop.xlane.xlu0 %1471 }
 0x225   :  { %v1474_v3 = vperm.slane %v1472_v2, 0  ;;  %v1477_v35 = vperm.slane %v1472_v2, 3  ;;  %v1476_v36 = vperm.slane %v1472_v2, 2  ;;  %v1478_v45 = vperm.slane %v1472_v2, 4 }
 0x227   :  { %v1486_v4 = vsub.f32 %v4032_v18, %v1474_v3  ;;  %v1489_v40 = vsub.f32 %v4061_v33, %v1477_v35  ;;  %v1488_v41 = vsub.f32 %v4036_v21, %v1476_v36  ;;  %v1490_v21 = vsub.f32 %v4078_v37, %v1478_v45  ;;  %v4446_v45 = vpop.xlane.xlu2 %1777 }
 0x228   :  { %v1745_v3 = vperm.slane %v1736_v63, 0 }
 0x229   :  { %v1492_v5 = vmul.f32 1.442695, %v1486_v4  ;;  %v1498_v46 = vmul.f32 1.442695, %v1489_v40  ;;  %v1496_v48 = vmul.f32 1.442695, %v1488_v41 }
 0x22a   :  { %v1500_v54 = vmul.f32 1.442695, %v1490_v21  ;;  %v4420_v4 = vld [vmem:[#allocation5 + $0x18] sm:$0xff]  ;;  %v4442_v40 = vld [vmem:[#allocation5 + $0x48] sm:$0xff] }
 0x22b   :  { %2854 = vpow2.f32 %v1492_v5  ;;  %v1764_v5 = vmul.f32 %v1744_v0, %v4417_v1 }
 0x231   :  { %v4365_v6 = vpop.eup %2854 }
 0x232   :  { %1511 = vperm.xlu2 %2853, %v4365_v6  }
 0x24a   :  { %v1228_v9 = vpop.xlane.xlu1 %1227 }
 0x24b   :  { %v1230_v10 = vperm.slane %v1228_v9, 0  ;;  %v1231_v11 = vperm.slane %v1228_v9, 1  ;;  %v1232_v12 = vperm.slane %v1228_v9, 2  ;;  %v1233_v15 = vperm.slane %v1228_v9, 3 }
 0x24c   :  { %v1234_v19 = vperm.slane %v1228_v9, 4  ;;  %v1235_v14 = vperm.slane %v1228_v9, 5  ;;  %v1738_v9 = vrot.slane %v2912_v42, 7 }
 0x24d   :  { %v1242_v16 = vsub.f32 %v4249_v26, %v1230_v10  ;;  %v1243_v18 = vsub.f32 %v4237_v20, %v1231_v11  ;;  %v1244_v17 = vsub.f32 %v4271_v34, %v1232_v12  ;;  %v1245_v29 = vsub.f32 %v4263_v31, %v1233_v15 }
 0x24e   :  { %v1246_v30 = vsub.f32 %v4312_v51, %v1234_v19  ;;  %v1247_v32 = vsub.f32 %v4305_v47, %v1235_v14  ;;  %v1475_v34 = vperm.slane %v1472_v2, 1  ;;  %v1479_v47 = vperm.slane %v1472_v2, 5  ;;  %v1729_v19 = vld [vmem:[#allocation9 + $0x8] sm:$0x3] }
 0x24f   :  { %v1248_v22 = vmul.f32 1.442695, %v1242_v16  ;;  %v1250_v24 = vmul.f32 1.442695, %v1243_v18  ;;  %v1252_v28 = vmul.f32 1.442695, %v1244_v17  ;;  %v1763_v10 = vmul.f32 %v1743_v27, %v4420_v4 }
 0x250   :  { %v1254_v26 = vmul.f32 1.442695, %v1245_v29  ;;  %v1256_v20 = vmul.f32 1.442695, %v1246_v30  ;;  %v1258_v13 = vmul.f32 1.442695, %v1247_v32  ;;  %v1487_v43 = vsub.f32 %v4043_v23, %v1475_v34 }
 0x251   :  { %2856 = vpow2.f32 %v1248_v22  ;;  %v1491_v23 = vsub.f32 %v4111_v53, %v1479_v47  ;;  %v1773_v2 = vsel %vm128_vm0, %v1761_v62, 0.0  ;;  %v1737_v11 = vrot.slane %v2912_v42, 6  ;;  %v4428_v18 = vld [vmem:[#allocation5 + $0x38] sm:$0xff]  ;;  %v4435_v30 = vld [vmem:[#allocation5 + $0x40] sm:$0xff] }
 0x252   :  { %2858 = vpow2.f32 %v1250_v24  ;;  %v1494_v51 = vmul.f32 1.442695, %v1487_v43  ;;  %v1765_v12 = vmul.f32 %v1745_v3, %v4423_v7  ;;  %v1782_v15 = vsel %vm128_vm0, %v1764_v5, 0.0 }
 0x253   :  { %2860 = vpow2.f32 %v1252_v28  ;;  %v1502_v55 = vmul.f32 1.442695, %v1491_v23  ;;  %v1747_v16 = vperm.slane %v1738_v9, 0  ;;  %v1779_v17 = vsel %vm128_vm0, %v1763_v10, 0.0  ;;  %v4432_v28 = vld [vmem:[#allocation5 + $0x30] sm:$0xff] }
 0x254   :  { %2862 = vpow2.f32 %v1254_v26  ;;  %v1746_v14 = vperm.slane %v1737_v11, 0  ;;  %v1785_v22 = vsel %vm128_vm0, %v1765_v12, 0.0  ;;  %v1748_v24 = vperm.slane %v1729_v19, 0 }
 0x255   :  { %2864 = vpow2.f32 %v1256_v20  ;;  %v1767_v29 = vmul.f32 %v1747_v16, %v4428_v18  ;;  %v1739_v35 = vrot.slane %v1729_v19, 1 }
 0x256   :  { %2866 = vpow2.f32 %v1258_v13  ;;  %v1766_v32 = vmul.f32 %v1746_v14, %v4432_v28  ;;  %v1768_v26 = vmul.f32 %v1748_v24, %v4435_v30 }
 0x257   :  { %v4376_v38 = vpop.eup %2856  ;;  %2868 = vpow2.f32 %v1498_v46  ;;  %v1791_v36 = vsel %vm128_vm0, %v1767_v29, 0.0  ;;  %v1749_v34 = vperm.slane %v1739_v35, 0 }
 0x258   :  { %v4378_v39 = vpop.eup %2858  ;;  %1267 = vperm.xlu2 %2853, %v4376_v38   ;;  %2870 = vpow2.f32 %v1496_v48  ;;  %v1788_v20 = vsel %vm128_vm0, %v1766_v32, 0.0  ;;  %v1794_v13 = vsel %vm128_vm0, %v1768_v26, 0.0 }
 0x259   :  { %v4381_v31 = vpop.eup %2860  ;;  %1270 = vperm.xlu1 %2851, %v4378_v39   ;;  %2872 = vpow2.f32 %v1494_v51  ;;  %v1769_v41 = vmul.f32 %v1749_v34, %v4442_v40 }
 0x25a   :  { %1273 = vperm.xlu0 %2852, %v4381_v31   ;;  %v4388_v50 = vpop.eup %2862  ;;  %2874 = vpow2.f32 %v1500_v54 }
 0x25b   :  { %v4390_v52 = vpop.eup %2864  ;;  %2876 = vpow2.f32 %v1502_v55  ;;  %v1797_v43 = vsel %vm128_vm0, %v1769_v41, 0.0 }
 0x25c   :  { %v4393_v33 = vpop.eup %2866 }
 0x25d   :  { %v4399_v56 = vpop.eup %2868 }
 0x25e   :  { %v4401_v57 = vpop.eup %2870 }
 0x25f   :  { %v4404_v58 = vpop.eup %2872 }
 0x260   :  { %1276 = vperm.xlu2 %2853, %v4388_v50   ;;  %v4408_v37 = vpop.eup %2874 }
 0x261   :  { %1279 = vperm.xlu1 %2851, %v4390_v52   ;;  %v4410_v53 = vpop.eup %2876 }
 0x262   :  { %1282 = vperm.xlu0 %2852, %v4393_v33  }
 0x268   :  { %1520 = vperm.xlu2 %2853, %v4399_v56  }
 0x269   :  { %1517 = vperm.xlu1 %2851, %v4401_v57  }
 0x26a   :  { %1514 = vperm.xlu0 %2852, %v4404_v58  }
 0x270   :  { %1523 = vperm.xlu2 %2853, %v4408_v37  }
 0x271   :  { %1526 = vperm.xlu1 %2851, %v4410_v53  }
 0x28c   :  { %v1512_v46 = vpop.permute.xlu2 %1511 }
 0x28d   :  { %v1528_v12 = vperm.slane %v1512_v46, %v4050_v25 }
 0x294   :  { %1774 = vadd.xlane.f32.xlu0 %v1773_v2 }
 0x299   :  { %1783 = vadd.xlane.f32.xlu2 %v1782_v15 }
 0x29b   :  { %1780 = vadd.xlane.f32.xlu1 %v1779_v17 }
 0x29c   :  { %1786 = vadd.xlane.f32.xlu0 %v1785_v22 }
 0x2a1   :  { %1792 = vadd.xlane.f32.xlu2 %v1791_v36 }
 0x2a3   :  { %1789 = vadd.xlane.f32.xlu1 %v1788_v20 }
 0x2a4   :  { %1795 = vadd.xlane.f32.xlu0 %v1794_v13 }
 0x2ab   :  { %1798 = vadd.xlane.f32.xlu1 %v1797_v43 }
 0x2b2   :  { %v1268_v47 = vpop.permute.xlu2 %1267 }
 0x2b3   :  { %v1284_v54 = vperm.slane %v1268_v47, %v4050_v25 }
 0x2ba   :  { %v1277_v51 = vpop.permute.xlu2 %1276 }
 0x2bb   :  { %v1287_v60 = vperm.slane %v1277_v51, %v4050_v25 }
 0x2c2   :  { %v1521_v27 = vpop.permute.xlu2 %1520 }
 0x2c3   :  { %v1531_v17 = vperm.slane %v1521_v27, %v4050_v25 }
 0x2ca   :  { %v1524_v19 = vpop.permute.xlu2 %1523 }
 0x2cb   :  { %v1271_v48 = vpop.permute.xlu1 %1270  ;;  %v1532_v24 = vperm.slane %v1524_v19, %v4050_v25 }
 0x2cc   :  { %v1274_v21 = vpop.permute.xlu0 %1273  ;;  %v1285_v23 = vperm.slane %v1271_v48, %v4050_v25 }
 0x2cd   :  { %v1286_v55 = vperm.slane %v1274_v21, %v4050_v25 }
 0x2ce   :  { %v1290_v42 = vsel %vm1214_vm4, %v1285_v23, %v1284_v54 }
 0x2cf   :  { %v1291_v59 = vsel %vm1216_vm5, %v1286_v55, %v1290_v42 }
 0x2d0   :  { %v1292_v0 = vsel %vm1218_vm6, %v1287_v60, %v1291_v59 }
 0x2d3   :  { %v1280_v44 = vpop.permute.xlu1 %1279 }
 0x2d4   :  { %v1283_v61 = vpop.permute.xlu0 %1282  ;;  %v1288_v62 = vperm.slane %v1280_v44, %v4050_v25 }
 0x2d5   :  { %v1289_v63 = vperm.slane %v1283_v61, %v4050_v25 }
 0x2d6   :  { %v1293_v2 = vsel %vm1220_vm7, %v1288_v62, %v1292_v0  ;;  %v4484_v62 = vmul.f32 0.17677669, %v4368_v8  ;;  %v4491_v0 = vmul.f32 0.17677669, %v4446_v45 }
 0x2d7   :  { %v1294_v3 = vsel %vm1222_vm8, %v1289_v63, %v1293_v2 }
 0x2d8   :  { %v1296_v5 = vsel %vm1225_vm9, %v1294_v3, 0.0  ;;  %v1820_v27 = vperm.slane %v4484_v62, %v4050_v25 }
 0x2d9   :  { %1297 = vadd.xlane.f32.xlu2 %v1296_v5  ;;  %v1822_v5 = vperm.slane %v4491_v0, %v4050_v25 }
 0x2db   :  { %v1518_v9 = vpop.permute.xlu1 %1517 }
 0x2dc   :  { %v1515_v10 = vpop.permute.xlu0 %1514  ;;  %v1530_v11 = vperm.slane %v1518_v9, %v4050_v25 }
 0x2dd   :  { %v1529_v15 = vperm.slane %v1515_v10, %v4050_v25 }
 0x2df   :  { %v1534_v16 = vsel %vm1214_vm4, %v1529_v15, %v1528_v12 }
 0x2e0   :  { %v1535_v14 = vsel %vm1216_vm5, %v1530_v11, %v1534_v16 }
 0x2e1   :  { %v1536_v22 = vsel %vm1218_vm6, %v1531_v17, %v1535_v14 }
 0x2e2   :  { %v1537_v35 = vsel %vm1220_vm7, %v1532_v24, %v1536_v22 }
 0x2e3   :  { %v1527_v29 = vpop.permute.xlu1 %1526 }
 0x2e4   :  { %v1533_v32 = vperm.slane %v1527_v29, %v4050_v25 }
 0x2e6   :  { %v1538_v26 = vsel %vm1222_vm8, %v1533_v32, %v1537_v35 }
 0x2e7   :  { %v1540_v36 = vsel %vm1225_vm9, %v1538_v26, 0.0 }
 0x2e8   :  { %1541 = vadd.xlane.f32.xlu2 %v1540_v36 }
 0x307   :  { %v1775_v44 = vpop.xlane.xlu0 %1774 }
 0x308   :  { %v4480_v61 = vmul.f32 0.17677669, %v1775_v44 }
 0x30c   :  { %v1784_v20 = vpop.xlane.xlu2 %1783 }
 0x30d   :  { %v4501_v9 = vmul.f32 0.17677669, %v1784_v20 }
 0x30f   :  { %v1787_v10 = vpop.xlane.xlu0 %1786 }
 0x310   :  { %v4506_v12 = vmul.f32 0.17677669, %v1787_v10 }
 0x312   :  { %v1825_v14 = vperm.slane %v4506_v12, %v4050_v25 }
 0x314   :  { %v1793_v34 = vpop.xlane.xlu2 %1792 }
 0x315   :  { %v4517_v22 = vmul.f32 0.17677669, %v1793_v34 }
 0x317   :  { %v1827_v35 = vperm.slane %v4517_v22, %v4050_v25  ;;  %v1796_v20 = vpop.xlane.xlu0 %1795 }
 0x34c   :  { %v1298_v13 = vpop.xlane.xlu2 %1297 }
 0x35b   :  { %v1542_v41 = vpop.xlane.xlu2 %1541 }
 0x35c   :  { %2878 = vrcp.f32 %v1542_v41  ;;  %v4529_v41 = vmul.f32 0.17677669, %v1796_v20 }
 0x35d   :  { %2880 = vrcp.f32 %v1298_v13 }
 0x362   :  { %v2879_v43 = vpop.eup %2878 }
 0x363   :  { %v1547_v46 = vperm.slane %v2879_v43, 2  ;;  %v1546_v47 = vperm.slane %v2879_v43, 1  ;;  %v1545_v48 = vperm.slane %v2879_v43, 0  ;;  %v1549_v54 = vperm.slane %v2879_v43, 4  ;;  %v4477_v60 = vpop.eup %2880 }
 0x364   :  { %v1548_v55 = vperm.slane %v2879_v43, 3  ;;  %v1550_v63 = vperm.slane %v2879_v43, 5  ;;  %v1302_v16 = vperm.slane %v4477_v60, 1  ;;  %v1303_v36 = vperm.slane %v4477_v60, 2 }
 0x365   :  { %v1559_v51 = vmul.f32 %v4401_v57, %v1547_v46  ;;  %v1558_v21 = vmul.f32 %v4404_v58, %v1546_v47  ;;  %v1557_v23 = vmul.f32 %v4365_v6, %v1545_v48  ;;  %v1561_v42 = vmul.f32 %v4408_v37, %v1549_v54  ;;  %v1781_v58 = vpop.xlane.xlu1 %1780 }
 0x366   :  { %v1560_v59 = vmul.f32 %v4399_v56, %v1548_v55  ;;  %v1301_v57 = vperm.slane %v4477_v60, 0  ;;  %v1821_v37 = vperm.slane %v4480_v61, %v4050_v25  ;;  %v4488_v56 = vmul.f32 0.17677669, %v1781_v58 }
 0x367   :  { %1575 = vperm.xlu2 %2853, %v1559_v51   ;;  %1570 = vperm.xlu1 %2851, %v1558_v21   ;;  %v1562_v3 = vmul.f32 %v4410_v53, %v1550_v63  ;;  %v1824_v53 = vperm.slane %v4501_v9, %v4050_v25  ;;  %v1314_v24 = vmul.f32 %v4378_v39, %v1302_v16  ;;  %v1304_v47 = vperm.slane %v4477_v60, 3 }
 0x368   :  { %1565 = vperm.xlu0 %2852, %v1557_v23   ;;  %v1313_v6 = vmul.f32 %v4376_v38, %v1301_v57  ;;  %v1830_v2 = vsel %vm1214_vm4, %v1821_v37, %v1820_v27  ;;  %v1823_v38 = vperm.slane %v4488_v56, %v4050_v25  ;;  %v1315_v39 = vmul.f32 %v4381_v31, %v1303_v36  ;;  %v4549_v37 = vld [vmem:[#allocation4] sm:$0xff] }
 0x369   :  { %v1831_v45 = vsel %vm1216_vm5, %v1822_v5, %v1830_v2  ;;  %v1828_v48 = vperm.slane %v4529_v41, %v4050_v25  ;;  %v1316_v21 = vmul.f32 %v4388_v50, %v1304_v47  ;;  %v1305_v23 = vperm.slane %v4477_v60, 4  ;;  %v4546_v50 = vld [vmem:[#allocation4 + $0x8] sm:$0xff]  ;;  %v4554_v2 = vld [vmem:[#allocation4 + $0x18] sm:$0xff] }
 0x36a   :  { %v1832_v15 = vsel %vm1218_vm6, %v1823_v38, %v1831_v45  ;;  %v1306_v55 = vperm.slane %v4477_v60, 5 }
 0x36b   :  { %v1833_v19 = vsel %vm1220_vm7, %v1824_v53, %v1832_v15  ;;  %v1317_v54 = vmul.f32 %v4390_v52, %v1305_v23  ;;  %v4560_v15 = vld [vmem:[#allocation4 + $0x20] sm:$0xff] }
 0x36c   :  { %v1834_v29 = vsel %vm1222_vm8, %v1825_v14, %v1833_v19 }
 0x36d   :  { %v1790_v8 = vpop.xlane.xlu1 %1789 }
 0x36e   :  { %v4504_v11 = vmul.f32 0.17677669, %v1790_v8  ;;  %v4557_v8 = vld [vmem:[#allocation4 + $0x10] sm:$0xff] }
 0x36f   :  { %1585 = vperm.xlu1 %2851, %v1561_v42   ;;  %v1318_v42 = vmul.f32 %v4393_v33, %v1306_v55 }
 0x370   :  { %1580 = vperm.xlu0 %2852, %v1560_v59   ;;  %v1826_v17 = vperm.slane %v4504_v11, %v4050_v25 }
 0x372   :  { %v1836_v32 = vsel %vm1835_vm10, %v1826_v17, %v1834_v29  ;;  %v4564_v17 = vld [vmem:[#allocation4 + $0x28] sm:$0xff] }
 0x373   :  { %v1838_v13 = vsel %vm1837_vm11, %v1827_v35, %v1836_v32 }
 0x374   :  { %v1843_v43 = vsel %vm1842_vm12, %v1838_v13, -inf }
 0x375   :  { %v1799_v26 = vpop.xlane.xlu1 %1798 }
 0x376   :  { %v4526_v34 = vmul.f32 0.17677669, %v1799_v26 }
 0x378   :  { %1327 = vperm.xlu0 %2852, %v1313_v6   ;;  %v1829_v46 = vperm.slane %v4526_v34, %v4050_v25 }
 0x37a   :  { %v1839_v51 = vsel %vm1214_vm4, %v1829_v46, %v1828_v48 }
 0x37b   :  { %v1847_v31 = vsel %vm1846_vm13, %v1839_v51, -inf }
 0x380   :  { %1590 = vperm.xlu0 %2852, %v1562_v3  }
 0x388   :  { %1332 = vperm.xlu0 %2852, %v1314_v24  }
 0x390   :  { %1337 = vperm.xlu0 %2852, %v1315_v39   ;;  %1844 = vmax.xlane.f32.xlu2 %v1843_v43 }
 0x398   :  { %1342 = vperm.xlu0 %2852, %v1316_v21  }
 0x399   :  { %1848 = vmax.xlane.f32.xlu1 %v1847_v31 }
 0x3a0   :  { %1347 = vperm.xlu0 %2852, %v1317_v54  }
 0x3a8   :  { %1352 = vperm.xlu2 %2853, %v1318_v42  }
 0x3c1   :  { %v1576_v52 = vpop.permute.xlu2 %1575 }
 0x3c2   :  { %v1595_v3 = vmul.f32 %v4557_v8, %v1576_v52 }
 0x3c4   :  { %v1613_v24 = vsel %vm128_vm0, %v1595_v3, 0.0 }
 0x3c5   :  { %v1614_v47 = vrot.slane %v1613_v24, 4 }
 0x3d9   :  { %v1571_v44 = vpop.permute.xlu1 %1570 }
 0x3da   :  { %v1566_v59 = vpop.permute.xlu0 %1565  ;;  %v1594_v6 = vmul.f32 %v4546_v50, %v1571_v44 }
 0x3db   :  { %v1593_v63 = vmul.f32 %v4549_v37, %v1566_v59 }
 0x3dc   :  { %v1606_v27 = vsel %vm128_vm0, %v1594_v6, 0.0  ;;  %v1615_v6 = vadd.f32 %v1614_v47, %v1613_v24 }
 0x3dd   :  { %v1599_v60 = vsel %vm128_vm0, %v1593_v63, 0.0  ;;  %v1607_v10 = vrot.slane %v1606_v27, 4 }
 0x3de   :  { %v1600_v45 = vrot.slane %v1599_v60, 4 }
 0x3df   :  { %v1608_v26 = vadd.f32 %v1607_v10, %v1606_v27 }
 0x3e0   :  { %v1601_v36 = vadd.f32 %v1600_v45, %v1599_v60  ;;  %v1616_v45 = vrot.slane %v1615_v6, 2 }
 0x3e1   :  { %v1586_v33 = vpop.permute.xlu1 %1585  ;;  %v1609_v55 = vrot.slane %v1608_v26, 2 }
 0x3e2   :  { %v1581_v57 = vpop.permute.xlu0 %1580  ;;  %v1597_v16 = vmul.f32 %v4560_v15, %v1586_v33  ;;  %v1602_v42 = vrot.slane %v1601_v36, 2 }
 0x3e3   :  { %v1596_v38 = vmul.f32 %v4554_v2, %v1581_v57  ;;  %v1610_v27 = vadd.f32 %v1609_v55, %v1608_v26 }
 0x3e4   :  { %v1627_v20 = vsel %vm128_vm0, %v1597_v16, 0.0  ;;  %v1603_v60 = vadd.f32 %v1602_v42, %v1601_v36 }
 0x3e5   :  { %v1620_v53 = vsel %vm128_vm0, %v1596_v38, 0.0  ;;  %v1628_v59 = vrot.slane %v1627_v20, 4 }
 0x3e6   :  { %v1621_v13 = vrot.slane %v1620_v53, 4 }
 0x3e7   :  { %v1629_v33 = vadd.f32 %v1628_v59, %v1627_v20  ;;  %v1617_v20 = vadd.f32 %v1616_v45, %v1615_v6 }
 0x3ea   :  { %v4544_v58 = vpop.permute.xlu0 %1327 }
 0x3f2   :  { %v1591_v5 = vpop.permute.xlu0 %1590 }
 0x3f3   :  { %v1598_v19 = vmul.f32 %v4564_v17, %v1591_v5 }
 0x3f5   :  { %v1634_v48 = vsel %vm128_vm0, %v1598_v19, 0.0 }
 0x3f6   :  { %v1635_v44 = vrot.slane %v1634_v48, 4 }
 0x3f8   :  { %v1636_v3 = vadd.f32 %v1635_v44, %v1634_v48 }
 0x3fa   :  { %v1637_v26 = vrot.slane %v1636_v3, 2  ;;  %v1333_v45 = vpop.permute.xlu0 %1332 }
 0x3fc   :  { %v1638_v48 = vadd.f32 %v1637_v26, %v1636_v3  ;;  %v1144_v26 = vld [vmem:[#allocation7 + $0x20] sm:$0xff] }
 0x3fe   :  { %v1639_v59 = vrot.slane %v1638_v48, 1 }
 0x403   :  { %v4567_v14 = vpop.xlane.xlu2 %1844 }
 0x404   :  { %v1855_v29 = vperm.slane %v4567_v14, 3  ;;  %v1852_v32 = vperm.slane %v4567_v14, 0  ;;  %v1853_v35 = vperm.slane %v4567_v14, 1  ;;  %v1858_v46 = vperm.slane %v4567_v14, 6 }
 0x405   :  { %v1857_v21 = vperm.slane %v4567_v14, 5  ;;  %v1854_v54 = vperm.slane %v4567_v14, 2 }
 0x406   :  { %v1875_v39 = vsub.f32 %v4488_v56, %v1855_v29  ;;  %v1872_v43 = vsub.f32 %v4484_v62, %v1852_v32  ;;  %v1873_v51 = vsub.f32 %v4480_v61, %v1853_v35  ;;  %v1622_v56 = vadd.f32 %v1621_v13, %v1620_v53 }
 0x407   :  { %v1878_v62 = vsub.f32 %v4504_v11, %v1858_v46  ;;  %v1877_v63 = vsub.f32 %v4506_v12, %v1857_v21  ;;  %v1874_v52 = vsub.f32 %v4491_v0, %v1854_v54  ;;  %v1611_v12 = vrot.slane %v1610_v27, 1 }
 0x408   :  { %v1888_v31 = vmul.f32 1.442695, %v1875_v39  ;;  %v1882_v23 = vmul.f32 1.442695, %v1872_v43  ;;  %v1884_v57 = vmul.f32 1.442695, %v1873_v51 }
 0x409   :  { %v1623_v38 = vrot.slane %v1622_v56, 2  ;;  %v1894_v10 = vmul.f32 1.442695, %v1878_v62  ;;  %v1892_v53 = vmul.f32 1.442695, %v1877_v63  ;;  %v1604_v29 = vrot.slane %v1603_v60, 1 }
 0x40a   :  { %2882 = vpow2.f32 %v1888_v31  ;;  %v1886_v11 = vmul.f32 1.442695, %v1874_v52  ;;  %v1630_v32 = vrot.slane %v1629_v33, 2  ;;  %v1612_v39 = vadd.f32 %v1611_v12, %v1610_v27  ;;  %v1141_v12 = vld [vmem:[#allocation7 + $0x8] sm:$0xff] }
 0x40b   :  { %2884 = vpow2.f32 %v1882_v23  ;;  %v1624_v35 = vadd.f32 %v1623_v38, %v1622_v56  ;;  %v1605_v46 = vadd.f32 %v1604_v29, %v1603_v60  ;;  %v1618_v21 = vrot.slane %v1617_v20, 1  ;;  %v1140_v29 = vld [vmem:[#allocation7] sm:$0xff] }
 0x40c   :  { %v1849_v61 = vpop.xlane.xlu1 %1848  ;;  %2886 = vpow2.f32 %v1884_v57  ;;  %v1631_v43 = vadd.f32 %v1630_v32, %v1629_v33  ;;  %v1640_v63 = vadd.f32 %v1639_v59, %v1638_v48  ;;  %v1859_v60 = vperm.slane %v4567_v14, 7  ;;  %v1143_v32 = vld [vmem:[#allocation7 + $0x18] sm:$0xff] }
 0x40d   :  { %v1861_v5 = vperm.slane %v1849_v61, 1  ;;  %v1860_v16 = vperm.slane %v1849_v61, 0  ;;  %2888 = vpow2.f32 %v1894_v10  ;;  %v1625_v47 = vrot.slane %v1624_v35, 1 }
 0x40e   :  { %2890 = vpow2.f32 %v1892_v53  ;;  %v1632_v55 = vrot.slane %v1631_v43, 1  ;;  %v1659_v57 = vsel %vm1214_vm4, %v1612_v39, %v1605_v46  ;;  %v1619_v56 = vadd.f32 %v1618_v21, %v1617_v20  ;;  %v2831_v46 = vld [vmem:[%s5072_s7 + $0x10] sm:$0xff] }
 0x40f   :  { %v1881_v36 = vsub.f32 %v4526_v34, %v1861_v5  ;;  %v1880_v13 = vsub.f32 %v4529_v41, %v1860_v16  ;;  %2892 = vpow2.f32 %v1886_v11  ;;  %v1856_v34 = vperm.slane %v4567_v14, 4  ;;  %v1338_v16 = vpop.permute.xlu0 %1337  ;;  %v2832_v11 = vld [vmem:[%s5072_s7 + $0x18] sm:$0xff] }
 0x410   :  { %v4584_v19 = vpop.eup %2882  ;;  %v1626_v42 = vadd.f32 %v1625_v47, %v1624_v35  ;;  %v1633_v62 = vadd.f32 %v1632_v55, %v1631_v43  ;;  %v1660_v6 = vsel %vm1216_vm5, %v1619_v56, %v1659_v57  ;;  %v1879_v3 = vsub.f32 %v4517_v22, %v1859_v60  ;;  %1709 = vmatpush.bf16.msra.mxu2 %v2832_v11  ;;  %v1142_v22 = vld [vmem:[#allocation7 + $0x10] sm:$0xff]  ;;  %v2829_v57 = vld [vmem:[%s5072_s7] sm:$0xff] }
 0x411   :  { %v4586_v24 = vpop.eup %2884  ;;  %1922 = vperm.xlu2 %2853, %v4584_v19   ;;  %v1900_v51 = vmul.f32 1.442695, %v1881_v36  ;;  %v1898_v31 = vmul.f32 1.442695, %v1880_v13  ;;  %v1876_v44 = vsub.f32 %v4501_v9, %v1856_v34  ;;  %v1320_v35 = vadd.f32 %v4546_v50, %v1141_v12  ;;  %v2830_v50 = vld [vmem:[%s5072_s7 + $0x8] sm:$0xff]  ;;  %v1353_v34 = vpop.permute.xlu2 %1352 }
 0x412   :  { %v4589_v0 = vpop.eup %2886  ;;  %1913 = vperm.xlu1 %2851, %v4586_v24   ;;  %v1661_v61 = vsel %vm1218_vm6, %v1626_v42, %v1660_v6  ;;  %v1896_v5 = vmul.f32 1.442695, %v1879_v3  ;;  %v1321_v36 = vadd.f32 %v4557_v8, %v1142_v22  ;;  %v1319_v20 = vadd.f32 %v4549_v37, %v1140_v29  ;;  %v1145_v37 = vld [vmem:[#allocation7 + $0x28] sm:$0xff] }
 0x413   :  { %1916 = vperm.xlu0 %2852, %v4589_v0   ;;  %v4595_v23 = vpop.eup %2888  ;;  %2894 = vpow2.f32 %v1900_v51  ;;  %v1890_v27 = vmul.f32 1.442695, %v1876_v44  ;;  %v1662_v38 = vsel %vm1220_vm7, %v1633_v62, %v1661_v61  ;;  %v1356_v13 = vmul.f32 %v1333_v45, %v1320_v35 }
 0x414   :  { %v4598_v54 = vpop.eup %2890  ;;  %2896 = vpow2.f32 %v1898_v31  ;;  %v1663_v9 = vsel %vm1222_vm8, %v1640_v63, %v1662_v38  ;;  %v1322_v39 = vadd.f32 %v4554_v2, %v1143_v32  ;;  %v1357_v47 = vmul.f32 %v1338_v16, %v1321_v36  ;;  %1710 = vmatpush.bf16.msra.mxu2 %v2831_v46 }
 0x415   :  { %v4601_v41 = vpop.eup %2892  ;;  %2898 = vpow2.f32 %v1890_v27  ;;  %v1323_v48 = vadd.f32 %v4560_v15, %v1144_v26  ;;  %v1355_v51 = vmul.f32 %v4544_v58, %v1319_v20  ;;  %v1368_v2 = vsel %vm128_vm0, %v1356_v13, 0.0 }
 0x416   :  { %2900 = vpow2.f32 %v1896_v5  ;;  %v1375_v31 = vsel %vm128_vm0, %v1357_v47, 0.0  ;;  %v1324_v15 = vadd.f32 %v4564_v17, %v1145_v37  ;;  %v1369_v58 = vrot.slane %v1368_v2, 4 }
 0x417   :  { %v1343_v53 = vpop.permute.xlu0 %1342  ;;  %v1361_v55 = vsel %vm128_vm0, %v1355_v51, 0.0  ;;  %v1376_v56 = vrot.slane %v1375_v31, 4 }
 0x418   :  { %v1358_v21 = vmul.f32 %v1343_v53, %v1322_v39  ;;  %1711 = vmatpush.bf16.msra.mxu2 %v2830_v50  ;;  %v1360_v44 = vmul.f32 %v1353_v34, %v1324_v15  ;;  %v1362_v62 = vrot.slane %v1361_v55, 4  ;;  %v1370_v61 = vadd.f32 %v1369_v58, %v1368_v2 }
 0x419   :  { %1931 = vperm.xlu2 %2853, %v4595_v23   ;;  %v4609_v52 = vpop.eup %2894  ;;  %v1377_v27 = vadd.f32 %v1376_v56, %v1375_v31 }
 0x41a   :  { %1928 = vperm.xlu1 %2851, %v4598_v54   ;;  %v4612_v33 = vpop.eup %2896  ;;  %v1382_v42 = vsel %vm128_vm0, %v1358_v21, 0.0  ;;  %v1396_v60 = vsel %vm128_vm0, %v1360_v44, 0.0  ;;  %v1363_v38 = vadd.f32 %v1362_v62, %v1361_v55  ;;  %v1371_v5 = vrot.slane %v1370_v61, 2 }
 0x41b   :  { %1919 = vperm.xlu0 %2852, %v4601_v41   ;;  %v4620_v10 = vpop.eup %2898  ;;  %v1383_v6 = vrot.slane %v1382_v42, 4  ;;  %v1397_v45 = vrot.slane %v1396_v60, 4  ;;  %v1378_v16 = vrot.slane %v1377_v27, 2 }
 0x41c   :  { %v4623_v14 = vpop.eup %2900  ;;  %1712 = vmatpush.bf16.msra.mxu2 %v2829_v57  ;;  %v1364_v53 = vrot.slane %v1363_v38, 2  ;;  %v1372_v22 = vadd.f32 %v1371_v5, %v1370_v61 }
 0x41d   :  { %v1384_v17 = vadd.f32 %v1383_v6, %v1382_v42  ;;  %v1398_v29 = vadd.f32 %v1397_v45, %v1396_v60  ;;  %v1379_v32 = vadd.f32 %v1378_v16, %v1377_v27 }
 0x41e   :  { %v1365_v26 = vadd.f32 %v1364_v53, %v1363_v38  ;;  %v1373_v39 = vrot.slane %v1372_v22, 1 }
 0x41f   :  { %v1348_v43 = vpop.permute.xlu0 %1347  ;;  %v1385_v11 = vrot.slane %v1384_v17, 2  ;;  %v1380_v46 = vrot.slane %v1379_v32, 1 }
 0x420   :  { %v1359_v8 = vmul.f32 %v1348_v43, %v1323_v48  ;;  %v1399_v43 = vrot.slane %v1398_v29, 2  ;;  %v1366_v48 = vrot.slane %v1365_v26, 1  ;;  %v1374_v50 = vadd.f32 %v1373_v39, %v1372_v22 }
 0x421   :  { %1940 = vperm.xlu2 %2853, %v4609_v52   ;;  %v1386_v36 = vadd.f32 %v1385_v11, %v1384_v17 }
 0x422   :  { %1937 = vperm.xlu1 %2851, %v4612_v33   ;;  %v1389_v59 = vsel %vm128_vm0, %v1359_v8, 0.0  ;;  %v1400_v37 = vadd.f32 %v1399_v43, %v1398_v29  ;;  %v1381_v8 = vadd.f32 %v1380_v46, %v1379_v32  ;;  %v1367_v31 = vadd.f32 %v1366_v48, %v1365_v26 }
 0x423   :  { %1664 = vrot.lane.b32.xlu0 %v1663_v9, %s2995_s19  ;;  %v1390_v63 = vrot.slane %v1389_v59, 4  ;;  %v1387_v51 = vrot.slane %v1386_v36, 1 }
 0x424   :  { %v1647_v15 = vsel %vm1214_vm4, %v1374_v50, %v1367_v31  ;;  %v1401_v58 = vrot.slane %v1400_v37, 1 }
 0x425   :  { %v1391_v9 = vadd.f32 %v1390_v63, %v1389_v59  ;;  %v1388_v34 = vadd.f32 %v1387_v51, %v1386_v36  ;;  %v1648_v59 = vsel %vm1216_vm5, %v1381_v8, %v1647_v15 }
 0x426   :  { %v1402_v62 = vadd.f32 %v1401_v58, %v1400_v37 }
 0x427   :  { %v1392_v12 = vrot.slane %v1391_v9, 2  ;;  %v1649_v57 = vsel %vm1218_vm6, %v1388_v34, %v1648_v59 }
 0x429   :  { %v1393_v13 = vadd.f32 %v1392_v12, %v1391_v9 }
 0x42b   :  { %1925 = vperm.xlu0 %2852, %v4620_v10   ;;  %v1394_v21 = vrot.slane %v1393_v13, 1 }
 0x42d   :  { %v1395_v42 = vadd.f32 %v1394_v21, %v1393_v13 }
 0x42f   :  { %v1650_v44 = vsel %vm1220_vm7, %v1395_v42, %v1649_v57 }
 0x430   :  { %v1651_v27 = vsel %vm1222_vm8, %v1402_v62, %v1650_v44 }
 0x433   :  { %1934 = vperm.xlu0 %2852, %v4623_v14  }
 0x46b   :  { %v1923_v3 = vpop.permute.xlu2 %1922 }
 0x46c   :  { %v1945_v29 = vperm.slane %v1923_v3, %v4050_v25 }
 0x473   :  { %v1932_v47 = vpop.permute.xlu2 %1931 }
 0x474   :  { %v1948_v13 = vperm.slane %v1932_v47, %v4050_v25 }
 0x47b   :  { %v1941_v56 = vpop.permute.xlu2 %1940 }
 0x47c   :  { %v1951_v63 = vperm.slane %v1941_v56, %v4050_v25 }
 0x484   :  { %v1914_v35 = vpop.permute.xlu1 %1913 }
 0x485   :  { %v1917_v20 = vpop.permute.xlu0 %1916  ;;  %v1942_v5 = vperm.slane %v1914_v35, %v4050_v25 }
 0x486   :  { %v1943_v45 = vperm.slane %v1917_v20, %v4050_v25 }
 0x488   :  { %v1952_v11 = vsel %vm1214_vm4, %v1943_v45, %v1942_v5 }
 0x48c   :  { %v1929_v2 = vpop.permute.xlu1 %1928 }
 0x48d   :  { %v1920_v55 = vpop.permute.xlu0 %1919  ;;  %v1947_v36 = vperm.slane %v1929_v2, %v4050_v25 }
 0x48e   :  { %v1944_v53 = vperm.slane %v1920_v55, %v4050_v25 }
 0x490   :  { %v1953_v12 = vsel %vm1216_vm5, %v1944_v53, %v1952_v11 }
 0x491   :  { %v1954_v35 = vsel %vm1218_vm6, %v1945_v29, %v1953_v12  ;;  %v2919_v12 = vld [vmem:[#allocation5 + $0x10] sm:$0xff]  ;;  %v2920_v29 = vld [vmem:[#allocation5] sm:$0xff] }
 0x494   :  { %v1938_v6 = vpop.permute.xlu1 %1937 }
 0x495   :  { %v1950_v61 = vperm.slane %v1938_v6, %v4050_v25  ;;  %v1665_v60 = vpop.permute.xlu0 %1664 }
 0x496   :  { %v1667_v38 = vsel %vm128_vm0, %v1651_v27, %v1665_v60 }
 0x497   :  { %v1668_v17 = vpack.c.bf16 %v1667_v38, %v1667_v38  ;;  %v1959_v9 = vsel %vm1214_vm4, %v1951_v63, %v1950_v61 }
 0x498   :  { %v1965_v16 = vsel %vm1846_vm13, %v1959_v9, 0.0 }
 0x499   :  { %2785 = vmatmul.msk.bf16.vlgmr.msra.gmra.mxu2 %vm1701_vm14, %v1668_v17  ;;  %1966 = vadd.xlane.f32.xlu1 %v1965_v16 }
 0x49d   :  { %v1926_v22 = vpop.permute.xlu0 %1925 }
 0x49e   :  { %v1946_v32 = vperm.slane %v1926_v22, %v4050_v25 }
 0x4a0   :  { %v1955_v26 = vsel %vm1220_vm7, %v1946_v32, %v1954_v35 }
 0x4a1   :  { %v1956_v20 = vsel %vm1222_vm8, %v1947_v36, %v1955_v26 }
 0x4a2   :  { %v1957_v46 = vsel %vm1835_vm10, %v1948_v13, %v1956_v20 }
 0x4a5   :  { %v1935_v39 = vpop.permute.xlu0 %1934 }
 0x4a6   :  { %v1949_v43 = vperm.slane %v1935_v39, %v4050_v25  ;;  %v2133_v25 = vld [vmem:[%s5073_s6] sm:$0x7] }
 0x4a7   :  { %v2135_v42 = vunpack.c.l.b16 %v2133_v25 }
 0x4a8   :  { %v1958_v48 = vsel %vm1837_vm11, %v1949_v43, %v1957_v46 }
 0x4a9   :  { %v1962_v3 = vsel %vm1842_vm12, %v1958_v48, 0.0  ;;  %v2136_v58 = vpack.c.b16 %v2135_v42, %v2135_v42 }
 0x4aa   :  { %1963 = vadd.xlane.f32.xlu0 %v1962_v3 }
 0x50c   :  { %v1967_v6 = vpop.xlane.xlu1 %1966 }
 0x51c   :  { %v4678_v51 = vpop.f32.mrf.mxu2 }
 0x51d   :  { %v1964_v21 = vpop.xlane.xlu0 %1963  ;;  %v2132_v36 = vpack.c.bf16 %v4678_v51, %v4678_v51 }
 0x51e   :  { %2902 = vrcp.f32 %v1964_v21 }
 0x51f   :  { %2904 = vrcp.f32 %v1967_v6 }
 0x524   :  { %v2903_v50 = vpop.eup %2902  ;;  %v1716_v37 = vpop.f32.mrf.mxu2 }
 0x525   :  { %v1978_v8 = vperm.slane %v2903_v50, 6  ;;  %v1977_v2 = vperm.slane %v2903_v50, 5  ;;  %v1972_v31 = vperm.slane %v2903_v50, 0  ;;  %v1973_v15 = vperm.slane %v2903_v50, 1  ;;  %v2905_v27 = vpop.eup %2904 }
 0x526   :  { %v1974_v57 = vperm.slane %v2903_v50, 2  ;;  %v1975_v44 = vperm.slane %v2903_v50, 3  ;;  %v1976_v62 = vperm.slane %v2903_v50, 4  ;;  %v1979_v63 = vperm.slane %v2903_v50, 7 }
 0x527   :  { %v1998_v47 = vmul.f32 %v4595_v23, %v1978_v8  ;;  %v1997_v34 = vmul.f32 %v4598_v54, %v1977_v2  ;;  %v1992_v55 = vmul.f32 %v4586_v24, %v1972_v31  ;;  %v1993_v59 = vmul.f32 %v4589_v0, %v1973_v15  ;;  %v2805_v23 = vld [vmem:[%s5074_s17] sm:$0xf]  ;;  %v2837_v24 = vld [vmem:[%s5074_s17] sm:$0x10] }
 0x528   :  { %v1994_v56 = vmul.f32 %v4601_v41, %v1974_v57  ;;  %v2806_v54 = vor.u32 %v2837_v24, %v2805_v23  ;;  %v1995_v0 = vmul.f32 %v4584_v19, %v1975_v44  ;;  %v1996_v41 = vmul.f32 %v4620_v10, %v1976_v62  ;;  %v2836_v10 = vld [vmem:[%s5075_s8 + $0x18] sm:$0xff] }
 0x529   :  { %2034 = vperm.xlu1 %2851, %v1998_v47   ;;  %2029 = vperm.xlu0 %2852, %v1997_v34   ;;  %v1999_v61 = vmul.f32 %v4623_v14, %v1979_v63  ;;  %v1980_v60 = vperm.slane %v2905_v27, 0  ;;  %v1981_v17 = vperm.slane %v2905_v27, 1  ;;  %v2835_v14 = vld [vmem:[%s5075_s8 + $0x10] sm:$0xff] }
 0x52a   :  { %2004 = vperm.xlu2 %2853, %v1992_v55   ;;  %2180 = vmatpush.bf16.msra.mxu3 %v2836_v10 }
 0x52b   :  { %v2000_v38 = vmul.f32 %v4612_v33, %v1980_v60  ;;  %v2001_v9 = vmul.f32 %v4609_v52, %v1981_v17  ;;  %v2834_v33 = vld [vmem:[%s5075_s8 + $0x8] sm:$0xff]  ;;  %v2833_v52 = vld [vmem:[%s5075_s8] sm:$0xff] }
 0x52e   :  { %2181 = vmatpush.bf16.msra.mxu3 %v2835_v14 }
 0x531   :  { %2137 = vrot.lane.b32.xlu1 %v2136_v58, %s2995_s19  ;;  %2249 = vrot.lane.b32.xlu0 %v2806_v54, %s2995_s19 }
 0x532   :  { %2009 = vperm.xlu2 %2853, %v1993_v59   ;;  %2182 = vmatpush.bf16.msra.mxu3 %v2834_v33 }
 0x536   :  { %2183 = vmatpush.bf16.msra.mxu3 %v2833_v52 }
 0x53a   :  { %2014 = vperm.xlu2 %2853, %v1994_v56  }
 0x542   :  { %2019 = vperm.xlu2 %2853, %v1995_v0  }
 0x54a   :  { %2024 = vperm.xlu2 %2853, %v1996_v41   ;;  %v2841_v41 = vld [vmem:[%s5076_s28 + $0x18] sm:$0xff] }
 0x54b   :  { %2292 = vmatpush.bf16.msrb.mxu0 %v2841_v41 }
 0x552   :  { %2039 = vperm.xlu2 %2853, %v1999_v61  }
 0x55a   :  { %2044 = vperm.xlu2 %2853, %v2000_v38  }
 0x562   :  { %2049 = vperm.xlu2 %2853, %v2001_v9  }
 0x584   :  { %v2005_v19 = vpop.permute.xlu2 %2004 }
 0x585   :  { %v2052_v32 = vmul.f32 %v2920_v29, %v2005_v19 }
 0x587   :  { %v2062_v39 = vsel %vm128_vm0, %v2052_v32, 0.0 }
 0x588   :  { %v2063_v51 = vrot.slane %v2062_v39, 4 }
 0x58a   :  { %v2064_v55 = vadd.f32 %v2063_v51, %v2062_v39 }
 0x58c   :  { %v2010_v5 = vpop.permute.xlu2 %2009  ;;  %v2065_v23 = vrot.slane %v2064_v55, 2 }
 0x58d   :  { %v2053_v11 = vmul.f32 %v2010_v5, %v4414_v49 }
 0x58e   :  { %v2066_v61 = vadd.f32 %v2065_v23, %v2064_v55 }
 0x58f   :  { %v2069_v26 = vsel %vm128_vm0, %v2053_v11, 0.0 }
 0x590   :  { %v2070_v49 = vrot.slane %v2069_v26, 4  ;;  %v2067_v33 = vrot.slane %v2066_v61, 1 }
 0x592   :  { %v2071_v2 = vadd.f32 %v2070_v49, %v2069_v26  ;;  %v2068_v26 = vadd.f32 %v2067_v33, %v2066_v61 }
 0x594   :  { %v2015_v45 = vpop.permute.xlu2 %2014  ;;  %v2072_v58 = vrot.slane %v2071_v2, 2 }
 0x595   :  { %v2054_v22 = vmul.f32 %v2919_v12, %v2015_v45 }
 0x596   :  { %v2073_v0 = vadd.f32 %v2072_v58, %v2071_v2 }
 0x597   :  { %v2076_v20 = vsel %vm128_vm0, %v2054_v22, 0.0 }
 0x598   :  { %v2077_v21 = vrot.slane %v2076_v20, 4  ;;  %v2074_v9 = vrot.slane %v2073_v0, 1 }
 0x59a   :  { %v2078_v47 = vadd.f32 %v2077_v21, %v2076_v20  ;;  %v2075_v22 = vadd.f32 %v2074_v9, %v2073_v0 }
 0x59b   :  { %v2035_v16 = vpop.permute.xlu1 %2034  ;;  %v2030_v13 = vpop.permute.xlu0 %2029 }
 0x59c   :  { %v2020_v53 = vpop.permute.xlu2 %2019  ;;  %v2058_v31 = vmul.f32 %v2035_v16, %v4432_v28  ;;  %v2079_v57 = vrot.slane %v2078_v47, 2  ;;  %v2839_v16 = vld [vmem:[%s5076_s28 + $0x8] sm:$0xff] }
 0x59d   :  { %v2055_v35 = vmul.f32 %v2020_v53, %v4420_v4  ;;  %v2057_v4 = vmul.f32 %v2030_v13, %v4423_v7  ;;  %v2838_v13 = vld [vmem:[%s5076_s28] sm:$0xff] }
 0x59e   :  { %v2104_v7 = vsel %vm128_vm0, %v2058_v31, 0.0  ;;  %v2080_v63 = vadd.f32 %v2079_v57, %v2078_v47 }
 0x59f   :  { %v2083_v43 = vsel %vm128_vm0, %v2055_v35, 0.0  ;;  %v2097_v34 = vsel %vm128_vm0, %v2057_v4, 0.0  ;;  %v2105_v54 = vrot.slane %v2104_v7, 4 }
 0x5a0   :  { %v2084_v37 = vrot.slane %v2083_v43, 4  ;;  %v2081_v5 = vrot.slane %v2080_v63, 1 }
 0x5a1   :  { %v2106_v38 = vadd.f32 %v2105_v54, %v2104_v7 }
 0x5a2   :  { %v2085_v42 = vadd.f32 %v2084_v37, %v2083_v43  ;;  %v2082_v35 = vadd.f32 %v2081_v5, %v2080_v63 }
 0x5a3   :  { %v2138_v46 = vpop.permute.xlu1 %2137  ;;  %v2107_v53 = vrot.slane %v2106_v38, 2 }
 0x5a4   :  { %v2025_v48 = vpop.permute.xlu2 %2024  ;;  %v2141_v3 = vsel %vm128_vm0, %v2132_v36, %v2138_v46  ;;  %v2086_v24 = vrot.slane %v2085_v42, 2  ;;  %v2194_v46 = vpack.c.bf16 %v2075_v22, %v2075_v22  ;;  %v2195_v21 = vpack.c.bf16 %v2082_v35, %v2082_v35 }
 0x5a5   :  { %v2056_v50 = vmul.f32 %v2025_v48, %v4417_v1  ;;  %2802 = vmatmul.msk.bf16.vlgmr.msra.gmra.mxu3 %vm1701_vm14, %v2141_v3  ;;  %v2098_v1 = vrot.slane %v2097_v34, 4  ;;  %v2108_v39 = vadd.f32 %v2107_v53, %v2106_v38 }
 0x5a6   :  { %v2087_v27 = vadd.f32 %v2086_v24, %v2085_v42  ;;  %v2216_v47 = vperm.slane %v2194_v46, 0 }
 0x5a7   :  { %v2090_v8 = vsel %vm128_vm0, %v2056_v50, 0.0  ;;  %v2099_v62 = vadd.f32 %v2098_v1, %v2097_v34  ;;  %v2193_v50 = vpack.c.bf16 %v2068_v26, %v2068_v26  ;;  %v2109_v2 = vrot.slane %v2108_v39, 1 }
 0x5a8   :  { %v2091_v25 = vrot.slane %v2090_v8, 4  ;;  %v2088_v45 = vrot.slane %v2087_v27, 1 }
 0x5a9   :  { %v2100_v19 = vrot.slane %v2099_v62, 2  ;;  %v2215_v58 = vperm.slane %v2193_v50, 0  ;;  %v2110_v57 = vadd.f32 %v2109_v2, %v2108_v39 }
 0x5aa   :  { %v2092_v15 = vadd.f32 %v2091_v25, %v2090_v8  ;;  %v2089_v36 = vadd.f32 %v2088_v45, %v2087_v27 }
 0x5ab   :  { %v2101_v29 = vadd.f32 %v2100_v19, %v2099_v62  ;;  %v2199_v41 = vpack.c.bf16 %v2110_v57, %v2110_v57 }
 0x5ac   :  { %v2040_v59 = vpop.permute.xlu2 %2039  ;;  %v2093_v44 = vrot.slane %v2092_v15, 2  ;;  %v2196_v51 = vpack.c.bf16 %v2089_v36, %v2089_v36 }
 0x5ad   :  { %v2059_v56 = vmul.f32 %v2040_v59, %v4428_v18  ;;  %v2840_v18 = vld [vmem:[%s5076_s28 + $0x10] sm:$0xff]  ;;  %v2102_v49 = vrot.slane %v2101_v29, 1 }
 0x5ae   :  { %v2094_v17 = vadd.f32 %v2093_v44, %v2092_v15  ;;  %2293 = vmatpush.bf16.msrb.mxu0 %v2840_v18  ;;  %v2217_v15 = vperm.slane %v2195_v21, 0  ;;  %v2218_v7 = vperm.slane %v2196_v51, 0 }
 0x5af   :  { %v2111_v28 = vsel %vm128_vm0, %v2059_v56, 0.0  ;;  %v2103_v34 = vadd.f32 %v2102_v49, %v2101_v29  ;;  %v2226_v56 = vunpack.c.l.b16 %v2216_v47 }
 0x5b0   :  { %v2112_v6 = vrot.slane %v2111_v28, 4  ;;  %v2095_v11 = vrot.slane %v2094_v17, 1  ;;  %v2227_v44 = vunpack.c.l.b16 %v2217_v15  ;;  %v2228_v0 = vunpack.c.l.b16 %v2218_v7 }
 0x5b1   :  { %v2198_v23 = vpack.c.bf16 %v2103_v34, %v2103_v34 }
 0x5b2   :  { %v2113_v60 = vadd.f32 %v2112_v6, %v2111_v28  ;;  %2294 = vmatpush.bf16.msrb.mxu0 %v2839_v16  ;;  %v2096_v43 = vadd.f32 %v2095_v11, %v2094_v17  ;;  %v2225_v28 = vunpack.c.l.b16 %v2215_v58 }
 0x5b3   :  { %v2220_v27 = vperm.slane %v2198_v23, 0 }
 0x5b4   :  { %v2045_v10 = vpop.permute.xlu2 %2044  ;;  %v2114_v52 = vrot.slane %v2113_v60, 2  ;;  %v2197_v31 = vpack.c.bf16 %v2096_v43, %v2096_v43  ;;  %v2235_v61 = vsel %vm1214_vm4, %v2226_v56, %v2225_v28 }
 0x5b5   :  { %v2060_v14 = vmul.f32 %v2045_v10, %v4435_v30  ;;  %v2236_v38 = vsel %vm1216_vm5, %v2227_v44, %v2235_v61  ;;  %v2221_v10 = vperm.slane %v2199_v41, 0 }
 0x5b6   :  { %v2115_v20 = vadd.f32 %v2114_v52, %v2113_v60  ;;  %2295 = vmatpush.bf16.msrb.mxu0 %v2838_v13  ;;  %v2237_v17 = vsel %vm1218_vm6, %v2228_v0, %v2236_v38 }
 0x5b7   :  { %v2118_v12 = vsel %vm128_vm0, %v2060_v14, 0.0  ;;  %v2230_v14 = vunpack.c.l.b16 %v2220_v27  ;;  %v2231_v11 = vunpack.c.l.b16 %v2221_v10 }
 0x5b8   :  { %v2119_v32 = vrot.slane %v2118_v12, 4  ;;  %v2116_v37 = vrot.slane %v2115_v20, 1 }
 0x5ba   :  { %v2120_v30 = vadd.f32 %v2119_v32, %v2118_v12  ;;  %v2117_v1 = vadd.f32 %v2116_v37, %v2115_v20  ;;  %v2250_v32 = vpop.permute.xlu0 %2249 }
 0x5bc   :  { %v2121_v48 = vrot.slane %v2120_v30, 2  ;;  %v2050_v3 = vpop.permute.xlu2 %2049  ;;  %v2200_v62 = vpack.c.bf16 %v2117_v1, %v2117_v1 }
 0x5bd   :  { %v2061_v4 = vmul.f32 %v2050_v3, %v4442_v40  ;;  %v2219_v40 = vperm.slane %v2197_v31, 0 }
 0x5be   :  { %v2122_v8 = vadd.f32 %v2121_v48, %v2120_v30  ;;  %v2222_v9 = vperm.slane %v2200_v62, 0 }
 0x5bf   :  { %v2125_v25 = vsel %vm128_vm0, %v2061_v4, 0.0  ;;  %v2229_v63 = vunpack.c.l.b16 %v2219_v40 }
 0x5c0   :  { %v2123_v55 = vrot.slane %v2122_v8, 1  ;;  %v2126_v42 = vrot.slane %v2125_v25, 4  ;;  %v2232_v52 = vunpack.c.l.b16 %v2222_v9 }
 0x5c1   :  { %v2238_v5 = vsel %vm1220_vm7, %v2229_v63, %v2237_v17 }
 0x5c2   :  { %v2127_v59 = vadd.f32 %v2126_v42, %v2125_v25  ;;  %v2124_v24 = vadd.f32 %v2123_v55, %v2122_v8  ;;  %v2239_v53 = vsel %vm1222_vm8, %v2230_v14, %v2238_v5 }
 0x5c3   :  { %v2240_v29 = vsel %vm1835_vm10, %v2231_v11, %v2239_v53 }
 0x5c4   :  { %v2128_v54 = vrot.slane %v2127_v59, 2  ;;  %v2201_v60 = vpack.c.bf16 %v2124_v24, %v2124_v24  ;;  %v2241_v35 = vsel %vm1837_vm11, %v2232_v52, %v2240_v29 }
 0x5c6   :  { %v2129_v6 = vadd.f32 %v2128_v54, %v2127_v59  ;;  %v2223_v33 = vperm.slane %v2201_v60, 0 }
 0x5c8   :  { %v2130_v18 = vrot.slane %v2129_v6, 1  ;;  %v2233_v12 = vunpack.c.l.b16 %v2223_v33 }
 0x5ca   :  { %v2131_v19 = vadd.f32 %v2130_v18, %v2129_v6 }
 0x5cc   :  { %v2202_v45 = vpack.c.bf16 %v2131_v19, %v2131_v19 }
 0x5ce   :  { %v2224_v16 = vperm.slane %v2202_v45, 0 }
 0x5d0   :  { %v2234_v22 = vunpack.c.l.b16 %v2224_v16 }
 0x5d2   :  { %v2242_v26 = vsel %vm1214_vm4, %v2234_v22, %v2233_v12 }
 0x5d3   :  { %v2243_v36 = vpack.c.b16 %v2242_v26, %v2241_v35 }
 0x5d5   :  { %v2253_v20 = vsel %vm128_vm0, %v2243_v36, %v2250_v32 }
 0x5d6   :  { %2823 = vmatmul.msk.bf16.vlgmr.msrb.gmra.mxu0 %vm1701_vm14, %v2253_v20 }
 0x628   :  { %v2185_v30 = vpop.f32.mrf.mxu3 }
 0x629   :  { %2906 = vtanh.f32 %v2185_v30 }
 0x62f   :  { %v2907_v13 = vpop.eup %2906 }
 0x630   :  { %v2190_v39 = vpack.c.bf16 %v2907_v13, %v2907_v13  ;;  %v2187_v43 = vpop.f32.mrf.mxu3 }
 0x632   :  { %2192 = vst.msk [vmem:[%s5077_s16] sm:$0x7] %vm2191_vm15, %v2190_v39 }
 0x653   :  { %v2297_v46 = vpop.f32.mrf.mxu0 }
 0x654   :  { %2908 = vtanh.f32 %v2297_v46 }
 0x65a   :  { %v2909_v49 = vpop.eup %2908 }
 0x65b   :  { %v2304_v48 = vpack.c.bf16 %v2909_v49, %v2909_v49  ;;  %v2299_v3 = vpop.f32.mrf.mxu0 }
 0x65c   :  { %2910 = vtanh.f32 %v2299_v3 }
 0x65d   :  { %2307 = vst.msk [vmem:[%s5078_s22] sm:$0xf] %vm2306_vm2, %v2304_v48 }
 0x662   :  { %v2911_v21 = vpop.eup %2910 }
 0x663   :  { %v2305_v4 = vpack.c.bf16 %v2911_v21, %v2911_v21 }
 0x665   :  { %2308 = vst.msk [vmem:[%s5078_s22 + $0x4] sm:$0x1] %vm193_vm1, %v2305_v4 }
 0x666   :  { %2317 = vsyncpa [#allocation11], 1 }
 0x667   :  { %2318 = vsyncpa [#allocation13], 1 }
 0x668   :  { %2319 = vsyncpa [#allocation16], 1 }

</bundles_post_ra>
